<compile_context>
chip_gen: v6e
topology: v6e:2x2x1
jax: 0.10.0
libtpu: 0.0.40
codegen_flags: <defaults>
</compile_context>

<pallas_src>
import functools
import math

import jax
import jax.numpy as jnp
from jax import lax
from jax.experimental import pallas as pl
from jax.experimental.pallas import tpu as pltpu

# ---------------- model hyper-params (small, consistent with the module) ----------------
EMBEDDING_SIZE = 32          # d_model
NUM_HEADS = 4
HEAD_DIM = EMBEDDING_SIZE // NUM_HEADS
NUM_ENCODER_LAYERS = 2
NUM_DECODER_LAYERS = 2
FORWARD_EXPANSION = 64       # nn.Transformer dim_feedforward (passed positionally in the module)
SRC_VOCAB_SIZE = 50
TGT_VOCAB_SIZE = 60
SRC_PAD_IDX = 1
MAX_LEN = 16
LN_EPS = 1e-5
NEG_INF = -1e30              # additive mask value (rows always have >=1 valid key)
LANES = 128                  # lane-dense padded width (slabs, qkv intermediates, vocab logits)

E, F = EMBEDDING_SIZE, FORWARD_EXPANSION

# ---------------- packed per-layer slab row offsets ----------------
# encoder layer slab: [wqkv | wo | w1 | w2 | 8 vector rows]  -> [168, 128]
ENC_WQKV, ENC_WO, ENC_W1, ENC_W2 = 0, E, 2 * E, 3 * E
ENC_VEC = 3 * E + F                      # rows: bqkv,bo,b1,b2,ln1g,ln1b,ln2g,ln2b
ENC_ROWS = ENC_VEC + 8                   # 168
# decoder layer slab: [swqkv | swo | cwq | cwkv | cwo | w1 | w2 | 16 vector rows] -> [272, 128]
DEC_SWQKV, DEC_SWO, DEC_CWQ, DEC_CWKV, DEC_CWO, DEC_W1, DEC_W2 = (
    0, E, 2 * E, 3 * E, 4 * E, 5 * E, 6 * E)
DEC_VEC = 6 * E + F                      # 13 used vector rows (+3 zero pad)
DEC_ROWS = DEC_VEC + 16                  # 272
# final slab: [dense_w | enc_norm_g, enc_norm_b, dec_norm_g, dec_norm_b, dense_b, pad] -> [40, 128]
FIN_W, FIN_VEC = 0, E
FIN_ROWS = FIN_VEC + 8                   # 40


# ---------------- in-kernel helpers (traced inside the fused Pallas body) ----------------
def _ln(x, g, b):
    """LayerNorm over last dim; x [M,E] f32, g/b [1,E]."""
    mean = jnp.mean(x, axis=-1, keepdims=True)
    var = jnp.mean((x - mean) ** 2, axis=-1, keepdims=True)
    return (x - mean) * lax.rsqrt(var + LN_EPS) * g + b


def _mha(q, k, v, wo, bo, mask, N, Sq, Sk):
    """Multi-head attention over flat batch-major activations.

    q: [N*Sq, E], k/v: [N*Sk, E]; wo: [E,E]; bo: [1,E];
    mask: additive, broadcastable to [N*H, Sq, Sk], or None.
    One batched score dot_general + one batched softmax + one batched context dot_general
    + one output-projection matmul (instead of 16 unrolled micro-matmuls).
    """
    H, Dh = NUM_HEADS, HEAD_DIM
    scale = 1.0 / math.sqrt(Dh)
    # (batch, head)-major stacks [N*H, S, Dh] — layout glue (VPU/XLU), no extra MXU pushes.
    qh = jnp.concatenate(
        [q[n * Sq:(n + 1) * Sq, h * Dh:(h + 1) * Dh][None]
         for n in range(N) for h in range(H)], axis=0)
    kh = jnp.concatenate(
        [k[n * Sk:(n + 1) * Sk, h * Dh:(h + 1) * Dh][None]
         for n in range(N) for h in range(H)], axis=0)
    vh = jnp.concatenate(
        [v[n * Sk:(n + 1) * Sk, h * Dh:(h + 1) * Dh][None]
         for n in range(N) for h in range(H)], axis=0)

    s = lax.dot_general(qh, kh, (((2,), (2,)), ((0,), (0,))),
                        preferred_element_type=jnp.float32) * scale       # [N*H, Sq, Sk]
    if mask is not None:
        s = s + mask
    s = s - jnp.max(s, axis=-1, keepdims=True)
    p = jnp.exp(s)
    p = p / jnp.sum(p, axis=-1, keepdims=True)                            # exact softmax
    ctx = lax.dot_general(p, vh, (((2,), (1,)), ((0,), (0,))),
                          preferred_element_type=jnp.float32)             # [N*H, Sq, Dh]

    # reassemble [N*Sq, E]: lane-concat heads per batch, sublane-concat over batches.
    rows = [jnp.concatenate([ctx[n * H + h] for h in range(H)], axis=-1) for n in range(N)]
    ctx_flat = jnp.concatenate(rows, axis=0) if N > 1 else rows[0]
    return jnp.dot(ctx_flat, wo, preferred_element_type=jnp.float32) + bo


def _encoder_layer(x, slab, mask, N, S):
    """One post-norm encoder layer; all weights sliced from one packed slab ref."""
    wqkv = slab[ENC_WQKV:ENC_WQKV + E, :]            # [E,128] (cols 0:3E real)
    wo = slab[ENC_WO:ENC_WO + E, :E]
    w1 = slab[ENC_W1:ENC_W1 + E, :F]
    w2 = slab[ENC_W2:ENC_W2 + F, :E]
    vec = slab[ENC_VEC:ENC_VEC + 8, :]               # [8,128]
    bqkv = vec[0:1, :]                               # zero-padded beyond 3E
    bo, b1, b2 = vec[1:2, :E], vec[2:3, :F], vec[3:4, :E]
    g1, be1, g2, be2 = vec[4:5, :E], vec[5:6, :E], vec[6:7, :E], vec[7:8, :E]

    qkv = jnp.dot(x, wqkv, preferred_element_type=jnp.float32) + bqkv     # [N*S,128] lane-dense
    attn = _mha(qkv[:, :E], qkv[:, E:2 * E], qkv[:, 2 * E:3 * E], wo, bo, mask, N, S, S)
    x = _ln(x + attn, g1, be1)
    h = jnp.maximum(jnp.dot(x, w1, preferred_element_type=jnp.float32) + b1, 0.0)
    f = jnp.dot(h, w2, preferred_element_type=jnp.float32) + b2
    return _ln(x + f, g2, be2)


def _decoder_layer(y, memory, slab, causal, N, St, Ss):
    """One post-norm decoder layer (causal self-attn + unmasked cross-attn + FFN)."""
    swqkv = slab[DEC_SWQKV:DEC_SWQKV + E, :]
    swo = slab[DEC_SWO:DEC_SWO + E, :E]
    cwq = slab[DEC_CWQ:DEC_CWQ + E, :E]
    cwkv = slab[DEC_CWKV:DEC_CWKV + E, :]            # [E,128] (cols 0:2E real)
    cwo = slab[DEC_CWO:DEC_CWO + E, :E]
    w1 = slab[DEC_W1:DEC_W1 + E, :F]
    w2 = slab[DEC_W2:DEC_W2 + F, :E]
    vec = slab[DEC_VEC:DEC_VEC + 16, :]
    sbqkv = vec[0:1, :]
    sbo, cbq = vec[1:2, :E], vec[2:3, :E]
    cbkv = vec[3:4, :]                               # zero-padded beyond 2E
    cbo, b1, b2 = vec[4:5, :E], vec[5:6, :F], vec[6:7, :E]
    g1, be1 = vec[7:8, :E], vec[8:9, :E]
    g2, be2 = vec[9:10, :E], vec[10:11, :E]
    g3, be3 = vec[11:12, :E], vec[12:13, :E]

    # --- causal self-attention ---
    qkv = jnp.dot(y, swqkv, preferred_element_type=jnp.float32) + sbqkv
    attn = _mha(qkv[:, :E], qkv[:, E:2 * E], qkv[:, 2 * E:3 * E], swo, sbo, causal, N, St, St)
    y = _ln(y + attn, g1, be1)

    # --- cross-attention over encoder memory (memory_key_padding_mask=None => unmasked) ---
    q = jnp.dot(y, cwq, preferred_element_type=jnp.float32) + cbq
    kv = jnp.dot(memory, cwkv, preferred_element_type=jnp.float32) + cbkv  # [N*Ss,128]
    attn = _mha(q, kv[:, :E], kv[:, E:2 * E], cwo, cbo, None, N, St, Ss)
    y = _ln(y + attn, g2, be2)

    # --- feed-forward ---
    h = jnp.maximum(jnp.dot(y, w1, preferred_element_type=jnp.float32) + b1, 0.0)
    f = jnp.dot(h, w2, preferred_element_type=jnp.float32) + b2
    return _ln(y + f, g3, be3)


# ---------------- the single fused kernel ----------------
def _fused_transformer_kernel(x_ref, y_ref, pad_ref, *refs, N, Ss, St, n_enc, n_dec):
    enc_refs = refs[:n_enc]
    dec_refs = refs[n_enc:n_enc + n_dec]
    fin_ref = refs[n_enc + n_dec]
    o_ref = refs[n_enc + n_dec + 1]
    H = NUM_HEADS

    x = x_ref[...].astype(jnp.float32)                # [N*Ss, E] embedded src
    y = y_ref[...].astype(jnp.float32)                # [N*St, E] embedded tgt
    pad = pad_ref[...]                                # [N, Ss] additive (0 / NEG_INF)

    # masks built ONCE per kernel, reused by every layer
    enc_mask = jnp.concatenate(
        [jnp.broadcast_to(pad[n:n + 1, :], (Ss, Ss))[None]
         for n in range(N) for _ in range(H)], axis=0)                     # [N*H, Ss, Ss]
    row = lax.broadcasted_iota(jnp.int32, (St, St), 0)
    col = lax.broadcasted_iota(jnp.int32, (St, St), 1)
    causal = jnp.where(row >= col, 0.0, NEG_INF).astype(jnp.float32)[None]  # [1, St, St]

    # --- encoder stack ---
    for enc_ref in enc_refs:
        x = _encoder_layer(x, enc_ref, enc_mask, N, Ss)
    fvec = fin_ref[FIN_VEC:FIN_VEC + 8, :]
    memory = _ln(x, fvec[0:1, :E], fvec[1:2, :E])     # final encoder-stack LayerNorm

    # --- decoder stack ---
    for dec_ref in dec_refs:
        y = _decoder_layer(y, memory, dec_ref, causal, N, St, Ss)
    y = _ln(y, fvec[2:3, :E], fvec[3:4, :E])          # final decoder-stack LayerNorm

    # --- vocab projection (lane-dense 128-wide; real cols = 0:TGT_VOCAB_SIZE) ---
    logits = (jnp.dot(y, fin_ref[FIN_W:FIN_W + E, :], preferred_element_type=jnp.float32)
              + fvec[4:5, :])
    o_ref[...] = logits.astype(o_ref.dtype)


def fused_transformer(x2d, y2d, pad_add, enc_slabs, dec_slabs, fin_slab, *, N, Ss, St):
    n_in = 3 + len(enc_slabs) + len(dec_slabs) + 1

    def vmem_spec():
        return pl.BlockSpec(memory_space=pltpu.MemorySpace.VMEM)

    return pl.pallas_call(
        functools.partial(_fused_transformer_kernel, N=N, Ss=Ss, St=St,
                          n_enc=len(enc_slabs), n_dec=len(dec_slabs)),
        out_shape=jax.ShapeDtypeStruct((N * St, LANES), jnp.float32),
        in_specs=[vmem_spec() for _ in range(n_in)],
        out_specs=vmem_spec(),
    )(x2d, y2d, pad_add, *enc_slabs, *dec_slabs, fin_slab)


# ---------------- full forward pass (embeddings / gathers are XLA glue) ----------------
def transformer_forward(packed, src, tgt):
    Ss, N = src.shape
    St, _ = tgt.shape

    # batch-major token tables (per-batch rows contiguous in the [N*S, E] slabs)
    src_bm = src.T
    tgt_bm = tgt.T
    src_pos = jnp.broadcast_to(jnp.arange(Ss)[None, :], (N, Ss))
    tgt_pos = jnp.broadcast_to(jnp.arange(St)[None, :], (N, St))

    # word + position embeddings (dropout = identity / eval mode)
    x = (jnp.take(packed["src_word_emb"], src_bm, axis=0)
         + jnp.take(packed["src_pos_emb"], src_pos, axis=0)).reshape(N * Ss, E)
    y = (jnp.take(packed["tgt_word_emb"], tgt_bm, axis=0)
         + jnp.take(packed["tgt_pos_emb"], tgt_pos, axis=0)).reshape(N * St, E)

    # tiny [N, Ss] additive key-padding mask (the only mask DMA'd into the kernel)
    pad_add = jnp.where(src_bm == SRC_PAD_IDX, NEG_INF, 0.0).astype(jnp.float32)

    out = fused_transformer(x, y, pad_add, packed["enc_slabs"], packed["dec_slabs"],
                            packed["fin_slab"], N=N, Ss=Ss, St=St)        # [N*St, 128]
    out = out[:, :TGT_VOCAB_SIZE].reshape(N, St, TGT_VOCAB_SIZE).transpose(1, 0, 2)
    return out                                                            # [St, N, V]


# ---------------- parameter init + slab packing ----------------
def _pad_lanes(a):
    return jnp.pad(a, ((0, 0), (0, LANES - a.shape[1])))


def _vec_row(v):
    v = jnp.asarray(v, jnp.float32).reshape(1, -1)
    return jnp.pad(v, ((0, 0), (0, LANES - v.shape[1])))


def _pack_enc_layer(lp):
    sa = lp["self"]
    slab = jnp.concatenate(
        [_pad_lanes(sa["wqkv"]), _pad_lanes(sa["wo"]), _pad_lanes(lp["w1"]), _pad_lanes(lp["w2"]),
         _vec_row(sa["bqkv"]), _vec_row(sa["bo"]), _vec_row(lp["b1"]), _vec_row(lp["b2"]),
         _vec_row(lp["ln1_g"]), _vec_row(lp["ln1_b"]), _vec_row(lp["ln2_g"]), _vec_row(lp["ln2_b"])],
        axis=0)
    assert slab.shape == (ENC_ROWS, LANES)
    return slab


def _pack_dec_layer(lp):
    sa, ca = lp["self"], lp["cross"]
    slab = jnp.concatenate(
        [_pad_lanes(sa["wqkv"]), _pad_lanes(sa["wo"]),
         _pad_lanes(ca["wq"]), _pad_lanes(ca["wkv"]), _pad_lanes(ca["wo"]),
         _pad_lanes(lp["w1"]), _pad_lanes(lp["w2"]),
         _vec_row(sa["bqkv"]), _vec_row(sa["bo"]),
         _vec_row(ca["bq"]), _vec_row(ca["bkv"]), _vec_row(ca["bo"]),
         _vec_row(lp["b1"]), _vec_row(lp["b2"]),
         _vec_row(lp["ln1_g"]), _vec_row(lp["ln1_b"]),
         _vec_row(lp["ln2_g"]), _vec_row(lp["ln2_b"]),
         _vec_row(lp["ln3_g"]), _vec_row(lp["ln3_b"]),
         jnp.zeros((3, LANES), jnp.float32)],
        axis=0)
    assert slab.shape == (DEC_ROWS, LANES)
    return slab


def _pack_final(params):
    slab = jnp.concatenate(
        [_pad_lanes(params["dense_w"]),
         _vec_row(params["enc_norm_g"]), _vec_row(params["enc_norm_b"]),
         _vec_row(params["dec_norm_g"]), _vec_row(params["dec_norm_b"]),
         _vec_row(params["dense_b"]),
         jnp.zeros((3, LANES), jnp.float32)],
        axis=0)
    assert slab.shape == (FIN_ROWS, LANES)
    return slab


def pack_params(params):
    return dict(
        src_word_emb=params["src_word_emb"], src_pos_emb=params["src_pos_emb"],
        tgt_word_emb=params["tgt_word_emb"], tgt_pos_emb=params["tgt_pos_emb"],
        enc_slabs=[_pack_enc_layer(lp) for lp in params["enc_layers"]],
        dec_slabs=[_pack_dec_layer(lp) for lp in params["dec_layers"]],
        fin_slab=_pack_final(params),
    )


def init_params(seed=0):
    keys = iter(jax.random.split(jax.random.PRNGKey(seed), 256))

    def nrm(shape, scale=0.02):
        return (scale * jax.random.normal(next(keys), shape)).astype(jnp.float32)

    def zeros(*s):
        return jnp.zeros(s, jnp.float32)

    def ones(*s):
        return jnp.ones(s, jnp.float32)

    def self_attn():
        return dict(wqkv=nrm((E, 3 * E)), bqkv=zeros(3 * E), wo=nrm((E, E)), bo=zeros(E))

    def cross_attn():
        return dict(wq=nrm((E, E)), bq=zeros(E), wkv=nrm((E, 2 * E)), bkv=zeros(2 * E),
                    wo=nrm((E, E)), bo=zeros(E))

    params = dict(
        src_word_emb=nrm((SRC_VOCAB_SIZE, E)), src_pos_emb=nrm((MAX_LEN, E)),
        tgt_word_emb=nrm((TGT_VOCAB_SIZE, E)), tgt_pos_emb=nrm((MAX_LEN, E)),
        enc_layers=[], dec_layers=[],
        enc_norm_g=ones(E), enc_norm_b=zeros(E),
        dec_norm_g=ones(E), dec_norm_b=zeros(E),
        dense_w=nrm((E, TGT_VOCAB_SIZE)), dense_b=zeros(TGT_VOCAB_SIZE),
    )
    for _ in range(NUM_ENCODER_LAYERS):
        params["enc_layers"].append(dict(
            self=self_attn(),
            w1=nrm((E, F)), b1=zeros(F), w2=nrm((F, E)), b2=zeros(E),
            ln1_g=ones(E), ln1_b=zeros(E), ln2_g=ones(E), ln2_b=zeros(E)))
    for _ in range(NUM_DECODER_LAYERS):
        params["dec_layers"].append(dict(
            self=self_attn(), cross=cross_attn(),
            w1=nrm((E, F)), b1=zeros(F), w2=nrm((F, E)), b2=zeros(E),
            ln1_g=ones(E), ln1_b=zeros(E), ln2_g=ones(E), ln2_b=zeros(E),
            ln3_g=ones(E), ln3_b=zeros(E)))
    return params


if __name__ == "__main__":
    params = init_params(seed=0)
    packed = pack_params(params)

    key = jax.random.PRNGKey(0)
    k_src, k_tgt = jax.random.split(key)
    Ss, St, N = 8, 8, 2
    src = jax.random.randint(k_src, (Ss, N), 2, SRC_VOCAB_SIZE).astype(jnp.int32)
    src = src.at[-2:, 0].set(SRC_PAD_IDX)   # pad the tail of batch 0
    tgt = jax.random.randint(k_tgt, (St, N), 2, TGT_VOCAB_SIZE).astype(jnp.int32)

    fwd = jax.jit(transformer_forward)
    out = fwd(packed, src, tgt)
    out = jax.block_until_ready(out)
    assert out.shape == (St, N, TGT_VOCAB_SIZE)
    assert bool(jnp.all(jnp.isfinite(out)))
    print("KERNEL_OK")
</pallas_src>

<mosaic_0001>
module attributes {stable_mosaic.version = 11 : i64} {
  func.func @_fused_transformer_kernel(%arg0: memref<16x32xf32, #tpu.memory_space<vmem>>, %arg1: memref<16x32xf32, #tpu.memory_space<vmem>>, %arg2: memref<2x8xf32, #tpu.memory_space<vmem>>, %arg3: memref<168x128xf32, #tpu.memory_space<vmem>>, %arg4: memref<168x128xf32, #tpu.memory_space<vmem>>, %arg5: memref<272x128xf32, #tpu.memory_space<vmem>>, %arg6: memref<272x128xf32, #tpu.memory_space<vmem>>, %arg7: memref<40x128xf32, #tpu.memory_space<vmem>>, %arg8: memref<16x128xf32, #tpu.memory_space<vmem>>) attributes {dimension_semantics = [], scalar_prefetch = 0 : i64, scratch_operands = 0 : i64, tpu.core_type = #tpu.core_type<tc>} {
    %c0 = arith.constant 0 : index
    %c0_0 = arith.constant 0 : index
    %0 = vector.load %arg0[%c0, %c0_0] : memref<16x32xf32, #tpu.memory_space<vmem>>, vector<16x32xf32>
    %c0_1 = arith.constant 0 : index
    %c0_2 = arith.constant 0 : index
    %1 = vector.load %arg1[%c0_1, %c0_2] : memref<16x32xf32, #tpu.memory_space<vmem>>, vector<16x32xf32>
    %c0_3 = arith.constant 0 : index
    %c0_4 = arith.constant 0 : index
    %2 = vector.load %arg2[%c0_3, %c0_4] : memref<2x8xf32, #tpu.memory_space<vmem>>, vector<2x8xf32>
    %3 = vector.extract_strided_slice %2 {offsets = [0, 0], sizes = [1, 8], strides = [1, 1]} : vector<2x8xf32> to vector<1x8xf32>
    %4 = vector.shape_cast %3 : vector<1x8xf32> to vector<1x8xf32>
    %5 = vector.broadcast %4 : vector<1x8xf32> to vector<8x8xf32>
    %6 = vector.shape_cast %5 : vector<8x8xf32> to vector<1x8x8xf32>
    %7 = vector.extract_strided_slice %2 {offsets = [0, 0], sizes = [1, 8], strides = [1, 1]} : vector<2x8xf32> to vector<1x8xf32>
    %8 = vector.shape_cast %7 : vector<1x8xf32> to vector<1x8xf32>
    %9 = vector.broadcast %8 : vector<1x8xf32> to vector<8x8xf32>
    %10 = vector.shape_cast %9 : vector<8x8xf32> to vector<1x8x8xf32>
    %11 = vector.extract_strided_slice %2 {offsets = [0, 0], sizes = [1, 8], strides = [1, 1]} : vector<2x8xf32> to vector<1x8xf32>
    %12 = vector.shape_cast %11 : vector<1x8xf32> to vector<1x8xf32>
    %13 = vector.broadcast %12 : vector<1x8xf32> to vector<8x8xf32>
    %14 = vector.shape_cast %13 : vector<8x8xf32> to vector<1x8x8xf32>
    %15 = vector.extract_strided_slice %2 {offsets = [0, 0], sizes = [1, 8], strides = [1, 1]} : vector<2x8xf32> to vector<1x8xf32>
    %16 = vector.shape_cast %15 : vector<1x8xf32> to vector<1x8xf32>
    %17 = vector.broadcast %16 : vector<1x8xf32> to vector<8x8xf32>
    %18 = vector.shape_cast %17 : vector<8x8xf32> to vector<1x8x8xf32>
    %19 = vector.extract_strided_slice %2 {offsets = [1, 0], sizes = [1, 8], strides = [1, 1]} : vector<2x8xf32> to vector<1x8xf32>
    %20 = vector.shape_cast %19 : vector<1x8xf32> to vector<1x8xf32>
    %21 = vector.broadcast %20 : vector<1x8xf32> to vector<8x8xf32>
    %22 = vector.shape_cast %21 : vector<8x8xf32> to vector<1x8x8xf32>
    %23 = vector.extract_strided_slice %2 {offsets = [1, 0], sizes = [1, 8], strides = [1, 1]} : vector<2x8xf32> to vector<1x8xf32>
    %24 = vector.shape_cast %23 : vector<1x8xf32> to vector<1x8xf32>
    %25 = vector.broadcast %24 : vector<1x8xf32> to vector<8x8xf32>
    %26 = vector.shape_cast %25 : vector<8x8xf32> to vector<1x8x8xf32>
    %27 = vector.extract_strided_slice %2 {offsets = [1, 0], sizes = [1, 8], strides = [1, 1]} : vector<2x8xf32> to vector<1x8xf32>
    %28 = vector.shape_cast %27 : vector<1x8xf32> to vector<1x8xf32>
    %29 = vector.broadcast %28 : vector<1x8xf32> to vector<8x8xf32>
    %30 = vector.shape_cast %29 : vector<8x8xf32> to vector<1x8x8xf32>
    %31 = vector.extract_strided_slice %2 {offsets = [1, 0], sizes = [1, 8], strides = [1, 1]} : vector<2x8xf32> to vector<1x8xf32>
    %32 = vector.shape_cast %31 : vector<1x8xf32> to vector<1x8xf32>
    %33 = vector.broadcast %32 : vector<1x8xf32> to vector<8x8xf32>
    %34 = vector.shape_cast %33 : vector<8x8xf32> to vector<1x8x8xf32>
    %35 = tpu.concatenate %6, %10, %14, %18, %22, %26, %30, %34 in 0 : vector<1x8x8xf32>, vector<1x8x8xf32>, vector<1x8x8xf32>, vector<1x8x8xf32>, vector<1x8x8xf32>, vector<1x8x8xf32>, vector<1x8x8xf32>, vector<1x8x8xf32> -> vector<8x8x8xf32>
    %36 = tpu.iota {dimensions = array<i32: 0>} : vector<8x8xi32>
    %37 = tpu.iota {dimensions = array<i32: 1>} : vector<8x8xi32>
    %38 = arith.cmpi sge, %36, %37 : vector<8x8xi32>
    %cst = arith.constant 0.000000e+00 : f32
    %cst_5 = arith.constant -1.000000e+30 : f32
    %39 = vector.broadcast %cst : f32 to vector<8x8xf32>
    %40 = vector.broadcast %cst_5 : f32 to vector<8x8xf32>
    %41 = arith.select %38, %39, %40 : vector<8x8xi1>, vector<8x8xf32>
    %42 = vector.shape_cast %41 : vector<8x8xf32> to vector<1x8x8xf32>
    %c0_6 = arith.constant 0 : index
    %c0_7 = arith.constant 0 : index
    %43 = vector.load %arg3[%c0_6, %c0_7] : memref<168x128xf32, #tpu.memory_space<vmem>>, vector<32x128xf32>
    %c32 = arith.constant 32 : index
    %c0_8 = arith.constant 0 : index
    %44 = vector.load %arg3[%c32, %c0_8] : memref<168x128xf32, #tpu.memory_space<vmem>>, vector<32x32xf32>
    %c64 = arith.constant 64 : index
    %c0_9 = arith.constant 0 : index
    %45 = vector.load %arg3[%c64, %c0_9] : memref<168x128xf32, #tpu.memory_space<vmem>>, vector<32x64xf32>
    %c96 = arith.constant 96 : index
    %c0_10 = arith.constant 0 : index
    %46 = vector.load %arg3[%c96, %c0_10] : memref<168x128xf32, #tpu.memory_space<vmem>>, vector<64x32xf32>
    %c160 = arith.constant 160 : index
    %c0_11 = arith.constant 0 : index
    %47 = vector.load %arg3[%c160, %c0_11] : memref<168x128xf32, #tpu.memory_space<vmem>>, vector<8x128xf32>
    %48 = vector.extract_strided_slice %47 {offsets = [0, 0], sizes = [1, 128], strides = [1, 1]} : vector<8x128xf32> to vector<1x128xf32>
    %49 = vector.extract_strided_slice %47 {offsets = [1, 0], sizes = [1, 32], strides = [1, 1]} : vector<8x128xf32> to vector<1x32xf32>
    %50 = vector.extract_strided_slice %47 {offsets = [2, 0], sizes = [1, 64], strides = [1, 1]} : vector<8x128xf32> to vector<1x64xf32>
    %51 = vector.extract_strided_slice %47 {offsets = [3, 0], sizes = [1, 32], strides = [1, 1]} : vector<8x128xf32> to vector<1x32xf32>
    %52 = vector.extract_strided_slice %47 {offsets = [4, 0], sizes = [1, 32], strides = [1, 1]} : vector<8x128xf32> to vector<1x32xf32>
    %53 = vector.extract_strided_slice %47 {offsets = [5, 0], sizes = [1, 32], strides = [1, 1]} : vector<8x128xf32> to vector<1x32xf32>
    %54 = vector.extract_strided_slice %47 {offsets = [6, 0], sizes = [1, 32], strides = [1, 1]} : vector<8x128xf32> to vector<1x32xf32>
    %55 = vector.extract_strided_slice %47 {offsets = [7, 0], sizes = [1, 32], strides = [1, 1]} : vector<8x128xf32> to vector<1x32xf32>
    %cst_12 = arith.constant dense<0.000000e+00> : vector<16x128xf32>
    %56 = tpu.matmul %0, %43, %cst_12 {dimension_numbers = #tpu.dot_dimension_numbers<[1], [0], [0], [1], [0, 0, 1, 1], [], []>} : vector<16x32xf32>, vector<32x128xf32>, vector<16x128xf32> -> vector<16x128xf32>
    %57 = vector.broadcast %48 : vector<1x128xf32> to vector<16x128xf32>
    %58 = arith.addf %56, %57 : vector<16x128xf32>
    %59 = vector.extract_strided_slice %58 {offsets = [0, 0], sizes = [16, 32], strides = [1, 1]} : vector<16x128xf32> to vector<16x32xf32>
    %60 = vector.extract_strided_slice %58 {offsets = [0, 32], sizes = [16, 32], strides = [1, 1]} : vector<16x128xf32> to vector<16x32xf32>
    %61 = vector.extract_strided_slice %58 {offsets = [0, 64], sizes = [16, 32], strides = [1, 1]} : vector<16x128xf32> to vector<16x32xf32>
    %62 = vector.extract_strided_slice %59 {offsets = [0, 0], sizes = [8, 8], strides = [1, 1]} : vector<16x32xf32> to vector<8x8xf32>
    %63 = vector.shape_cast %62 : vector<8x8xf32> to vector<1x8x8xf32>
    %64 = vector.extract_strided_slice %59 {offsets = [0, 8], sizes = [8, 8], strides = [1, 1]} : vector<16x32xf32> to vector<8x8xf32>
    %65 = vector.shape_cast %64 : vector<8x8xf32> to vector<1x8x8xf32>
    %66 = vector.extract_strided_slice %59 {offsets = [0, 16], sizes = [8, 8], strides = [1, 1]} : vector<16x32xf32> to vector<8x8xf32>
    %67 = vector.shape_cast %66 : vector<8x8xf32> to vector<1x8x8xf32>
    %68 = vector.extract_strided_slice %59 {offsets = [0, 24], sizes = [8, 8], strides = [1, 1]} : vector<16x32xf32> to vector<8x8xf32>
    %69 = vector.shape_cast %68 : vector<8x8xf32> to vector<1x8x8xf32>
    %70 = vector.extract_strided_slice %59 {offsets = [8, 0], sizes = [8, 8], strides = [1, 1]} : vector<16x32xf32> to vector<8x8xf32>
    %71 = vector.shape_cast %70 : vector<8x8xf32> to vector<1x8x8xf32>
    %72 = vector.extract_strided_slice %59 {offsets = [8, 8], sizes = [8, 8], strides = [1, 1]} : vector<16x32xf32> to vector<8x8xf32>
    %73 = vector.shape_cast %72 : vector<8x8xf32> to vector<1x8x8xf32>
    %74 = vector.extract_strided_slice %59 {offsets = [8, 16], sizes = [8, 8], strides = [1, 1]} : vector<16x32xf32> to vector<8x8xf32>
    %75 = vector.shape_cast %74 : vector<8x8xf32> to vector<1x8x8xf32>
    %76 = vector.extract_strided_slice %59 {offsets = [8, 24], sizes = [8, 8], strides = [1, 1]} : vector<16x32xf32> to vector<8x8xf32>
    %77 = vector.shape_cast %76 : vector<8x8xf32> to vector<1x8x8xf32>
    %78 = tpu.concatenate %63, %65, %67, %69, %71, %73, %75, %77 in 0 : vector<1x8x8xf32>, vector<1x8x8xf32>, vector<1x8x8xf32>, vector<1x8x8xf32>, vector<1x8x8xf32>, vector<1x8x8xf32>, vector<1x8x8xf32>, vector<1x8x8xf32> -> vector<8x8x8xf32>
    %79 = vector.extract_strided_slice %60 {offsets = [0, 0], sizes = [8, 8], strides = [1, 1]} : vector<16x32xf32> to vector<8x8xf32>
    %80 = vector.shape_cast %79 : vector<8x8xf32> to vector<1x8x8xf32>
    %81 = vector.extract_strided_slice %60 {offsets = [0, 8], sizes = [8, 8], strides = [1, 1]} : vector<16x32xf32> to vector<8x8xf32>
    %82 = vector.shape_cast %81 : vector<8x8xf32> to vector<1x8x8xf32>
    %83 = vector.extract_strided_slice %60 {offsets = [0, 16], sizes = [8, 8], strides = [1, 1]} : vector<16x32xf32> to vector<8x8xf32>
    %84 = vector.shape_cast %83 : vector<8x8xf32> to vector<1x8x8xf32>
    %85 = vector.extract_strided_slice %60 {offsets = [0, 24], sizes = [8, 8], strides = [1, 1]} : vector<16x32xf32> to vector<8x8xf32>
    %86 = vector.shape_cast %85 : vector<8x8xf32> to vector<1x8x8xf32>
    %87 = vector.extract_strided_slice %60 {offsets = [8, 0], sizes = [8, 8], strides = [1, 1]} : vector<16x32xf32> to vector<8x8xf32>
    %88 = vector.shape_cast %87 : vector<8x8xf32> to vector<1x8x8xf32>
    %89 = vector.extract_strided_slice %60 {offsets = [8, 8], sizes = [8, 8], strides = [1, 1]} : vector<16x32xf32> to vector<8x8xf32>
    %90 = vector.shape_cast %89 : vector<8x8xf32> to vector<1x8x8xf32>
    %91 = vector.extract_strided_slice %60 {offsets = [8, 16], sizes = [8, 8], strides = [1, 1]} : vector<16x32xf32> to vector<8x8xf32>
    %92 = vector.shape_cast %91 : vector<8x8xf32> to vector<1x8x8xf32>
    %93 = vector.extract_strided_slice %60 {offsets = [8, 24], sizes = [8, 8], strides = [1, 1]} : vector<16x32xf32> to vector<8x8xf32>
    %94 = vector.shape_cast %93 : vector<8x8xf32> to vector<1x8x8xf32>
    %95 = tpu.concatenate %80, %82, %84, %86, %88, %90, %92, %94 in 0 : vector<1x8x8xf32>, vector<1x8x8xf32>, vector<1x8x8xf32>, vector<1x8x8xf32>, vector<1x8x8xf32>, vector<1x8x8xf32>, vector<1x8x8xf32>, vector<1x8x8xf32> -> vector<8x8x8xf32>
    %96 = vector.extract_strided_slice %61 {offsets = [0, 0], sizes = [8, 8], strides = [1, 1]} : vector<16x32xf32> to vector<8x8xf32>
    %97 = vector.shape_cast %96 : vector<8x8xf32> to vector<1x8x8xf32>
    %98 = vector.extract_strided_slice %61 {offsets = [0, 8], sizes = [8, 8], strides = [1, 1]} : vector<16x32xf32> to vector<8x8xf32>
    %99 = vector.shape_cast %98 : vector<8x8xf32> to vector<1x8x8xf32>
    %100 = vector.extract_strided_slice %61 {offsets = [0, 16], sizes = [8, 8], strides = [1, 1]} : vector<16x32xf32> to vector<8x8xf32>
    %101 = vector.shape_cast %100 : vector<8x8xf32> to vector<1x8x8xf32>
    %102 = vector.extract_strided_slice %61 {offsets = [0, 24], sizes = [8, 8], strides = [1, 1]} : vector<16x32xf32> to vector<8x8xf32>
    %103 = vector.shape_cast %102 : vector<8x8xf32> to vector<1x8x8xf32>
    %104 = vector.extract_strided_slice %61 {offsets = [8, 0], sizes = [8, 8], strides = [1, 1]} : vector<16x32xf32> to vector<8x8xf32>
    %105 = vector.shape_cast %104 : vector<8x8xf32> to vector<1x8x8xf32>
    %106 = vector.extract_strided_slice %61 {offsets = [8, 8], sizes = [8, 8], strides = [1, 1]} : vector<16x32xf32> to vector<8x8xf32>
    %107 = vector.shape_cast %106 : vector<8x8xf32> to vector<1x8x8xf32>
    %108 = vector.extract_strided_slice %61 {offsets = [8, 16], sizes = [8, 8], strides = [1, 1]} : vector<16x32xf32> to vector<8x8xf32>
    %109 = vector.shape_cast %108 : vector<8x8xf32> to vector<1x8x8xf32>
    %110 = vector.extract_strided_slice %61 {offsets = [8, 24], sizes = [8, 8], strides = [1, 1]} : vector<16x32xf32> to vector<8x8xf32>
    %111 = vector.shape_cast %110 : vector<8x8xf32> to vector<1x8x8xf32>
    %112 = tpu.concatenate %97, %99, %101, %103, %105, %107, %109, %111 in 0 : vector<1x8x8xf32>, vector<1x8x8xf32>, vector<1x8x8xf32>, vector<1x8x8xf32>, vector<1x8x8xf32>, vector<1x8x8xf32>, vector<1x8x8xf32>, vector<1x8x8xf32> -> vector<8x8x8xf32>
    %cst_13 = arith.constant dense<0.000000e+00> : vector<8x8x8xf32>
    %113 = tpu.matmul %78, %95, %cst_13 {dimension_numbers = #tpu.dot_dimension_numbers<[2], [2], [1], [1], [0, 0, 0, 1, 1, 1], [0], [0]>} : vector<8x8x8xf32>, vector<8x8x8xf32>, vector<8x8x8xf32> -> vector<8x8x8xf32>
    %cst_14 = arith.constant 0.353553385 : f32
    %114 = vector.broadcast %cst_14 : f32 to vector<8x8x8xf32>
    %115 = arith.mulf %113, %114 : vector<8x8x8xf32>
    %116 = arith.addf %115, %35 : vector<8x8x8xf32>
    %cst_15 = arith.constant dense<0xFF800000> : vector<8x8xf32>
    %117 = vector.multi_reduction <maximumf>, %116, %cst_15 [2] : vector<8x8x8xf32> to vector<8x8xf32>
    %118 = vector.shape_cast %117 : vector<8x8xf32> to vector<8x8x1xf32>
    %119 = vector.broadcast %118 : vector<8x8x1xf32> to vector<8x8x8xf32>
    %120 = arith.subf %116, %119 : vector<8x8x8xf32>
    %121 = math.exp %120 : vector<8x8x8xf32>
    %cst_16 = arith.constant dense<0.000000e+00> : vector<8x8xf32>
    %122 = vector.multi_reduction <add>, %121, %cst_16 [2] : vector<8x8x8xf32> to vector<8x8xf32>
    %123 = vector.shape_cast %122 : vector<8x8xf32> to vector<8x8x1xf32>
    %124 = vector.broadcast %123 : vector<8x8x1xf32> to vector<8x8x8xf32>
    %125 = arith.divf %121, %124 : vector<8x8x8xf32>
    %cst_17 = arith.constant dense<0.000000e+00> : vector<8x8x8xf32>
    %126 = tpu.matmul %125, %112, %cst_17 {dimension_numbers = #tpu.dot_dimension_numbers<[2], [1], [1], [2], [0, 0, 0, 1, 1, 2], [0], [0]>} : vector<8x8x8xf32>, vector<8x8x8xf32>, vector<8x8x8xf32> -> vector<8x8x8xf32>
    %127 = vector.extract_strided_slice %126 {offsets = [0, 0, 0], sizes = [1, 8, 8], strides = [1, 1, 1]} : vector<8x8x8xf32> to vector<1x8x8xf32>
    %128 = vector.shape_cast %127 : vector<1x8x8xf32> to vector<8x8xf32>
    %129 = vector.extract_strided_slice %126 {offsets = [1, 0, 0], sizes = [1, 8, 8], strides = [1, 1, 1]} : vector<8x8x8xf32> to vector<1x8x8xf32>
    %130 = vector.shape_cast %129 : vector<1x8x8xf32> to vector<8x8xf32>
    %131 = vector.extract_strided_slice %126 {offsets = [2, 0, 0], sizes = [1, 8, 8], strides = [1, 1, 1]} : vector<8x8x8xf32> to vector<1x8x8xf32>
    %132 = vector.shape_cast %131 : vector<1x8x8xf32> to vector<8x8xf32>
    %133 = vector.extract_strided_slice %126 {offsets = [3, 0, 0], sizes = [1, 8, 8], strides = [1, 1, 1]} : vector<8x8x8xf32> to vector<1x8x8xf32>
    %134 = vector.shape_cast %133 : vector<1x8x8xf32> to vector<8x8xf32>
    %135 = tpu.concatenate %128, %130, %132, %134 in 1 : vector<8x8xf32>, vector<8x8xf32>, vector<8x8xf32>, vector<8x8xf32> -> vector<8x32xf32>
    %136 = vector.extract_strided_slice %126 {offsets = [4, 0, 0], sizes = [1, 8, 8], strides = [1, 1, 1]} : vector<8x8x8xf32> to vector<1x8x8xf32>
    %137 = vector.shape_cast %136 : vector<1x8x8xf32> to vector<8x8xf32>
    %138 = vector.extract_strided_slice %126 {offsets = [5, 0, 0], sizes = [1, 8, 8], strides = [1, 1, 1]} : vector<8x8x8xf32> to vector<1x8x8xf32>
    %139 = vector.shape_cast %138 : vector<1x8x8xf32> to vector<8x8xf32>
    %140 = vector.extract_strided_slice %126 {offsets = [6, 0, 0], sizes = [1, 8, 8], strides = [1, 1, 1]} : vector<8x8x8xf32> to vector<1x8x8xf32>
    %141 = vector.shape_cast %140 : vector<1x8x8xf32> to vector<8x8xf32>
    %142 = vector.extract_strided_slice %126 {offsets = [7, 0, 0], sizes = [1, 8, 8], strides = [1, 1, 1]} : vector<8x8x8xf32> to vector<1x8x8xf32>
    %143 = vector.shape_cast %142 : vector<1x8x8xf32> to vector<8x8xf32>
    %144 = tpu.concatenate %137, %139, %141, %143 in 1 : vector<8x8xf32>, vector<8x8xf32>, vector<8x8xf32>, vector<8x8xf32> -> vector<8x32xf32>
    %145 = tpu.concatenate %135, %144 in 0 : vector<8x32xf32>, vector<8x32xf32> -> vector<16x32xf32>
    %cst_18 = arith.constant dense<0.000000e+00> : vector<16x32xf32>
    %146 = tpu.matmul %145, %44, %cst_18 {dimension_numbers = #tpu.dot_dimension_numbers<[1], [0], [0], [1], [0, 0, 1, 1], [], []>} : vector<16x32xf32>, vector<32x32xf32>, vector<16x32xf32> -> vector<16x32xf32>
    %147 = vector.broadcast %49 : vector<1x32xf32> to vector<16x32xf32>
    %148 = arith.addf %146, %147 : vector<16x32xf32>
    %149 = arith.addf %0, %148 : vector<16x32xf32>
    %cst_19 = arith.constant dense<0.000000e+00> : vector<16xf32>
    %150 = vector.multi_reduction <add>, %149, %cst_19 [1] : vector<16x32xf32> to vector<16xf32>
    %151 = vector.shape_cast %150 : vector<16xf32> to vector<16x1xf32>
    %cst_20 = arith.constant 3.200000e+01 : f32
    %152 = vector.broadcast %cst_20 : f32 to vector<16x1xf32>
    %153 = arith.divf %151, %152 : vector<16x1xf32>
    %154 = vector.broadcast %153 : vector<16x1xf32> to vector<16x32xf32>
    %155 = arith.subf %149, %154 : vector<16x32xf32>
    %156 = arith.mulf %155, %155 : vector<16x32xf32>
    %cst_21 = arith.constant dense<0.000000e+00> : vector<16xf32>
    %157 = vector.multi_reduction <add>, %156, %cst_21 [1] : vector<16x32xf32> to vector<16xf32>
    %158 = vector.shape_cast %157 : vector<16xf32> to vector<16x1xf32>
    %cst_22 = arith.constant 3.200000e+01 : f32
    %159 = vector.broadcast %cst_22 : f32 to vector<16x1xf32>
    %160 = arith.divf %158, %159 : vector<16x1xf32>
    %161 = vector.broadcast %153 : vector<16x1xf32> to vector<16x32xf32>
    %162 = arith.subf %149, %161 : vector<16x32xf32>
    %cst_23 = arith.constant 9.99999974E-6 : f32
    %163 = vector.broadcast %cst_23 : f32 to vector<16x1xf32>
    %164 = arith.addf %160, %163 : vector<16x1xf32>
    %165 = math.rsqrt %164 : vector<16x1xf32>
    %166 = vector.broadcast %165 : vector<16x1xf32> to vector<16x32xf32>
    %167 = arith.mulf %162, %166 : vector<16x32xf32>
    %168 = vector.broadcast %52 : vector<1x32xf32> to vector<16x32xf32>
    %169 = arith.mulf %167, %168 : vector<16x32xf32>
    %170 = vector.broadcast %53 : vector<1x32xf32> to vector<16x32xf32>
    %171 = arith.addf %169, %170 : vector<16x32xf32>
    %cst_24 = arith.constant dense<0.000000e+00> : vector<16x64xf32>
    %172 = tpu.matmul %171, %45, %cst_24 {dimension_numbers = #tpu.dot_dimension_numbers<[1], [0], [0], [1], [0, 0, 1, 1], [], []>} : vector<16x32xf32>, vector<32x64xf32>, vector<16x64xf32> -> vector<16x64xf32>
    %173 = vector.broadcast %50 : vector<1x64xf32> to vector<16x64xf32>
    %174 = arith.addf %172, %173 : vector<16x64xf32>
    %cst_25 = arith.constant 0.000000e+00 : f32
    %175 = vector.broadcast %cst_25 : f32 to vector<16x64xf32>
    %176 = arith.maximumf %174, %175 : vector<16x64xf32>
    %cst_26 = arith.constant dense<0.000000e+00> : vector<16x32xf32>
    %177 = tpu.matmul %176, %46, %cst_26 {dimension_numbers = #tpu.dot_dimension_numbers<[1], [0], [0], [1], [0, 0, 1, 1], [], []>} : vector<16x64xf32>, vector<64x32xf32>, vector<16x32xf32> -> vector<16x32xf32>
    %178 = vector.broadcast %51 : vector<1x32xf32> to vector<16x32xf32>
    %179 = arith.addf %177, %178 : vector<16x32xf32>
    %180 = arith.addf %171, %179 : vector<16x32xf32>
    %cst_27 = arith.constant dense<0.000000e+00> : vector<16xf32>
    %181 = vector.multi_reduction <add>, %180, %cst_27 [1] : vector<16x32xf32> to vector<16xf32>
    %182 = vector.shape_cast %181 : vector<16xf32> to vector<16x1xf32>
    %cst_28 = arith.constant 3.200000e+01 : f32
    %183 = vector.broadcast %cst_28 : f32 to vector<16x1xf32>
    %184 = arith.divf %182, %183 : vector<16x1xf32>
    %185 = vector.broadcast %184 : vector<16x1xf32> to vector<16x32xf32>
    %186 = arith.subf %180, %185 : vector<16x32xf32>
    %187 = arith.mulf %186, %186 : vector<16x32xf32>
    %cst_29 = arith.constant dense<0.000000e+00> : vector<16xf32>
    %188 = vector.multi_reduction <add>, %187, %cst_29 [1] : vector<16x32xf32> to vector<16xf32>
    %189 = vector.shape_cast %188 : vector<16xf32> to vector<16x1xf32>
    %cst_30 = arith.constant 3.200000e+01 : f32
    %190 = vector.broadcast %cst_30 : f32 to vector<16x1xf32>
    %191 = arith.divf %189, %190 : vector<16x1xf32>
    %192 = vector.broadcast %184 : vector<16x1xf32> to vector<16x32xf32>
    %193 = arith.subf %180, %192 : vector<16x32xf32>
    %cst_31 = arith.constant 9.99999974E-6 : f32
    %194 = vector.broadcast %cst_31 : f32 to vector<16x1xf32>
    %195 = arith.addf %191, %194 : vector<16x1xf32>
    %196 = math.rsqrt %195 : vector<16x1xf32>
    %197 = vector.broadcast %196 : vector<16x1xf32> to vector<16x32xf32>
    %198 = arith.mulf %193, %197 : vector<16x32xf32>
    %199 = vector.broadcast %54 : vector<1x32xf32> to vector<16x32xf32>
    %200 = arith.mulf %198, %199 : vector<16x32xf32>
    %201 = vector.broadcast %55 : vector<1x32xf32> to vector<16x32xf32>
    %202 = arith.addf %200, %201 : vector<16x32xf32>
    %c0_32 = arith.constant 0 : index
    %c0_33 = arith.constant 0 : index
    %203 = vector.load %arg4[%c0_32, %c0_33] : memref<168x128xf32, #tpu.memory_space<vmem>>, vector<32x128xf32>
    %c32_34 = arith.constant 32 : index
    %c0_35 = arith.constant 0 : index
    %204 = vector.load %arg4[%c32_34, %c0_35] : memref<168x128xf32, #tpu.memory_space<vmem>>, vector<32x32xf32>
    %c64_36 = arith.constant 64 : index
    %c0_37 = arith.constant 0 : index
    %205 = vector.load %arg4[%c64_36, %c0_37] : memref<168x128xf32, #tpu.memory_space<vmem>>, vector<32x64xf32>
    %c96_38 = arith.constant 96 : index
    %c0_39 = arith.constant 0 : index
    %206 = vector.load %arg4[%c96_38, %c0_39] : memref<168x128xf32, #tpu.memory_space<vmem>>, vector<64x32xf32>
    %c160_40 = arith.constant 160 : index
    %c0_41 = arith.constant 0 : index
    %207 = vector.load %arg4[%c160_40, %c0_41] : memref<168x128xf32, #tpu.memory_space<vmem>>, vector<8x128xf32>
    %208 = vector.extract_strided_slice %207 {offsets = [0, 0], sizes = [1, 128], strides = [1, 1]} : vector<8x128xf32> to vector<1x128xf32>
    %209 = vector.extract_strided_slice %207 {offsets = [1, 0], sizes = [1, 32], strides = [1, 1]} : vector<8x128xf32> to vector<1x32xf32>
    %210 = vector.extract_strided_slice %207 {offsets = [2, 0], sizes = [1, 64], strides = [1, 1]} : vector<8x128xf32> to vector<1x64xf32>
    %211 = vector.extract_strided_slice %207 {offsets = [3, 0], sizes = [1, 32], strides = [1, 1]} : vector<8x128xf32> to vector<1x32xf32>
    %212 = vector.extract_strided_slice %207 {offsets = [4, 0], sizes = [1, 32], strides = [1, 1]} : vector<8x128xf32> to vector<1x32xf32>
    %213 = vector.extract_strided_slice %207 {offsets = [5, 0], sizes = [1, 32], strides = [1, 1]} : vector<8x128xf32> to vector<1x32xf32>
    %214 = vector.extract_strided_slice %207 {offsets = [6, 0], sizes = [1, 32], strides = [1, 1]} : vector<8x128xf32> to vector<1x32xf32>
    %215 = vector.extract_strided_slice %207 {offsets = [7, 0], sizes = [1, 32], strides = [1, 1]} : vector<8x128xf32> to vector<1x32xf32>
    %cst_42 = arith.constant dense<0.000000e+00> : vector<16x128xf32>
    %216 = tpu.matmul %202, %203, %cst_42 {dimension_numbers = #tpu.dot_dimension_numbers<[1], [0], [0], [1], [0, 0, 1, 1], [], []>} : vector<16x32xf32>, vector<32x128xf32>, vector<16x128xf32> -> vector<16x128xf32>
    %217 = vector.broadcast %208 : vector<1x128xf32> to vector<16x128xf32>
    %218 = arith.addf %216, %217 : vector<16x128xf32>
    %219 = vector.extract_strided_slice %218 {offsets = [0, 0], sizes = [16, 32], strides = [1, 1]} : vector<16x128xf32> to vector<16x32xf32>
    %220 = vector.extract_strided_slice %218 {offsets = [0, 32], sizes = [16, 32], strides = [1, 1]} : vector<16x128xf32> to vector<16x32xf32>
    %221 = vector.extract_strided_slice %218 {offsets = [0, 64], sizes = [16, 32], strides = [1, 1]} : vector<16x128xf32> to vector<16x32xf32>
    %222 = vector.extract_strided_slice %219 {offsets = [0, 0], sizes = [8, 8], strides = [1, 1]} : vector<16x32xf32> to vector<8x8xf32>
    %223 = vector.shape_cast %222 : vector<8x8xf32> to vector<1x8x8xf32>
    %224 = vector.extract_strided_slice %219 {offsets = [0, 8], sizes = [8, 8], strides = [1, 1]} : vector<16x32xf32> to vector<8x8xf32>
    %225 = vector.shape_cast %224 : vector<8x8xf32> to vector<1x8x8xf32>
    %226 = vector.extract_strided_slice %219 {offsets = [0, 16], sizes = [8, 8], strides = [1, 1]} : vector<16x32xf32> to vector<8x8xf32>
    %227 = vector.shape_cast %226 : vector<8x8xf32> to vector<1x8x8xf32>
    %228 = vector.extract_strided_slice %219 {offsets = [0, 24], sizes = [8, 8], strides = [1, 1]} : vector<16x32xf32> to vector<8x8xf32>
    %229 = vector.shape_cast %228 : vector<8x8xf32> to vector<1x8x8xf32>
    %230 = vector.extract_strided_slice %219 {offsets = [8, 0], sizes = [8, 8], strides = [1, 1]} : vector<16x32xf32> to vector<8x8xf32>
    %231 = vector.shape_cast %230 : vector<8x8xf32> to vector<1x8x8xf32>
    %232 = vector.extract_strided_slice %219 {offsets = [8, 8], sizes = [8, 8], strides = [1, 1]} : vector<16x32xf32> to vector<8x8xf32>
    %233 = vector.shape_cast %232 : vector<8x8xf32> to vector<1x8x8xf32>
    %234 = vector.extract_strided_slice %219 {offsets = [8, 16], sizes = [8, 8], strides = [1, 1]} : vector<16x32xf32> to vector<8x8xf32>
    %235 = vector.shape_cast %234 : vector<8x8xf32> to vector<1x8x8xf32>
    %236 = vector.extract_strided_slice %219 {offsets = [8, 24], sizes = [8, 8], strides = [1, 1]} : vector<16x32xf32> to vector<8x8xf32>
    %237 = vector.shape_cast %236 : vector<8x8xf32> to vector<1x8x8xf32>
    %238 = tpu.concatenate %223, %225, %227, %229, %231, %233, %235, %237 in 0 : vector<1x8x8xf32>, vector<1x8x8xf32>, vector<1x8x8xf32>, vector<1x8x8xf32>, vector<1x8x8xf32>, vector<1x8x8xf32>, vector<1x8x8xf32>, vector<1x8x8xf32> -> vector<8x8x8xf32>
    %239 = vector.extract_strided_slice %220 {offsets = [0, 0], sizes = [8, 8], strides = [1, 1]} : vector<16x32xf32> to vector<8x8xf32>
    %240 = vector.shape_cast %239 : vector<8x8xf32> to vector<1x8x8xf32>
    %241 = vector.extract_strided_slice %220 {offsets = [0, 8], sizes = [8, 8], strides = [1, 1]} : vector<16x32xf32> to vector<8x8xf32>
    %242 = vector.shape_cast %241 : vector<8x8xf32> to vector<1x8x8xf32>
    %243 = vector.extract_strided_slice %220 {offsets = [0, 16], sizes = [8, 8], strides = [1, 1]} : vector<16x32xf32> to vector<8x8xf32>
    %244 = vector.shape_cast %243 : vector<8x8xf32> to vector<1x8x8xf32>
    %245 = vector.extract_strided_slice %220 {offsets = [0, 24], sizes = [8, 8], strides = [1, 1]} : vector<16x32xf32> to vector<8x8xf32>
    %246 = vector.shape_cast %245 : vector<8x8xf32> to vector<1x8x8xf32>
    %247 = vector.extract_strided_slice %220 {offsets = [8, 0], sizes = [8, 8], strides = [1, 1]} : vector<16x32xf32> to vector<8x8xf32>
    %248 = vector.shape_cast %247 : vector<8x8xf32> to vector<1x8x8xf32>
    %249 = vector.extract_strided_slice %220 {offsets = [8, 8], sizes = [8, 8], strides = [1, 1]} : vector<16x32xf32> to vector<8x8xf32>
    %250 = vector.shape_cast %249 : vector<8x8xf32> to vector<1x8x8xf32>
    %251 = vector.extract_strided_slice %220 {offsets = [8, 16], sizes = [8, 8], strides = [1, 1]} : vector<16x32xf32> to vector<8x8xf32>
    %252 = vector.shape_cast %251 : vector<8x8xf32> to vector<1x8x8xf32>
    %253 = vector.extract_strided_slice %220 {offsets = [8, 24], sizes = [8, 8], strides = [1, 1]} : vector<16x32xf32> to vector<8x8xf32>
    %254 = vector.shape_cast %253 : vector<8x8xf32> to vector<1x8x8xf32>
    %255 = tpu.concatenate %240, %242, %244, %246, %248, %250, %252, %254 in 0 : vector<1x8x8xf32>, vector<1x8x8xf32>, vector<1x8x8xf32>, vector<1x8x8xf32>, vector<1x8x8xf32>, vector<1x8x8xf32>, vector<1x8x8xf32>, vector<1x8x8xf32> -> vector<8x8x8xf32>
    %256 = vector.extract_strided_slice %221 {offsets = [0, 0], sizes = [8, 8], strides = [1, 1]} : vector<16x32xf32> to vector<8x8xf32>
    %257 = vector.shape_cast %256 : vector<8x8xf32> to vector<1x8x8xf32>
    %258 = vector.extract_strided_slice %221 {offsets = [0, 8], sizes = [8, 8], strides = [1, 1]} : vector<16x32xf32> to vector<8x8xf32>
    %259 = vector.shape_cast %258 : vector<8x8xf32> to vector<1x8x8xf32>
    %260 = vector.extract_strided_slice %221 {offsets = [0, 16], sizes = [8, 8], strides = [1, 1]} : vector<16x32xf32> to vector<8x8xf32>
    %261 = vector.shape_cast %260 : vector<8x8xf32> to vector<1x8x8xf32>
    %262 = vector.extract_strided_slice %221 {offsets = [0, 24], sizes = [8, 8], strides = [1, 1]} : vector<16x32xf32> to vector<8x8xf32>
    %263 = vector.shape_cast %262 : vector<8x8xf32> to vector<1x8x8xf32>
    %264 = vector.extract_strided_slice %221 {offsets = [8, 0], sizes = [8, 8], strides = [1, 1]} : vector<16x32xf32> to vector<8x8xf32>
    %265 = vector.shape_cast %264 : vector<8x8xf32> to vector<1x8x8xf32>
    %266 = vector.extract_strided_slice %221 {offsets = [8, 8], sizes = [8, 8], strides = [1, 1]} : vector<16x32xf32> to vector<8x8xf32>
    %267 = vector.shape_cast %266 : vector<8x8xf32> to vector<1x8x8xf32>
    %268 = vector.extract_strided_slice %221 {offsets = [8, 16], sizes = [8, 8], strides = [1, 1]} : vector<16x32xf32> to vector<8x8xf32>
    %269 = vector.shape_cast %268 : vector<8x8xf32> to vector<1x8x8xf32>
    %270 = vector.extract_strided_slice %221 {offsets = [8, 24], sizes = [8, 8], strides = [1, 1]} : vector<16x32xf32> to vector<8x8xf32>
    %271 = vector.shape_cast %270 : vector<8x8xf32> to vector<1x8x8xf32>
    %272 = tpu.concatenate %257, %259, %261, %263, %265, %267, %269, %271 in 0 : vector<1x8x8xf32>, vector<1x8x8xf32>, vector<1x8x8xf32>, vector<1x8x8xf32>, vector<1x8x8xf32>, vector<1x8x8xf32>, vector<1x8x8xf32>, vector<1x8x8xf32> -> vector<8x8x8xf32>
    %cst_43 = arith.constant dense<0.000000e+00> : vector<8x8x8xf32>
    %273 = tpu.matmul %238, %255, %cst_43 {dimension_numbers = #tpu.dot_dimension_numbers<[2], [2], [1], [1], [0, 0, 0, 1, 1, 1], [0], [0]>} : vector<8x8x8xf32>, vector<8x8x8xf32>, vector<8x8x8xf32> -> vector<8x8x8xf32>
    %cst_44 = arith.constant 0.353553385 : f32
    %274 = vector.broadcast %cst_44 : f32 to vector<8x8x8xf32>
    %275 = arith.mulf %273, %274 : vector<8x8x8xf32>
    %276 = arith.addf %275, %35 : vector<8x8x8xf32>
    %cst_45 = arith.constant dense<0xFF800000> : vector<8x8xf32>
    %277 = vector.multi_reduction <maximumf>, %276, %cst_45 [2] : vector<8x8x8xf32> to vector<8x8xf32>
    %278 = vector.shape_cast %277 : vector<8x8xf32> to vector<8x8x1xf32>
    %279 = vector.broadcast %278 : vector<8x8x1xf32> to vector<8x8x8xf32>
    %280 = arith.subf %276, %279 : vector<8x8x8xf32>
    %281 = math.exp %280 : vector<8x8x8xf32>
    %cst_46 = arith.constant dense<0.000000e+00> : vector<8x8xf32>
    %282 = vector.multi_reduction <add>, %281, %cst_46 [2] : vector<8x8x8xf32> to vector<8x8xf32>
    %283 = vector.shape_cast %282 : vector<8x8xf32> to vector<8x8x1xf32>
    %284 = vector.broadcast %283 : vector<8x8x1xf32> to vector<8x8x8xf32>
    %285 = arith.divf %281, %284 : vector<8x8x8xf32>
    %cst_47 = arith.constant dense<0.000000e+00> : vector<8x8x8xf32>
    %286 = tpu.matmul %285, %272, %cst_47 {dimension_numbers = #tpu.dot_dimension_numbers<[2], [1], [1], [2], [0, 0, 0, 1, 1, 2], [0], [0]>} : vector<8x8x8xf32>, vector<8x8x8xf32>, vector<8x8x8xf32> -> vector<8x8x8xf32>
    %287 = vector.extract_strided_slice %286 {offsets = [0, 0, 0], sizes = [1, 8, 8], strides = [1, 1, 1]} : vector<8x8x8xf32> to vector<1x8x8xf32>
    %288 = vector.shape_cast %287 : vector<1x8x8xf32> to vector<8x8xf32>
    %289 = vector.extract_strided_slice %286 {offsets = [1, 0, 0], sizes = [1, 8, 8], strides = [1, 1, 1]} : vector<8x8x8xf32> to vector<1x8x8xf32>
    %290 = vector.shape_cast %289 : vector<1x8x8xf32> to vector<8x8xf32>
    %291 = vector.extract_strided_slice %286 {offsets = [2, 0, 0], sizes = [1, 8, 8], strides = [1, 1, 1]} : vector<8x8x8xf32> to vector<1x8x8xf32>
    %292 = vector.shape_cast %291 : vector<1x8x8xf32> to vector<8x8xf32>
    %293 = vector.extract_strided_slice %286 {offsets = [3, 0, 0], sizes = [1, 8, 8], strides = [1, 1, 1]} : vector<8x8x8xf32> to vector<1x8x8xf32>
    %294 = vector.shape_cast %293 : vector<1x8x8xf32> to vector<8x8xf32>
    %295 = tpu.concatenate %288, %290, %292, %294 in 1 : vector<8x8xf32>, vector<8x8xf32>, vector<8x8xf32>, vector<8x8xf32> -> vector<8x32xf32>
    %296 = vector.extract_strided_slice %286 {offsets = [4, 0, 0], sizes = [1, 8, 8], strides = [1, 1, 1]} : vector<8x8x8xf32> to vector<1x8x8xf32>
    %297 = vector.shape_cast %296 : vector<1x8x8xf32> to vector<8x8xf32>
    %298 = vector.extract_strided_slice %286 {offsets = [5, 0, 0], sizes = [1, 8, 8], strides = [1, 1, 1]} : vector<8x8x8xf32> to vector<1x8x8xf32>
    %299 = vector.shape_cast %298 : vector<1x8x8xf32> to vector<8x8xf32>
    %300 = vector.extract_strided_slice %286 {offsets = [6, 0, 0], sizes = [1, 8, 8], strides = [1, 1, 1]} : vector<8x8x8xf32> to vector<1x8x8xf32>
    %301 = vector.shape_cast %300 : vector<1x8x8xf32> to vector<8x8xf32>
    %302 = vector.extract_strided_slice %286 {offsets = [7, 0, 0], sizes = [1, 8, 8], strides = [1, 1, 1]} : vector<8x8x8xf32> to vector<1x8x8xf32>
    %303 = vector.shape_cast %302 : vector<1x8x8xf32> to vector<8x8xf32>
    %304 = tpu.concatenate %297, %299, %301, %303 in 1 : vector<8x8xf32>, vector<8x8xf32>, vector<8x8xf32>, vector<8x8xf32> -> vector<8x32xf32>
    %305 = tpu.concatenate %295, %304 in 0 : vector<8x32xf32>, vector<8x32xf32> -> vector<16x32xf32>
    %cst_48 = arith.constant dense<0.000000e+00> : vector<16x32xf32>
    %306 = tpu.matmul %305, %204, %cst_48 {dimension_numbers = #tpu.dot_dimension_numbers<[1], [0], [0], [1], [0, 0, 1, 1], [], []>} : vector<16x32xf32>, vector<32x32xf32>, vector<16x32xf32> -> vector<16x32xf32>
    %307 = vector.broadcast %209 : vector<1x32xf32> to vector<16x32xf32>
    %308 = arith.addf %306, %307 : vector<16x32xf32>
    %309 = arith.addf %202, %308 : vector<16x32xf32>
    %cst_49 = arith.constant dense<0.000000e+00> : vector<16xf32>
    %310 = vector.multi_reduction <add>, %309, %cst_49 [1] : vector<16x32xf32> to vector<16xf32>
    %311 = vector.shape_cast %310 : vector<16xf32> to vector<16x1xf32>
    %cst_50 = arith.constant 3.200000e+01 : f32
    %312 = vector.broadcast %cst_50 : f32 to vector<16x1xf32>
    %313 = arith.divf %311, %312 : vector<16x1xf32>
    %314 = vector.broadcast %313 : vector<16x1xf32> to vector<16x32xf32>
    %315 = arith.subf %309, %314 : vector<16x32xf32>
    %316 = arith.mulf %315, %315 : vector<16x32xf32>
    %cst_51 = arith.constant dense<0.000000e+00> : vector<16xf32>
    %317 = vector.multi_reduction <add>, %316, %cst_51 [1] : vector<16x32xf32> to vector<16xf32>
    %318 = vector.shape_cast %317 : vector<16xf32> to vector<16x1xf32>
    %cst_52 = arith.constant 3.200000e+01 : f32
    %319 = vector.broadcast %cst_52 : f32 to vector<16x1xf32>
    %320 = arith.divf %318, %319 : vector<16x1xf32>
    %321 = vector.broadcast %313 : vector<16x1xf32> to vector<16x32xf32>
    %322 = arith.subf %309, %321 : vector<16x32xf32>
    %cst_53 = arith.constant 9.99999974E-6 : f32
    %323 = vector.broadcast %cst_53 : f32 to vector<16x1xf32>
    %324 = arith.addf %320, %323 : vector<16x1xf32>
    %325 = math.rsqrt %324 : vector<16x1xf32>
    %326 = vector.broadcast %325 : vector<16x1xf32> to vector<16x32xf32>
    %327 = arith.mulf %322, %326 : vector<16x32xf32>
    %328 = vector.broadcast %212 : vector<1x32xf32> to vector<16x32xf32>
    %329 = arith.mulf %327, %328 : vector<16x32xf32>
    %330 = vector.broadcast %213 : vector<1x32xf32> to vector<16x32xf32>
    %331 = arith.addf %329, %330 : vector<16x32xf32>
    %cst_54 = arith.constant dense<0.000000e+00> : vector<16x64xf32>
    %332 = tpu.matmul %331, %205, %cst_54 {dimension_numbers = #tpu.dot_dimension_numbers<[1], [0], [0], [1], [0, 0, 1, 1], [], []>} : vector<16x32xf32>, vector<32x64xf32>, vector<16x64xf32> -> vector<16x64xf32>
    %333 = vector.broadcast %210 : vector<1x64xf32> to vector<16x64xf32>
    %334 = arith.addf %332, %333 : vector<16x64xf32>
    %cst_55 = arith.constant 0.000000e+00 : f32
    %335 = vector.broadcast %cst_55 : f32 to vector<16x64xf32>
    %336 = arith.maximumf %334, %335 : vector<16x64xf32>
    %cst_56 = arith.constant dense<0.000000e+00> : vector<16x32xf32>
    %337 = tpu.matmul %336, %206, %cst_56 {dimension_numbers = #tpu.dot_dimension_numbers<[1], [0], [0], [1], [0, 0, 1, 1], [], []>} : vector<16x64xf32>, vector<64x32xf32>, vector<16x32xf32> -> vector<16x32xf32>
    %338 = vector.broadcast %211 : vector<1x32xf32> to vector<16x32xf32>
    %339 = arith.addf %337, %338 : vector<16x32xf32>
    %340 = arith.addf %331, %339 : vector<16x32xf32>
    %cst_57 = arith.constant dense<0.000000e+00> : vector<16xf32>
    %341 = vector.multi_reduction <add>, %340, %cst_57 [1] : vector<16x32xf32> to vector<16xf32>
    %342 = vector.shape_cast %341 : vector<16xf32> to vector<16x1xf32>
    %cst_58 = arith.constant 3.200000e+01 : f32
    %343 = vector.broadcast %cst_58 : f32 to vector<16x1xf32>
    %344 = arith.divf %342, %343 : vector<16x1xf32>
    %345 = vector.broadcast %344 : vector<16x1xf32> to vector<16x32xf32>
    %346 = arith.subf %340, %345 : vector<16x32xf32>
    %347 = arith.mulf %346, %346 : vector<16x32xf32>
    %cst_59 = arith.constant dense<0.000000e+00> : vector<16xf32>
    %348 = vector.multi_reduction <add>, %347, %cst_59 [1] : vector<16x32xf32> to vector<16xf32>
    %349 = vector.shape_cast %348 : vector<16xf32> to vector<16x1xf32>
    %cst_60 = arith.constant 3.200000e+01 : f32
    %350 = vector.broadcast %cst_60 : f32 to vector<16x1xf32>
    %351 = arith.divf %349, %350 : vector<16x1xf32>
    %352 = vector.broadcast %344 : vector<16x1xf32> to vector<16x32xf32>
    %353 = arith.subf %340, %352 : vector<16x32xf32>
    %cst_61 = arith.constant 9.99999974E-6 : f32
    %354 = vector.broadcast %cst_61 : f32 to vector<16x1xf32>
    %355 = arith.addf %351, %354 : vector<16x1xf32>
    %356 = math.rsqrt %355 : vector<16x1xf32>
    %357 = vector.broadcast %356 : vector<16x1xf32> to vector<16x32xf32>
    %358 = arith.mulf %353, %357 : vector<16x32xf32>
    %359 = vector.broadcast %214 : vector<1x32xf32> to vector<16x32xf32>
    %360 = arith.mulf %358, %359 : vector<16x32xf32>
    %361 = vector.broadcast %215 : vector<1x32xf32> to vector<16x32xf32>
    %362 = arith.addf %360, %361 : vector<16x32xf32>
    %c32_62 = arith.constant 32 : index
    %c0_63 = arith.constant 0 : index
    %363 = vector.load %arg7[%c32_62, %c0_63] : memref<40x128xf32, #tpu.memory_space<vmem>>, vector<8x128xf32>
    %364 = vector.extract_strided_slice %363 {offsets = [0, 0], sizes = [1, 32], strides = [1, 1]} : vector<8x128xf32> to vector<1x32xf32>
    %365 = vector.extract_strided_slice %363 {offsets = [1, 0], sizes = [1, 32], strides = [1, 1]} : vector<8x128xf32> to vector<1x32xf32>
    %cst_64 = arith.constant dense<0.000000e+00> : vector<16xf32>
    %366 = vector.multi_reduction <add>, %362, %cst_64 [1] : vector<16x32xf32> to vector<16xf32>
    %367 = vector.shape_cast %366 : vector<16xf32> to vector<16x1xf32>
    %cst_65 = arith.constant 3.200000e+01 : f32
    %368 = vector.broadcast %cst_65 : f32 to vector<16x1xf32>
    %369 = arith.divf %367, %368 : vector<16x1xf32>
    %370 = vector.broadcast %369 : vector<16x1xf32> to vector<16x32xf32>
    %371 = arith.subf %362, %370 : vector<16x32xf32>
    %372 = arith.mulf %371, %371 : vector<16x32xf32>
    %cst_66 = arith.constant dense<0.000000e+00> : vector<16xf32>
    %373 = vector.multi_reduction <add>, %372, %cst_66 [1] : vector<16x32xf32> to vector<16xf32>
    %374 = vector.shape_cast %373 : vector<16xf32> to vector<16x1xf32>
    %cst_67 = arith.constant 3.200000e+01 : f32
    %375 = vector.broadcast %cst_67 : f32 to vector<16x1xf32>
    %376 = arith.divf %374, %375 : vector<16x1xf32>
    %377 = vector.broadcast %369 : vector<16x1xf32> to vector<16x32xf32>
    %378 = arith.subf %362, %377 : vector<16x32xf32>
    %cst_68 = arith.constant 9.99999974E-6 : f32
    %379 = vector.broadcast %cst_68 : f32 to vector<16x1xf32>
    %380 = arith.addf %376, %379 : vector<16x1xf32>
    %381 = math.rsqrt %380 : vector<16x1xf32>
    %382 = vector.broadcast %381 : vector<16x1xf32> to vector<16x32xf32>
    %383 = arith.mulf %378, %382 : vector<16x32xf32>
    %384 = vector.broadcast %364 : vector<1x32xf32> to vector<16x32xf32>
    %385 = arith.mulf %383, %384 : vector<16x32xf32>
    %386 = vector.broadcast %365 : vector<1x32xf32> to vector<16x32xf32>
    %387 = arith.addf %385, %386 : vector<16x32xf32>
    %c0_69 = arith.constant 0 : index
    %c0_70 = arith.constant 0 : index
    %388 = vector.load %arg5[%c0_69, %c0_70] : memref<272x128xf32, #tpu.memory_space<vmem>>, vector<32x128xf32>
    %c32_71 = arith.constant 32 : index
    %c0_72 = arith.constant 0 : index
    %389 = vector.load %arg5[%c32_71, %c0_72] : memref<272x128xf32, #tpu.memory_space<vmem>>, vector<32x32xf32>
    %c64_73 = arith.constant 64 : index
    %c0_74 = arith.constant 0 : index
    %390 = vector.load %arg5[%c64_73, %c0_74] : memref<272x128xf32, #tpu.memory_space<vmem>>, vector<32x32xf32>
    %c96_75 = arith.constant 96 : index
    %c0_76 = arith.constant 0 : index
    %391 = vector.load %arg5[%c96_75, %c0_76] : memref<272x128xf32, #tpu.memory_space<vmem>>, vector<32x128xf32>
    %c128 = arith.constant 128 : index
    %c0_77 = arith.constant 0 : index
    %392 = vector.load %arg5[%c128, %c0_77] : memref<272x128xf32, #tpu.memory_space<vmem>>, vector<32x32xf32>
    %c160_78 = arith.constant 160 : index
    %c0_79 = arith.constant 0 : index
    %393 = vector.load %arg5[%c160_78, %c0_79] : memref<272x128xf32, #tpu.memory_space<vmem>>, vector<32x64xf32>
    %c192 = arith.constant 192 : index
    %c0_80 = arith.constant 0 : index
    %394 = vector.load %arg5[%c192, %c0_80] : memref<272x128xf32, #tpu.memory_space<vmem>>, vector<64x32xf32>
    %c256 = arith.constant 256 : index
    %c0_81 = arith.constant 0 : index
    %395 = vector.load %arg5[%c256, %c0_81] : memref<272x128xf32, #tpu.memory_space<vmem>>, vector<16x128xf32>
    %396 = vector.extract_strided_slice %395 {offsets = [0, 0], sizes = [1, 128], strides = [1, 1]} : vector<16x128xf32> to vector<1x128xf32>
    %397 = vector.extract_strided_slice %395 {offsets = [1, 0], sizes = [1, 32], strides = [1, 1]} : vector<16x128xf32> to vector<1x32xf32>
    %398 = vector.extract_strided_slice %395 {offsets = [2, 0], sizes = [1, 32], strides = [1, 1]} : vector<16x128xf32> to vector<1x32xf32>
    %399 = vector.extract_strided_slice %395 {offsets = [3, 0], sizes = [1, 128], strides = [1, 1]} : vector<16x128xf32> to vector<1x128xf32>
    %400 = vector.extract_strided_slice %395 {offsets = [4, 0], sizes = [1, 32], strides = [1, 1]} : vector<16x128xf32> to vector<1x32xf32>
    %401 = vector.extract_strided_slice %395 {offsets = [5, 0], sizes = [1, 64], strides = [1, 1]} : vector<16x128xf32> to vector<1x64xf32>
    %402 = vector.extract_strided_slice %395 {offsets = [6, 0], sizes = [1, 32], strides = [1, 1]} : vector<16x128xf32> to vector<1x32xf32>
    %403 = vector.extract_strided_slice %395 {offsets = [7, 0], sizes = [1, 32], strides = [1, 1]} : vector<16x128xf32> to vector<1x32xf32>
    %404 = vector.extract_strided_slice %395 {offsets = [8, 0], sizes = [1, 32], strides = [1, 1]} : vector<16x128xf32> to vector<1x32xf32>
    %405 = vector.extract_strided_slice %395 {offsets = [9, 0], sizes = [1, 32], strides = [1, 1]} : vector<16x128xf32> to vector<1x32xf32>
    %406 = vector.extract_strided_slice %395 {offsets = [10, 0], sizes = [1, 32], strides = [1, 1]} : vector<16x128xf32> to vector<1x32xf32>
    %407 = vector.extract_strided_slice %395 {offsets = [11, 0], sizes = [1, 32], strides = [1, 1]} : vector<16x128xf32> to vector<1x32xf32>
    %408 = vector.extract_strided_slice %395 {offsets = [12, 0], sizes = [1, 32], strides = [1, 1]} : vector<16x128xf32> to vector<1x32xf32>
    %cst_82 = arith.constant dense<0.000000e+00> : vector<16x128xf32>
    %409 = tpu.matmul %1, %388, %cst_82 {dimension_numbers = #tpu.dot_dimension_numbers<[1], [0], [0], [1], [0, 0, 1, 1], [], []>} : vector<16x32xf32>, vector<32x128xf32>, vector<16x128xf32> -> vector<16x128xf32>
    %410 = vector.broadcast %396 : vector<1x128xf32> to vector<16x128xf32>
    %411 = arith.addf %409, %410 : vector<16x128xf32>
    %412 = vector.extract_strided_slice %411 {offsets = [0, 0], sizes = [16, 32], strides = [1, 1]} : vector<16x128xf32> to vector<16x32xf32>
    %413 = vector.extract_strided_slice %411 {offsets = [0, 32], sizes = [16, 32], strides = [1, 1]} : vector<16x128xf32> to vector<16x32xf32>
    %414 = vector.extract_strided_slice %411 {offsets = [0, 64], sizes = [16, 32], strides = [1, 1]} : vector<16x128xf32> to vector<16x32xf32>
    %415 = vector.extract_strided_slice %412 {offsets = [0, 0], sizes = [8, 8], strides = [1, 1]} : vector<16x32xf32> to vector<8x8xf32>
    %416 = vector.shape_cast %415 : vector<8x8xf32> to vector<1x8x8xf32>
    %417 = vector.extract_strided_slice %412 {offsets = [0, 8], sizes = [8, 8], strides = [1, 1]} : vector<16x32xf32> to vector<8x8xf32>
    %418 = vector.shape_cast %417 : vector<8x8xf32> to vector<1x8x8xf32>
    %419 = vector.extract_strided_slice %412 {offsets = [0, 16], sizes = [8, 8], strides = [1, 1]} : vector<16x32xf32> to vector<8x8xf32>
    %420 = vector.shape_cast %419 : vector<8x8xf32> to vector<1x8x8xf32>
    %421 = vector.extract_strided_slice %412 {offsets = [0, 24], sizes = [8, 8], strides = [1, 1]} : vector<16x32xf32> to vector<8x8xf32>
    %422 = vector.shape_cast %421 : vector<8x8xf32> to vector<1x8x8xf32>
    %423 = vector.extract_strided_slice %412 {offsets = [8, 0], sizes = [8, 8], strides = [1, 1]} : vector<16x32xf32> to vector<8x8xf32>
    %424 = vector.shape_cast %423 : vector<8x8xf32> to vector<1x8x8xf32>
    %425 = vector.extract_strided_slice %412 {offsets = [8, 8], sizes = [8, 8], strides = [1, 1]} : vector<16x32xf32> to vector<8x8xf32>
    %426 = vector.shape_cast %425 : vector<8x8xf32> to vector<1x8x8xf32>
    %427 = vector.extract_strided_slice %412 {offsets = [8, 16], sizes = [8, 8], strides = [1, 1]} : vector<16x32xf32> to vector<8x8xf32>
    %428 = vector.shape_cast %427 : vector<8x8xf32> to vector<1x8x8xf32>
    %429 = vector.extract_strided_slice %412 {offsets = [8, 24], sizes = [8, 8], strides = [1, 1]} : vector<16x32xf32> to vector<8x8xf32>
    %430 = vector.shape_cast %429 : vector<8x8xf32> to vector<1x8x8xf32>
    %431 = tpu.concatenate %416, %418, %420, %422, %424, %426, %428, %430 in 0 : vector<1x8x8xf32>, vector<1x8x8xf32>, vector<1x8x8xf32>, vector<1x8x8xf32>, vector<1x8x8xf32>, vector<1x8x8xf32>, vector<1x8x8xf32>, vector<1x8x8xf32> -> vector<8x8x8xf32>
    %432 = vector.extract_strided_slice %413 {offsets = [0, 0], sizes = [8, 8], strides = [1, 1]} : vector<16x32xf32> to vector<8x8xf32>
    %433 = vector.shape_cast %432 : vector<8x8xf32> to vector<1x8x8xf32>
    %434 = vector.extract_strided_slice %413 {offsets = [0, 8], sizes = [8, 8], strides = [1, 1]} : vector<16x32xf32> to vector<8x8xf32>
    %435 = vector.shape_cast %434 : vector<8x8xf32> to vector<1x8x8xf32>
    %436 = vector.extract_strided_slice %413 {offsets = [0, 16], sizes = [8, 8], strides = [1, 1]} : vector<16x32xf32> to vector<8x8xf32>
    %437 = vector.shape_cast %436 : vector<8x8xf32> to vector<1x8x8xf32>
    %438 = vector.extract_strided_slice %413 {offsets = [0, 24], sizes = [8, 8], strides = [1, 1]} : vector<16x32xf32> to vector<8x8xf32>
    %439 = vector.shape_cast %438 : vector<8x8xf32> to vector<1x8x8xf32>
    %440 = vector.extract_strided_slice %413 {offsets = [8, 0], sizes = [8, 8], strides = [1, 1]} : vector<16x32xf32> to vector<8x8xf32>
    %441 = vector.shape_cast %440 : vector<8x8xf32> to vector<1x8x8xf32>
    %442 = vector.extract_strided_slice %413 {offsets = [8, 8], sizes = [8, 8], strides = [1, 1]} : vector<16x32xf32> to vector<8x8xf32>
    %443 = vector.shape_cast %442 : vector<8x8xf32> to vector<1x8x8xf32>
    %444 = vector.extract_strided_slice %413 {offsets = [8, 16], sizes = [8, 8], strides = [1, 1]} : vector<16x32xf32> to vector<8x8xf32>
    %445 = vector.shape_cast %444 : vector<8x8xf32> to vector<1x8x8xf32>
    %446 = vector.extract_strided_slice %413 {offsets = [8, 24], sizes = [8, 8], strides = [1, 1]} : vector<16x32xf32> to vector<8x8xf32>
    %447 = vector.shape_cast %446 : vector<8x8xf32> to vector<1x8x8xf32>
    %448 = tpu.concatenate %433, %435, %437, %439, %441, %443, %445, %447 in 0 : vector<1x8x8xf32>, vector<1x8x8xf32>, vector<1x8x8xf32>, vector<1x8x8xf32>, vector<1x8x8xf32>, vector<1x8x8xf32>, vector<1x8x8xf32>, vector<1x8x8xf32> -> vector<8x8x8xf32>
    %449 = vector.extract_strided_slice %414 {offsets = [0, 0], sizes = [8, 8], strides = [1, 1]} : vector<16x32xf32> to vector<8x8xf32>
    %450 = vector.shape_cast %449 : vector<8x8xf32> to vector<1x8x8xf32>
    %451 = vector.extract_strided_slice %414 {offsets = [0, 8], sizes = [8, 8], strides = [1, 1]} : vector<16x32xf32> to vector<8x8xf32>
    %452 = vector.shape_cast %451 : vector<8x8xf32> to vector<1x8x8xf32>
    %453 = vector.extract_strided_slice %414 {offsets = [0, 16], sizes = [8, 8], strides = [1, 1]} : vector<16x32xf32> to vector<8x8xf32>
    %454 = vector.shape_cast %453 : vector<8x8xf32> to vector<1x8x8xf32>
    %455 = vector.extract_strided_slice %414 {offsets = [0, 24], sizes = [8, 8], strides = [1, 1]} : vector<16x32xf32> to vector<8x8xf32>
    %456 = vector.shape_cast %455 : vector<8x8xf32> to vector<1x8x8xf32>
    %457 = vector.extract_strided_slice %414 {offsets = [8, 0], sizes = [8, 8], strides = [1, 1]} : vector<16x32xf32> to vector<8x8xf32>
    %458 = vector.shape_cast %457 : vector<8x8xf32> to vector<1x8x8xf32>
    %459 = vector.extract_strided_slice %414 {offsets = [8, 8], sizes = [8, 8], strides = [1, 1]} : vector<16x32xf32> to vector<8x8xf32>
    %460 = vector.shape_cast %459 : vector<8x8xf32> to vector<1x8x8xf32>
    %461 = vector.extract_strided_slice %414 {offsets = [8, 16], sizes = [8, 8], strides = [1, 1]} : vector<16x32xf32> to vector<8x8xf32>
    %462 = vector.shape_cast %461 : vector<8x8xf32> to vector<1x8x8xf32>
    %463 = vector.extract_strided_slice %414 {offsets = [8, 24], sizes = [8, 8], strides = [1, 1]} : vector<16x32xf32> to vector<8x8xf32>
    %464 = vector.shape_cast %463 : vector<8x8xf32> to vector<1x8x8xf32>
    %465 = tpu.concatenate %450, %452, %454, %456, %458, %460, %462, %464 in 0 : vector<1x8x8xf32>, vector<1x8x8xf32>, vector<1x8x8xf32>, vector<1x8x8xf32>, vector<1x8x8xf32>, vector<1x8x8xf32>, vector<1x8x8xf32>, vector<1x8x8xf32> -> vector<8x8x8xf32>
    %cst_83 = arith.constant dense<0.000000e+00> : vector<8x8x8xf32>
    %466 = tpu.matmul %431, %448, %cst_83 {dimension_numbers = #tpu.dot_dimension_numbers<[2], [2], [1], [1], [0, 0, 0, 1, 1, 1], [0], [0]>} : vector<8x8x8xf32>, vector<8x8x8xf32>, vector<8x8x8xf32> -> vector<8x8x8xf32>
    %cst_84 = arith.constant 0.353553385 : f32
    %467 = vector.broadcast %cst_84 : f32 to vector<8x8x8xf32>
    %468 = arith.mulf %466, %467 : vector<8x8x8xf32>
    %469 = vector.broadcast %42 : vector<1x8x8xf32> to vector<8x8x8xf32>
    %470 = arith.addf %468, %469 : vector<8x8x8xf32>
    %cst_85 = arith.constant dense<0xFF800000> : vector<8x8xf32>
    %471 = vector.multi_reduction <maximumf>, %470, %cst_85 [2] : vector<8x8x8xf32> to vector<8x8xf32>
    %472 = vector.shape_cast %471 : vector<8x8xf32> to vector<8x8x1xf32>
    %473 = vector.broadcast %472 : vector<8x8x1xf32> to vector<8x8x8xf32>
    %474 = arith.subf %470, %473 : vector<8x8x8xf32>
    %475 = math.exp %474 : vector<8x8x8xf32>
    %cst_86 = arith.constant dense<0.000000e+00> : vector<8x8xf32>
    %476 = vector.multi_reduction <add>, %475, %cst_86 [2] : vector<8x8x8xf32> to vector<8x8xf32>
    %477 = vector.shape_cast %476 : vector<8x8xf32> to vector<8x8x1xf32>
    %478 = vector.broadcast %477 : vector<8x8x1xf32> to vector<8x8x8xf32>
    %479 = arith.divf %475, %478 : vector<8x8x8xf32>
    %cst_87 = arith.constant dense<0.000000e+00> : vector<8x8x8xf32>
    %480 = tpu.matmul %479, %465, %cst_87 {dimension_numbers = #tpu.dot_dimension_numbers<[2], [1], [1], [2], [0, 0, 0, 1, 1, 2], [0], [0]>} : vector<8x8x8xf32>, vector<8x8x8xf32>, vector<8x8x8xf32> -> vector<8x8x8xf32>
    %481 = vector.extract_strided_slice %480 {offsets = [0, 0, 0], sizes = [1, 8, 8], strides = [1, 1, 1]} : vector<8x8x8xf32> to vector<1x8x8xf32>
    %482 = vector.shape_cast %481 : vector<1x8x8xf32> to vector<8x8xf32>
    %483 = vector.extract_strided_slice %480 {offsets = [1, 0, 0], sizes = [1, 8, 8], strides = [1, 1, 1]} : vector<8x8x8xf32> to vector<1x8x8xf32>
    %484 = vector.shape_cast %483 : vector<1x8x8xf32> to vector<8x8xf32>
    %485 = vector.extract_strided_slice %480 {offsets = [2, 0, 0], sizes = [1, 8, 8], strides = [1, 1, 1]} : vector<8x8x8xf32> to vector<1x8x8xf32>
    %486 = vector.shape_cast %485 : vector<1x8x8xf32> to vector<8x8xf32>
    %487 = vector.extract_strided_slice %480 {offsets = [3, 0, 0], sizes = [1, 8, 8], strides = [1, 1, 1]} : vector<8x8x8xf32> to vector<1x8x8xf32>
    %488 = vector.shape_cast %487 : vector<1x8x8xf32> to vector<8x8xf32>
    %489 = tpu.concatenate %482, %484, %486, %488 in 1 : vector<8x8xf32>, vector<8x8xf32>, vector<8x8xf32>, vector<8x8xf32> -> vector<8x32xf32>
    %490 = vector.extract_strided_slice %480 {offsets = [4, 0, 0], sizes = [1, 8, 8], strides = [1, 1, 1]} : vector<8x8x8xf32> to vector<1x8x8xf32>
    %491 = vector.shape_cast %490 : vector<1x8x8xf32> to vector<8x8xf32>
    %492 = vector.extract_strided_slice %480 {offsets = [5, 0, 0], sizes = [1, 8, 8], strides = [1, 1, 1]} : vector<8x8x8xf32> to vector<1x8x8xf32>
    %493 = vector.shape_cast %492 : vector<1x8x8xf32> to vector<8x8xf32>
    %494 = vector.extract_strided_slice %480 {offsets = [6, 0, 0], sizes = [1, 8, 8], strides = [1, 1, 1]} : vector<8x8x8xf32> to vector<1x8x8xf32>
    %495 = vector.shape_cast %494 : vector<1x8x8xf32> to vector<8x8xf32>
    %496 = vector.extract_strided_slice %480 {offsets = [7, 0, 0], sizes = [1, 8, 8], strides = [1, 1, 1]} : vector<8x8x8xf32> to vector<1x8x8xf32>
    %497 = vector.shape_cast %496 : vector<1x8x8xf32> to vector<8x8xf32>
    %498 = tpu.concatenate %491, %493, %495, %497 in 1 : vector<8x8xf32>, vector<8x8xf32>, vector<8x8xf32>, vector<8x8xf32> -> vector<8x32xf32>
    %499 = tpu.concatenate %489, %498 in 0 : vector<8x32xf32>, vector<8x32xf32> -> vector<16x32xf32>
    %cst_88 = arith.constant dense<0.000000e+00> : vector<16x32xf32>
    %500 = tpu.matmul %499, %389, %cst_88 {dimension_numbers = #tpu.dot_dimension_numbers<[1], [0], [0], [1], [0, 0, 1, 1], [], []>} : vector<16x32xf32>, vector<32x32xf32>, vector<16x32xf32> -> vector<16x32xf32>
    %501 = vector.broadcast %397 : vector<1x32xf32> to vector<16x32xf32>
    %502 = arith.addf %500, %501 : vector<16x32xf32>
    %503 = arith.addf %1, %502 : vector<16x32xf32>
    %cst_89 = arith.constant dense<0.000000e+00> : vector<16xf32>
    %504 = vector.multi_reduction <add>, %503, %cst_89 [1] : vector<16x32xf32> to vector<16xf32>
    %505 = vector.shape_cast %504 : vector<16xf32> to vector<16x1xf32>
    %cst_90 = arith.constant 3.200000e+01 : f32
    %506 = vector.broadcast %cst_90 : f32 to vector<16x1xf32>
    %507 = arith.divf %505, %506 : vector<16x1xf32>
    %508 = vector.broadcast %507 : vector<16x1xf32> to vector<16x32xf32>
    %509 = arith.subf %503, %508 : vector<16x32xf32>
    %510 = arith.mulf %509, %509 : vector<16x32xf32>
    %cst_91 = arith.constant dense<0.000000e+00> : vector<16xf32>
    %511 = vector.multi_reduction <add>, %510, %cst_91 [1] : vector<16x32xf32> to vector<16xf32>
    %512 = vector.shape_cast %511 : vector<16xf32> to vector<16x1xf32>
    %cst_92 = arith.constant 3.200000e+01 : f32
    %513 = vector.broadcast %cst_92 : f32 to vector<16x1xf32>
    %514 = arith.divf %512, %513 : vector<16x1xf32>
    %515 = vector.broadcast %507 : vector<16x1xf32> to vector<16x32xf32>
    %516 = arith.subf %503, %515 : vector<16x32xf32>
    %cst_93 = arith.constant 9.99999974E-6 : f32
    %517 = vector.broadcast %cst_93 : f32 to vector<16x1xf32>
    %518 = arith.addf %514, %517 : vector<16x1xf32>
    %519 = math.rsqrt %518 : vector<16x1xf32>
    %520 = vector.broadcast %519 : vector<16x1xf32> to vector<16x32xf32>
    %521 = arith.mulf %516, %520 : vector<16x32xf32>
    %522 = vector.broadcast %403 : vector<1x32xf32> to vector<16x32xf32>
    %523 = arith.mulf %521, %522 : vector<16x32xf32>
    %524 = vector.broadcast %404 : vector<1x32xf32> to vector<16x32xf32>
    %525 = arith.addf %523, %524 : vector<16x32xf32>
    %cst_94 = arith.constant dense<0.000000e+00> : vector<16x32xf32>
    %526 = tpu.matmul %525, %390, %cst_94 {dimension_numbers = #tpu.dot_dimension_numbers<[1], [0], [0], [1], [0, 0, 1, 1], [], []>} : vector<16x32xf32>, vector<32x32xf32>, vector<16x32xf32> -> vector<16x32xf32>
    %527 = vector.broadcast %398 : vector<1x32xf32> to vector<16x32xf32>
    %528 = arith.addf %526, %527 : vector<16x32xf32>
    %cst_95 = arith.constant dense<0.000000e+00> : vector<16x128xf32>
    %529 = tpu.matmul %387, %391, %cst_95 {dimension_numbers = #tpu.dot_dimension_numbers<[1], [0], [0], [1], [0, 0, 1, 1], [], []>} : vector<16x32xf32>, vector<32x128xf32>, vector<16x128xf32> -> vector<16x128xf32>
    %530 = vector.broadcast %399 : vector<1x128xf32> to vector<16x128xf32>
    %531 = arith.addf %529, %530 : vector<16x128xf32>
    %532 = vector.extract_strided_slice %531 {offsets = [0, 0], sizes = [16, 32], strides = [1, 1]} : vector<16x128xf32> to vector<16x32xf32>
    %533 = vector.extract_strided_slice %531 {offsets = [0, 32], sizes = [16, 32], strides = [1, 1]} : vector<16x128xf32> to vector<16x32xf32>
    %534 = vector.extract_strided_slice %528 {offsets = [0, 0], sizes = [8, 8], strides = [1, 1]} : vector<16x32xf32> to vector<8x8xf32>
    %535 = vector.shape_cast %534 : vector<8x8xf32> to vector<1x8x8xf32>
    %536 = vector.extract_strided_slice %528 {offsets = [0, 8], sizes = [8, 8], strides = [1, 1]} : vector<16x32xf32> to vector<8x8xf32>
    %537 = vector.shape_cast %536 : vector<8x8xf32> to vector<1x8x8xf32>
    %538 = vector.extract_strided_slice %528 {offsets = [0, 16], sizes = [8, 8], strides = [1, 1]} : vector<16x32xf32> to vector<8x8xf32>
    %539 = vector.shape_cast %538 : vector<8x8xf32> to vector<1x8x8xf32>
    %540 = vector.extract_strided_slice %528 {offsets = [0, 24], sizes = [8, 8], strides = [1, 1]} : vector<16x32xf32> to vector<8x8xf32>
    %541 = vector.shape_cast %540 : vector<8x8xf32> to vector<1x8x8xf32>
    %542 = vector.extract_strided_slice %528 {offsets = [8, 0], sizes = [8, 8], strides = [1, 1]} : vector<16x32xf32> to vector<8x8xf32>
    %543 = vector.shape_cast %542 : vector<8x8xf32> to vector<1x8x8xf32>
    %544 = vector.extract_strided_slice %528 {offsets = [8, 8], sizes = [8, 8], strides = [1, 1]} : vector<16x32xf32> to vector<8x8xf32>
    %545 = vector.shape_cast %544 : vector<8x8xf32> to vector<1x8x8xf32>
    %546 = vector.extract_strided_slice %528 {offsets = [8, 16], sizes = [8, 8], strides = [1, 1]} : vector<16x32xf32> to vector<8x8xf32>
    %547 = vector.shape_cast %546 : vector<8x8xf32> to vector<1x8x8xf32>
    %548 = vector.extract_strided_slice %528 {offsets = [8, 24], sizes = [8, 8], strides = [1, 1]} : vector<16x32xf32> to vector<8x8xf32>
    %549 = vector.shape_cast %548 : vector<8x8xf32> to vector<1x8x8xf32>
    %550 = tpu.concatenate %535, %537, %539, %541, %543, %545, %547, %549 in 0 : vector<1x8x8xf32>, vector<1x8x8xf32>, vector<1x8x8xf32>, vector<1x8x8xf32>, vector<1x8x8xf32>, vector<1x8x8xf32>, vector<1x8x8xf32>, vector<1x8x8xf32> -> vector<8x8x8xf32>
    %551 = vector.extract_strided_slice %532 {offsets = [0, 0], sizes = [8, 8], strides = [1, 1]} : vector<16x32xf32> to vector<8x8xf32>
    %552 = vector.shape_cast %551 : vector<8x8xf32> to vector<1x8x8xf32>
    %553 = vector.extract_strided_slice %532 {offsets = [0, 8], sizes = [8, 8], strides = [1, 1]} : vector<16x32xf32> to vector<8x8xf32>
    %554 = vector.shape_cast %553 : vector<8x8xf32> to vector<1x8x8xf32>
    %555 = vector.extract_strided_slice %532 {offsets = [0, 16], sizes = [8, 8], strides = [1, 1]} : vector<16x32xf32> to vector<8x8xf32>
    %556 = vector.shape_cast %555 : vector<8x8xf32> to vector<1x8x8xf32>
    %557 = vector.extract_strided_slice %532 {offsets = [0, 24], sizes = [8, 8], strides = [1, 1]} : vector<16x32xf32> to vector<8x8xf32>
    %558 = vector.shape_cast %557 : vector<8x8xf32> to vector<1x8x8xf32>
    %559 = vector.extract_strided_slice %532 {offsets = [8, 0], sizes = [8, 8], strides = [1, 1]} : vector<16x32xf32> to vector<8x8xf32>
    %560 = vector.shape_cast %559 : vector<8x8xf32> to vector<1x8x8xf32>
    %561 = vector.extract_strided_slice %532 {offsets = [8, 8], sizes = [8, 8], strides = [1, 1]} : vector<16x32xf32> to vector<8x8xf32>
    %562 = vector.shape_cast %561 : vector<8x8xf32> to vector<1x8x8xf32>
    %563 = vector.extract_strided_slice %532 {offsets = [8, 16], sizes = [8, 8], strides = [1, 1]} : vector<16x32xf32> to vector<8x8xf32>
    %564 = vector.shape_cast %563 : vector<8x8xf32> to vector<1x8x8xf32>
    %565 = vector.extract_strided_slice %532 {offsets = [8, 24], sizes = [8, 8], strides = [1, 1]} : vector<16x32xf32> to vector<8x8xf32>
    %566 = vector.shape_cast %565 : vector<8x8xf32> to vector<1x8x8xf32>
    %567 = tpu.concatenate %552, %554, %556, %558, %560, %562, %564, %566 in 0 : vector<1x8x8xf32>, vector<1x8x8xf32>, vector<1x8x8xf32>, vector<1x8x8xf32>, vector<1x8x8xf32>, vector<1x8x8xf32>, vector<1x8x8xf32>, vector<1x8x8xf32> -> vector<8x8x8xf32>
    %568 = vector.extract_strided_slice %533 {offsets = [0, 0], sizes = [8, 8], strides = [1, 1]} : vector<16x32xf32> to vector<8x8xf32>
    %569 = vector.shape_cast %568 : vector<8x8xf32> to vector<1x8x8xf32>
    %570 = vector.extract_strided_slice %533 {offsets = [0, 8], sizes = [8, 8], strides = [1, 1]} : vector<16x32xf32> to vector<8x8xf32>
    %571 = vector.shape_cast %570 : vector<8x8xf32> to vector<1x8x8xf32>
    %572 = vector.extract_strided_slice %533 {offsets = [0, 16], sizes = [8, 8], strides = [1, 1]} : vector<16x32xf32> to vector<8x8xf32>
    %573 = vector.shape_cast %572 : vector<8x8xf32> to vector<1x8x8xf32>
    %574 = vector.extract_strided_slice %533 {offsets = [0, 24], sizes = [8, 8], strides = [1, 1]} : vector<16x32xf32> to vector<8x8xf32>
    %575 = vector.shape_cast %574 : vector<8x8xf32> to vector<1x8x8xf32>
    %576 = vector.extract_strided_slice %533 {offsets = [8, 0], sizes = [8, 8], strides = [1, 1]} : vector<16x32xf32> to vector<8x8xf32>
    %577 = vector.shape_cast %576 : vector<8x8xf32> to vector<1x8x8xf32>
    %578 = vector.extract_strided_slice %533 {offsets = [8, 8], sizes = [8, 8], strides = [1, 1]} : vector<16x32xf32> to vector<8x8xf32>
    %579 = vector.shape_cast %578 : vector<8x8xf32> to vector<1x8x8xf32>
    %580 = vector.extract_strided_slice %533 {offsets = [8, 16], sizes = [8, 8], strides = [1, 1]} : vector<16x32xf32> to vector<8x8xf32>
    %581 = vector.shape_cast %580 : vector<8x8xf32> to vector<1x8x8xf32>
    %582 = vector.extract_strided_slice %533 {offsets = [8, 24], sizes = [8, 8], strides = [1, 1]} : vector<16x32xf32> to vector<8x8xf32>
    %583 = vector.shape_cast %582 : vector<8x8xf32> to vector<1x8x8xf32>
    %584 = tpu.concatenate %569, %571, %573, %575, %577, %579, %581, %583 in 0 : vector<1x8x8xf32>, vector<1x8x8xf32>, vector<1x8x8xf32>, vector<1x8x8xf32>, vector<1x8x8xf32>, vector<1x8x8xf32>, vector<1x8x8xf32>, vector<1x8x8xf32> -> vector<8x8x8xf32>
    %cst_96 = arith.constant dense<0.000000e+00> : vector<8x8x8xf32>
    %585 = tpu.matmul %550, %567, %cst_96 {dimension_numbers = #tpu.dot_dimension_numbers<[2], [2], [1], [1], [0, 0, 0, 1, 1, 1], [0], [0]>} : vector<8x8x8xf32>, vector<8x8x8xf32>, vector<8x8x8xf32> -> vector<8x8x8xf32>
    %cst_97 = arith.constant 0.353553385 : f32
    %586 = vector.broadcast %cst_97 : f32 to vector<8x8x8xf32>
    %587 = arith.mulf %585, %586 : vector<8x8x8xf32>
    %cst_98 = arith.constant dense<0xFF800000> : vector<8x8xf32>
    %588 = vector.multi_reduction <maximumf>, %587, %cst_98 [2] : vector<8x8x8xf32> to vector<8x8xf32>
    %589 = vector.shape_cast %588 : vector<8x8xf32> to vector<8x8x1xf32>
    %590 = vector.broadcast %589 : vector<8x8x1xf32> to vector<8x8x8xf32>
    %591 = arith.subf %587, %590 : vector<8x8x8xf32>
    %592 = math.exp %591 : vector<8x8x8xf32>
    %cst_99 = arith.constant dense<0.000000e+00> : vector<8x8xf32>
    %593 = vector.multi_reduction <add>, %592, %cst_99 [2] : vector<8x8x8xf32> to vector<8x8xf32>
    %594 = vector.shape_cast %593 : vector<8x8xf32> to vector<8x8x1xf32>
    %595 = vector.broadcast %594 : vector<8x8x1xf32> to vector<8x8x8xf32>
    %596 = arith.divf %592, %595 : vector<8x8x8xf32>
    %cst_100 = arith.constant dense<0.000000e+00> : vector<8x8x8xf32>
    %597 = tpu.matmul %596, %584, %cst_100 {dimension_numbers = #tpu.dot_dimension_numbers<[2], [1], [1], [2], [0, 0, 0, 1, 1, 2], [0], [0]>} : vector<8x8x8xf32>, vector<8x8x8xf32>, vector<8x8x8xf32> -> vector<8x8x8xf32>
    %598 = vector.extract_strided_slice %597 {offsets = [0, 0, 0], sizes = [1, 8, 8], strides = [1, 1, 1]} : vector<8x8x8xf32> to vector<1x8x8xf32>
    %599 = vector.shape_cast %598 : vector<1x8x8xf32> to vector<8x8xf32>
    %600 = vector.extract_strided_slice %597 {offsets = [1, 0, 0], sizes = [1, 8, 8], strides = [1, 1, 1]} : vector<8x8x8xf32> to vector<1x8x8xf32>
    %601 = vector.shape_cast %600 : vector<1x8x8xf32> to vector<8x8xf32>
    %602 = vector.extract_strided_slice %597 {offsets = [2, 0, 0], sizes = [1, 8, 8], strides = [1, 1, 1]} : vector<8x8x8xf32> to vector<1x8x8xf32>
    %603 = vector.shape_cast %602 : vector<1x8x8xf32> to vector<8x8xf32>
    %604 = vector.extract_strided_slice %597 {offsets = [3, 0, 0], sizes = [1, 8, 8], strides = [1, 1, 1]} : vector<8x8x8xf32> to vector<1x8x8xf32>
    %605 = vector.shape_cast %604 : vector<1x8x8xf32> to vector<8x8xf32>
    %606 = tpu.concatenate %599, %601, %603, %605 in 1 : vector<8x8xf32>, vector<8x8xf32>, vector<8x8xf32>, vector<8x8xf32> -> vector<8x32xf32>
    %607 = vector.extract_strided_slice %597 {offsets = [4, 0, 0], sizes = [1, 8, 8], strides = [1, 1, 1]} : vector<8x8x8xf32> to vector<1x8x8xf32>
    %608 = vector.shape_cast %607 : vector<1x8x8xf32> to vector<8x8xf32>
    %609 = vector.extract_strided_slice %597 {offsets = [5, 0, 0], sizes = [1, 8, 8], strides = [1, 1, 1]} : vector<8x8x8xf32> to vector<1x8x8xf32>
    %610 = vector.shape_cast %609 : vector<1x8x8xf32> to vector<8x8xf32>
    %611 = vector.extract_strided_slice %597 {offsets = [6, 0, 0], sizes = [1, 8, 8], strides = [1, 1, 1]} : vector<8x8x8xf32> to vector<1x8x8xf32>
    %612 = vector.shape_cast %611 : vector<1x8x8xf32> to vector<8x8xf32>
    %613 = vector.extract_strided_slice %597 {offsets = [7, 0, 0], sizes = [1, 8, 8], strides = [1, 1, 1]} : vector<8x8x8xf32> to vector<1x8x8xf32>
    %614 = vector.shape_cast %613 : vector<1x8x8xf32> to vector<8x8xf32>
    %615 = tpu.concatenate %608, %610, %612, %614 in 1 : vector<8x8xf32>, vector<8x8xf32>, vector<8x8xf32>, vector<8x8xf32> -> vector<8x32xf32>
    %616 = tpu.concatenate %606, %615 in 0 : vector<8x32xf32>, vector<8x32xf32> -> vector<16x32xf32>
    %cst_101 = arith.constant dense<0.000000e+00> : vector<16x32xf32>
    %617 = tpu.matmul %616, %392, %cst_101 {dimension_numbers = #tpu.dot_dimension_numbers<[1], [0], [0], [1], [0, 0, 1, 1], [], []>} : vector<16x32xf32>, vector<32x32xf32>, vector<16x32xf32> -> vector<16x32xf32>
    %618 = vector.broadcast %400 : vector<1x32xf32> to vector<16x32xf32>
    %619 = arith.addf %617, %618 : vector<16x32xf32>
    %620 = arith.addf %525, %619 : vector<16x32xf32>
    %cst_102 = arith.constant dense<0.000000e+00> : vector<16xf32>
    %621 = vector.multi_reduction <add>, %620, %cst_102 [1] : vector<16x32xf32> to vector<16xf32>
    %622 = vector.shape_cast %621 : vector<16xf32> to vector<16x1xf32>
    %cst_103 = arith.constant 3.200000e+01 : f32
    %623 = vector.broadcast %cst_103 : f32 to vector<16x1xf32>
    %624 = arith.divf %622, %623 : vector<16x1xf32>
    %625 = vector.broadcast %624 : vector<16x1xf32> to vector<16x32xf32>
    %626 = arith.subf %620, %625 : vector<16x32xf32>
    %627 = arith.mulf %626, %626 : vector<16x32xf32>
    %cst_104 = arith.constant dense<0.000000e+00> : vector<16xf32>
    %628 = vector.multi_reduction <add>, %627, %cst_104 [1] : vector<16x32xf32> to vector<16xf32>
    %629 = vector.shape_cast %628 : vector<16xf32> to vector<16x1xf32>
    %cst_105 = arith.constant 3.200000e+01 : f32
    %630 = vector.broadcast %cst_105 : f32 to vector<16x1xf32>
    %631 = arith.divf %629, %630 : vector<16x1xf32>
    %632 = vector.broadcast %624 : vector<16x1xf32> to vector<16x32xf32>
    %633 = arith.subf %620, %632 : vector<16x32xf32>
    %cst_106 = arith.constant 9.99999974E-6 : f32
    %634 = vector.broadcast %cst_106 : f32 to vector<16x1xf32>
    %635 = arith.addf %631, %634 : vector<16x1xf32>
    %636 = math.rsqrt %635 : vector<16x1xf32>
    %637 = vector.broadcast %636 : vector<16x1xf32> to vector<16x32xf32>
    %638 = arith.mulf %633, %637 : vector<16x32xf32>
    %639 = vector.broadcast %405 : vector<1x32xf32> to vector<16x32xf32>
    %640 = arith.mulf %638, %639 : vector<16x32xf32>
    %641 = vector.broadcast %406 : vector<1x32xf32> to vector<16x32xf32>
    %642 = arith.addf %640, %641 : vector<16x32xf32>
    %cst_107 = arith.constant dense<0.000000e+00> : vector<16x64xf32>
    %643 = tpu.matmul %642, %393, %cst_107 {dimension_numbers = #tpu.dot_dimension_numbers<[1], [0], [0], [1], [0, 0, 1, 1], [], []>} : vector<16x32xf32>, vector<32x64xf32>, vector<16x64xf32> -> vector<16x64xf32>
    %644 = vector.broadcast %401 : vector<1x64xf32> to vector<16x64xf32>
    %645 = arith.addf %643, %644 : vector<16x64xf32>
    %cst_108 = arith.constant 0.000000e+00 : f32
    %646 = vector.broadcast %cst_108 : f32 to vector<16x64xf32>
    %647 = arith.maximumf %645, %646 : vector<16x64xf32>
    %cst_109 = arith.constant dense<0.000000e+00> : vector<16x32xf32>
    %648 = tpu.matmul %647, %394, %cst_109 {dimension_numbers = #tpu.dot_dimension_numbers<[1], [0], [0], [1], [0, 0, 1, 1], [], []>} : vector<16x64xf32>, vector<64x32xf32>, vector<16x32xf32> -> vector<16x32xf32>
    %649 = vector.broadcast %402 : vector<1x32xf32> to vector<16x32xf32>
    %650 = arith.addf %648, %649 : vector<16x32xf32>
    %651 = arith.addf %642, %650 : vector<16x32xf32>
    %cst_110 = arith.constant dense<0.000000e+00> : vector<16xf32>
    %652 = vector.multi_reduction <add>, %651, %cst_110 [1] : vector<16x32xf32> to vector<16xf32>
    %653 = vector.shape_cast %652 : vector<16xf32> to vector<16x1xf32>
    %cst_111 = arith.constant 3.200000e+01 : f32
    %654 = vector.broadcast %cst_111 : f32 to vector<16x1xf32>
    %655 = arith.divf %653, %654 : vector<16x1xf32>
    %656 = vector.broadcast %655 : vector<16x1xf32> to vector<16x32xf32>
    %657 = arith.subf %651, %656 : vector<16x32xf32>
    %658 = arith.mulf %657, %657 : vector<16x32xf32>
    %cst_112 = arith.constant dense<0.000000e+00> : vector<16xf32>
    %659 = vector.multi_reduction <add>, %658, %cst_112 [1] : vector<16x32xf32> to vector<16xf32>
    %660 = vector.shape_cast %659 : vector<16xf32> to vector<16x1xf32>
    %cst_113 = arith.constant 3.200000e+01 : f32
    %661 = vector.broadcast %cst_113 : f32 to vector<16x1xf32>
    %662 = arith.divf %660, %661 : vector<16x1xf32>
    %663 = vector.broadcast %655 : vector<16x1xf32> to vector<16x32xf32>
    %664 = arith.subf %651, %663 : vector<16x32xf32>
    %cst_114 = arith.constant 9.99999974E-6 : f32
    %665 = vector.broadcast %cst_114 : f32 to vector<16x1xf32>
    %666 = arith.addf %662, %665 : vector<16x1xf32>
    %667 = math.rsqrt %666 : vector<16x1xf32>
    %668 = vector.broadcast %667 : vector<16x1xf32> to vector<16x32xf32>
    %669 = arith.mulf %664, %668 : vector<16x32xf32>
    %670 = vector.broadcast %407 : vector<1x32xf32> to vector<16x32xf32>
    %671 = arith.mulf %669, %670 : vector<16x32xf32>
    %672 = vector.broadcast %408 : vector<1x32xf32> to vector<16x32xf32>
    %673 = arith.addf %671, %672 : vector<16x32xf32>
    %c0_115 = arith.constant 0 : index
    %c0_116 = arith.constant 0 : index
    %674 = vector.load %arg6[%c0_115, %c0_116] : memref<272x128xf32, #tpu.memory_space<vmem>>, vector<32x128xf32>
    %c32_117 = arith.constant 32 : index
    %c0_118 = arith.constant 0 : index
    %675 = vector.load %arg6[%c32_117, %c0_118] : memref<272x128xf32, #tpu.memory_space<vmem>>, vector<32x32xf32>
    %c64_119 = arith.constant 64 : index
    %c0_120 = arith.constant 0 : index
    %676 = vector.load %arg6[%c64_119, %c0_120] : memref<272x128xf32, #tpu.memory_space<vmem>>, vector<32x32xf32>
    %c96_121 = arith.constant 96 : index
    %c0_122 = arith.constant 0 : index
    %677 = vector.load %arg6[%c96_121, %c0_122] : memref<272x128xf32, #tpu.memory_space<vmem>>, vector<32x128xf32>
    %c128_123 = arith.constant 128 : index
    %c0_124 = arith.constant 0 : index
    %678 = vector.load %arg6[%c128_123, %c0_124] : memref<272x128xf32, #tpu.memory_space<vmem>>, vector<32x32xf32>
    %c160_125 = arith.constant 160 : index
    %c0_126 = arith.constant 0 : index
    %679 = vector.load %arg6[%c160_125, %c0_126] : memref<272x128xf32, #tpu.memory_space<vmem>>, vector<32x64xf32>
    %c192_127 = arith.constant 192 : index
    %c0_128 = arith.constant 0 : index
    %680 = vector.load %arg6[%c192_127, %c0_128] : memref<272x128xf32, #tpu.memory_space<vmem>>, vector<64x32xf32>
    %c256_129 = arith.constant 256 : index
    %c0_130 = arith.constant 0 : index
    %681 = vector.load %arg6[%c256_129, %c0_130] : memref<272x128xf32, #tpu.memory_space<vmem>>, vector<16x128xf32>
    %682 = vector.extract_strided_slice %681 {offsets = [0, 0], sizes = [1, 128], strides = [1, 1]} : vector<16x128xf32> to vector<1x128xf32>
    %683 = vector.extract_strided_slice %681 {offsets = [1, 0], sizes = [1, 32], strides = [1, 1]} : vector<16x128xf32> to vector<1x32xf32>
    %684 = vector.extract_strided_slice %681 {offsets = [2, 0], sizes = [1, 32], strides = [1, 1]} : vector<16x128xf32> to vector<1x32xf32>
    %685 = vector.extract_strided_slice %681 {offsets = [3, 0], sizes = [1, 128], strides = [1, 1]} : vector<16x128xf32> to vector<1x128xf32>
    %686 = vector.extract_strided_slice %681 {offsets = [4, 0], sizes = [1, 32], strides = [1, 1]} : vector<16x128xf32> to vector<1x32xf32>
    %687 = vector.extract_strided_slice %681 {offsets = [5, 0], sizes = [1, 64], strides = [1, 1]} : vector<16x128xf32> to vector<1x64xf32>
    %688 = vector.extract_strided_slice %681 {offsets = [6, 0], sizes = [1, 32], strides = [1, 1]} : vector<16x128xf32> to vector<1x32xf32>
    %689 = vector.extract_strided_slice %681 {offsets = [7, 0], sizes = [1, 32], strides = [1, 1]} : vector<16x128xf32> to vector<1x32xf32>
    %690 = vector.extract_strided_slice %681 {offsets = [8, 0], sizes = [1, 32], strides = [1, 1]} : vector<16x128xf32> to vector<1x32xf32>
    %691 = vector.extract_strided_slice %681 {offsets = [9, 0], sizes = [1, 32], strides = [1, 1]} : vector<16x128xf32> to vector<1x32xf32>
    %692 = vector.extract_strided_slice %681 {offsets = [10, 0], sizes = [1, 32], strides = [1, 1]} : vector<16x128xf32> to vector<1x32xf32>
    %693 = vector.extract_strided_slice %681 {offsets = [11, 0], sizes = [1, 32], strides = [1, 1]} : vector<16x128xf32> to vector<1x32xf32>
    %694 = vector.extract_strided_slice %681 {offsets = [12, 0], sizes = [1, 32], strides = [1, 1]} : vector<16x128xf32> to vector<1x32xf32>
    %cst_131 = arith.constant dense<0.000000e+00> : vector<16x128xf32>
    %695 = tpu.matmul %673, %674, %cst_131 {dimension_numbers = #tpu.dot_dimension_numbers<[1], [0], [0], [1], [0, 0, 1, 1], [], []>} : vector<16x32xf32>, vector<32x128xf32>, vector<16x128xf32> -> vector<16x128xf32>
    %696 = vector.broadcast %682 : vector<1x128xf32> to vector<16x128xf32>
    %697 = arith.addf %695, %696 : vector<16x128xf32>
    %698 = vector.extract_strided_slice %697 {offsets = [0, 0], sizes = [16, 32], strides = [1, 1]} : vector<16x128xf32> to vector<16x32xf32>
    %699 = vector.extract_strided_slice %697 {offsets = [0, 32], sizes = [16, 32], strides = [1, 1]} : vector<16x128xf32> to vector<16x32xf32>
    %700 = vector.extract_strided_slice %697 {offsets = [0, 64], sizes = [16, 32], strides = [1, 1]} : vector<16x128xf32> to vector<16x32xf32>
    %701 = vector.extract_strided_slice %698 {offsets = [0, 0], sizes = [8, 8], strides = [1, 1]} : vector<16x32xf32> to vector<8x8xf32>
    %702 = vector.shape_cast %701 : vector<8x8xf32> to vector<1x8x8xf32>
    %703 = vector.extract_strided_slice %698 {offsets = [0, 8], sizes = [8, 8], strides = [1, 1]} : vector<16x32xf32> to vector<8x8xf32>
    %704 = vector.shape_cast %703 : vector<8x8xf32> to vector<1x8x8xf32>
    %705 = vector.extract_strided_slice %698 {offsets = [0, 16], sizes = [8, 8], strides = [1, 1]} : vector<16x32xf32> to vector<8x8xf32>
    %706 = vector.shape_cast %705 : vector<8x8xf32> to vector<1x8x8xf32>
    %707 = vector.extract_strided_slice %698 {offsets = [0, 24], sizes = [8, 8], strides = [1, 1]} : vector<16x32xf32> to vector<8x8xf32>
    %708 = vector.shape_cast %707 : vector<8x8xf32> to vector<1x8x8xf32>
    %709 = vector.extract_strided_slice %698 {offsets = [8, 0], sizes = [8, 8], strides = [1, 1]} : vector<16x32xf32> to vector<8x8xf32>
    %710 = vector.shape_cast %709 : vector<8x8xf32> to vector<1x8x8xf32>
    %711 = vector.extract_strided_slice %698 {offsets = [8, 8], sizes = [8, 8], strides = [1, 1]} : vector<16x32xf32> to vector<8x8xf32>
    %712 = vector.shape_cast %711 : vector<8x8xf32> to vector<1x8x8xf32>
    %713 = vector.extract_strided_slice %698 {offsets = [8, 16], sizes = [8, 8], strides = [1, 1]} : vector<16x32xf32> to vector<8x8xf32>
    %714 = vector.shape_cast %713 : vector<8x8xf32> to vector<1x8x8xf32>
    %715 = vector.extract_strided_slice %698 {offsets = [8, 24], sizes = [8, 8], strides = [1, 1]} : vector<16x32xf32> to vector<8x8xf32>
    %716 = vector.shape_cast %715 : vector<8x8xf32> to vector<1x8x8xf32>
    %717 = tpu.concatenate %702, %704, %706, %708, %710, %712, %714, %716 in 0 : vector<1x8x8xf32>, vector<1x8x8xf32>, vector<1x8x8xf32>, vector<1x8x8xf32>, vector<1x8x8xf32>, vector<1x8x8xf32>, vector<1x8x8xf32>, vector<1x8x8xf32> -> vector<8x8x8xf32>
    %718 = vector.extract_strided_slice %699 {offsets = [0, 0], sizes = [8, 8], strides = [1, 1]} : vector<16x32xf32> to vector<8x8xf32>
    %719 = vector.shape_cast %718 : vector<8x8xf32> to vector<1x8x8xf32>
    %720 = vector.extract_strided_slice %699 {offsets = [0, 8], sizes = [8, 8], strides = [1, 1]} : vector<16x32xf32> to vector<8x8xf32>
    %721 = vector.shape_cast %720 : vector<8x8xf32> to vector<1x8x8xf32>
    %722 = vector.extract_strided_slice %699 {offsets = [0, 16], sizes = [8, 8], strides = [1, 1]} : vector<16x32xf32> to vector<8x8xf32>
    %723 = vector.shape_cast %722 : vector<8x8xf32> to vector<1x8x8xf32>
    %724 = vector.extract_strided_slice %699 {offsets = [0, 24], sizes = [8, 8], strides = [1, 1]} : vector<16x32xf32> to vector<8x8xf32>
    %725 = vector.shape_cast %724 : vector<8x8xf32> to vector<1x8x8xf32>
    %726 = vector.extract_strided_slice %699 {offsets = [8, 0], sizes = [8, 8], strides = [1, 1]} : vector<16x32xf32> to vector<8x8xf32>
    %727 = vector.shape_cast %726 : vector<8x8xf32> to vector<1x8x8xf32>
    %728 = vector.extract_strided_slice %699 {offsets = [8, 8], sizes = [8, 8], strides = [1, 1]} : vector<16x32xf32> to vector<8x8xf32>
    %729 = vector.shape_cast %728 : vector<8x8xf32> to vector<1x8x8xf32>
    %730 = vector.extract_strided_slice %699 {offsets = [8, 16], sizes = [8, 8], strides = [1, 1]} : vector<16x32xf32> to vector<8x8xf32>
    %731 = vector.shape_cast %730 : vector<8x8xf32> to vector<1x8x8xf32>
    %732 = vector.extract_strided_slice %699 {offsets = [8, 24], sizes = [8, 8], strides = [1, 1]} : vector<16x32xf32> to vector<8x8xf32>
    %733 = vector.shape_cast %732 : vector<8x8xf32> to vector<1x8x8xf32>
    %734 = tpu.concatenate %719, %721, %723, %725, %727, %729, %731, %733 in 0 : vector<1x8x8xf32>, vector<1x8x8xf32>, vector<1x8x8xf32>, vector<1x8x8xf32>, vector<1x8x8xf32>, vector<1x8x8xf32>, vector<1x8x8xf32>, vector<1x8x8xf32> -> vector<8x8x8xf32>
    %735 = vector.extract_strided_slice %700 {offsets = [0, 0], sizes = [8, 8], strides = [1, 1]} : vector<16x32xf32> to vector<8x8xf32>
    %736 = vector.shape_cast %735 : vector<8x8xf32> to vector<1x8x8xf32>
    %737 = vector.extract_strided_slice %700 {offsets = [0, 8], sizes = [8, 8], strides = [1, 1]} : vector<16x32xf32> to vector<8x8xf32>
    %738 = vector.shape_cast %737 : vector<8x8xf32> to vector<1x8x8xf32>
    %739 = vector.extract_strided_slice %700 {offsets = [0, 16], sizes = [8, 8], strides = [1, 1]} : vector<16x32xf32> to vector<8x8xf32>
    %740 = vector.shape_cast %739 : vector<8x8xf32> to vector<1x8x8xf32>
    %741 = vector.extract_strided_slice %700 {offsets = [0, 24], sizes = [8, 8], strides = [1, 1]} : vector<16x32xf32> to vector<8x8xf32>
    %742 = vector.shape_cast %741 : vector<8x8xf32> to vector<1x8x8xf32>
    %743 = vector.extract_strided_slice %700 {offsets = [8, 0], sizes = [8, 8], strides = [1, 1]} : vector<16x32xf32> to vector<8x8xf32>
    %744 = vector.shape_cast %743 : vector<8x8xf32> to vector<1x8x8xf32>
    %745 = vector.extract_strided_slice %700 {offsets = [8, 8], sizes = [8, 8], strides = [1, 1]} : vector<16x32xf32> to vector<8x8xf32>
    %746 = vector.shape_cast %745 : vector<8x8xf32> to vector<1x8x8xf32>
    %747 = vector.extract_strided_slice %700 {offsets = [8, 16], sizes = [8, 8], strides = [1, 1]} : vector<16x32xf32> to vector<8x8xf32>
    %748 = vector.shape_cast %747 : vector<8x8xf32> to vector<1x8x8xf32>
    %749 = vector.extract_strided_slice %700 {offsets = [8, 24], sizes = [8, 8], strides = [1, 1]} : vector<16x32xf32> to vector<8x8xf32>
    %750 = vector.shape_cast %749 : vector<8x8xf32> to vector<1x8x8xf32>
    %751 = tpu.concatenate %736, %738, %740, %742, %744, %746, %748, %750 in 0 : vector<1x8x8xf32>, vector<1x8x8xf32>, vector<1x8x8xf32>, vector<1x8x8xf32>, vector<1x8x8xf32>, vector<1x8x8xf32>, vector<1x8x8xf32>, vector<1x8x8xf32> -> vector<8x8x8xf32>
    %cst_132 = arith.constant dense<0.000000e+00> : vector<8x8x8xf32>
    %752 = tpu.matmul %717, %734, %cst_132 {dimension_numbers = #tpu.dot_dimension_numbers<[2], [2], [1], [1], [0, 0, 0, 1, 1, 1], [0], [0]>} : vector<8x8x8xf32>, vector<8x8x8xf32>, vector<8x8x8xf32> -> vector<8x8x8xf32>
    %cst_133 = arith.constant 0.353553385 : f32
    %753 = vector.broadcast %cst_133 : f32 to vector<8x8x8xf32>
    %754 = arith.mulf %752, %753 : vector<8x8x8xf32>
    %755 = vector.broadcast %42 : vector<1x8x8xf32> to vector<8x8x8xf32>
    %756 = arith.addf %754, %755 : vector<8x8x8xf32>
    %cst_134 = arith.constant dense<0xFF800000> : vector<8x8xf32>
    %757 = vector.multi_reduction <maximumf>, %756, %cst_134 [2] : vector<8x8x8xf32> to vector<8x8xf32>
    %758 = vector.shape_cast %757 : vector<8x8xf32> to vector<8x8x1xf32>
    %759 = vector.broadcast %758 : vector<8x8x1xf32> to vector<8x8x8xf32>
    %760 = arith.subf %756, %759 : vector<8x8x8xf32>
    %761 = math.exp %760 : vector<8x8x8xf32>
    %cst_135 = arith.constant dense<0.000000e+00> : vector<8x8xf32>
    %762 = vector.multi_reduction <add>, %761, %cst_135 [2] : vector<8x8x8xf32> to vector<8x8xf32>
    %763 = vector.shape_cast %762 : vector<8x8xf32> to vector<8x8x1xf32>
    %764 = vector.broadcast %763 : vector<8x8x1xf32> to vector<8x8x8xf32>
    %765 = arith.divf %761, %764 : vector<8x8x8xf32>
    %cst_136 = arith.constant dense<0.000000e+00> : vector<8x8x8xf32>
    %766 = tpu.matmul %765, %751, %cst_136 {dimension_numbers = #tpu.dot_dimension_numbers<[2], [1], [1], [2], [0, 0, 0, 1, 1, 2], [0], [0]>} : vector<8x8x8xf32>, vector<8x8x8xf32>, vector<8x8x8xf32> -> vector<8x8x8xf32>
    %767 = vector.extract_strided_slice %766 {offsets = [0, 0, 0], sizes = [1, 8, 8], strides = [1, 1, 1]} : vector<8x8x8xf32> to vector<1x8x8xf32>
    %768 = vector.shape_cast %767 : vector<1x8x8xf32> to vector<8x8xf32>
    %769 = vector.extract_strided_slice %766 {offsets = [1, 0, 0], sizes = [1, 8, 8], strides = [1, 1, 1]} : vector<8x8x8xf32> to vector<1x8x8xf32>
    %770 = vector.shape_cast %769 : vector<1x8x8xf32> to vector<8x8xf32>
    %771 = vector.extract_strided_slice %766 {offsets = [2, 0, 0], sizes = [1, 8, 8], strides = [1, 1, 1]} : vector<8x8x8xf32> to vector<1x8x8xf32>
    %772 = vector.shape_cast %771 : vector<1x8x8xf32> to vector<8x8xf32>
    %773 = vector.extract_strided_slice %766 {offsets = [3, 0, 0], sizes = [1, 8, 8], strides = [1, 1, 1]} : vector<8x8x8xf32> to vector<1x8x8xf32>
    %774 = vector.shape_cast %773 : vector<1x8x8xf32> to vector<8x8xf32>
    %775 = tpu.concatenate %768, %770, %772, %774 in 1 : vector<8x8xf32>, vector<8x8xf32>, vector<8x8xf32>, vector<8x8xf32> -> vector<8x32xf32>
    %776 = vector.extract_strided_slice %766 {offsets = [4, 0, 0], sizes = [1, 8, 8], strides = [1, 1, 1]} : vector<8x8x8xf32> to vector<1x8x8xf32>
    %777 = vector.shape_cast %776 : vector<1x8x8xf32> to vector<8x8xf32>
    %778 = vector.extract_strided_slice %766 {offsets = [5, 0, 0], sizes = [1, 8, 8], strides = [1, 1, 1]} : vector<8x8x8xf32> to vector<1x8x8xf32>
    %779 = vector.shape_cast %778 : vector<1x8x8xf32> to vector<8x8xf32>
    %780 = vector.extract_strided_slice %766 {offsets = [6, 0, 0], sizes = [1, 8, 8], strides = [1, 1, 1]} : vector<8x8x8xf32> to vector<1x8x8xf32>
    %781 = vector.shape_cast %780 : vector<1x8x8xf32> to vector<8x8xf32>
    %782 = vector.extract_strided_slice %766 {offsets = [7, 0, 0], sizes = [1, 8, 8], strides = [1, 1, 1]} : vector<8x8x8xf32> to vector<1x8x8xf32>
    %783 = vector.shape_cast %782 : vector<1x8x8xf32> to vector<8x8xf32>
    %784 = tpu.concatenate %777, %779, %781, %783 in 1 : vector<8x8xf32>, vector<8x8xf32>, vector<8x8xf32>, vector<8x8xf32> -> vector<8x32xf32>
    %785 = tpu.concatenate %775, %784 in 0 : vector<8x32xf32>, vector<8x32xf32> -> vector<16x32xf32>
    %cst_137 = arith.constant dense<0.000000e+00> : vector<16x32xf32>
    %786 = tpu.matmul %785, %675, %cst_137 {dimension_numbers = #tpu.dot_dimension_numbers<[1], [0], [0], [1], [0, 0, 1, 1], [], []>} : vector<16x32xf32>, vector<32x32xf32>, vector<16x32xf32> -> vector<16x32xf32>
    %787 = vector.broadcast %683 : vector<1x32xf32> to vector<16x32xf32>
    %788 = arith.addf %786, %787 : vector<16x32xf32>
    %789 = arith.addf %673, %788 : vector<16x32xf32>
    %cst_138 = arith.constant dense<0.000000e+00> : vector<16xf32>
    %790 = vector.multi_reduction <add>, %789, %cst_138 [1] : vector<16x32xf32> to vector<16xf32>
    %791 = vector.shape_cast %790 : vector<16xf32> to vector<16x1xf32>
    %cst_139 = arith.constant 3.200000e+01 : f32
    %792 = vector.broadcast %cst_139 : f32 to vector<16x1xf32>
    %793 = arith.divf %791, %792 : vector<16x1xf32>
    %794 = vector.broadcast %793 : vector<16x1xf32> to vector<16x32xf32>
    %795 = arith.subf %789, %794 : vector<16x32xf32>
    %796 = arith.mulf %795, %795 : vector<16x32xf32>
    %cst_140 = arith.constant dense<0.000000e+00> : vector<16xf32>
    %797 = vector.multi_reduction <add>, %796, %cst_140 [1] : vector<16x32xf32> to vector<16xf32>
    %798 = vector.shape_cast %797 : vector<16xf32> to vector<16x1xf32>
    %cst_141 = arith.constant 3.200000e+01 : f32
    %799 = vector.broadcast %cst_141 : f32 to vector<16x1xf32>
    %800 = arith.divf %798, %799 : vector<16x1xf32>
    %801 = vector.broadcast %793 : vector<16x1xf32> to vector<16x32xf32>
    %802 = arith.subf %789, %801 : vector<16x32xf32>
    %cst_142 = arith.constant 9.99999974E-6 : f32
    %803 = vector.broadcast %cst_142 : f32 to vector<16x1xf32>
    %804 = arith.addf %800, %803 : vector<16x1xf32>
    %805 = math.rsqrt %804 : vector<16x1xf32>
    %806 = vector.broadcast %805 : vector<16x1xf32> to vector<16x32xf32>
    %807 = arith.mulf %802, %806 : vector<16x32xf32>
    %808 = vector.broadcast %689 : vector<1x32xf32> to vector<16x32xf32>
    %809 = arith.mulf %807, %808 : vector<16x32xf32>
    %810 = vector.broadcast %690 : vector<1x32xf32> to vector<16x32xf32>
    %811 = arith.addf %809, %810 : vector<16x32xf32>
    %cst_143 = arith.constant dense<0.000000e+00> : vector<16x32xf32>
    %812 = tpu.matmul %811, %676, %cst_143 {dimension_numbers = #tpu.dot_dimension_numbers<[1], [0], [0], [1], [0, 0, 1, 1], [], []>} : vector<16x32xf32>, vector<32x32xf32>, vector<16x32xf32> -> vector<16x32xf32>
    %813 = vector.broadcast %684 : vector<1x32xf32> to vector<16x32xf32>
    %814 = arith.addf %812, %813 : vector<16x32xf32>
    %cst_144 = arith.constant dense<0.000000e+00> : vector<16x128xf32>
    %815 = tpu.matmul %387, %677, %cst_144 {dimension_numbers = #tpu.dot_dimension_numbers<[1], [0], [0], [1], [0, 0, 1, 1], [], []>} : vector<16x32xf32>, vector<32x128xf32>, vector<16x128xf32> -> vector<16x128xf32>
    %816 = vector.broadcast %685 : vector<1x128xf32> to vector<16x128xf32>
    %817 = arith.addf %815, %816 : vector<16x128xf32>
    %818 = vector.extract_strided_slice %817 {offsets = [0, 0], sizes = [16, 32], strides = [1, 1]} : vector<16x128xf32> to vector<16x32xf32>
    %819 = vector.extract_strided_slice %817 {offsets = [0, 32], sizes = [16, 32], strides = [1, 1]} : vector<16x128xf32> to vector<16x32xf32>
    %820 = vector.extract_strided_slice %814 {offsets = [0, 0], sizes = [8, 8], strides = [1, 1]} : vector<16x32xf32> to vector<8x8xf32>
    %821 = vector.shape_cast %820 : vector<8x8xf32> to vector<1x8x8xf32>
    %822 = vector.extract_strided_slice %814 {offsets = [0, 8], sizes = [8, 8], strides = [1, 1]} : vector<16x32xf32> to vector<8x8xf32>
    %823 = vector.shape_cast %822 : vector<8x8xf32> to vector<1x8x8xf32>
    %824 = vector.extract_strided_slice %814 {offsets = [0, 16], sizes = [8, 8], strides = [1, 1]} : vector<16x32xf32> to vector<8x8xf32>
    %825 = vector.shape_cast %824 : vector<8x8xf32> to vector<1x8x8xf32>
    %826 = vector.extract_strided_slice %814 {offsets = [0, 24], sizes = [8, 8], strides = [1, 1]} : vector<16x32xf32> to vector<8x8xf32>
    %827 = vector.shape_cast %826 : vector<8x8xf32> to vector<1x8x8xf32>
    %828 = vector.extract_strided_slice %814 {offsets = [8, 0], sizes = [8, 8], strides = [1, 1]} : vector<16x32xf32> to vector<8x8xf32>
    %829 = vector.shape_cast %828 : vector<8x8xf32> to vector<1x8x8xf32>
    %830 = vector.extract_strided_slice %814 {offsets = [8, 8], sizes = [8, 8], strides = [1, 1]} : vector<16x32xf32> to vector<8x8xf32>
    %831 = vector.shape_cast %830 : vector<8x8xf32> to vector<1x8x8xf32>
    %832 = vector.extract_strided_slice %814 {offsets = [8, 16], sizes = [8, 8], strides = [1, 1]} : vector<16x32xf32> to vector<8x8xf32>
    %833 = vector.shape_cast %832 : vector<8x8xf32> to vector<1x8x8xf32>
    %834 = vector.extract_strided_slice %814 {offsets = [8, 24], sizes = [8, 8], strides = [1, 1]} : vector<16x32xf32> to vector<8x8xf32>
    %835 = vector.shape_cast %834 : vector<8x8xf32> to vector<1x8x8xf32>
    %836 = tpu.concatenate %821, %823, %825, %827, %829, %831, %833, %835 in 0 : vector<1x8x8xf32>, vector<1x8x8xf32>, vector<1x8x8xf32>, vector<1x8x8xf32>, vector<1x8x8xf32>, vector<1x8x8xf32>, vector<1x8x8xf32>, vector<1x8x8xf32> -> vector<8x8x8xf32>
    %837 = vector.extract_strided_slice %818 {offsets = [0, 0], sizes = [8, 8], strides = [1, 1]} : vector<16x32xf32> to vector<8x8xf32>
    %838 = vector.shape_cast %837 : vector<8x8xf32> to vector<1x8x8xf32>
    %839 = vector.extract_strided_slice %818 {offsets = [0, 8], sizes = [8, 8], strides = [1, 1]} : vector<16x32xf32> to vector<8x8xf32>
    %840 = vector.shape_cast %839 : vector<8x8xf32> to vector<1x8x8xf32>
    %841 = vector.extract_strided_slice %818 {offsets = [0, 16], sizes = [8, 8], strides = [1, 1]} : vector<16x32xf32> to vector<8x8xf32>
    %842 = vector.shape_cast %841 : vector<8x8xf32> to vector<1x8x8xf32>
    %843 = vector.extract_strided_slice %818 {offsets = [0, 24], sizes = [8, 8], strides = [1, 1]} : vector<16x32xf32> to vector<8x8xf32>
    %844 = vector.shape_cast %843 : vector<8x8xf32> to vector<1x8x8xf32>
    %845 = vector.extract_strided_slice %818 {offsets = [8, 0], sizes = [8, 8], strides = [1, 1]} : vector<16x32xf32> to vector<8x8xf32>
    %846 = vector.shape_cast %845 : vector<8x8xf32> to vector<1x8x8xf32>
    %847 = vector.extract_strided_slice %818 {offsets = [8, 8], sizes = [8, 8], strides = [1, 1]} : vector<16x32xf32> to vector<8x8xf32>
    %848 = vector.shape_cast %847 : vector<8x8xf32> to vector<1x8x8xf32>
    %849 = vector.extract_strided_slice %818 {offsets = [8, 16], sizes = [8, 8], strides = [1, 1]} : vector<16x32xf32> to vector<8x8xf32>
    %850 = vector.shape_cast %849 : vector<8x8xf32> to vector<1x8x8xf32>
    %851 = vector.extract_strided_slice %818 {offsets = [8, 24], sizes = [8, 8], strides = [1, 1]} : vector<16x32xf32> to vector<8x8xf32>
    %852 = vector.shape_cast %851 : vector<8x8xf32> to vector<1x8x8xf32>
    %853 = tpu.concatenate %838, %840, %842, %844, %846, %848, %850, %852 in 0 : vector<1x8x8xf32>, vector<1x8x8xf32>, vector<1x8x8xf32>, vector<1x8x8xf32>, vector<1x8x8xf32>, vector<1x8x8xf32>, vector<1x8x8xf32>, vector<1x8x8xf32> -> vector<8x8x8xf32>
    %854 = vector.extract_strided_slice %819 {offsets = [0, 0], sizes = [8, 8], strides = [1, 1]} : vector<16x32xf32> to vector<8x8xf32>
    %855 = vector.shape_cast %854 : vector<8x8xf32> to vector<1x8x8xf32>
    %856 = vector.extract_strided_slice %819 {offsets = [0, 8], sizes = [8, 8], strides = [1, 1]} : vector<16x32xf32> to vector<8x8xf32>
    %857 = vector.shape_cast %856 : vector<8x8xf32> to vector<1x8x8xf32>
    %858 = vector.extract_strided_slice %819 {offsets = [0, 16], sizes = [8, 8], strides = [1, 1]} : vector<16x32xf32> to vector<8x8xf32>
    %859 = vector.shape_cast %858 : vector<8x8xf32> to vector<1x8x8xf32>
    %860 = vector.extract_strided_slice %819 {offsets = [0, 24], sizes = [8, 8], strides = [1, 1]} : vector<16x32xf32> to vector<8x8xf32>
    %861 = vector.shape_cast %860 : vector<8x8xf32> to vector<1x8x8xf32>
    %862 = vector.extract_strided_slice %819 {offsets = [8, 0], sizes = [8, 8], strides = [1, 1]} : vector<16x32xf32> to vector<8x8xf32>
    %863 = vector.shape_cast %862 : vector<8x8xf32> to vector<1x8x8xf32>
    %864 = vector.extract_strided_slice %819 {offsets = [8, 8], sizes = [8, 8], strides = [1, 1]} : vector<16x32xf32> to vector<8x8xf32>
    %865 = vector.shape_cast %864 : vector<8x8xf32> to vector<1x8x8xf32>
    %866 = vector.extract_strided_slice %819 {offsets = [8, 16], sizes = [8, 8], strides = [1, 1]} : vector<16x32xf32> to vector<8x8xf32>
    %867 = vector.shape_cast %866 : vector<8x8xf32> to vector<1x8x8xf32>
    %868 = vector.extract_strided_slice %819 {offsets = [8, 24], sizes = [8, 8], strides = [1, 1]} : vector<16x32xf32> to vector<8x8xf32>
    %869 = vector.shape_cast %868 : vector<8x8xf32> to vector<1x8x8xf32>
    %870 = tpu.concatenate %855, %857, %859, %861, %863, %865, %867, %869 in 0 : vector<1x8x8xf32>, vector<1x8x8xf32>, vector<1x8x8xf32>, vector<1x8x8xf32>, vector<1x8x8xf32>, vector<1x8x8xf32>, vector<1x8x8xf32>, vector<1x8x8xf32> -> vector<8x8x8xf32>
    %cst_145 = arith.constant dense<0.000000e+00> : vector<8x8x8xf32>
    %871 = tpu.matmul %836, %853, %cst_145 {dimension_numbers = #tpu.dot_dimension_numbers<[2], [2], [1], [1], [0, 0, 0, 1, 1, 1], [0], [0]>} : vector<8x8x8xf32>, vector<8x8x8xf32>, vector<8x8x8xf32> -> vector<8x8x8xf32>
    %cst_146 = arith.constant 0.353553385 : f32
    %872 = vector.broadcast %cst_146 : f32 to vector<8x8x8xf32>
    %873 = arith.mulf %871, %872 : vector<8x8x8xf32>
    %cst_147 = arith.constant dense<0xFF800000> : vector<8x8xf32>
    %874 = vector.multi_reduction <maximumf>, %873, %cst_147 [2] : vector<8x8x8xf32> to vector<8x8xf32>
    %875 = vector.shape_cast %874 : vector<8x8xf32> to vector<8x8x1xf32>
    %876 = vector.broadcast %875 : vector<8x8x1xf32> to vector<8x8x8xf32>
    %877 = arith.subf %873, %876 : vector<8x8x8xf32>
    %878 = math.exp %877 : vector<8x8x8xf32>
    %cst_148 = arith.constant dense<0.000000e+00> : vector<8x8xf32>
    %879 = vector.multi_reduction <add>, %878, %cst_148 [2] : vector<8x8x8xf32> to vector<8x8xf32>
    %880 = vector.shape_cast %879 : vector<8x8xf32> to vector<8x8x1xf32>
    %881 = vector.broadcast %880 : vector<8x8x1xf32> to vector<8x8x8xf32>
    %882 = arith.divf %878, %881 : vector<8x8x8xf32>
    %cst_149 = arith.constant dense<0.000000e+00> : vector<8x8x8xf32>
    %883 = tpu.matmul %882, %870, %cst_149 {dimension_numbers = #tpu.dot_dimension_numbers<[2], [1], [1], [2], [0, 0, 0, 1, 1, 2], [0], [0]>} : vector<8x8x8xf32>, vector<8x8x8xf32>, vector<8x8x8xf32> -> vector<8x8x8xf32>
    %884 = vector.extract_strided_slice %883 {offsets = [0, 0, 0], sizes = [1, 8, 8], strides = [1, 1, 1]} : vector<8x8x8xf32> to vector<1x8x8xf32>
    %885 = vector.shape_cast %884 : vector<1x8x8xf32> to vector<8x8xf32>
    %886 = vector.extract_strided_slice %883 {offsets = [1, 0, 0], sizes = [1, 8, 8], strides = [1, 1, 1]} : vector<8x8x8xf32> to vector<1x8x8xf32>
    %887 = vector.shape_cast %886 : vector<1x8x8xf32> to vector<8x8xf32>
    %888 = vector.extract_strided_slice %883 {offsets = [2, 0, 0], sizes = [1, 8, 8], strides = [1, 1, 1]} : vector<8x8x8xf32> to vector<1x8x8xf32>
    %889 = vector.shape_cast %888 : vector<1x8x8xf32> to vector<8x8xf32>
    %890 = vector.extract_strided_slice %883 {offsets = [3, 0, 0], sizes = [1, 8, 8], strides = [1, 1, 1]} : vector<8x8x8xf32> to vector<1x8x8xf32>
    %891 = vector.shape_cast %890 : vector<1x8x8xf32> to vector<8x8xf32>
    %892 = tpu.concatenate %885, %887, %889, %891 in 1 : vector<8x8xf32>, vector<8x8xf32>, vector<8x8xf32>, vector<8x8xf32> -> vector<8x32xf32>
    %893 = vector.extract_strided_slice %883 {offsets = [4, 0, 0], sizes = [1, 8, 8], strides = [1, 1, 1]} : vector<8x8x8xf32> to vector<1x8x8xf32>
    %894 = vector.shape_cast %893 : vector<1x8x8xf32> to vector<8x8xf32>
    %895 = vector.extract_strided_slice %883 {offsets = [5, 0, 0], sizes = [1, 8, 8], strides = [1, 1, 1]} : vector<8x8x8xf32> to vector<1x8x8xf32>
    %896 = vector.shape_cast %895 : vector<1x8x8xf32> to vector<8x8xf32>
    %897 = vector.extract_strided_slice %883 {offsets = [6, 0, 0], sizes = [1, 8, 8], strides = [1, 1, 1]} : vector<8x8x8xf32> to vector<1x8x8xf32>
    %898 = vector.shape_cast %897 : vector<1x8x8xf32> to vector<8x8xf32>
    %899 = vector.extract_strided_slice %883 {offsets = [7, 0, 0], sizes = [1, 8, 8], strides = [1, 1, 1]} : vector<8x8x8xf32> to vector<1x8x8xf32>
    %900 = vector.shape_cast %899 : vector<1x8x8xf32> to vector<8x8xf32>
    %901 = tpu.concatenate %894, %896, %898, %900 in 1 : vector<8x8xf32>, vector<8x8xf32>, vector<8x8xf32>, vector<8x8xf32> -> vector<8x32xf32>
    %902 = tpu.concatenate %892, %901 in 0 : vector<8x32xf32>, vector<8x32xf32> -> vector<16x32xf32>
    %cst_150 = arith.constant dense<0.000000e+00> : vector<16x32xf32>
    %903 = tpu.matmul %902, %678, %cst_150 {dimension_numbers = #tpu.dot_dimension_numbers<[1], [0], [0], [1], [0, 0, 1, 1], [], []>} : vector<16x32xf32>, vector<32x32xf32>, vector<16x32xf32> -> vector<16x32xf32>
    %904 = vector.broadcast %686 : vector<1x32xf32> to vector<16x32xf32>
    %905 = arith.addf %903, %904 : vector<16x32xf32>
    %906 = arith.addf %811, %905 : vector<16x32xf32>
    %cst_151 = arith.constant dense<0.000000e+00> : vector<16xf32>
    %907 = vector.multi_reduction <add>, %906, %cst_151 [1] : vector<16x32xf32> to vector<16xf32>
    %908 = vector.shape_cast %907 : vector<16xf32> to vector<16x1xf32>
    %cst_152 = arith.constant 3.200000e+01 : f32
    %909 = vector.broadcast %cst_152 : f32 to vector<16x1xf32>
    %910 = arith.divf %908, %909 : vector<16x1xf32>
    %911 = vector.broadcast %910 : vector<16x1xf32> to vector<16x32xf32>
    %912 = arith.subf %906, %911 : vector<16x32xf32>
    %913 = arith.mulf %912, %912 : vector<16x32xf32>
    %cst_153 = arith.constant dense<0.000000e+00> : vector<16xf32>
    %914 = vector.multi_reduction <add>, %913, %cst_153 [1] : vector<16x32xf32> to vector<16xf32>
    %915 = vector.shape_cast %914 : vector<16xf32> to vector<16x1xf32>
    %cst_154 = arith.constant 3.200000e+01 : f32
    %916 = vector.broadcast %cst_154 : f32 to vector<16x1xf32>
    %917 = arith.divf %915, %916 : vector<16x1xf32>
    %918 = vector.broadcast %910 : vector<16x1xf32> to vector<16x32xf32>
    %919 = arith.subf %906, %918 : vector<16x32xf32>
    %cst_155 = arith.constant 9.99999974E-6 : f32
    %920 = vector.broadcast %cst_155 : f32 to vector<16x1xf32>
    %921 = arith.addf %917, %920 : vector<16x1xf32>
    %922 = math.rsqrt %921 : vector<16x1xf32>
    %923 = vector.broadcast %922 : vector<16x1xf32> to vector<16x32xf32>
    %924 = arith.mulf %919, %923 : vector<16x32xf32>
    %925 = vector.broadcast %691 : vector<1x32xf32> to vector<16x32xf32>
    %926 = arith.mulf %924, %925 : vector<16x32xf32>
    %927 = vector.broadcast %692 : vector<1x32xf32> to vector<16x32xf32>
    %928 = arith.addf %926, %927 : vector<16x32xf32>
    %cst_156 = arith.constant dense<0.000000e+00> : vector<16x64xf32>
    %929 = tpu.matmul %928, %679, %cst_156 {dimension_numbers = #tpu.dot_dimension_numbers<[1], [0], [0], [1], [0, 0, 1, 1], [], []>} : vector<16x32xf32>, vector<32x64xf32>, vector<16x64xf32> -> vector<16x64xf32>
    %930 = vector.broadcast %687 : vector<1x64xf32> to vector<16x64xf32>
    %931 = arith.addf %929, %930 : vector<16x64xf32>
    %cst_157 = arith.constant 0.000000e+00 : f32
    %932 = vector.broadcast %cst_157 : f32 to vector<16x64xf32>
    %933 = arith.maximumf %931, %932 : vector<16x64xf32>
    %cst_158 = arith.constant dense<0.000000e+00> : vector<16x32xf32>
    %934 = tpu.matmul %933, %680, %cst_158 {dimension_numbers = #tpu.dot_dimension_numbers<[1], [0], [0], [1], [0, 0, 1, 1], [], []>} : vector<16x64xf32>, vector<64x32xf32>, vector<16x32xf32> -> vector<16x32xf32>
    %935 = vector.broadcast %688 : vector<1x32xf32> to vector<16x32xf32>
    %936 = arith.addf %934, %935 : vector<16x32xf32>
    %937 = arith.addf %928, %936 : vector<16x32xf32>
    %cst_159 = arith.constant dense<0.000000e+00> : vector<16xf32>
    %938 = vector.multi_reduction <add>, %937, %cst_159 [1] : vector<16x32xf32> to vector<16xf32>
    %939 = vector.shape_cast %938 : vector<16xf32> to vector<16x1xf32>
    %cst_160 = arith.constant 3.200000e+01 : f32
    %940 = vector.broadcast %cst_160 : f32 to vector<16x1xf32>
    %941 = arith.divf %939, %940 : vector<16x1xf32>
    %942 = vector.broadcast %941 : vector<16x1xf32> to vector<16x32xf32>
    %943 = arith.subf %937, %942 : vector<16x32xf32>
    %944 = arith.mulf %943, %943 : vector<16x32xf32>
    %cst_161 = arith.constant dense<0.000000e+00> : vector<16xf32>
    %945 = vector.multi_reduction <add>, %944, %cst_161 [1] : vector<16x32xf32> to vector<16xf32>
    %946 = vector.shape_cast %945 : vector<16xf32> to vector<16x1xf32>
    %cst_162 = arith.constant 3.200000e+01 : f32
    %947 = vector.broadcast %cst_162 : f32 to vector<16x1xf32>
    %948 = arith.divf %946, %947 : vector<16x1xf32>
    %949 = vector.broadcast %941 : vector<16x1xf32> to vector<16x32xf32>
    %950 = arith.subf %937, %949 : vector<16x32xf32>
    %cst_163 = arith.constant 9.99999974E-6 : f32
    %951 = vector.broadcast %cst_163 : f32 to vector<16x1xf32>
    %952 = arith.addf %948, %951 : vector<16x1xf32>
    %953 = math.rsqrt %952 : vector<16x1xf32>
    %954 = vector.broadcast %953 : vector<16x1xf32> to vector<16x32xf32>
    %955 = arith.mulf %950, %954 : vector<16x32xf32>
    %956 = vector.broadcast %693 : vector<1x32xf32> to vector<16x32xf32>
    %957 = arith.mulf %955, %956 : vector<16x32xf32>
    %958 = vector.broadcast %694 : vector<1x32xf32> to vector<16x32xf32>
    %959 = arith.addf %957, %958 : vector<16x32xf32>
    %960 = vector.extract_strided_slice %363 {offsets = [2, 0], sizes = [1, 32], strides = [1, 1]} : vector<8x128xf32> to vector<1x32xf32>
    %961 = vector.extract_strided_slice %363 {offsets = [3, 0], sizes = [1, 32], strides = [1, 1]} : vector<8x128xf32> to vector<1x32xf32>
    %cst_164 = arith.constant dense<0.000000e+00> : vector<16xf32>
    %962 = vector.multi_reduction <add>, %959, %cst_164 [1] : vector<16x32xf32> to vector<16xf32>
    %963 = vector.shape_cast %962 : vector<16xf32> to vector<16x1xf32>
    %cst_165 = arith.constant 3.200000e+01 : f32
    %964 = vector.broadcast %cst_165 : f32 to vector<16x1xf32>
    %965 = arith.divf %963, %964 : vector<16x1xf32>
    %966 = vector.broadcast %965 : vector<16x1xf32> to vector<16x32xf32>
    %967 = arith.subf %959, %966 : vector<16x32xf32>
    %968 = arith.mulf %967, %967 : vector<16x32xf32>
    %cst_166 = arith.constant dense<0.000000e+00> : vector<16xf32>
    %969 = vector.multi_reduction <add>, %968, %cst_166 [1] : vector<16x32xf32> to vector<16xf32>
    %970 = vector.shape_cast %969 : vector<16xf32> to vector<16x1xf32>
    %cst_167 = arith.constant 3.200000e+01 : f32
    %971 = vector.broadcast %cst_167 : f32 to vector<16x1xf32>
    %972 = arith.divf %970, %971 : vector<16x1xf32>
    %973 = vector.broadcast %965 : vector<16x1xf32> to vector<16x32xf32>
    %974 = arith.subf %959, %973 : vector<16x32xf32>
    %cst_168 = arith.constant 9.99999974E-6 : f32
    %975 = vector.broadcast %cst_168 : f32 to vector<16x1xf32>
    %976 = arith.addf %972, %975 : vector<16x1xf32>
    %977 = math.rsqrt %976 : vector<16x1xf32>
    %978 = vector.broadcast %977 : vector<16x1xf32> to vector<16x32xf32>
    %979 = arith.mulf %974, %978 : vector<16x32xf32>
    %980 = vector.broadcast %960 : vector<1x32xf32> to vector<16x32xf32>
    %981 = arith.mulf %979, %980 : vector<16x32xf32>
    %982 = vector.broadcast %961 : vector<1x32xf32> to vector<16x32xf32>
    %983 = arith.addf %981, %982 : vector<16x32xf32>
    %c0_169 = arith.constant 0 : index
    %c0_170 = arith.constant 0 : index
    %984 = vector.load %arg7[%c0_169, %c0_170] : memref<40x128xf32, #tpu.memory_space<vmem>>, vector<32x128xf32>
    %cst_171 = arith.constant dense<0.000000e+00> : vector<16x128xf32>
    %985 = tpu.matmul %983, %984, %cst_171 {dimension_numbers = #tpu.dot_dimension_numbers<[1], [0], [0], [1], [0, 0, 1, 1], [], []>} : vector<16x32xf32>, vector<32x128xf32>, vector<16x128xf32> -> vector<16x128xf32>
    %986 = vector.extract_strided_slice %363 {offsets = [4, 0], sizes = [1, 128], strides = [1, 1]} : vector<8x128xf32> to vector<1x128xf32>
    %987 = vector.broadcast %986 : vector<1x128xf32> to vector<16x128xf32>
    %988 = arith.addf %985, %987 : vector<16x128xf32>
    %c0_172 = arith.constant 0 : index
    %c0_173 = arith.constant 0 : index
    %989 = vector.load %arg8[%c0_172, %c0_173] : memref<16x128xf32, #tpu.memory_space<vmem>>, vector<16x128xf32>
    tpu.vector_store %arg8[%c0_172, %c0_173], %988 {strides = array<i32>} : memref<16x128xf32, #tpu.memory_space<vmem>>, vector<16x128xf32>,
    return
  }
}

</mosaic_0001>

<bundles_post_ra>
// kernel: transformer_forward.1
= control target key start
LH: loop header
LB: loop body
LE: loop exit
PB: predicated region body
PF: predicated region fallthrough
CT: control target
= control target key end

     0   :  { %13 = vsyncpa [#allocation3], 0  ;;  %s12367_s27 = smov [#allocation2]   ;;  %s14200_s0 = inlined_call_operand.vmem [shape: f32[16,32], index: 0, kind: input, shape index: {}]   ;;  %s14201_s1 = inlined_call_operand.vmem [shape: f32[16,32], index: 1, kind: input, shape index: {}]   ;;  %s14202_s2 = inlined_call_operand.vmem [shape: f32[2,8], index: 2, kind: input, shape index: {}]   ;;  %s14203_s3 = inlined_call_operand.vmem [shape: f32[168,128], index: 3, kind: input, shape index: {}]   ;;  %s14204_s4 = inlined_call_operand.vmem [shape: f32[168,128], index: 4, kind: input, shape index: {}]   ;;  %s14205_s5 = inlined_call_operand.vmem [shape: f32[272,128], index: 5, kind: input, shape index: {}]   ;;  %s14206_s6 = inlined_call_operand.vmem [shape: f32[272,128], index: 6, kind: input, shape index: {}]   ;;  %s14207_s7 = inlined_call_operand.hbm [shape: f32[40,128], index: 7, kind: input, shape index: {}]   ;;  %s14208_s8 = inlined_call_operand.vmem [shape: f32[16,128], index: 8, kind: output, shape index: {}]  }
   0x1   :  { %s33_s28 = sshll.u32 %s12367_s27, 4  ;;  %s34_s28 = int_to_ptr.vmem [resolvable:$true] %s33_s28 }
   0x2   :  { %s12353_s29 = scalar_lea.vmem %s34_s28, 640  ;;  %p12358_p1 = scmp.lt.s32.totalorder %s34_s28, %s34_s28 }
   0x3   :  { %p12354_p0 = scmp.ne.s32.totalorder %s34_s28, %s12353_s29  ;;  %p12359_p2 = scmp.lt.s32.totalorder %s12353_s29, %s12353_s29 }
   0x5   :  { %p12360_p3 = por %p12359_p2, %p12358_p1 }
   0x7   :  { %p12361_p4 = pnand %p12360_p3, %p12354_p0 }
   0x9   :  { %12364 = shalt.err (!%p12361_p4)
}
   0xa   :  { %s12368_s30 = smov 128   ;;  %s12369_s9 = smov 8  }
   0xb   :  { %39 = dma.hbm_to_vmem [thread:$0]  %s14207_s7, 640, %s34_s28, [#allocation3], %s12368_s30, %s12368_s30, %s12369_s9  }
   0xc   :  { %12365 = dma.done.wait [#allocation3], 640  }
   0xd   :  { %12366 = vsyncadd [#allocation3], 4294966656  ;;  %vm87_vm0 = vcmask 261120   ;;  %v65_v0 = vld [vmem:[%s14203_s3 + $0x18] sm:$0xff]  ;;  %v64_v1 = vld [vmem:[%s14203_s3 + $0x10] sm:$0xff]  ;;  %v48_v6 = vlaneseq  ;;  %v12370_v12 = vmov 0.0  }
   0xe   :  { %11323 = vmatprep.subr.mxu0 %v65_v0  ;;  %v12438_v2 = vld [vmem:[%s14200_s0] sm:$0xff]  ;;  %v63_v3 = vld [vmem:[%s14203_s3 + $0x8] sm:$0xff]  ;;  %11334 = vmatprep.subr.mxu1 %v12370_v12  ;;  %s12372_s25 = smov 120   ;;  %vm12373_vm1 = vmmov 0   ;;  %s12374_s26 = smov 112   ;;  %vm185_vm2 = vcmask 64512  }
   0xf   :  { %11324 = vmatpush3.msra.mxu0 %v65_v0  ;;  %11331 = vmatprep.mubr.msk.f32.mxu0 %vm87_vm0, %v12438_v2  ;;  %v62_v4 = vld [vmem:[%s14203_s3] sm:$0xff]  ;;  %v12451_v5 = vld [vmem:[%s14200_s0 + $0x8] sm:$0xff]  ;;  %v12456_v7 = vshrl.u32 %v48_v6, 7  ;;  %s12371_s0 = smov 104   ;;  %s12375_s27 = smov 96   ;;  %vm1517_vm3 = vcmask 130048  }
  0x10   :  { %11325 = vmatprep.subr.mxu0 %v64_v1  ;;  %v12464_v9 = vld [vmem:[%s14203_s3 + $0xa0] sm:$0xff]  ;;  %11336 = vmatprep.mubr.msk.f32.mxu1 %vm12373_vm1, %v12370_v12  ;;  %s12377_s17 = smov 16   ;;  %s12378_s18 = smov 24   ;;  %vm1519_vm4 = vcmask 195584   ;;  %vm1753_vm5 = vcmask 523264  }
  0x11   :  { %11326 = vmatpush3.msra.mxu0 %v64_v1  ;;  %v12459_v8 = vsub.s32 0, %v12456_v7  ;;  %v47_v30 = vld [vmem:[%s14202_s2] sm:$0x3]  ;;  %v12579_v41 = vsub.s32 1, %v12456_v7  ;;  %s12376_s2 = smov 64  }
  0x12   :  { %11327 = vmatprep.subr.mxu0 %v63_v3 }
  0x13   :  { %11328 = vmatpush3.msra.mxu0 %v63_v3  ;;  %v86_v11 = vrot.slane %v12464_v9, %v12459_v8  ;;  %v12570_v31 = vrot.slane %v47_v30, %v12459_v8  ;;  %v12586_v47 = vrot.slane %v47_v30, %v12579_v41 }
  0x14   :  { %11329 = vmatprep.subr.mxu0 %v62_v4 }
  0x15   :  { %11330 = vmatpush3.msra.mxu0 %v62_v4 }
  0x16   :  { %11332 = vmatmul.mubr.msk.f32.vlgmr.msra.gmra.mxu0 %vm87_vm0, %v12451_v5  ;;  %11354 = vmatprep.subr.mxu0 %v12370_v12 }
  0x17   :  { %11356 = vmatprep.mubr.msk.f32.mxu0 %vm12373_vm1, %v12370_v12 }
  0xd6   :  { %v11333_v10 = vpop.f32.mrf.mxu0 }
  0xd7   :  { %v12480_v15 = vadd.f32 %v11333_v10, %v86_v11 }
  0xd8   :  { %v160_v13 = vpop.f32.mrf.mxu0 }
  0xd9   :  { %v12470_v14 = vadd.f32 %v160_v13, %v86_v11 }
  0xdb   :  { %174 = vrot.lane.b32.xlu1 %v12470_v14, %s12371_s0  ;;  %170 = vrot.lane.b32.xlu0 %v12470_v14, %s12372_s25 }
  0xdf   :  { %177 = vrot.lane.b32.xlu1 %v12480_v15, %s12372_s25  ;;  %172 = vrot.lane.b32.xlu0 %v12470_v14, %s12374_s26 }
  0xe3   :  { %181 = vrot.lane.b32.xlu1 %v12480_v15, %s12371_s0  ;;  %179 = vrot.lane.b32.xlu0 %v12480_v15, %s12374_s26 }
  0xe7   :  { %183 = vrot.lane.b32.xlu0 %v12470_v14, %s12375_s27 }
 0x14d   :  { %v12492_v16 = vpop.permute.xlu1 %174  ;;  %v12494_v17 = vpop.permute.xlu0 %170 }
 0x14e   :  { %260 = vrot.lane.b32.xlu1 %v12494_v17, %s12375_s27 }
 0x151   :  { %v12498_v18 = vpop.permute.xlu0 %172  ;;  %v12504_v19 = vpop.permute.xlu1 %177 }
 0x152   :  { %412 = vrot.lane.b32.xlu1 %v12492_v16, %s12375_s27  ;;  %336 = vrot.lane.b32.xlu0 %v12498_v18, %s12375_s27 }
 0x155   :  { %v12506_v20 = vpop.permute.xlu0 %179  ;;  %v12512_v21 = vpop.permute.xlu1 %181 }
 0x156   :  { %564 = vrot.lane.b32.xlu1 %v12504_v19, %s12375_s27  ;;  %488 = vrot.lane.b32.xlu0 %v12480_v15, %s12375_s27 }
 0x159   :  { %v184_v22 = vpop.permute.xlu0 %183 }
 0x15a   :  { %716 = vrot.lane.b32.xlu1 %v12512_v21, %s12375_s27  ;;  %640 = vrot.lane.b32.xlu0 %v12506_v20, %s12375_s27 }
 0x15b   :  { %11335 = vmatpush3.xpose.msk.msra.mxu1 %vm185_vm2, %v184_v22 }
 0x15c   :  { %11339 = vmatprep.subr.mxu1 %v12370_v12 }
 0x15e   :  { %11337 = vmatmul.mubr.msk.f32.vlgmr.msra.gmra.mxu1 %vm185_vm2, %v12470_v14 }
 0x15f   :  { %11341 = vmatprep.mubr.msk.f32.mxu1 %vm12373_vm1, %v12370_v12 }
 0x1c0   :  { %v261_v23 = vpop.permute.xlu1 %260 }
 0x1c1   :  { %11340 = vmatpush3.xpose.msk.msra.mxu1 %vm185_vm2, %v261_v23 }
 0x1c2   :  { %11344 = vmatprep.subr.mxu1 %v12370_v12 }
 0x1c4   :  { %v413_v24 = vpop.permute.xlu1 %412  ;;  %11342 = vmatmul.mubr.msk.f32.vlgmr.msra.gmra.mxu1 %vm185_vm2, %v12494_v17  ;;  %v337_v25 = vpop.permute.xlu0 %336 }
 0x1c5   :  { %11345 = vmatpush3.xpose.msk.msra.mxu1 %vm185_vm2, %v337_v25  ;;  %11346 = vmatprep.mubr.msk.f32.mxu1 %vm12373_vm1, %v12370_v12 }
 0x1c6   :  { %11349 = vmatprep.subr.mxu1 %v12370_v12 }
 0x1c8   :  { %11347 = vmatmul.mubr.msk.f32.vlgmr.msra.gmra.mxu1 %vm185_vm2, %v12498_v18  ;;  %v489_v26 = vpop.permute.xlu0 %488  ;;  %v565_v27 = vpop.permute.xlu1 %564 }
 0x1c9   :  { %11350 = vmatpush3.xpose.msk.msra.mxu1 %vm185_vm2, %v413_v24  ;;  %11355 = vmatpush3.xpose.msk.msra.mxu0 %vm185_vm2, %v489_v26 }
 0x1ca   :  { %11351 = vmatprep.mubr.msk.f32.mxu1 %vm12373_vm1, %v12370_v12  ;;  %11359 = vmatprep.subr.mxu1 %v12370_v12 }
 0x1cb   :  { %11364 = vmatprep.subr.mxu0 %v12370_v12 }
 0x1cc   :  { %11352 = vmatmul.mubr.msk.f32.vlgmr.msra.gmra.mxu1 %vm185_vm2, %v12492_v16  ;;  %11357 = vmatmul.mubr.msk.f32.vlgmr.msra.gmra.mxu0 %vm185_vm2, %v12480_v15  ;;  %v641_v28 = vpop.permute.xlu0 %640  ;;  %v717_v29 = vpop.permute.xlu1 %716 }
 0x1cd   :  { %11360 = vmatpush3.xpose.msk.msra.mxu1 %vm185_vm2, %v565_v27  ;;  %11365 = vmatpush3.xpose.msk.msra.mxu0 %vm185_vm2, %v641_v28 }
 0x1ce   :  { %11361 = vmatprep.mubr.msk.f32.mxu1 %vm12373_vm1, %v12370_v12  ;;  %11366 = vmatprep.mubr.msk.f32.mxu0 %vm12373_vm1, %v12370_v12 }
 0x1cf   :  { %11369 = vmatprep.subr.mxu1 %v12370_v12  ;;  %11374 = vmatprep.subr.mxu0 %v12370_v12 }
 0x1d0   :  { %11362 = vmatmul.mubr.msk.f32.vlgmr.msra.gmra.mxu1 %vm185_vm2, %v12504_v19  ;;  %11367 = vmatmul.mubr.msk.f32.vlgmr.msra.gmra.mxu0 %vm185_vm2, %v12506_v20 }
 0x1d1   :  { %11370 = vmatpush3.xpose.msk.msra.mxu1 %vm185_vm2, %v717_v29  ;;  %11371 = vmatprep.mubr.msk.f32.mxu1 %vm12373_vm1, %v12370_v12 }
 0x1d2   :  { %11379 = vmatprep.subr.mxu1 %v12370_v12  ;;  %11376 = vmatprep.mubr.msk.f32.mxu0 %vm12373_vm1, %v12370_v12 }
 0x1d4   :  { %11372 = vmatmul.mubr.msk.f32.vlgmr.msra.gmra.mxu1 %vm185_vm2, %v12512_v21 }
 0x1d5   :  { %11381 = vmatprep.mubr.msk.f32.mxu1 %vm12373_vm1, %v12370_v12 }
 0x21e   :  { %v256_v32 = vpop.f32.mrf.mxu1 }
 0x21f   :  { %v792_v33 = vmul.f32 0.35355338, %v256_v32 }
 0x220   :  { %v11338_v34 = vpop.f32.mrf.mxu1 }
 0x221   :  { %v12573_v35 = vadd.f32 %v792_v33, %v12570_v31 }
 0x223   :  { %v808_v36 = vsel %vm185_vm2, %v12573_v35, -inf }
 0x224   :  { %809 = vmax.xlane.f32.xlu0 %v808_v36 }
 0x284   :  { %v332_v37 = vpop.f32.mrf.mxu1 }
 0x285   :  { %v793_v38 = vmul.f32 0.35355338, %v332_v37 }
 0x286   :  { %v11343_v39 = vpop.f32.mrf.mxu1 }
 0x287   :  { %v801_v40 = vadd.f32 %v793_v38, %v12570_v31 }
 0x288   :  { %v408_v42 = vpop.f32.mrf.mxu1 }
 0x289   :  { %v794_v43 = vmul.f32 0.35355338, %v408_v42  ;;  %v811_v44 = vsel %vm185_vm2, %v801_v40, -inf }
 0x28a   :  { %812 = vmax.xlane.f32.xlu1 %v811_v44  ;;  %v11348_v45 = vpop.f32.mrf.mxu1 }
 0x28b   :  { %v12583_v46 = vadd.f32 %v794_v43, %v12570_v31 }
 0x28c   :  { %v484_v48 = vpop.f32.mrf.mxu1  ;;  %v560_v49 = vpop.f32.mrf.mxu0 }
 0x28d   :  { %v795_v50 = vmul.f32 0.35355338, %v484_v48  ;;  %v796_v51 = vmul.f32 0.35355338, %v560_v49  ;;  %v814_v52 = vsel %vm185_vm2, %v12583_v46, -inf }
 0x28e   :  { %815 = vmax.xlane.f32.xlu0 %v814_v52  ;;  %v11353_v53 = vpop.f32.mrf.mxu1  ;;  %v11358_v54 = vpop.f32.mrf.mxu0 }
 0x28f   :  { %v803_v55 = vadd.f32 %v795_v50, %v12570_v31  ;;  %v804_v56 = vadd.f32 %v796_v51, %v12586_v47 }
 0x290   :  { %v636_v57 = vpop.f32.mrf.mxu1  ;;  %v712_v58 = vpop.f32.mrf.mxu0 }
 0x291   :  { %v797_v59 = vmul.f32 0.35355338, %v636_v57  ;;  %v798_v60 = vmul.f32 0.35355338, %v712_v58  ;;  %v817_v61 = vsel %vm185_vm2, %v803_v55, -inf  ;;  %v820_v62 = vsel %vm185_vm2, %v804_v56, -inf }
 0x292   :  { %818 = vmax.xlane.f32.xlu0 %v817_v61  ;;  %v11363_v63 = vpop.f32.mrf.mxu1  ;;  %821 = vmax.xlane.f32.xlu1 %v820_v62  ;;  %v11368_v0 = vpop.f32.mrf.mxu0 }
 0x293   :  { %v805_v1 = vadd.f32 %v797_v59, %v12586_v47  ;;  %v806_v3 = vadd.f32 %v798_v60, %v12586_v47 }
 0x294   :  { %v788_v4 = vpop.f32.mrf.mxu1 }
 0x295   :  { %v799_v10 = vmul.f32 0.35355338, %v788_v4  ;;  %v823_v11 = vsel %vm185_vm2, %v805_v1, -inf  ;;  %v826_v13 = vsel %vm185_vm2, %v806_v3, -inf }
 0x296   :  { %824 = vmax.xlane.f32.xlu0 %v823_v11  ;;  %v11373_v22 = vpop.f32.mrf.mxu1  ;;  %827 = vmax.xlane.f32.xlu1 %v826_v13 }
 0x297   :  { %v807_v23 = vadd.f32 %v799_v10, %v12586_v47 }
 0x299   :  { %v829_v24 = vsel %vm185_vm2, %v807_v23, -inf }
 0x29a   :  { %830 = vmax.xlane.f32.xlu0 %v829_v24 }
 0x2a7   :  { %896 = vrot.lane.b32.xlu1 %v12470_v14, %s12376_s2 }
 0x2ab   :  { %1048 = vrot.lane.b32.xlu1 %v12498_v18, %s12376_s2 }
 0x2ad   :  { %v810_v25 = vpop.xlane.xlu0 %809 }
 0x2ae   :  { %v832_v18 = vsub.f32 %v12573_v35, %v810_v25 }
 0x2af   :  { %1124 = vrot.lane.b32.xlu1 %v12492_v16, %s12376_s2 }
 0x2b0   :  { %972 = vrot.lane.b32.xlu0 %v12494_v17, %s12376_s2  ;;  %v840_v33 = vmul.f32 1.442695, %v832_v18 }
 0x2b3   :  { %1276 = vrot.lane.b32.xlu1 %v12504_v19, %s12376_s2 }
 0x2b4   :  { %1200 = vrot.lane.b32.xlu0 %v12480_v15, %s12376_s2 }
 0x313   :  { %v813_v26 = vpop.xlane.xlu1 %812 }
 0x314   :  { %v833_v27 = vsub.f32 %v801_v40, %v813_v26 }
 0x316   :  { %v842_v28 = vmul.f32 1.442695, %v833_v27 }
 0x317   :  { %v816_v14 = vpop.xlane.xlu0 %815 }
 0x318   :  { %12101 = vpow2.f32 %v842_v28  ;;  %v834_v38 = vsub.f32 %v12583_v46, %v816_v14 }
 0x31a   :  { %v844_v45 = vmul.f32 1.442695, %v834_v38 }
 0x31b   :  { %v822_v29 = vpop.xlane.xlu1 %821  ;;  %v819_v30 = vpop.xlane.xlu0 %818 }
 0x31c   :  { %v836_v16 = vsub.f32 %v804_v56, %v822_v29  ;;  %v835_v32 = vsub.f32 %v803_v55, %v819_v30 }
 0x31e   :  { %v848_v17 = vmul.f32 1.442695, %v836_v16  ;;  %v846_v34 = vmul.f32 1.442695, %v835_v32 }
 0x31f   :  { %v828_v36 = vpop.xlane.xlu1 %827  ;;  %v825_v19 = vpop.xlane.xlu0 %824 }
 0x320   :  { %12103 = vpow2.f32 %v848_v17  ;;  %v838_v37 = vsub.f32 %v806_v3, %v828_v36  ;;  %v837_v15 = vsub.f32 %v805_v1, %v825_v19 }
 0x321   :  { %12105 = vpow2.f32 %v846_v34 }
 0x322   :  { %12107 = vpow2.f32 %v840_v33  ;;  %v852_v39 = vmul.f32 1.442695, %v838_v37  ;;  %v850_v40 = vmul.f32 1.442695, %v837_v15 }
 0x323   :  { %v897_v42 = vpop.permute.xlu1 %896  ;;  %v831_v35 = vpop.xlane.xlu0 %830 }
 0x324   :  { %v839_v43 = vsub.f32 %v807_v23, %v831_v35  ;;  %11375 = vmatpush3.msra.mxu0 %v897_v42  ;;  %12109 = vpow2.f32 %v850_v40  ;;  %v69_v42 = vld [vmem:[%s14203_s3 + $0x38] sm:$0xff] }
 0x325   :  { %v12102_v44 = vpop.eup %12101  ;;  %11384 = vmatprep.subr.mxu0 %v12370_v12  ;;  %12111 = vpow2.f32 %v852_v39 }
 0x326   :  { %v854_v48 = vmul.f32 1.442695, %v839_v43  ;;  %v859_v49 = vsel %vm185_vm2, %v12102_v44, 0.0 }
 0x327   :  { %860 = vadd.xlane.f32.xlu0 %v859_v49  ;;  %v973_v50 = vpop.permute.xlu0 %972  ;;  %v1049_v0 = vpop.permute.xlu1 %1048  ;;  %v67_v49 = vld [vmem:[%s14203_s3 + $0x28] sm:$0xff] }
 0x328   :  { %12113 = vpow2.f32 %v854_v48  ;;  %11380 = vmatpush3.msra.mxu1 %v973_v50 }
 0x329   :  { %11389 = vmatprep.subr.mxu1 %v12370_v12  ;;  %12115 = vpow2.f32 %v844_v45  ;;  %v68_v45 = vld [vmem:[%s14203_s3 + $0x30] sm:$0xff] }
 0x32b   :  { %v1201_v1 = vpop.permute.xlu0 %1200  ;;  %v1125_v3 = vpop.permute.xlu1 %1124 }
 0x32d   :  { %v12617_v46 = vpop.eup %12103 }
 0x32e   :  { %v12106_v51 = vpop.eup %12105  ;;  %v868_v52 = vsel %vm185_vm2, %v12617_v46, 0.0 }
 0x32f   :  { %v12108_v53 = vpop.eup %12107  ;;  %869 = vadd.xlane.f32.xlu1 %v868_v52  ;;  %v865_v54 = vsel %vm185_vm2, %v12106_v51, 0.0  ;;  %v1277_v10 = vpop.permute.xlu1 %1276  ;;  %v66_v52 = vld [vmem:[%s14203_s3 + $0x20] sm:$0xff] }
 0x330   :  { %866 = vadd.xlane.f32.xlu0 %v865_v54  ;;  %v856_v56 = vsel %vm185_vm2, %v12108_v53, 0.0 }
 0x331   :  { %v12110_v55 = vpop.eup %12109 }
 0x332   :  { %v12623_v57 = vpop.eup %12111  ;;  %v871_v58 = vsel %vm185_vm2, %v12110_v55, 0.0 }
 0x333   :  { %857 = vadd.xlane.f32.xlu1 %v856_v56  ;;  %v874_v60 = vsel %vm185_vm2, %v12623_v57, 0.0 }
 0x334   :  { %872 = vadd.xlane.f32.xlu0 %v871_v58 }
 0x335   :  { %v12114_v59 = vpop.eup %12113 }
 0x336   :  { %v877_v61 = vsel %vm185_vm2, %v12114_v59, 0.0  ;;  %v12116_v62 = vpop.eup %12115 }
 0x337   :  { %875 = vadd.xlane.f32.xlu1 %v874_v60  ;;  %v862_v63 = vsel %vm185_vm2, %v12116_v62, 0.0 }
 0x338   :  { %878 = vadd.xlane.f32.xlu0 %v877_v61 }
 0x33b   :  { %863 = vadd.xlane.f32.xlu1 %v862_v63 }
 0x34c   :  { %1428 = vrot.lane.b32.xlu1 %v12512_v21, %s12376_s2 }
 0x34e   :  { %1352 = vrot.lane.b32.xlu0 %v12506_v20, %s12376_s2 }
 0x3b0   :  { %v861_v4 = vpop.xlane.xlu0 %860 }
 0x3b1   :  { %12117 = vrcp.f32 %v861_v4 }
 0x3b8   :  { %v870_v11 = vpop.xlane.xlu1 %869 }
 0x3b9   :  { %v867_v13 = vpop.xlane.xlu0 %866 }
 0x3ba   :  { %12119 = vrcp.f32 %v867_v13 }
 0x3bc   :  { %v858_v22 = vpop.xlane.xlu1 %857 }
 0x3bd   :  { %12121 = vrcp.f32 %v858_v22  ;;  %v873_v23 = vpop.xlane.xlu0 %872 }
 0x3be   :  { %v12118_v24 = vpop.eup %12117  ;;  %12123 = vrcp.f32 %v873_v23  ;;  %v1539_v23 = vrot.slane %v12464_v9, %v12579_v41 }
 0x3bf   :  { %v883_v25 = vmul.f32 %v12118_v24, %v12102_v44 }
 0x3c0   :  { %v876_v26 = vpop.xlane.xlu1 %875 }
 0x3c1   :  { %v879_v21 = vpop.xlane.xlu0 %878  ;;  %11382 = vmatmul.mubr.msk.f32.vlgmr.msra.gmra.mxu1 %vm185_vm2, %v883_v25 }
 0x3c2   :  { %12125 = vrcp.f32 %v879_v21  ;;  %11390 = vmatpush3.msra.mxu1 %v1125_v3  ;;  %11391 = vmatprep.mubr.msk.f32.mxu1 %vm12373_vm1, %v12370_v12 }
 0x3c3   :  { %11399 = vmatprep.subr.mxu1 %v12370_v12 }
 0x3c4   :  { %v864_v20 = vpop.xlane.xlu1 %863 }
 0x3c5   :  { %12127 = vrcp.f32 %v864_v20  ;;  %v1353_v15 = vpop.permute.xlu0 %1352 }
 0x3c6   :  { %12129 = vrcp.f32 %v870_v11 }
 0x3c7   :  { %v12120_v27 = vpop.eup %12119  ;;  %12131 = vrcp.f32 %v876_v26 }
 0x3c8   :  { %v887_v28 = vmul.f32 %v12120_v27, %v12106_v51  ;;  %v1429_v16 = vpop.permute.xlu1 %1428 }
 0x3ca   :  { %v12122_v14 = vpop.eup %12121  ;;  %11392 = vmatmul.mubr.msk.f32.vlgmr.msra.gmra.mxu1 %vm185_vm2, %v887_v28 }
 0x3cb   :  { %v12124_v18 = vpop.eup %12123  ;;  %11400 = vmatpush3.msra.mxu1 %v1277_v10  ;;  %11401 = vmatprep.mubr.msk.f32.mxu1 %vm12373_vm1, %v12370_v12  ;;  %v881_v29 = vmul.f32 %v12122_v14, %v12108_v53 }
 0x3cc   :  { %11409 = vmatprep.subr.mxu1 %v12370_v12  ;;  %v891_v30 = vmul.f32 %v12124_v18, %v12110_v55 }
 0x3cd   :  { %11377 = vmatmul.mubr.msk.f32.vlgmr.msra.gmra.mxu0 %vm185_vm2, %v881_v29 }
 0x3ce   :  { %11385 = vmatpush3.msra.mxu0 %v1049_v0  ;;  %11402 = vmatmul.mubr.msk.f32.vlgmr.msra.gmra.mxu1 %vm185_vm2, %v891_v30 }
 0x3cf   :  { %v12126_v32 = vpop.eup %12125  ;;  %11410 = vmatpush3.msra.mxu1 %v1429_v16  ;;  %11411 = vmatprep.mubr.msk.f32.mxu1 %vm12373_vm1, %v12370_v12 }
 0x3d0   :  { %v895_v33 = vmul.f32 %v12126_v32, %v12114_v59  ;;  %11386 = vmatprep.mubr.msk.f32.mxu0 %vm12373_vm1, %v12370_v12  ;;  %11394 = vmatprep.subr.mxu0 %v12370_v12 }
 0x3d2   :  { %v12128_v17 = vpop.eup %12127  ;;  %11412 = vmatmul.mubr.msk.f32.vlgmr.msra.gmra.mxu1 %vm185_vm2, %v895_v33 }
 0x3d3   :  { %v885_v34 = vmul.f32 %v12128_v17, %v12116_v62  ;;  %v12130_v36 = vpop.eup %12129 }
 0x3d4   :  { %v889_v19 = vmul.f32 %v12130_v36, %v12617_v46  ;;  %v12132_v37 = vpop.eup %12131 }
 0x3d5   :  { %11387 = vmatmul.mubr.msk.f32.vlgmr.msra.gmra.mxu0 %vm185_vm2, %v885_v34  ;;  %v893_v38 = vmul.f32 %v12132_v37, %v12623_v57  ;;  %v71_v37 = vld [vmem:[%s14203_s3 + $0x48] sm:$0xff] }
 0x3d6   :  { %11395 = vmatpush3.msra.mxu0 %v1201_v1  ;;  %11396 = vmatprep.mubr.msk.f32.mxu0 %vm12373_vm1, %v12370_v12 }
 0x3d7   :  { %11404 = vmatprep.subr.mxu0 %v12370_v12 }
 0x3d9   :  { %11397 = vmatmul.mubr.msk.f32.vlgmr.msra.gmra.mxu0 %vm185_vm2, %v889_v19  ;;  %v72_v19 = vld [vmem:[%s14203_s3 + $0x50] sm:$0xff] }
 0x3da   :  { %11405 = vmatpush3.msra.mxu0 %v1353_v15  ;;  %11406 = vmatprep.mubr.msk.f32.mxu0 %vm12373_vm1, %v12370_v12  ;;  %v70_v15 = vld [vmem:[%s14203_s3 + $0x40] sm:$0xff] }
 0x3db   :  { %11414 = vmatprep.subr.mxu0 %v69_v42 }
 0x3dd   :  { %11407 = vmatmul.mubr.msk.f32.vlgmr.msra.gmra.mxu0 %vm185_vm2, %v893_v38  ;;  %v81_v38 = vld [vmem:[%s14203_s3 + $0x98] sm:$0xff] }
 0x3de   :  { %11415 = vmatpush3.msra.mxu0 %v69_v42  ;;  %v78_v42 = vld [vmem:[%s14203_s3 + $0x80] sm:$0xff] }
 0x3df   :  { %11416 = vmatprep.subr.mxu0 %v68_v45 }
 0x3e0   :  { %11417 = vmatpush3.msra.mxu0 %v68_v45 }
 0x3e1   :  { %11418 = vmatprep.subr.mxu0 %v67_v49 }
 0x3e2   :  { %11419 = vmatpush3.msra.mxu0 %v67_v49 }
 0x3e3   :  { %11420 = vmatprep.subr.mxu0 %v66_v52 }
 0x3e4   :  { %11421 = vmatpush3.msra.mxu0 %v66_v52 }
 0x3e5   :  { %11436 = vmatprep.subr.mxu0 %v81_v38 }
 0x481   :  { %v1044_v39 = vpop.f32.mrf.mxu1 }
 0x482   :  { %1505 = vrot.lane.b32.xlu0 %v1044_v39, %s12369_s9  ;;  %v80_v39 = vld [vmem:[%s14203_s3 + $0x90] sm:$0xff] }
 0x483   :  { %v11383_v40 = vpop.f32.mrf.mxu1 }
 0x484   :  { %v79_v40 = vld [vmem:[%s14203_s3 + $0x88] sm:$0xff] }
 0x48a   :  { %v1196_v35 = vpop.f32.mrf.mxu1 }
 0x48c   :  { %v11393_v43 = vpop.f32.mrf.mxu1 }
 0x48d   :  { %v968_v44 = vpop.f32.mrf.mxu0 }
 0x48e   :  { %v1348_v48 = vpop.f32.mrf.mxu1 }
 0x48f   :  { %1522 = vrot.lane.b32.xlu0 %v1348_v48, %s12369_s9  ;;  %v11378_v50 = vpop.f32.mrf.mxu0 }
 0x490   :  { %v11403_v46 = vpop.f32.mrf.mxu1  ;;  %v12719_v50 = vsub.s32 4, %v12456_v7 }
 0x491   :  { %v12722_v46 = vsub.s32 5, %v12456_v7 }
 0x492   :  { %v1500_v51 = vpop.f32.mrf.mxu1 }
 0x494   :  { %v11413_v53 = vpop.f32.mrf.mxu1 }
 0x495   :  { %v1120_v54 = vpop.f32.mrf.mxu0 }
 0x496   :  { %1509 = vrot.lane.b32.xlu1 %v1120_v54, %s12377_s17  ;;  %v1659_v54 = vrot.slane %v12464_v9, %v12722_v46 }
 0x497   :  { %v11388_v55 = vpop.f32.mrf.mxu0 }
 0x499   :  { %v1272_v56 = vpop.f32.mrf.mxu0 }
 0x49a   :  { %1513 = vrot.lane.b32.xlu1 %v1196_v35, %s12378_s18 }
 0x49b   :  { %v11398_v57 = vpop.f32.mrf.mxu0 }
 0x49d   :  { %v1424_v58 = vpop.f32.mrf.mxu0 }
 0x49e   :  { %1530 = vrot.lane.b32.xlu1 %v1500_v51, %s12378_s18  ;;  %1526 = vrot.lane.b32.xlu0 %v1424_v58, %s12377_s17  ;;  %v1653_v51 = vrot.slane %v12464_v9, %v12719_v50 }
 0x49f   :  { %v11408_v59 = vpop.f32.mrf.mxu0 }
 0x4f4   :  { %v1506_v60 = vpop.permute.xlu0 %1505 }
 0x4f5   :  { %v1516_v62 = vsel %vm185_vm2, %v968_v44, %v1506_v60 }
 0x501   :  { %v1523_v63 = vpop.permute.xlu0 %1522 }
 0x502   :  { %v1533_v4 = vsel %vm185_vm2, %v1272_v56, %v1523_v63  ;;  %v75_v63 = vld [vmem:[%s14203_s3 + $0x68] sm:$0xff] }
 0x508   :  { %v1510_v61 = vpop.permute.xlu1 %1509 }
 0x509   :  { %v1518_v0 = vsel %vm1517_vm3, %v1516_v62, %v1510_v61  ;;  %v77_v61 = vld [vmem:[%s14203_s3 + $0x78] sm:$0xff]  ;;  %v76_v62 = vld [vmem:[%s14203_s3 + $0x70] sm:$0xff] }
 0x50c   :  { %v1514_v1 = vpop.permute.xlu1 %1513 }
 0x50d   :  { %v1520_v3 = vsel %vm1519_vm4, %v1518_v0, %v1514_v1  ;;  %v74_v0 = vld [vmem:[%s14203_s3 + $0x60] sm:$0xff]  ;;  %v12744_v1 = vsub.s32 2, %v12456_v7 }
 0x50e   :  { %11422 = vmatprep.mubr.msk.f32.mxu0 %vm87_vm0, %v1520_v3 }
 0x50f   :  { %v1665_v3 = vrot.slane %v12464_v9, %v12744_v1 }
 0x510   :  { %v1531_v10 = vpop.permute.xlu1 %1530  ;;  %v1527_v11 = vpop.permute.xlu0 %1526 }
 0x511   :  { %v1534_v13 = vsel %vm1517_vm3, %v1533_v4, %v1527_v11 }
 0x512   :  { %v1535_v22 = vsel %vm1519_vm4, %v1534_v13, %v1531_v10 }
 0x513   :  { %11423 = vmatmul.mubr.msk.f32.vlgmr.msra.gmra.mxu0 %vm87_vm0, %v1535_v22 }
 0x514   :  { %11437 = vmatpush3.msra.mxu0 %v81_v38  ;;  %v1876_v38 = vld [vmem:[%s14204_s4 + $0x8] sm:$0xff] }
 0x515   :  { %11438 = vmatprep.subr.mxu0 %v80_v39 }
 0x516   :  { %11439 = vmatpush3.msra.mxu0 %v80_v39  ;;  %v1875_v39 = vld [vmem:[%s14204_s4] sm:$0xff] }
 0x517   :  { %11440 = vmatprep.subr.mxu0 %v79_v40 }
 0x518   :  { %11441 = vmatpush3.msra.mxu0 %v79_v40 }
 0x519   :  { %11442 = vmatprep.subr.mxu0 %v78_v42 }
 0x51a   :  { %11443 = vmatpush3.msra.mxu0 %v78_v42 }
 0x51b   :  { %11444 = vmatprep.subr.mxu0 %v77_v61 }
 0x51c   :  { %11445 = vmatpush3.msra.mxu0 %v77_v61  ;;  %v12797_v61 = vld [vmem:[%s14204_s4 + $0xa0] sm:$0xff] }
 0x51d   :  { %11446 = vmatprep.subr.mxu0 %v76_v62 }
 0x51e   :  { %11447 = vmatpush3.msra.mxu0 %v76_v62  ;;  %v1899_v62 = vrot.slane %v12797_v61, %v12459_v8 }
 0x51f   :  { %11448 = vmatprep.subr.mxu0 %v75_v63 }
 0x520   :  { %11449 = vmatpush3.msra.mxu0 %v75_v63 }
 0x521   :  { %11450 = vmatprep.subr.mxu0 %v74_v0 }
 0x522   :  { %11451 = vmatpush3.msra.mxu0 %v74_v0 }
 0x523   :  { %11476 = vmatprep.subr.mxu0 %v12370_v12 }
 0x5d3   :  { %v11424_v24 = vpop.f32.mrf.mxu0 }
 0x5d4   :  { %v1618_v25 = vadd.f32 %v11424_v24, %v1539_v23  ;;  %v12753_v24 = vsub.s32 3, %v12456_v7 }
 0x5d5   :  { %v1612_v26 = vpop.f32.mrf.mxu0 }
 0x5d6   :  { %v1613_v21 = vadd.f32 %v1612_v26, %v1539_v23  ;;  %v1622_v20 = vadd.f32 %v1618_v25, %v12451_v5  ;;  %v1752_v25 = vrot.slane %v12464_v9, %v12753_v24 }
 0x5d8   :  { %v1626_v27 = vsel %vm87_vm0, %v1622_v20, 0.0  ;;  %v1621_v28 = vadd.f32 %v1613_v21, %v12438_v2  ;;  %v73_v2 = vld [vmem:[%s14203_s3 + $0x58] sm:$0xff] }
 0x5d9   :  { %1627 = vadd.xlane.f32.xlu1 %v1626_v27  ;;  %11425 = vmatprep.subr.mxu1 %v73_v2 }
 0x5da   :  { %v1623_v14 = vsel %vm87_vm0, %v1621_v28, 0.0  ;;  %11426 = vmatpush3.msra.mxu1 %v73_v2 }
 0x5db   :  { %1624 = vadd.xlane.f32.xlu0 %v1623_v14  ;;  %11427 = vmatprep.subr.mxu1 %v72_v19 }
 0x5dc   :  { %11428 = vmatpush3.msra.mxu1 %v72_v19 }
 0x5dd   :  { %11429 = vmatprep.subr.mxu1 %v71_v37 }
 0x5de   :  { %11430 = vmatpush3.msra.mxu1 %v71_v37  ;;  %v1878_v37 = vld [vmem:[%s14204_s4 + $0x18] sm:$0xff] }
 0x5df   :  { %11431 = vmatprep.subr.mxu1 %v70_v15 }
 0x5e0   :  { %11432 = vmatpush3.msra.mxu1 %v70_v15  ;;  %v1877_v15 = vld [vmem:[%s14204_s4 + $0x10] sm:$0xff] }
 0x5e1   :  { %11455 = vmatprep.subr.mxu1 %v1878_v37 }
 0x662   :  { %v1628_v18 = vpop.xlane.xlu1 %1627 }
 0x663   :  { %v1631_v29 = vmul.f32 0.03125, %v1628_v18 }
 0x664   :  { %v1625_v30 = vpop.xlane.xlu0 %1624 }
 0x665   :  { %v1630_v16 = vmul.f32 0.03125, %v1625_v30  ;;  %v1633_v32 = vsub.f32 %v1622_v20, %v1631_v29 }
 0x667   :  { %v1632_v33 = vsub.f32 %v1621_v28, %v1630_v16  ;;  %v1635_v36 = vmul.f32 %v1633_v32, %v1633_v32 }
 0x669   :  { %v1634_v17 = vmul.f32 %v1632_v33, %v1632_v33  ;;  %v1639_v5 = vsel %vm87_vm0, %v1635_v36, 0.0 }
 0x66b   :  { %v1636_v34 = vsel %vm87_vm0, %v1634_v17, 0.0 }
 0x66c   :  { %1637 = vadd.xlane.f32.xlu0 %v1636_v34 }
 0x670   :  { %1640 = vadd.xlane.f32.xlu0 %v1639_v5 }
 0x6f5   :  { %v1638_v35 = vpop.xlane.xlu0 %1637 }
 0x6f6   :  { %v1642_v43 = vmul.f32 0.03125, %v1638_v35 }
 0x6f8   :  { %v1644_v44 = vadd.f32 1e-05, %v1642_v43 }
 0x6f9   :  { %v1641_v45 = vpop.xlane.xlu0 %1640 }
 0x6fa   :  { %12133 = vrsqrt.f32 %v1644_v44  ;;  %v1643_v48 = vmul.f32 0.03125, %v1641_v45 }
 0x6fc   :  { %v1645_v49 = vadd.f32 1e-05, %v1643_v48  ;;  %v12775_v48 = vsub.s32 6, %v12456_v7 }
 0x6fe   :  { %12135 = vrsqrt.f32 %v1645_v49 }
 0x707   :  { %v12134_v52 = vpop.eup %12133 }
 0x708   :  { %v1648_v53 = vmul.f32 %v12134_v52, %v1632_v33  ;;  %v12780_v52 = vsub.s32 7, %v12456_v7 }
 0x70a   :  { %v1654_v55 = vmul.f32 %v1653_v51, %v1648_v53 }
 0x70b   :  { %v12136_v56 = vpop.eup %12135 }
 0x70c   :  { %v1649_v57 = vmul.f32 %v12136_v56, %v1633_v32  ;;  %v1660_v58 = vadd.f32 %v1659_v54, %v1654_v55 }
 0x70e   :  { %v1655_v59 = vmul.f32 %v1653_v51, %v1649_v57  ;;  %11433 = vmatprep.mubr.msk.f32.mxu1 %vm87_vm0, %v1660_v58  ;;  %v1866_v51 = vrot.slane %v12464_v9, %v12775_v48  ;;  %v1872_v57 = vrot.slane %v12464_v9, %v12780_v52 }
 0x710   :  { %v1661_v60 = vadd.f32 %v1659_v54, %v1655_v59 }
 0x712   :  { %11434 = vmatmul.mubr.msk.f32.vlgmr.msra.gmra.mxu1 %vm87_vm0, %v1661_v60 }
 0x713   :  { %11456 = vmatpush3.msra.mxu1 %v1878_v37 }
 0x714   :  { %11457 = vmatprep.subr.mxu1 %v1877_v15 }
 0x715   :  { %11458 = vmatpush3.msra.mxu1 %v1877_v15 }
 0x716   :  { %11459 = vmatprep.subr.mxu1 %v1876_v38 }
 0x717   :  { %11460 = vmatpush3.msra.mxu1 %v1876_v38 }
 0x718   :  { %11461 = vmatprep.subr.mxu1 %v1875_v39 }
 0x719   :  { %11462 = vmatpush3.msra.mxu1 %v1875_v39 }
 0x71a   :  { %11466 = vmatprep.subr.mxu1 %v12370_v12 }
 0x7d2   :  { %v11435_v4 = vpop.f32.mrf.mxu1 }
 0x7d3   :  { %v1744_v10 = vadd.f32 %v11435_v4, %v1665_v3 }
 0x7d4   :  { %v1738_v11 = vpop.f32.mrf.mxu1 }
 0x7d5   :  { %v1739_v13 = vadd.f32 %v1738_v11, %v1665_v3  ;;  %v1748_v23 = vmax.f32 %v1744_v10, 0.0 }
 0x7d7   :  { %v1747_v22 = vmax.f32 %v1739_v13, 0.0 }
 0x7d9   :  { %11452 = vmatprep.mubr.msk.f32.mxu0 %vm1753_vm5, %v1747_v22 }
 0x7da   :  { %11453 = vmatmul.mubr.msk.f32.vlgmr.msra.gmra.mxu0 %vm1753_vm5, %v1748_v23 }
 0x7db   :  { %11478 = vmatprep.mubr.msk.f32.mxu0 %vm12373_vm1, %v12370_v12 }
 0x89a   :  { %v11454_v26 = vpop.f32.mrf.mxu0 }
 0x89b   :  { %v1832_v21 = vadd.f32 %v11454_v26, %v1752_v25 }
 0x89c   :  { %v1826_v20 = vpop.f32.mrf.mxu0 }
 0x89d   :  { %v1827_v27 = vadd.f32 %v1826_v20, %v1752_v25  ;;  %v1836_v28 = vadd.f32 %v1832_v21, %v1661_v60 }
 0x89f   :  { %v1840_v14 = vsel %vm87_vm0, %v1836_v28, 0.0  ;;  %v1835_v18 = vadd.f32 %v1827_v27, %v1660_v58 }
 0x8a0   :  { %1841 = vadd.xlane.f32.xlu0 %v1840_v14 }
 0x8a1   :  { %v1837_v29 = vsel %vm87_vm0, %v1835_v18, 0.0 }
 0x8a2   :  { %1838 = vadd.xlane.f32.xlu1 %v1837_v29 }
 0x929   :  { %v1842_v30 = vpop.xlane.xlu0 %1841 }
 0x92a   :  { %v1844_v16 = vmul.f32 0.03125, %v1842_v30 }
 0x92b   :  { %v1839_v32 = vpop.xlane.xlu1 %1838 }
 0x92c   :  { %v1846_v33 = vsub.f32 %v1836_v28, %v1844_v16  ;;  %v1843_v17 = vmul.f32 0.03125, %v1839_v32 }
 0x92e   :  { %v1845_v34 = vsub.f32 %v1835_v18, %v1843_v17  ;;  %v1848_v36 = vmul.f32 %v1846_v33, %v1846_v33 }
 0x930   :  { %v1852_v5 = vsel %vm87_vm0, %v1848_v36, 0.0  ;;  %v1847_v2 = vmul.f32 %v1845_v34, %v1845_v34 }
 0x931   :  { %1853 = vadd.xlane.f32.xlu0 %v1852_v5 }
 0x932   :  { %v1849_v19 = vsel %vm87_vm0, %v1847_v2, 0.0 }
 0x933   :  { %1850 = vadd.xlane.f32.xlu1 %v1849_v19 }
 0x9ba   :  { %v1854_v40 = vpop.xlane.xlu0 %1853 }
 0x9bb   :  { %v1856_v42 = vmul.f32 0.03125, %v1854_v40 }
 0x9bc   :  { %v1851_v35 = vpop.xlane.xlu1 %1850 }
 0x9bd   :  { %v1858_v43 = vadd.f32 1e-05, %v1856_v42  ;;  %v1855_v44 = vmul.f32 0.03125, %v1851_v35 }
 0x9bf   :  { %12137 = vrsqrt.f32 %v1858_v43  ;;  %v1857_v45 = vadd.f32 1e-05, %v1855_v44 }
 0x9c1   :  { %12139 = vrsqrt.f32 %v1857_v45 }
 0x9cc   :  { %v12138_v49 = vpop.eup %12137 }
 0x9cd   :  { %v1862_v53 = vmul.f32 %v12138_v49, %v1846_v33 }
 0x9ce   :  { %v12140_v54 = vpop.eup %12139 }
 0x9cf   :  { %v1861_v55 = vmul.f32 %v12140_v54, %v1845_v34  ;;  %v1868_v56 = vmul.f32 %v1866_v51, %v1862_v53 }
 0x9d1   :  { %v1867_v58 = vmul.f32 %v1866_v51, %v1861_v55  ;;  %v12786_v60 = vadd.f32 %v1872_v57, %v1868_v56 }
 0x9d3   :  { %v12784_v59 = vadd.f32 %v1872_v57, %v1867_v58 }
 0x9d5   :  { %11463 = vmatprep.mubr.msk.f32.mxu1 %vm87_vm0, %v12784_v59 }
 0x9d6   :  { %11464 = vmatmul.mubr.msk.f32.vlgmr.msra.gmra.mxu1 %vm87_vm0, %v12786_v60 }
 0x9d7   :  { %11468 = vmatprep.mubr.msk.f32.mxu1 %vm12373_vm1, %v12370_v12 }
 0xa96   :  { %v11465_v9 = vpop.f32.mrf.mxu1 }
 0xa97   :  { %v12807_v3 = vadd.f32 %v11465_v9, %v1899_v62 }
 0xa98   :  { %v1972_v63 = vpop.f32.mrf.mxu1 }
 0xa99   :  { %v12801_v0 = vadd.f32 %v1972_v63, %v1899_v62 }
 0xa9b   :  { %1984 = vrot.lane.b32.xlu0 %v12801_v0, %s12374_s26  ;;  %1982 = vrot.lane.b32.xlu1 %v12801_v0, %s12372_s25 }
 0xa9f   :  { %1991 = vrot.lane.b32.xlu0 %v12807_v3, %s12374_s26  ;;  %1986 = vrot.lane.b32.xlu1 %v12801_v0, %s12371_s0 }
 0xaa3   :  { %1995 = vrot.lane.b32.xlu0 %v12801_v0, %s12375_s27  ;;  %1989 = vrot.lane.b32.xlu1 %v12807_v3, %s12372_s25 }
 0xaa7   :  { %1993 = vrot.lane.b32.xlu1 %v12807_v3, %s12371_s0 }
 0xb0d   :  { %v12819_v4 = vpop.permute.xlu0 %1984  ;;  %v12821_v10 = vpop.permute.xlu1 %1982 }
 0xb0e   :  { %2147 = vrot.lane.b32.xlu0 %v12819_v4, %s12375_s27  ;;  %2071 = vrot.lane.b32.xlu1 %v12821_v10, %s12375_s27 }
 0xb11   :  { %v12827_v11 = vpop.permute.xlu0 %1991  ;;  %v12829_v13 = vpop.permute.xlu1 %1986 }
 0xb12   :  { %2299 = vrot.lane.b32.xlu0 %v12807_v3, %s12375_s27  ;;  %2223 = vrot.lane.b32.xlu1 %v12829_v13, %s12375_s27 }
 0xb15   :  { %v1996_v22 = vpop.permute.xlu0 %1995  ;;  %v12835_v23 = vpop.permute.xlu1 %1989 }
 0xb16   :  { %2451 = vrot.lane.b32.xlu0 %v12827_v11, %s12375_s27  ;;  %11467 = vmatpush3.xpose.msk.msra.mxu1 %vm185_vm2, %v1996_v22 }
 0xb17   :  { %2375 = vrot.lane.b32.xlu1 %v12835_v23, %s12375_s27  ;;  %11471 = vmatprep.subr.mxu1 %v12370_v12 }
 0xb19   :  { %11469 = vmatmul.mubr.msk.f32.vlgmr.msra.gmra.mxu1 %vm185_vm2, %v12801_v0  ;;  %v12845_v25 = vpop.permute.xlu1 %1993 }
 0xb1a   :  { %11473 = vmatprep.mubr.msk.f32.mxu1 %vm12373_vm1, %v12370_v12 }
 0xb1b   :  { %2527 = vrot.lane.b32.xlu1 %v12845_v25, %s12375_s27 }
 0xb80   :  { %v2148_v26 = vpop.permute.xlu0 %2147  ;;  %v2072_v21 = vpop.permute.xlu1 %2071 }
 0xb81   :  { %11472 = vmatpush3.xpose.msk.msra.mxu1 %vm185_vm2, %v2072_v21  ;;  %11477 = vmatpush3.xpose.msk.msra.mxu0 %vm185_vm2, %v2148_v26 }
 0xb82   :  { %11486 = vmatprep.subr.mxu0 %v12370_v12  ;;  %11481 = vmatprep.subr.mxu1 %v12370_v12 }
 0xb84   :  { %11479 = vmatmul.mubr.msk.f32.vlgmr.msra.gmra.mxu0 %vm185_vm2, %v12819_v4  ;;  %v2300_v20 = vpop.permute.xlu0 %2299  ;;  %11474 = vmatmul.mubr.msk.f32.vlgmr.msra.gmra.mxu1 %vm185_vm2, %v12821_v10  ;;  %v2224_v27 = vpop.permute.xlu1 %2223 }
 0xb85   :  { %11482 = vmatpush3.xpose.msk.msra.mxu1 %vm185_vm2, %v2224_v27  ;;  %11487 = vmatpush3.xpose.msk.msra.mxu0 %vm185_vm2, %v2300_v20 }
 0xb86   :  { %11483 = vmatprep.mubr.msk.f32.mxu1 %vm12373_vm1, %v12370_v12  ;;  %11488 = vmatprep.mubr.msk.f32.mxu0 %vm12373_vm1, %v12370_v12 }
 0xb87   :  { %11496 = vmatprep.subr.mxu0 %v12370_v12  ;;  %11491 = vmatprep.subr.mxu1 %v12370_v12 }
 0xb88   :  { %11489 = vmatmul.mubr.msk.f32.vlgmr.msra.gmra.mxu0 %vm185_vm2, %v12807_v3  ;;  %v2452_v28 = vpop.permute.xlu0 %2451  ;;  %11484 = vmatmul.mubr.msk.f32.vlgmr.msra.gmra.mxu1 %vm185_vm2, %v12829_v13 }
 0xb89   :  { %v2376_v14 = vpop.permute.xlu1 %2375  ;;  %11497 = vmatpush3.xpose.msk.msra.mxu0 %vm185_vm2, %v2452_v28  ;;  %11493 = vmatprep.mubr.msk.f32.mxu1 %vm12373_vm1, %v12370_v12 }
 0xb8a   :  { %11492 = vmatpush3.xpose.msk.msra.mxu1 %vm185_vm2, %v2376_v14  ;;  %11498 = vmatprep.mubr.msk.f32.mxu0 %vm12373_vm1, %v12370_v12 }
 0xb8b   :  { %11501 = vmatprep.subr.mxu1 %v12370_v12  ;;  %11506 = vmatprep.subr.mxu0 %v12370_v12 }
 0xb8c   :  { %11499 = vmatmul.mubr.msk.f32.vlgmr.msra.gmra.mxu0 %vm185_vm2, %v12827_v11 }
 0xb8d   :  { %11494 = vmatmul.mubr.msk.f32.vlgmr.msra.gmra.mxu1 %vm185_vm2, %v12835_v23  ;;  %v2528_v18 = vpop.permute.xlu1 %2527  ;;  %11508 = vmatprep.mubr.msk.f32.mxu0 %vm12373_vm1, %v12370_v12 }
 0xb8e   :  { %11502 = vmatpush3.xpose.msk.msra.mxu1 %vm185_vm2, %v2528_v18  ;;  %11503 = vmatprep.mubr.msk.f32.mxu1 %vm12373_vm1, %v12370_v12 }
 0xb8f   :  { %11511 = vmatprep.subr.mxu1 %v12370_v12 }
 0xb91   :  { %11504 = vmatmul.mubr.msk.f32.vlgmr.msra.gmra.mxu1 %vm185_vm2, %v12845_v25 }
 0xb92   :  { %11513 = vmatprep.mubr.msk.f32.mxu1 %vm12373_vm1, %v12370_v12 }
 0xbd9   :  { %v2067_v29 = vpop.f32.mrf.mxu1 }
 0xbda   :  { %v2603_v30 = vmul.f32 0.35355338, %v2067_v29 }
 0xbdb   :  { %v11470_v16 = vpop.f32.mrf.mxu1 }
 0xbdc   :  { %v2611_v32 = vadd.f32 %v2603_v30, %v12570_v31 }
 0xbde   :  { %v2619_v33 = vsel %vm185_vm2, %v2611_v32, -inf }
 0xbdf   :  { %2620 = vmax.xlane.f32.xlu0 %v2619_v33 }
 0xc44   :  { %v2143_v17 = vpop.f32.mrf.mxu1  ;;  %v2219_v34 = vpop.f32.mrf.mxu0 }
 0xc45   :  { %v2604_v36 = vmul.f32 0.35355338, %v2143_v17  ;;  %v2605_v5 = vmul.f32 0.35355338, %v2219_v34 }
 0xc46   :  { %v11475_v2 = vpop.f32.mrf.mxu1  ;;  %v11480_v19 = vpop.f32.mrf.mxu0 }
 0xc47   :  { %v2613_v37 = vadd.f32 %v2605_v5, %v12570_v31  ;;  %v2612_v15 = vadd.f32 %v2604_v36, %v12570_v31 }
 0xc48   :  { %v2295_v38 = vpop.f32.mrf.mxu1  ;;  %v2371_v39 = vpop.f32.mrf.mxu0 }
 0xc49   :  { %v2606_v40 = vmul.f32 0.35355338, %v2295_v38  ;;  %v2607_v42 = vmul.f32 0.35355338, %v2371_v39  ;;  %v2625_v35 = vsel %vm185_vm2, %v2613_v37, -inf  ;;  %v2622_v43 = vsel %vm185_vm2, %v2612_v15, -inf }
 0xc4a   :  { %2626 = vmax.xlane.f32.xlu0 %v2625_v35  ;;  %v11490_v44 = vpop.f32.mrf.mxu0  ;;  %2623 = vmax.xlane.f32.xlu1 %v2622_v43  ;;  %v11485_v45 = vpop.f32.mrf.mxu1 }
 0xc4b   :  { %v2615_v49 = vadd.f32 %v2607_v42, %v12586_v47  ;;  %v2614_v51 = vadd.f32 %v2606_v40, %v12570_v31 }
 0xc4c   :  { %v2523_v53 = vpop.f32.mrf.mxu0 }
 0xc4d   :  { %v2447_v54 = vpop.f32.mrf.mxu1  ;;  %v2609_v55 = vmul.f32 0.35355338, %v2523_v53  ;;  %v2631_v56 = vsel %vm185_vm2, %v2615_v49, -inf  ;;  %v2628_v57 = vsel %vm185_vm2, %v2614_v51, -inf }
 0xc4e   :  { %v2608_v58 = vmul.f32 0.35355338, %v2447_v54  ;;  %v11500_v9 = vpop.f32.mrf.mxu0  ;;  %2632 = vmax.xlane.f32.xlu1 %v2631_v56  ;;  %2629 = vmax.xlane.f32.xlu0 %v2628_v57 }
 0xc4f   :  { %v11495_v62 = vpop.f32.mrf.mxu1  ;;  %v2617_v63 = vadd.f32 %v2609_v55, %v12586_v47 }
 0xc50   :  { %v2616_v22 = vadd.f32 %v2608_v58, %v12586_v47 }
 0xc51   :  { %v2599_v26 = vpop.f32.mrf.mxu1  ;;  %v2637_v21 = vsel %vm185_vm2, %v2617_v63, -inf }
 0xc52   :  { %v2610_v31 = vmul.f32 0.35355338, %v2599_v26  ;;  %2638 = vmax.xlane.f32.xlu1 %v2637_v21  ;;  %v2634_v20 = vsel %vm185_vm2, %v2616_v22, -inf }
 0xc53   :  { %2635 = vmax.xlane.f32.xlu0 %v2634_v20  ;;  %v11505_v27 = vpop.f32.mrf.mxu1 }
 0xc54   :  { %v2618_v28 = vadd.f32 %v2610_v31, %v12586_v47 }
 0xc56   :  { %v2640_v14 = vsel %vm185_vm2, %v2618_v28, -inf }
 0xc57   :  { %2641 = vmax.xlane.f32.xlu0 %v2640_v14 }
 0xc63   :  { %2707 = vrot.lane.b32.xlu1 %v12801_v0, %s12376_s2 }
 0xc67   :  { %2859 = vrot.lane.b32.xlu1 %v12819_v4, %s12376_s2 }
 0xc68   :  { %v2621_v47 = vpop.xlane.xlu0 %2620 }
 0xc69   :  { %v2643_v18 = vsub.f32 %v2611_v32, %v2621_v47 }
 0xc6b   :  { %2935 = vrot.lane.b32.xlu1 %v12829_v13, %s12376_s2  ;;  %v2651_v29 = vmul.f32 1.442695, %v2643_v18 }
 0xc6d   :  { %2783 = vrot.lane.b32.xlu0 %v12821_v10, %s12376_s2  ;;  %12141 = vpow2.f32 %v2651_v29 }
 0xc6f   :  { %3087 = vrot.lane.b32.xlu1 %v12835_v23, %s12376_s2 }
 0xc71   :  { %3011 = vrot.lane.b32.xlu0 %v12807_v3, %s12376_s2 }
 0xc7a   :  { %v12921_v0 = vpop.eup %12141 }
 0xc7b   :  { %v2667_v4 = vsel %vm185_vm2, %v12921_v0, 0.0 }
 0xc93   :  { %2668 = vadd.xlane.f32.xlu1 %v2667_v4 }
 0xcd3   :  { %v2627_v13 = vpop.xlane.xlu0 %2626  ;;  %v2624_v30 = vpop.xlane.xlu1 %2623 }
 0xcd4   :  { %v2645_v16 = vsub.f32 %v2613_v37, %v2627_v13  ;;  %v2644_v10 = vsub.f32 %v2612_v15, %v2624_v30 }
 0xcd6   :  { %v2655_v33 = vmul.f32 1.442695, %v2645_v16  ;;  %v2653_v17 = vmul.f32 1.442695, %v2644_v10 }
 0xcd7   :  { %v2630_v23 = vpop.xlane.xlu0 %2629  ;;  %v2633_v34 = vpop.xlane.xlu1 %2632 }
 0xcd8   :  { %12143 = vpow2.f32 %v2655_v33  ;;  %v2646_v3 = vsub.f32 %v2614_v51, %v2630_v23  ;;  %v2647_v36 = vsub.f32 %v2615_v49, %v2633_v34 }
 0xcd9   :  { %12145 = vpow2.f32 %v2653_v17 }
 0xcda   :  { %v2657_v32 = vmul.f32 1.442695, %v2646_v3  ;;  %v2659_v5 = vmul.f32 1.442695, %v2647_v36 }
 0xcdb   :  { %v2639_v2 = vpop.xlane.xlu1 %2638 }
 0xcdc   :  { %12147 = vpow2.f32 %v2657_v32  ;;  %v2636_v19 = vpop.xlane.xlu0 %2635  ;;  %v2649_v38 = vsub.f32 %v2617_v63, %v2639_v2 }
 0xcdd   :  { %12149 = vpow2.f32 %v2659_v5  ;;  %v2648_v39 = vsub.f32 %v2616_v22, %v2636_v19 }
 0xcde   :  { %v2663_v40 = vmul.f32 1.442695, %v2649_v38 }
 0xcdf   :  { %v2661_v42 = vmul.f32 1.442695, %v2648_v39  ;;  %v2708_v37 = vpop.permute.xlu1 %2707 }
 0xce0   :  { %12151 = vpow2.f32 %v2663_v40  ;;  %v2642_v15 = vpop.xlane.xlu0 %2641  ;;  %11507 = vmatpush3.msra.mxu0 %v2708_v37 }
 0xce1   :  { %12153 = vpow2.f32 %v2661_v42  ;;  %v2650_v35 = vsub.f32 %v2618_v28, %v2642_v15  ;;  %11516 = vmatprep.subr.mxu0 %v12370_v12  ;;  %v1882_v15 = vld [vmem:[%s14204_s4 + $0x38] sm:$0xff] }
 0xce3   :  { %v2665_v43 = vmul.f32 1.442695, %v2650_v35  ;;  %v2860_v21 = vpop.permute.xlu1 %2859  ;;  %v1881_v35 = vld [vmem:[%s14204_s4 + $0x30] sm:$0xff] }
 0xce4   :  { %v2784_v44 = vpop.permute.xlu0 %2783 }
 0xce5   :  { %v12144_v45 = vpop.eup %12143  ;;  %12155 = vpow2.f32 %v2665_v43  ;;  %11512 = vmatpush3.msra.mxu1 %v2784_v44  ;;  %v1880_v43 = vld [vmem:[%s14204_s4 + $0x28] sm:$0xff] }
 0xce6   :  { %v12146_v49 = vpop.eup %12145  ;;  %v2673_v51 = vsel %vm185_vm2, %v12144_v45, 0.0  ;;  %11521 = vmatprep.subr.mxu1 %v12370_v12 }
 0xce7   :  { %2674 = vadd.xlane.f32.xlu1 %v2673_v51  ;;  %v2670_v53 = vsel %vm185_vm2, %v12146_v49, 0.0  ;;  %v2936_v31 = vpop.permute.xlu1 %2935  ;;  %v1879_v51 = vld [vmem:[%s14204_s4 + $0x20] sm:$0xff] }
 0xce8   :  { %2671 = vadd.xlane.f32.xlu0 %v2670_v53 }
 0xce9   :  { %v12148_v54 = vpop.eup %12147 }
 0xcea   :  { %v12150_v55 = vpop.eup %12149  ;;  %v2676_v56 = vsel %vm185_vm2, %v12148_v54, 0.0 }
 0xceb   :  { %v2679_v57 = vsel %vm185_vm2, %v12150_v55, 0.0  ;;  %v3088_v20 = vpop.permute.xlu1 %3087 }
 0xcec   :  { %2677 = vadd.xlane.f32.xlu0 %v2676_v56  ;;  %2680 = vadd.xlane.f32.xlu1 %v2679_v57 }
 0xced   :  { %v12931_v58 = vpop.eup %12151 }
 0xcee   :  { %v12154_v9 = vpop.eup %12153  ;;  %v2685_v62 = vsel %vm185_vm2, %v12931_v58, 0.0 }
 0xcef   :  { %v2682_v63 = vsel %vm185_vm2, %v12154_v9, 0.0 }
 0xcf0   :  { %2683 = vadd.xlane.f32.xlu0 %v2682_v63  ;;  %2686 = vadd.xlane.f32.xlu1 %v2685_v62 }
 0xcf2   :  { %v12936_v22 = vpop.eup %12155 }
 0xcf3   :  { %v2688_v26 = vsel %vm185_vm2, %v12936_v22, 0.0 }
 0xcf4   :  { %2689 = vadd.xlane.f32.xlu0 %v2688_v26 }
 0xd01   :  { %3239 = vrot.lane.b32.xlu1 %v12845_v25, %s12376_s2  ;;  %v3012_v25 = vpop.permute.xlu0 %3011 }
 0xd0a   :  { %3163 = vrot.lane.b32.xlu0 %v12827_v11, %s12376_s2 }
 0xd1c   :  { %v2669_v27 = vpop.xlane.xlu1 %2668 }
 0xd1d   :  { %12157 = vrcp.f32 %v2669_v27 }
 0xd2a   :  { %v12158_v28 = vpop.eup %12157 }
 0xd2b   :  { %v2692_v14 = vmul.f32 %v12158_v28, %v12921_v0 }
 0xd2d   :  { %11509 = vmatmul.mubr.msk.f32.vlgmr.msra.gmra.mxu0 %vm185_vm2, %v2692_v14 }
 0xd2e   :  { %11517 = vmatpush3.msra.mxu0 %v2860_v21  ;;  %11518 = vmatprep.mubr.msk.f32.mxu0 %vm12373_vm1, %v12370_v12 }
 0xd2f   :  { %11526 = vmatprep.subr.mxu0 %v12370_v12 }
 0xd70   :  { %v2675_v47 = vpop.xlane.xlu1 %2674 }
 0xd71   :  { %v2672_v18 = vpop.xlane.xlu0 %2671  ;;  %12159 = vrcp.f32 %v2675_v47 }
 0xd72   :  { %12161 = vrcp.f32 %v2672_v18 }
 0xd75   :  { %v2678_v11 = vpop.xlane.xlu0 %2677  ;;  %v2681_v29 = vpop.xlane.xlu1 %2680 }
 0xd76   :  { %12163 = vrcp.f32 %v2678_v11 }
 0xd77   :  { %12165 = vrcp.f32 %v2681_v29 }
 0xd79   :  { %v2684_v4 = vpop.xlane.xlu0 %2683  ;;  %v2687_v13 = vpop.xlane.xlu1 %2686 }
 0xd7a   :  { %12167 = vrcp.f32 %v2684_v4 }
 0xd7b   :  { %12169 = vrcp.f32 %v2687_v13  ;;  %v3348_v13 = vrot.slane %v12797_v61, %v12579_v41 }
 0xd7d   :  { %v2690_v0 = vpop.xlane.xlu0 %2689  ;;  %v3240_v38 = vpop.permute.xlu1 %3239 }
 0xd7e   :  { %v12160_v30 = vpop.eup %12159  ;;  %12171 = vrcp.f32 %v2690_v0 }
 0xd7f   :  { %v12162_v16 = vpop.eup %12161  ;;  %v2696_v10 = vmul.f32 %v12160_v30, %v12144_v45 }
 0xd80   :  { %v2694_v33 = vmul.f32 %v12162_v16, %v12146_v49 }
 0xd81   :  { %11519 = vmatmul.mubr.msk.f32.vlgmr.msra.gmra.mxu0 %vm185_vm2, %v2696_v10  ;;  %v3164_v32 = vpop.permute.xlu0 %3163 }
 0xd82   :  { %11514 = vmatmul.mubr.msk.f32.vlgmr.msra.gmra.mxu1 %vm185_vm2, %v2694_v33  ;;  %11527 = vmatpush3.msra.mxu0 %v3012_v25 }
 0xd83   :  { %v12164_v17 = vpop.eup %12163  ;;  %11522 = vmatpush3.msra.mxu1 %v2936_v31  ;;  %11523 = vmatprep.mubr.msk.f32.mxu1 %vm12373_vm1, %v12370_v12 }
 0xd84   :  { %v12166_v23 = vpop.eup %12165  ;;  %11528 = vmatprep.mubr.msk.f32.mxu0 %vm12373_vm1, %v12370_v12  ;;  %11531 = vmatprep.subr.mxu1 %v12370_v12  ;;  %v2698_v34 = vmul.f32 %v12164_v17, %v12148_v54 }
 0xd85   :  { %11536 = vmatprep.subr.mxu0 %v12370_v12  ;;  %v2700_v3 = vmul.f32 %v12166_v23, %v12150_v55 }
 0xd86   :  { %11524 = vmatmul.mubr.msk.f32.vlgmr.msra.gmra.mxu1 %vm185_vm2, %v2698_v34 }
 0xd87   :  { %v12168_v36 = vpop.eup %12167  ;;  %11529 = vmatmul.mubr.msk.f32.vlgmr.msra.gmra.mxu0 %vm185_vm2, %v2700_v3  ;;  %11532 = vmatpush3.msra.mxu1 %v3088_v20 }
 0xd88   :  { %v12170_v5 = vpop.eup %12169  ;;  %11537 = vmatpush3.msra.mxu0 %v3164_v32  ;;  %11533 = vmatprep.mubr.msk.f32.mxu1 %vm12373_vm1, %v12370_v12  ;;  %v2702_v2 = vmul.f32 %v12168_v36, %v12154_v9 }
 0xd89   :  { %11538 = vmatprep.mubr.msk.f32.mxu0 %vm12373_vm1, %v12370_v12  ;;  %11541 = vmatprep.subr.mxu1 %v12370_v12  ;;  %v2704_v19 = vmul.f32 %v12170_v5, %v12931_v58 }
 0xd8a   :  { %11534 = vmatmul.mubr.msk.f32.vlgmr.msra.gmra.mxu1 %vm185_vm2, %v2702_v2  ;;  %11546 = vmatprep.subr.mxu0 %v1882_v15 }
 0xd8b   :  { %v12172_v39 = vpop.eup %12171  ;;  %11539 = vmatmul.mubr.msk.f32.vlgmr.msra.gmra.mxu0 %vm185_vm2, %v2704_v19  ;;  %11542 = vmatpush3.msra.mxu1 %v3240_v38 }
 0xd8c   :  { %11543 = vmatprep.mubr.msk.f32.mxu1 %vm12373_vm1, %v12370_v12  ;;  %v2706_v40 = vmul.f32 %v12172_v39, %v12936_v22  ;;  %11547 = vmatpush3.msra.mxu0 %v1882_v15  ;;  %v1883_v15 = vld [vmem:[%s14204_s4 + $0x40] sm:$0xff] }
 0xd8d   :  { %11548 = vmatprep.subr.mxu0 %v1881_v35 }
 0xd8e   :  { %11544 = vmatmul.mubr.msk.f32.vlgmr.msra.gmra.mxu1 %vm185_vm2, %v2706_v40  ;;  %11549 = vmatpush3.msra.mxu0 %v1881_v35  ;;  %v3724_v35 = vld [vmem:[%s14205_s5 + $0x18] sm:$0xff] }
 0xd8f   :  { %11550 = vmatprep.subr.mxu0 %v1880_v43 }
 0xd90   :  { %11551 = vmatpush3.msra.mxu0 %v1880_v43  ;;  %v1894_v43 = vld [vmem:[%s14204_s4 + $0x98] sm:$0xff] }
 0xd91   :  { %11552 = vmatprep.subr.mxu0 %v1879_v51 }
 0xd92   :  { %11553 = vmatpush3.msra.mxu0 %v1879_v51 }
 0xd93   :  { %11568 = vmatprep.subr.mxu0 %v1894_v43 }
 0xded   :  { %v2779_v42 = vpop.f32.mrf.mxu0 }
 0xdef   :  { %v11510_v37 = vpop.f32.mrf.mxu0 }
 0xdf0   :  { %v1884_v37 = vld [vmem:[%s14204_s4 + $0x48] sm:$0xff] }
 0xe41   :  { %v2931_v44 = vpop.f32.mrf.mxu0 }
 0xe42   :  { %v2855_v45 = vpop.f32.mrf.mxu1  ;;  %3320 = vrot.lane.b32.xlu1 %v2931_v44, %s12377_s17  ;;  %v1893_v44 = vld [vmem:[%s14204_s4 + $0x90] sm:$0xff] }
 0xe43   :  { %3316 = vrot.lane.b32.xlu0 %v2855_v45, %s12369_s9  ;;  %v11520_v49 = vpop.f32.mrf.mxu0  ;;  %v1892_v45 = vld [vmem:[%s14204_s4 + $0x88] sm:$0xff] }
 0xe44   :  { %v11515_v53 = vpop.f32.mrf.mxu1  ;;  %v1891_v49 = vld [vmem:[%s14204_s4 + $0x80] sm:$0xff] }
 0xe46   :  { %v3007_v54 = vpop.f32.mrf.mxu1 }
 0xe47   :  { %v3083_v55 = vpop.f32.mrf.mxu0  ;;  %3324 = vrot.lane.b32.xlu1 %v3007_v54, %s12378_s18 }
 0xe48   :  { %v11525_v56 = vpop.f32.mrf.mxu1 }
 0xe49   :  { %v11530_v57 = vpop.f32.mrf.mxu0 }
 0xe4a   :  { %v3159_v58 = vpop.f32.mrf.mxu1 }
 0xe4b   :  { %v3235_v9 = vpop.f32.mrf.mxu0  ;;  %3331 = vrot.lane.b32.xlu0 %v3159_v58, %s12369_s9  ;;  %v3461_v58 = vrot.slane %v12797_v61, %v12719_v50 }
 0xe4c   :  { %v11535_v62 = vpop.f32.mrf.mxu1 }
 0xe4d   :  { %v11540_v63 = vpop.f32.mrf.mxu0 }
 0xe4e   :  { %v3311_v22 = vpop.f32.mrf.mxu1  ;;  %v3467_v63 = vrot.slane %v12797_v61, %v12722_v46 }
 0xe4f   :  { %3335 = vrot.lane.b32.xlu0 %v3235_v9, %s12377_s17  ;;  %3339 = vrot.lane.b32.xlu1 %v3311_v22, %s12378_s18 }
 0xe50   :  { %v11545_v26 = vpop.f32.mrf.mxu1 }
 0xeb4   :  { %v3321_v21 = vpop.permute.xlu1 %3320 }
 0xeb5   :  { %v3317_v31 = vpop.permute.xlu0 %3316 }
 0xeb6   :  { %v3327_v20 = vsel %vm185_vm2, %v2779_v42, %v3317_v31  ;;  %v1885_v42 = vld [vmem:[%s14204_s4 + $0x50] sm:$0xff] }
 0xeb7   :  { %v3328_v27 = vsel %vm1517_vm3, %v3327_v20, %v3321_v21 }
 0xeb9   :  { %v3325_v28 = vpop.permute.xlu1 %3324 }
 0xeba   :  { %v3329_v14 = vsel %vm1519_vm4, %v3328_v27, %v3325_v28  ;;  %v13045_v28 = vld [vmem:[%s14201_s1] sm:$0xff] }
 0xebb   :  { %11554 = vmatprep.mubr.msk.f32.mxu0 %vm87_vm0, %v3329_v14  ;;  %v3723_v14 = vld [vmem:[%s14205_s5 + $0x10] sm:$0xff] }
 0xebd   :  { %v3332_v25 = vpop.permute.xlu0 %3331 }
 0xebe   :  { %v3342_v47 = vsel %vm185_vm2, %v3083_v55, %v3332_v25  ;;  %v3722_v25 = vld [vmem:[%s14205_s5 + $0x8] sm:$0xff] }
 0xec1   :  { %v3336_v18 = vpop.permute.xlu0 %3335  ;;  %v3340_v11 = vpop.permute.xlu1 %3339 }
 0xec2   :  { %v3343_v29 = vsel %vm1517_vm3, %v3342_v47, %v3336_v18  ;;  %v3721_v47 = vld [vmem:[%s14205_s5] sm:$0xff]  ;;  %v13063_v18 = vld [vmem:[%s14201_s1 + $0x8] sm:$0xff] }
 0xec3   :  { %v3344_v4 = vsel %vm1519_vm4, %v3343_v29, %v3340_v11  ;;  %v1890_v11 = vld [vmem:[%s14204_s4 + $0x78] sm:$0xff]  ;;  %v1889_v29 = vld [vmem:[%s14204_s4 + $0x70] sm:$0xff] }
 0xec4   :  { %11555 = vmatmul.mubr.msk.f32.vlgmr.msra.gmra.mxu0 %vm87_vm0, %v3344_v4  ;;  %v1888_v4 = vld [vmem:[%s14204_s4 + $0x68] sm:$0xff] }
 0xec5   :  { %11569 = vmatpush3.msra.mxu0 %v1894_v43 }
 0xec6   :  { %11570 = vmatprep.subr.mxu0 %v1893_v44 }
 0xec7   :  { %11571 = vmatpush3.msra.mxu0 %v1893_v44 }
 0xec8   :  { %11572 = vmatprep.subr.mxu0 %v1892_v45 }
 0xec9   :  { %11573 = vmatpush3.msra.mxu0 %v1892_v45 }
 0xeca   :  { %11574 = vmatprep.subr.mxu0 %v1891_v49 }
 0xecb   :  { %11575 = vmatpush3.msra.mxu0 %v1891_v49  ;;  %v59_v49 = vand.u32 127, %v48_v6 }
 0xecc   :  { %11576 = vmatprep.subr.mxu0 %v1890_v11 }
 0xecd   :  { %11577 = vmatpush3.msra.mxu0 %v1890_v11  ;;  %vm60_vm6 = vcmp.ge.s32.totalorder %v12456_v7, %v59_v49 }
 0xece   :  { %11578 = vmatprep.subr.mxu0 %v1889_v29 }
 0xecf   :  { %11579 = vmatpush3.msra.mxu0 %v1889_v29 }
 0xed0   :  { %11580 = vmatprep.subr.mxu0 %v1888_v4 }
 0xed1   :  { %11581 = vmatpush3.msra.mxu0 %v1888_v4 }
 0xf84   :  { %v11556_v0 = vpop.f32.mrf.mxu0 }
 0xf85   :  { %v3427_v30 = vadd.f32 %v11556_v0, %v3348_v13  ;;  %v3473_v0 = vrot.slane %v12797_v61, %v12744_v1 }
 0xf86   :  { %v3421_v16 = vpop.f32.mrf.mxu0 }
 0xf87   :  { %v3422_v10 = vadd.f32 %v3421_v16, %v3348_v13  ;;  %v3431_v33 = vadd.f32 %v3427_v30, %v12786_v60  ;;  %v1887_v13 = vld [vmem:[%s14204_s4 + $0x60] sm:$0xff] }
 0xf88   :  { %11582 = vmatprep.subr.mxu0 %v1887_v13 }
 0xf89   :  { %v3435_v17 = vsel %vm87_vm0, %v3431_v33, 0.0  ;;  %v3430_v23 = vadd.f32 %v3422_v10, %v12784_v59  ;;  %v1886_v59 = vld [vmem:[%s14204_s4 + $0x58] sm:$0xff]  ;;  %11583 = vmatpush3.msra.mxu0 %v1887_v13 }
 0xf8a   :  { %3436 = vadd.xlane.f32.xlu1 %v3435_v17  ;;  %11557 = vmatprep.subr.mxu1 %v1886_v59 }
 0xf8b   :  { %v3432_v34 = vsel %vm87_vm0, %v3430_v23, 0.0  ;;  %11558 = vmatpush3.msra.mxu1 %v1886_v59  ;;  %11608 = vmatprep.subr.mxu0 %v12370_v12 }
 0xf8c   :  { %3433 = vadd.xlane.f32.xlu0 %v3432_v34  ;;  %11559 = vmatprep.subr.mxu1 %v1885_v42  ;;  %v13088_v34 = vld [vmem:[%s14205_s5 + $0x100] sm:$0xff] }
 0xf8d   :  { %11560 = vmatpush3.msra.mxu1 %v1885_v42 }
 0xf8e   :  { %11561 = vmatprep.subr.mxu1 %v1884_v37 }
 0xf8f   :  { %11562 = vmatpush3.msra.mxu1 %v1884_v37 }
 0xf90   :  { %11563 = vmatprep.subr.mxu1 %v1883_v15 }
 0xf91   :  { %11564 = vmatpush3.msra.mxu1 %v1883_v15 }
 0xf92   :  { %11587 = vmatprep.subr.mxu1 %v3724_v35 }
0x1013   :  { %v3437_v3 = vpop.xlane.xlu1 %3436 }
0x1014   :  { %v3439_v36 = vmul.f32 0.03125, %v3437_v3 }
0x1015   :  { %v3434_v32 = vpop.xlane.xlu0 %3433 }
0x1016   :  { %v3438_v5 = vmul.f32 0.03125, %v3434_v32  ;;  %v3441_v2 = vsub.f32 %v3431_v33, %v3439_v36  ;;  %v3758_v36 = vrot.slane %v13088_v34, %v12459_v8 }
0x1018   :  { %v3440_v19 = vsub.f32 %v3430_v23, %v3438_v5  ;;  %v3443_v40 = vmul.f32 %v3441_v2, %v3441_v2 }
0x101a   :  { %v3442_v38 = vmul.f32 %v3440_v19, %v3440_v19  ;;  %v3447_v60 = vsel %vm87_vm0, %v3443_v40, 0.0 }
0x101c   :  { %v3444_v39 = vsel %vm87_vm0, %v3442_v38, 0.0 }
0x101d   :  { %3445 = vadd.xlane.f32.xlu0 %v3444_v39 }
0x1021   :  { %3448 = vadd.xlane.f32.xlu0 %v3447_v60 }
0x10a6   :  { %v3446_v51 = vpop.xlane.xlu0 %3445 }
0x10a7   :  { %v3450_v53 = vmul.f32 0.03125, %v3446_v51  ;;  %v12379_v51 = vmov -1e+30  }
0x10a9   :  { %v3452_v54 = vadd.f32 1e-05, %v3450_v53  ;;  %v13190_v53 = vsel %vm60_vm6, 0.0, %v12379_v51 }
0x10aa   :  { %v3449_v55 = vpop.xlane.xlu0 %3448 }
0x10ab   :  { %12173 = vrsqrt.f32 %v3452_v54  ;;  %v3451_v56 = vmul.f32 0.03125, %v3449_v55 }
0x10ad   :  { %v3453_v57 = vadd.f32 1e-05, %v3451_v56 }
0x10af   :  { %12175 = vrsqrt.f32 %v3453_v57 }
0x10b8   :  { %v12174_v9 = vpop.eup %12173 }
0x10b9   :  { %v3456_v62 = vmul.f32 %v12174_v9, %v3440_v19 }
0x10bb   :  { %v3462_v22 = vmul.f32 %v3461_v58, %v3456_v62 }
0x10bc   :  { %v12176_v26 = vpop.eup %12175 }
0x10bd   :  { %v3457_v21 = vmul.f32 %v12176_v26, %v3441_v2  ;;  %v13036_v31 = vadd.f32 %v3467_v63, %v3462_v22 }
0x10bf   :  { %v3463_v20 = vmul.f32 %v3461_v58, %v3457_v21  ;;  %11565 = vmatprep.mubr.msk.f32.mxu1 %vm87_vm0, %v13036_v31 }
0x10c1   :  { %v13040_v27 = vadd.f32 %v3467_v63, %v3463_v20 }
0x10c3   :  { %11566 = vmatmul.mubr.msk.f32.vlgmr.msra.gmra.mxu1 %vm87_vm0, %v13040_v27 }
0x10c4   :  { %11588 = vmatpush3.msra.mxu1 %v3724_v35  ;;  %11595 = vmatprep.mubr.msk.f32.mxu1 %vm87_vm0, %v13045_v28 }
0x10c5   :  { %11589 = vmatprep.subr.mxu1 %v3723_v14 }
0x10c6   :  { %11590 = vmatpush3.msra.mxu1 %v3723_v14 }
0x10c7   :  { %11591 = vmatprep.subr.mxu1 %v3722_v25 }
0x10c8   :  { %11592 = vmatpush3.msra.mxu1 %v3722_v25 }
0x10c9   :  { %11593 = vmatprep.subr.mxu1 %v3721_v47 }
0x10ca   :  { %11594 = vmatpush3.msra.mxu1 %v3721_v47 }
0x10cb   :  { %11596 = vmatmul.mubr.msk.f32.vlgmr.msra.gmra.mxu1 %vm87_vm0, %v13063_v18  ;;  %11598 = vmatprep.subr.mxu1 %v12370_v12 }
0x10cc   :  { %11600 = vmatprep.mubr.msk.f32.mxu1 %vm12373_vm1, %v12370_v12 }
0x1183   :  { %v11567_v30 = vpop.f32.mrf.mxu1 }
0x1184   :  { %v3552_v16 = vadd.f32 %v11567_v30, %v3473_v0 }
0x1185   :  { %v3546_v10 = vpop.f32.mrf.mxu1 }
0x1186   :  { %v3547_v33 = vadd.f32 %v3546_v10, %v3473_v0  ;;  %v3556_v23 = vmax.f32 %v3552_v16, 0.0 }
0x1188   :  { %v3555_v17 = vmax.f32 %v3547_v33, 0.0 }
0x118a   :  { %11584 = vmatprep.mubr.msk.f32.mxu0 %vm1753_vm5, %v3555_v17 }
0x118b   :  { %v11597_v3 = vpop.f32.mrf.mxu1  ;;  %11585 = vmatmul.mubr.msk.f32.vlgmr.msra.gmra.mxu0 %vm1753_vm5, %v3556_v23 }
0x118c   :  { %11610 = vmatprep.mubr.msk.f32.mxu0 %vm12373_vm1, %v12370_v12  ;;  %v13102_v5 = vadd.f32 %v11597_v3, %v3758_v36 }
0x118d   :  { %v3831_v61 = vpop.f32.mrf.mxu1 }
0x118e   :  { %v13096_v32 = vadd.f32 %v3831_v61, %v3758_v36 }
0x1190   :  { %3843 = vrot.lane.b32.xlu0 %v13096_v32, %s12374_s26  ;;  %3841 = vrot.lane.b32.xlu1 %v13096_v32, %s12372_s25 }
0x1194   :  { %3850 = vrot.lane.b32.xlu0 %v13102_v5, %s12374_s26  ;;  %3845 = vrot.lane.b32.xlu1 %v13096_v32, %s12371_s0 }
0x1198   :  { %3854 = vrot.lane.b32.xlu0 %v13096_v32, %s12375_s27  ;;  %3848 = vrot.lane.b32.xlu1 %v13102_v5, %s12372_s25 }
0x119c   :  { %3852 = vrot.lane.b32.xlu1 %v13102_v5, %s12371_s0 }
0x1202   :  { %v13114_v2 = vpop.permute.xlu0 %3843  ;;  %v13116_v19 = vpop.permute.xlu1 %3841 }
0x1203   :  { %4006 = vrot.lane.b32.xlu0 %v13114_v2, %s12375_s27  ;;  %3930 = vrot.lane.b32.xlu1 %v13116_v19, %s12375_s27 }
0x1206   :  { %v13122_v38 = vpop.permute.xlu0 %3850  ;;  %v13124_v39 = vpop.permute.xlu1 %3845 }
0x1207   :  { %4158 = vrot.lane.b32.xlu0 %v13102_v5, %s12375_s27  ;;  %4082 = vrot.lane.b32.xlu1 %v13124_v39, %s12375_s27 }
0x120a   :  { %v3855_v40 = vpop.permute.xlu0 %3854  ;;  %v13130_v60 = vpop.permute.xlu1 %3848 }
0x120b   :  { %4310 = vrot.lane.b32.xlu0 %v13122_v38, %s12375_s27  ;;  %11599 = vmatpush3.xpose.msk.msra.mxu1 %vm185_vm2, %v3855_v40 }
0x120c   :  { %4234 = vrot.lane.b32.xlu1 %v13130_v60, %s12375_s27  ;;  %11603 = vmatprep.subr.mxu1 %v12370_v12 }
0x120e   :  { %11601 = vmatmul.mubr.msk.f32.vlgmr.msra.gmra.mxu1 %vm185_vm2, %v13096_v32  ;;  %v13140_v59 = vpop.permute.xlu1 %3852 }
0x120f   :  { %11605 = vmatprep.mubr.msk.f32.mxu1 %vm12373_vm1, %v12370_v12 }
0x1210   :  { %4386 = vrot.lane.b32.xlu1 %v13140_v59, %s12375_s27 }
0x124b   :  { %v13194_v9 = vpop.f32.mrf.mxu0 }
0x124d   :  { %v13196_v62 = vpop.f32.mrf.mxu0 }
0x1275   :  { %v4007_v42 = vpop.permute.xlu0 %4006  ;;  %v3931_v37 = vpop.permute.xlu1 %3930 }
0x1276   :  { %11604 = vmatpush3.xpose.msk.msra.mxu1 %vm185_vm2, %v3931_v37  ;;  %11609 = vmatpush3.xpose.msk.msra.mxu0 %vm185_vm2, %v4007_v42 }
0x1277   :  { %11613 = vmatprep.subr.mxu1 %v12370_v12  ;;  %11618 = vmatprep.subr.mxu0 %v12370_v12 }
0x1279   :  { %v4159_v15 = vpop.permute.xlu0 %4158  ;;  %11606 = vmatmul.mubr.msk.f32.vlgmr.msra.gmra.mxu1 %vm185_vm2, %v13116_v19  ;;  %v4083_v35 = vpop.permute.xlu1 %4082  ;;  %11611 = vmatmul.mubr.msk.f32.vlgmr.msra.gmra.mxu0 %vm185_vm2, %v13114_v2 }
0x127a   :  { %11614 = vmatpush3.xpose.msk.msra.mxu1 %vm185_vm2, %v4083_v35  ;;  %11619 = vmatpush3.xpose.msk.msra.mxu0 %vm185_vm2, %v4159_v15 }
0x127b   :  { %11615 = vmatprep.mubr.msk.f32.mxu1 %vm12373_vm1, %v12370_v12  ;;  %11620 = vmatprep.mubr.msk.f32.mxu0 %vm12373_vm1, %v12370_v12 }
0x127c   :  { %11623 = vmatprep.subr.mxu1 %v12370_v12  ;;  %11628 = vmatprep.subr.mxu0 %v12370_v12 }
0x127d   :  { %v4311_v43 = vpop.permute.xlu0 %4310  ;;  %11616 = vmatmul.mubr.msk.f32.vlgmr.msra.gmra.mxu1 %vm185_vm2, %v13124_v39  ;;  %11621 = vmatmul.mubr.msk.f32.vlgmr.msra.gmra.mxu0 %vm185_vm2, %v13102_v5 }
0x127e   :  { %v4235_v44 = vpop.permute.xlu1 %4234  ;;  %11629 = vmatpush3.xpose.msk.msra.mxu0 %vm185_vm2, %v4311_v43  ;;  %11625 = vmatprep.mubr.msk.f32.mxu1 %vm12373_vm1, %v12370_v12 }
0x127f   :  { %11624 = vmatpush3.xpose.msk.msra.mxu1 %vm185_vm2, %v4235_v44  ;;  %11630 = vmatprep.mubr.msk.f32.mxu0 %vm12373_vm1, %v12370_v12 }
0x1280   :  { %11633 = vmatprep.subr.mxu1 %v12370_v12  ;;  %11638 = vmatprep.subr.mxu0 %v12370_v12 }
0x1281   :  { %11631 = vmatmul.mubr.msk.f32.vlgmr.msra.gmra.mxu0 %vm185_vm2, %v13122_v38 }
0x1282   :  { %11626 = vmatmul.mubr.msk.f32.vlgmr.msra.gmra.mxu1 %vm185_vm2, %v13130_v60  ;;  %v4387_v45 = vpop.permute.xlu1 %4386  ;;  %11640 = vmatprep.mubr.msk.f32.mxu0 %vm12373_vm1, %v12370_v12 }
0x1283   :  { %11634 = vmatpush3.xpose.msk.msra.mxu1 %vm185_vm2, %v4387_v45  ;;  %11635 = vmatprep.mubr.msk.f32.mxu1 %vm12373_vm1, %v12370_v12 }
0x1284   :  { %11643 = vmatprep.subr.mxu1 %v12370_v12 }
0x1286   :  { %11636 = vmatmul.mubr.msk.f32.vlgmr.msra.gmra.mxu1 %vm185_vm2, %v13140_v59 }
0x1287   :  { %11645 = vmatprep.mubr.msk.f32.mxu1 %vm12373_vm1, %v12370_v12 }
0x12ce   :  { %v3926_v54 = vpop.f32.mrf.mxu1 }
0x12cf   :  { %v4462_v55 = vmul.f32 0.35355338, %v3926_v54 }
0x12d0   :  { %v11602_v56 = vpop.f32.mrf.mxu1 }
0x12d1   :  { %v4470_v57 = vadd.f32 %v4462_v55, %v13190_v53 }
0x12d3   :  { %v4478_v58 = vsel %vm185_vm2, %v4470_v57, -inf }
0x12d4   :  { %4479 = vmax.xlane.f32.xlu0 %v4478_v58 }
0x1339   :  { %v4002_v63 = vpop.f32.mrf.mxu1  ;;  %v4078_v22 = vpop.f32.mrf.mxu0 }
0x133a   :  { %v4463_v6 = vmul.f32 0.35355338, %v4002_v63  ;;  %v4464_v26 = vmul.f32 0.35355338, %v4078_v22 }
0x133b   :  { %v11607_v7 = vpop.f32.mrf.mxu1  ;;  %v11612_v21 = vpop.f32.mrf.mxu0 }
0x133c   :  { %v4471_v20 = vadd.f32 %v4463_v6, %v13190_v53  ;;  %v4472_v14 = vadd.f32 %v4464_v26, %v13190_v53 }
0x133d   :  { %v4154_v25 = vpop.f32.mrf.mxu1  ;;  %v4230_v47 = vpop.f32.mrf.mxu0 }
0x133e   :  { %v4465_v11 = vmul.f32 0.35355338, %v4154_v25  ;;  %v4466_v29 = vmul.f32 0.35355338, %v4230_v47  ;;  %v4481_v4 = vsel %vm185_vm2, %v4471_v20, -inf  ;;  %v4484_v13 = vsel %vm185_vm2, %v4472_v14, -inf }
0x133f   :  { %4482 = vmax.xlane.f32.xlu1 %v4481_v4  ;;  %v11617_v0 = vpop.f32.mrf.mxu1  ;;  %4485 = vmax.xlane.f32.xlu0 %v4484_v13  ;;  %v11622_v30 = vpop.f32.mrf.mxu0 }
0x1340   :  { %v4473_v16 = vadd.f32 %v4465_v11, %v13190_v53  ;;  %v4474_v10 = vadd.f32 %v4466_v29, %v13190_v53 }
0x1341   :  { %v4382_v33 = vpop.f32.mrf.mxu0 }
0x1342   :  { %v4306_v17 = vpop.f32.mrf.mxu1  ;;  %v4468_v23 = vmul.f32 0.35355338, %v4382_v33  ;;  %v4487_v3 = vsel %vm185_vm2, %v4473_v16, -inf  ;;  %v4490_v36 = vsel %vm185_vm2, %v4474_v10, -inf }
0x1343   :  { %v4467_v61 = vmul.f32 0.35355338, %v4306_v17  ;;  %4488 = vmax.xlane.f32.xlu0 %v4487_v3  ;;  %4491 = vmax.xlane.f32.xlu1 %v4490_v36  ;;  %v11632_v40 = vpop.f32.mrf.mxu0 }
0x1344   :  { %v4476_v42 = vadd.f32 %v4468_v23, %v13190_v53  ;;  %v11627_v37 = vpop.f32.mrf.mxu1 }
0x1345   :  { %v4475_v15 = vadd.f32 %v4467_v61, %v13190_v53 }
0x1346   :  { %v4458_v35 = vpop.f32.mrf.mxu1  ;;  %v4496_v43 = vsel %vm185_vm2, %v4476_v42, -inf }
0x1347   :  { %v4469_v44 = vmul.f32 0.35355338, %v4458_v35  ;;  %v4493_v45 = vsel %vm185_vm2, %v4475_v15, -inf  ;;  %4497 = vmax.xlane.f32.xlu1 %v4496_v43 }
0x1348   :  { %v11637_v49 = vpop.f32.mrf.mxu1  ;;  %4494 = vmax.xlane.f32.xlu0 %v4493_v45 }
0x1349   :  { %v4477_v51 = vadd.f32 %v4469_v44, %v13190_v53 }
0x134b   :  { %v4499_v54 = vsel %vm185_vm2, %v4477_v51, -inf }
0x134c   :  { %4500 = vmax.xlane.f32.xlu0 %v4499_v54 }
0x1358   :  { %4566 = vrot.lane.b32.xlu1 %v13096_v32, %s12376_s2 }
0x135c   :  { %4718 = vrot.lane.b32.xlu1 %v13114_v2, %s12376_s2 }
0x135d   :  { %v4480_v55 = vpop.xlane.xlu0 %4479 }
0x135e   :  { %v4502_v56 = vsub.f32 %v4470_v57, %v4480_v55 }
0x1360   :  { %4794 = vrot.lane.b32.xlu1 %v13124_v39, %s12376_s2  ;;  %v4510_v58 = vmul.f32 1.442695, %v4502_v56 }
0x1362   :  { %4642 = vrot.lane.b32.xlu0 %v13116_v19, %s12376_s2  ;;  %12177 = vpow2.f32 %v4510_v58 }
0x1364   :  { %4946 = vrot.lane.b32.xlu1 %v13130_v60, %s12376_s2 }
0x1366   :  { %4870 = vrot.lane.b32.xlu0 %v13102_v5, %s12376_s2 }
0x136f   :  { %v13224_v32 = vpop.eup %12177 }
0x1370   :  { %v4526_v2 = vsel %vm185_vm2, %v13224_v32, 0.0 }
0x1388   :  { %4527 = vadd.xlane.f32.xlu1 %v4526_v2 }
0x13c8   :  { %v4483_v39 = vpop.xlane.xlu1 %4482  ;;  %v4486_v63 = vpop.xlane.xlu0 %4485 }
0x13c9   :  { %v4503_v22 = vsub.f32 %v4471_v20, %v4483_v39  ;;  %v4504_v19 = vsub.f32 %v4472_v14, %v4486_v63 }
0x13cb   :  { %v4512_v6 = vmul.f32 1.442695, %v4503_v22  ;;  %v4514_v26 = vmul.f32 1.442695, %v4504_v19 }
0x13cc   :  { %v4489_v60 = vpop.xlane.xlu0 %4488  ;;  %v4492_v7 = vpop.xlane.xlu1 %4491 }
0x13cd   :  { %12179 = vpow2.f32 %v4512_v6  ;;  %v4505_v5 = vsub.f32 %v4473_v16, %v4489_v60  ;;  %v4506_v21 = vsub.f32 %v4474_v10, %v4492_v7 }
0x13ce   :  { %12181 = vpow2.f32 %v4514_v26 }
0x13cf   :  { %v4516_v57 = vmul.f32 1.442695, %v4505_v5  ;;  %v4518_v25 = vmul.f32 1.442695, %v4506_v21 }
0x13d0   :  { %v4498_v47 = vpop.xlane.xlu1 %4497 }
0x13d1   :  { %12183 = vpow2.f32 %v4516_v57  ;;  %v4495_v11 = vpop.xlane.xlu0 %4494  ;;  %v4508_v29 = vsub.f32 %v4476_v42, %v4498_v47 }
0x13d2   :  { %12185 = vpow2.f32 %v4518_v25  ;;  %v4507_v4 = vsub.f32 %v4475_v15, %v4495_v11 }
0x13d3   :  { %v4522_v13 = vmul.f32 1.442695, %v4508_v29 }
0x13d4   :  { %v4520_v0 = vmul.f32 1.442695, %v4507_v4  ;;  %v4567_v20 = vpop.permute.xlu1 %4566 }
0x13d5   :  { %12187 = vpow2.f32 %v4522_v13  ;;  %v4501_v14 = vpop.xlane.xlu0 %4500  ;;  %11639 = vmatpush3.msra.mxu0 %v4567_v20 }
0x13d6   :  { %12189 = vpow2.f32 %v4520_v0  ;;  %v4509_v30 = vsub.f32 %v4477_v51, %v4501_v14  ;;  %11648 = vmatprep.subr.mxu0 %v12370_v12 }
0x13d8   :  { %v4524_v16 = vmul.f32 1.442695, %v4509_v30  ;;  %v4719_v49 = vpop.permute.xlu1 %4718 }
0x13d9   :  { %v4643_v10 = vpop.permute.xlu0 %4642 }
0x13da   :  { %v12180_v33 = vpop.eup %12179  ;;  %12191 = vpow2.f32 %v4524_v16  ;;  %11644 = vmatpush3.msra.mxu1 %v4643_v10  ;;  %v3728_v10 = vld [vmem:[%s14205_s5 + $0x38] sm:$0xff] }
0x13db   :  { %v12182_v17 = vpop.eup %12181  ;;  %v4529_v23 = vsel %vm185_vm2, %v12180_v33, 0.0  ;;  %11653 = vmatprep.subr.mxu1 %v12370_v12 }
0x13dc   :  { %4530 = vadd.xlane.f32.xlu0 %v4529_v23  ;;  %v4532_v3 = vsel %vm185_vm2, %v12182_v17, 0.0  ;;  %v4795_v51 = vpop.permute.xlu1 %4794 }
0x13dd   :  { %4533 = vadd.xlane.f32.xlu1 %v4532_v3 }
0x13de   :  { %v12184_v36 = vpop.eup %12183 }
0x13df   :  { %v12186_v61 = vpop.eup %12185  ;;  %v4535_v40 = vsel %vm185_vm2, %v12184_v36, 0.0 }
0x13e0   :  { %4536 = vadd.xlane.f32.xlu0 %v4535_v40  ;;  %v4538_v42 = vsel %vm185_vm2, %v12186_v61, 0.0  ;;  %v4947_v54 = vpop.permute.xlu1 %4946 }
0x13e1   :  { %4539 = vadd.xlane.f32.xlu1 %v4538_v42 }
0x13e2   :  { %v13234_v37 = vpop.eup %12187 }
0x13e3   :  { %v12190_v15 = vpop.eup %12189  ;;  %v4544_v35 = vsel %vm185_vm2, %v13234_v37, 0.0 }
0x13e4   :  { %v4541_v43 = vsel %vm185_vm2, %v12190_v15, 0.0 }
0x13e5   :  { %4542 = vadd.xlane.f32.xlu0 %v4541_v43  ;;  %4545 = vadd.xlane.f32.xlu1 %v4544_v35 }
0x13e7   :  { %v13239_v44 = vpop.eup %12191 }
0x13e8   :  { %v4547_v45 = vsel %vm185_vm2, %v13239_v44, 0.0 }
0x13e9   :  { %4548 = vadd.xlane.f32.xlu0 %v4547_v45 }
0x13f6   :  { %5098 = vrot.lane.b32.xlu1 %v13140_v59, %s12376_s2  ;;  %v4871_v59 = vpop.permute.xlu0 %4870 }
0x13ff   :  { %5022 = vrot.lane.b32.xlu0 %v13122_v38, %s12376_s2 }
0x1411   :  { %v4528_v55 = vpop.xlane.xlu1 %4527 }
0x1412   :  { %12193 = vrcp.f32 %v4528_v55  ;;  %v12341_v55 = vld [vmem:[%s14204_s4 + $0xa0] sm:$0xff] }
0x141f   :  { %v12194_v56 = vpop.eup %12193 }
0x1420   :  { %v4551_v58 = vmul.f32 %v12194_v56, %v13224_v32  ;;  %v3560_v56 = vrot.slane %v12341_v55, %v12753_v24 }
0x1422   :  { %11641 = vmatmul.mubr.msk.f32.vlgmr.msra.gmra.mxu0 %vm185_vm2, %v4551_v58  ;;  %v3634_v58 = vadd.f32 %v13196_v62, %v3560_v56 }
0x1423   :  { %11649 = vmatpush3.msra.mxu0 %v4719_v49  ;;  %11650 = vmatprep.mubr.msk.f32.mxu0 %vm12373_vm1, %v12370_v12 }
0x1424   :  { %11658 = vmatprep.subr.mxu0 %v12370_v12 }
0x1465   :  { %v4531_v2 = vpop.xlane.xlu0 %4530 }
0x1466   :  { %12195 = vrcp.f32 %v4531_v2  ;;  %v4534_v38 = vpop.xlane.xlu1 %4533  ;;  %v3639_v2 = vadd.f32 %v13194_v9, %v3560_v56 }
0x1467   :  { %12197 = vrcp.f32 %v4534_v38 }
0x1469   :  { %v4537_v39 = vpop.xlane.xlu0 %4536 }
0x146a   :  { %12199 = vrcp.f32 %v4537_v39  ;;  %v4540_v63 = vpop.xlane.xlu1 %4539  ;;  %v3643_v39 = vadd.f32 %v3639_v2, %v13040_v27 }
0x146b   :  { %12201 = vrcp.f32 %v4540_v63 }
0x146c   :  { %v3647_v63 = vsel %vm87_vm0, %v3643_v39, 0.0 }
0x146e   :  { %v4543_v22 = vpop.xlane.xlu0 %4542  ;;  %v4546_v19 = vpop.xlane.xlu1 %4545 }
0x146f   :  { %12203 = vrcp.f32 %v4543_v22 }
0x1470   :  { %12205 = vrcp.f32 %v4546_v19 }
0x1472   :  { %v4549_v32 = vpop.xlane.xlu0 %4548  ;;  %v5099_v0 = vpop.permute.xlu1 %5098 }
0x1473   :  { %v12196_v6 = vpop.eup %12195  ;;  %12207 = vrcp.f32 %v4549_v32 }
0x1474   :  { %v12198_v26 = vpop.eup %12197  ;;  %v4553_v60 = vmul.f32 %v12196_v6, %v12180_v33  ;;  %v3727_v33 = vld [vmem:[%s14205_s5 + $0x30] sm:$0xff] }
0x1475   :  { %v4555_v7 = vmul.f32 %v12198_v26, %v12182_v17  ;;  %v3726_v17 = vld [vmem:[%s14205_s5 + $0x28] sm:$0xff] }
0x1476   :  { %11646 = vmatmul.mubr.msk.f32.vlgmr.msra.gmra.mxu1 %vm185_vm2, %v4553_v60  ;;  %v5023_v47 = vpop.permute.xlu0 %5022 }
0x1477   :  { %v12200_v5 = vpop.eup %12199  ;;  %11651 = vmatmul.mubr.msk.f32.vlgmr.msra.gmra.mxu0 %vm185_vm2, %v4555_v7  ;;  %11654 = vmatpush3.msra.mxu1 %v4795_v51 }
0x1478   :  { %v12202_v21 = vpop.eup %12201  ;;  %11659 = vmatpush3.msra.mxu0 %v4871_v59  ;;  %11655 = vmatprep.mubr.msk.f32.mxu1 %vm12373_vm1, %v12370_v12  ;;  %v4557_v57 = vmul.f32 %v12200_v5, %v12184_v36  ;;  %v3725_v36 = vld [vmem:[%s14205_s5 + $0x20] sm:$0xff]  ;;  %v3642_v59 = vadd.f32 %v3634_v58, %v13036_v31 }
0x1479   :  { %11660 = vmatprep.mubr.msk.f32.mxu0 %vm12373_vm1, %v12370_v12  ;;  %11663 = vmatprep.subr.mxu1 %v12370_v12  ;;  %v4559_v25 = vmul.f32 %v12202_v21, %v12186_v61 }
0x147a   :  { %11668 = vmatprep.subr.mxu0 %v12370_v12  ;;  %11656 = vmatmul.mubr.msk.f32.vlgmr.msra.gmra.mxu1 %vm185_vm2, %v4557_v57  ;;  %v3644_v38 = vsel %vm87_vm0, %v3642_v59, 0.0 }
0x147b   :  { %11661 = vmatmul.mubr.msk.f32.vlgmr.msra.gmra.mxu0 %vm185_vm2, %v4559_v25  ;;  %11664 = vmatpush3.msra.mxu1 %v4947_v54 }
0x147c   :  { %v12204_v11 = vpop.eup %12203  ;;  %11669 = vmatpush3.msra.mxu0 %v5023_v47  ;;  %11665 = vmatprep.mubr.msk.f32.mxu1 %vm12373_vm1, %v12370_v12 }
0x147d   :  { %v12206_v29 = vpop.eup %12205  ;;  %11670 = vmatprep.mubr.msk.f32.mxu0 %vm12373_vm1, %v12370_v12  ;;  %11673 = vmatprep.subr.mxu1 %v12370_v12  ;;  %v4561_v4 = vmul.f32 %v12204_v11, %v12190_v15 }
0x147e   :  { %v4563_v13 = vmul.f32 %v12206_v29, %v13234_v37  ;;  %11678 = vmatprep.subr.mxu0 %v3728_v10 }
0x147f   :  { %11666 = vmatmul.mubr.msk.f32.vlgmr.msra.gmra.mxu1 %vm185_vm2, %v4561_v4 }
0x1480   :  { %v12208_v20 = vpop.eup %12207  ;;  %11671 = vmatmul.mubr.msk.f32.vlgmr.msra.gmra.mxu0 %vm185_vm2, %v4563_v13  ;;  %11674 = vmatpush3.msra.mxu1 %v5099_v0 }
0x1481   :  { %11675 = vmatprep.mubr.msk.f32.mxu1 %vm12373_vm1, %v12370_v12  ;;  %v4565_v14 = vmul.f32 %v12208_v20, %v13239_v44  ;;  %11679 = vmatpush3.msra.mxu0 %v3728_v10 }
0x1482   :  { %11680 = vmatprep.subr.mxu0 %v3727_v33 }
0x1483   :  { %11676 = vmatmul.mubr.msk.f32.vlgmr.msra.gmra.mxu1 %vm185_vm2, %v4565_v14  ;;  %11681 = vmatpush3.msra.mxu0 %v3727_v33 }
0x1484   :  { %11682 = vmatprep.subr.mxu0 %v3726_v17 }
0x1485   :  { %11683 = vmatpush3.msra.mxu0 %v3726_v17 }
0x1486   :  { %11684 = vmatprep.subr.mxu0 %v3725_v36 }
0x1487   :  { %11685 = vmatpush3.msra.mxu0 %v3725_v36 }
0x14e2   :  { %v4638_v30 = vpop.f32.mrf.mxu0 }
0x14e4   :  { %v11642_v16 = vpop.f32.mrf.mxu0 }
0x1536   :  { %v4714_v23 = vpop.f32.mrf.mxu1 }
0x1537   :  { %v4790_v3 = vpop.f32.mrf.mxu0  ;;  %5175 = vrot.lane.b32.xlu0 %v4714_v23, %s12369_s9 }
0x1538   :  { %5179 = vrot.lane.b32.xlu1 %v4790_v3, %s12377_s17  ;;  %v11647_v61 = vpop.f32.mrf.mxu1  ;;  %v3673_v3 = vrot.slane %v12341_v55, %v12775_v48 }
0x1539   :  { %v11652_v40 = vpop.f32.mrf.mxu0 }
0x153a   :  { %v4866_v42 = vpop.f32.mrf.mxu1  ;;  %v5207_v40 = vrot.slane %v13088_v34, %v12579_v41 }
0x153b   :  { %v4942_v37 = vpop.f32.mrf.mxu0 }
0x153c   :  { %5183 = vrot.lane.b32.xlu1 %v4866_v42, %s12378_s18  ;;  %v11657_v15 = vpop.f32.mrf.mxu1 }
0x153d   :  { %v11662_v35 = vpop.f32.mrf.mxu0 }
0x153f   :  { %v5018_v43 = vpop.f32.mrf.mxu1 }
0x1540   :  { %v5094_v44 = vpop.f32.mrf.mxu0  ;;  %5190 = vrot.lane.b32.xlu0 %v5018_v43, %s12369_s9 }
0x1541   :  { %v11667_v45 = vpop.f32.mrf.mxu1 }
0x1542   :  { %v11672_v49 = vpop.f32.mrf.mxu0 }
0x1543   :  { %v5170_v51 = vpop.f32.mrf.mxu1 }
0x1544   :  { %5198 = vrot.lane.b32.xlu1 %v5170_v51, %s12378_s18  ;;  %5194 = vrot.lane.b32.xlu0 %v5094_v44, %s12377_s17 }
0x1545   :  { %v11677_v54 = vpop.f32.mrf.mxu1 }
0x1563   :  { %3645 = vadd.xlane.f32.xlu0 %v3644_v38 }
0x1568   :  { %3648 = vadd.xlane.f32.xlu1 %v3647_v63 }
0x15a9   :  { %v5176_v22 = vpop.permute.xlu0 %5175 }
0x15aa   :  { %v5180_v19 = vpop.permute.xlu1 %5179  ;;  %v5186_v32 = vsel %vm185_vm2, %v4638_v30, %v5176_v22 }
0x15ab   :  { %v5187_v6 = vsel %vm1517_vm3, %v5186_v32, %v5180_v19 }
0x15ae   :  { %v5184_v26 = vpop.permute.xlu1 %5183 }
0x15af   :  { %v5188_v62 = vsel %vm1519_vm4, %v5187_v6, %v5184_v26 }
0x15b0   :  { %11686 = vmatprep.mubr.msk.f32.mxu0 %vm87_vm0, %v5188_v62 }
0x15b2   :  { %v5191_v31 = vpop.permute.xlu0 %5190 }
0x15b3   :  { %v5201_v9 = vsel %vm185_vm2, %v4942_v37, %v5191_v31  ;;  %v3679_v37 = vrot.slane %v12341_v55, %v12780_v52 }
0x15b6   :  { %v5199_v60 = vpop.permute.xlu1 %5198  ;;  %v5195_v27 = vpop.permute.xlu0 %5194 }
0x15b7   :  { %v5202_v7 = vsel %vm1517_vm3, %v5201_v9, %v5195_v27 }
0x15b8   :  { %v5203_v5 = vsel %vm1519_vm4, %v5202_v7, %v5199_v60 }
0x15b9   :  { %11687 = vmatmul.mubr.msk.f32.vlgmr.msra.gmra.mxu0 %vm87_vm0, %v5203_v5 }
0x15ec   :  { %v3646_v21 = vpop.xlane.xlu0 %3645 }
0x15ed   :  { %v3650_v57 = vmul.f32 0.03125, %v3646_v21 }
0x15ef   :  { %v3652_v25 = vsub.f32 %v3642_v59, %v3650_v57 }
0x15f1   :  { %v3649_v47 = vpop.xlane.xlu1 %3648  ;;  %v3654_v11 = vmul.f32 %v3652_v25, %v3652_v25 }
0x15f2   :  { %v3651_v29 = vmul.f32 0.03125, %v3649_v47 }
0x15f3   :  { %v3656_v4 = vsel %vm87_vm0, %v3654_v11, 0.0  ;;  %v3736_v11 = vld [vmem:[%s14205_s5 + $0x78] sm:$0xff] }
0x15f4   :  { %v3653_v13 = vsub.f32 %v3643_v39, %v3651_v29  ;;  %3657 = vadd.xlane.f32.xlu0 %v3656_v4  ;;  %v3735_v29 = vld [vmem:[%s14205_s5 + $0x70] sm:$0xff]  ;;  %11700 = vmatprep.subr.mxu0 %v3736_v11  ;;  %v3732_v4 = vld [vmem:[%s14205_s5 + $0x58] sm:$0xff] }
0x15f5   :  { %11701 = vmatpush3.msra.mxu0 %v3736_v11  ;;  %11689 = vmatprep.subr.mxu1 %v3732_v4 }
0x15f6   :  { %v3655_v0 = vmul.f32 %v3653_v13, %v3653_v13  ;;  %11702 = vmatprep.subr.mxu0 %v3735_v29  ;;  %11690 = vmatpush3.msra.mxu1 %v3732_v4 }
0x15f7   :  { %11703 = vmatpush3.msra.mxu0 %v3735_v29 }
0x15f8   :  { %v3659_v20 = vsel %vm87_vm0, %v3655_v0, 0.0  ;;  %v3731_v0 = vld [vmem:[%s14205_s5 + $0x50] sm:$0xff] }
0x15f9   :  { %3660 = vadd.xlane.f32.xlu0 %v3659_v20  ;;  %v3733_v20 = vld [vmem:[%s14205_s5 + $0x60] sm:$0xff]  ;;  %11691 = vmatprep.subr.mxu1 %v3731_v0 }
0x15fa   :  { %11692 = vmatpush3.msra.mxu1 %v3731_v0 }
0x1679   :  { %v11688_v23 = vpop.f32.mrf.mxu0 }
0x167a   :  { %v5286_v54 = vadd.f32 %v11688_v23, %v5207_v40 }
0x167b   :  { %v5280_v61 = vpop.f32.mrf.mxu0 }
0x167c   :  { %v5281_v15 = vadd.f32 %v5280_v61, %v5207_v40  ;;  %v5290_v2 = vadd.f32 %v5286_v54, %v13063_v18 }
0x167d   :  { %v3658_v14 = vpop.xlane.xlu0 %3657 }
0x167e   :  { %v3662_v30 = vmul.f32 0.03125, %v3658_v14  ;;  %v5289_v49 = vadd.f32 %v5281_v15, %v13045_v28  ;;  %v5294_v38 = vsel %vm87_vm0, %v5290_v2, 0.0  ;;  %v3730_v14 = vld [vmem:[%s14205_s5 + $0x48] sm:$0xff] }
0x167f   :  { %11693 = vmatprep.subr.mxu1 %v3730_v14 }
0x1680   :  { %v3664_v16 = vadd.f32 1e-05, %v3662_v30  ;;  %v5291_v59 = vsel %vm87_vm0, %v5289_v49, 0.0  ;;  %11694 = vmatpush3.msra.mxu1 %v3730_v14  ;;  %v3729_v30 = vld [vmem:[%s14205_s5 + $0x40] sm:$0xff] }
0x1681   :  { %11695 = vmatprep.subr.mxu1 %v3729_v30 }
0x1682   :  { %12209 = vrsqrt.f32 %v3664_v16  ;;  %v3661_v10 = vpop.xlane.xlu0 %3660  ;;  %11696 = vmatpush3.msra.mxu1 %v3729_v30 }
0x1683   :  { %v3663_v33 = vmul.f32 0.03125, %v3661_v10  ;;  %11711 = vmatprep.subr.mxu1 %v12370_v12 }
0x1685   :  { %v3665_v17 = vadd.f32 1e-05, %v3663_v33 }
0x1687   :  { %12211 = vrsqrt.f32 %v3665_v17 }
0x168f   :  { %v12210_v36 = vpop.eup %12209 }
0x1690   :  { %v3668_v42 = vmul.f32 %v12210_v36, %v3652_v25 }
0x1692   :  { %v3674_v35 = vmul.f32 %v3673_v3, %v3668_v42 }
0x1694   :  { %v12212_v43 = vpop.eup %12211  ;;  %v3680_v44 = vadd.f32 %v3679_v37, %v3674_v35  ;;  %v3682_v35 = vld [vmem:[#allocation2 + $0x20] sm:$0xff] }
0x1695   :  { %v3669_v45 = vmul.f32 %v12212_v43, %v3653_v13  ;;  %v3734_v13 = vld [vmem:[%s14205_s5 + $0x68] sm:$0xff]  ;;  %v3712_v43 = vrot.slane %v3682_v35, %v12459_v8 }
0x1696   :  { %v3683_v51 = vsel %vm87_vm0, %v3680_v44, 0.0  ;;  %11704 = vmatprep.subr.mxu0 %v3734_v13 }
0x1697   :  { %3684 = vadd.xlane.f32.xlu1 %v3683_v51  ;;  %v3675_v56 = vmul.f32 %v3673_v3, %v3669_v45  ;;  %11705 = vmatpush3.msra.mxu0 %v3734_v13  ;;  %v13374_v51 = vld [vmem:[%s14205_s5 + $0x108] sm:$0xff] }
0x1698   :  { %11706 = vmatprep.subr.mxu0 %v3733_v20 }
0x1699   :  { %v3681_v58 = vadd.f32 %v3679_v37, %v3675_v56  ;;  %11707 = vmatpush3.msra.mxu0 %v3733_v20  ;;  %v5320_v56 = vrot.slane %v13088_v34, %v12780_v52 }
0x169a   :  { %11721 = vmatprep.subr.mxu0 %v12370_v12 }
0x169b   :  { %5292 = vadd.xlane.f32.xlu1 %v5291_v59  ;;  %v3686_v55 = vsel %vm87_vm0, %v3681_v58, 0.0 }
0x169c   :  { %3687 = vadd.xlane.f32.xlu0 %v3686_v55 }
0x16a0   :  { %5295 = vadd.xlane.f32.xlu0 %v5294_v38  ;;  %v5326_v38 = vrot.slane %v13374_v51, %v12459_v8 }
0x1720   :  { %v3685_v39 = vpop.xlane.xlu1 %3684 }
0x1721   :  { %v3689_v63 = vmul.f32 0.03125, %v3685_v39 }
0x1723   :  { %v13322_v28 = vsub.f32 %v3680_v44, %v3689_v63 }
0x1724   :  { %v5293_v22 = vpop.xlane.xlu1 %5292 }
0x1725   :  { %v5297_v19 = vmul.f32 0.03125, %v5293_v22  ;;  %v3688_v32 = vpop.xlane.xlu0 %3687  ;;  %v3693_v6 = vmul.f32 %v13322_v28, %v13322_v28 }
0x1726   :  { %v3690_v26 = vmul.f32 0.03125, %v3688_v32 }
0x1727   :  { %v13326_v62 = vsub.f32 %v5289_v49, %v5297_v19  ;;  %v3695_v18 = vsel %vm87_vm0, %v3693_v6, 0.0  ;;  %v3718_v49 = vrot.slane %v3682_v35, %v12579_v41 }
0x1728   :  { %v13329_v31 = vsub.f32 %v3681_v58, %v3690_v26  ;;  %3696 = vadd.xlane.f32.xlu1 %v3695_v18  ;;  %v5417_v18 = vrot.slane %v13088_v34, %v12753_v24 }
0x1729   :  { %v5296_v9 = vpop.xlane.xlu0 %5295  ;;  %v5301_v60 = vmul.f32 %v13326_v62, %v13326_v62 }
0x172a   :  { %v5298_v27 = vmul.f32 0.03125, %v5296_v9  ;;  %v3694_v7 = vmul.f32 %v13329_v31, %v13329_v31 }
0x172b   :  { %v5303_v5 = vsel %vm87_vm0, %v5301_v60, 0.0 }
0x172c   :  { %v13336_v21 = vsub.f32 %v5290_v2, %v5298_v27  ;;  %5304 = vadd.xlane.f32.xlu1 %v5303_v5  ;;  %v3698_v57 = vsel %vm87_vm0, %v3694_v7, 0.0  ;;  %v5332_v5 = vrot.slane %v13088_v34, %v12744_v1 }
0x172d   :  { %3699 = vadd.xlane.f32.xlu0 %v3698_v57 }
0x172e   :  { %v5302_v25 = vmul.f32 %v13336_v21, %v13336_v21 }
0x1730   :  { %v5306_v47 = vsel %vm87_vm0, %v5302_v25, 0.0 }
0x1731   :  { %5307 = vadd.xlane.f32.xlu0 %v5306_v47 }
0x17b1   :  { %v3697_v16 = vpop.xlane.xlu1 %3696 }
0x17b2   :  { %v3701_v10 = vmul.f32 0.03125, %v3697_v16 }
0x17b4   :  { %v3703_v33 = vadd.f32 1e-05, %v3701_v10 }
0x17b5   :  { %v5305_v17 = vpop.xlane.xlu1 %5304 }
0x17b6   :  { %12213 = vrsqrt.f32 %v3703_v33  ;;  %v5309_v23 = vmul.f32 0.03125, %v5305_v17  ;;  %v3700_v3 = vpop.xlane.xlu0 %3699 }
0x17b7   :  { %v3702_v36 = vmul.f32 0.03125, %v3700_v3 }
0x17b8   :  { %v5311_v61 = vadd.f32 1e-05, %v5309_v23 }
0x17b9   :  { %v3704_v40 = vadd.f32 1e-05, %v3702_v36 }
0x17ba   :  { %12215 = vrsqrt.f32 %v5311_v61  ;;  %v5308_v42 = vpop.xlane.xlu0 %5307 }
0x17bb   :  { %12217 = vrsqrt.f32 %v3704_v40  ;;  %v5310_v37 = vmul.f32 0.03125, %v5308_v42 }
0x17bd   :  { %v5312_v15 = vadd.f32 1e-05, %v5310_v37 }
0x17bf   :  { %12219 = vrsqrt.f32 %v5312_v15 }
0x17c3   :  { %v12214_v44 = vpop.eup %12213 }
0x17c4   :  { %v3707_v45 = vmul.f32 %v12214_v44, %v13322_v28 }
0x17c6   :  { %v3713_v54 = vmul.f32 %v3712_v43, %v3707_v45 }
0x17c7   :  { %v12216_v58 = vpop.eup %12215 }
0x17c8   :  { %v12218_v59 = vpop.eup %12217  ;;  %v13378_v2 = vadd.f32 %v3718_v49, %v3713_v54  ;;  %v5315_v55 = vmul.f32 %v12216_v58, %v13326_v62 }
0x17c9   :  { %v3708_v39 = vmul.f32 %v12218_v59, %v13329_v31 }
0x17ca   :  { %11708 = vmatprep.mubr.msk.f32.mxu0 %vm87_vm0, %v13378_v2  ;;  %v5321_v63 = vmul.f32 %v5320_v56, %v5315_v55 }
0x17cb   :  { %v3714_v28 = vmul.f32 %v3712_v43, %v3708_v39 }
0x17cc   :  { %v12220_v22 = vpop.eup %12219  ;;  %v13386_v19 = vadd.f32 %v5326_v38, %v5321_v63 }
0x17cd   :  { %v13388_v32 = vadd.f32 %v3718_v49, %v3714_v28  ;;  %v5316_v6 = vmul.f32 %v12220_v22, %v13336_v21 }
0x17ce   :  { %11697 = vmatprep.mubr.msk.f32.mxu1 %vm87_vm0, %v13386_v19 }
0x17cf   :  { %v5322_v26 = vmul.f32 %v5320_v56, %v5316_v6  ;;  %11709 = vmatmul.mubr.msk.f32.vlgmr.msra.gmra.mxu0 %vm87_vm0, %v13388_v32 }
0x17d0   :  { %11723 = vmatprep.mubr.msk.f32.mxu0 %vm12373_vm1, %v12370_v12 }
0x17d1   :  { %v13397_v62 = vadd.f32 %v5326_v38, %v5322_v26 }
0x17d3   :  { %11698 = vmatmul.mubr.msk.f32.vlgmr.msra.gmra.mxu1 %vm87_vm0, %v13397_v62 }
0x17d4   :  { %11713 = vmatprep.mubr.msk.f32.mxu1 %vm12373_vm1, %v12370_v12 }
0x188f   :  { %v11710_v31 = vpop.f32.mrf.mxu0 }
0x1890   :  { %v13405_v9 = vadd.f32 %v11710_v31, %v5417_v18 }
0x1891   :  { %v5490_v60 = vpop.f32.mrf.mxu0 }
0x1892   :  { %v13407_v27 = vadd.f32 %v5490_v60, %v5417_v18  ;;  %5521 = vrot.lane.b32.xlu0 %v13405_v9, %s12372_s25 }
0x1893   :  { %v11699_v7 = vpop.f32.mrf.mxu1 }
0x1894   :  { %5514 = vrot.lane.b32.xlu1 %v13407_v27, %s12372_s25  ;;  %11712 = vmatpush3.xpose.msk.msra.mxu1 %vm185_vm2, %v13407_v27  ;;  %v5411_v34 = vadd.f32 %v11699_v7, %v5332_v5 }
0x1895   :  { %v5405_v21 = vpop.f32.mrf.mxu1  ;;  %11716 = vmatprep.subr.mxu1 %v12370_v12 }
0x1896   :  { %v5406_v57 = vadd.f32 %v5405_v21, %v5332_v5 }
0x1898   :  { %5516 = vrot.lane.b32.xlu1 %v13407_v27, %s12374_s26  ;;  %5500 = vrot.lane.b32.xlu0 %v5406_v57, %s12372_s25 }
0x1899   :  { %11714 = vmatmul.mubr.msk.f32.vlgmr.msra.gmra.mxu1 %vm185_vm2, %v5406_v57 }
0x189a   :  { %11718 = vmatprep.mubr.msk.f32.mxu1 %vm12373_vm1, %v12370_v12 }
0x189c   :  { %5518 = vrot.lane.b32.xlu1 %v13407_v27, %s12371_s0  ;;  %5502 = vrot.lane.b32.xlu0 %v5406_v57, %s12374_s26 }
0x18a0   :  { %5507 = vrot.lane.b32.xlu1 %v5411_v34, %s12372_s25  ;;  %5523 = vrot.lane.b32.xlu0 %v13405_v9, %s12374_s26 }
0x18a4   :  { %5504 = vrot.lane.b32.xlu1 %v5406_v57, %s12371_s0  ;;  %5509 = vrot.lane.b32.xlu0 %v5411_v34, %s12374_s26 }
0x18a8   :  { %5525 = vrot.lane.b32.xlu1 %v13405_v9, %s12371_s0 }
0x18ac   :  { %5511 = vrot.lane.b32.xlu1 %v5411_v34, %s12371_s0 }
0x1904   :  { %v13435_v25 = vpop.permute.xlu0 %5521 }
0x1906   :  { %v13437_v47 = vpop.permute.xlu1 %5514 }
0x1907   :  { %11717 = vmatpush3.xpose.msk.msra.mxu1 %vm185_vm2, %v13437_v47 }
0x1908   :  { %11726 = vmatprep.subr.mxu1 %v12370_v12 }
0x190a   :  { %v13442_v11 = vpop.permute.xlu1 %5516  ;;  %v5501_v29 = vpop.permute.xlu0 %5500 }
0x190b   :  { %11719 = vmatmul.mubr.msk.f32.vlgmr.msra.gmra.mxu1 %vm185_vm2, %v5501_v29  ;;  %11722 = vmatpush3.xpose.msk.msra.mxu0 %vm185_vm2, %v13442_v11 }
0x190c   :  { %11731 = vmatprep.subr.mxu0 %v12370_v12  ;;  %11728 = vmatprep.mubr.msk.f32.mxu1 %vm12373_vm1, %v12370_v12 }
0x190e   :  { %v13450_v4 = vpop.permute.xlu1 %5518  ;;  %v5503_v13 = vpop.permute.xlu0 %5502 }
0x190f   :  { %11724 = vmatmul.mubr.msk.f32.vlgmr.msra.gmra.mxu0 %vm185_vm2, %v5503_v13  ;;  %11727 = vmatpush3.xpose.msk.msra.mxu1 %vm185_vm2, %v13450_v4 }
0x1910   :  { %11732 = vmatpush3.xpose.msk.msra.mxu0 %vm185_vm2, %v13405_v9  ;;  %11733 = vmatprep.mubr.msk.f32.mxu0 %vm12373_vm1, %v12370_v12 }
0x1911   :  { %11741 = vmatprep.subr.mxu0 %v12370_v12  ;;  %11736 = vmatprep.subr.mxu1 %v12370_v12 }
0x1912   :  { %v5508_v0 = vpop.permute.xlu1 %5507  ;;  %v13461_v20 = vpop.permute.xlu0 %5523 }
0x1913   :  { %11734 = vmatmul.mubr.msk.f32.vlgmr.msra.gmra.mxu0 %vm185_vm2, %v5411_v34 }
0x1914   :  { %11742 = vmatpush3.xpose.msk.msra.mxu0 %vm185_vm2, %v13461_v20  ;;  %11743 = vmatprep.mubr.msk.f32.mxu0 %vm12373_vm1, %v12370_v12 }
0x1915   :  { %11751 = vmatprep.subr.mxu0 %v12370_v12 }
0x1916   :  { %v5505_v14 = vpop.permute.xlu1 %5504  ;;  %v5510_v30 = vpop.permute.xlu0 %5509 }
0x1917   :  { %11729 = vmatmul.mubr.msk.f32.vlgmr.msra.gmra.mxu1 %vm185_vm2, %v5505_v14  ;;  %11744 = vmatmul.mubr.msk.f32.vlgmr.msra.gmra.mxu0 %vm185_vm2, %v5510_v30 }
0x1918   :  { %11737 = vmatpush3.xpose.msk.msra.mxu1 %vm185_vm2, %v13435_v25  ;;  %11738 = vmatprep.mubr.msk.f32.mxu1 %vm12373_vm1, %v12370_v12 }
0x1919   :  { %11746 = vmatprep.subr.mxu1 %v12370_v12  ;;  %11753 = vmatprep.mubr.msk.f32.mxu0 %vm12373_vm1, %v12370_v12 }
0x191a   :  { %v13478_v16 = vpop.permute.xlu1 %5525 }
0x191b   :  { %11739 = vmatmul.mubr.msk.f32.vlgmr.msra.gmra.mxu1 %vm185_vm2, %v5508_v0 }
0x191c   :  { %11747 = vmatpush3.xpose.msk.msra.mxu1 %vm185_vm2, %v13478_v16  ;;  %11748 = vmatprep.mubr.msk.f32.mxu1 %vm12373_vm1, %v12370_v12 }
0x191d   :  { %11756 = vmatprep.subr.mxu1 %v12370_v12 }
0x191e   :  { %v5512_v10 = vpop.permute.xlu1 %5511 }
0x191f   :  { %11749 = vmatmul.mubr.msk.f32.vlgmr.msra.gmra.mxu1 %vm185_vm2, %v5512_v10 }
0x1920   :  { %11758 = vmatprep.mubr.msk.f32.mxu1 %vm12373_vm1, %v12370_v12 }
0x1959   :  { %v5597_v33 = vpop.f32.mrf.mxu1 }
0x195a   :  { %v6119_v17 = vmul.f32 0.35355338, %v5597_v33 }
0x195b   :  { %v11715_v23 = vpop.f32.mrf.mxu1 }
0x195c   :  { %v6127_v3 = vsel %vm185_vm2, %v6119_v17, -inf }
0x195d   :  { %6128 = vmax.xlane.f32.xlu0 %v6127_v3 }
0x19cb   :  { %v5671_v36 = vpop.f32.mrf.mxu1 }
0x19cc   :  { %v6120_v61 = vmul.f32 0.35355338, %v5671_v36 }
0x19cd   :  { %v11720_v40 = vpop.f32.mrf.mxu1 }
0x19ce   :  { %v6130_v42 = vsel %vm185_vm2, %v6120_v61, -inf }
0x19cf   :  { %6131 = vmax.xlane.f32.xlu1 %v6130_v42  ;;  %v5745_v37 = vpop.f32.mrf.mxu0 }
0x19d0   :  { %v6121_v15 = vmul.f32 0.35355338, %v5745_v37 }
0x19d1   :  { %v11725_v35 = vpop.f32.mrf.mxu0 }
0x19d2   :  { %v6133_v43 = vsel %vm185_vm2, %v6121_v15, -inf }
0x19d3   :  { %6134 = vmax.xlane.f32.xlu0 %v6133_v43  ;;  %v5893_v44 = vpop.f32.mrf.mxu0 }
0x19d4   :  { %v6123_v45 = vmul.f32 0.35355338, %v5893_v44 }
0x19d5   :  { %v11735_v49 = vpop.f32.mrf.mxu0 }
0x19d6   :  { %v6139_v54 = vsel %vm185_vm2, %v6123_v45, -inf }
0x19d7   :  { %v5819_v56 = vpop.f32.mrf.mxu1  ;;  %6140 = vmax.xlane.f32.xlu1 %v6139_v54  ;;  %v6041_v58 = vpop.f32.mrf.mxu0 }
0x19d8   :  { %v6122_v59 = vmul.f32 0.35355338, %v5819_v56  ;;  %v6125_v55 = vmul.f32 0.35355338, %v6041_v58 }
0x19d9   :  { %v11730_v38 = vpop.f32.mrf.mxu1  ;;  %v11745_v39 = vpop.f32.mrf.mxu0 }
0x19da   :  { %v6136_v63 = vsel %vm185_vm2, %v6122_v59, -inf  ;;  %v6145_v28 = vsel %vm185_vm2, %v6125_v55, -inf }
0x19db   :  { %v5967_v22 = vpop.f32.mrf.mxu1  ;;  %6137 = vmax.xlane.f32.xlu0 %v6136_v63  ;;  %6146 = vmax.xlane.f32.xlu1 %v6145_v28 }
0x19dc   :  { %v6124_v6 = vmul.f32 0.35355338, %v5967_v22 }
0x19dd   :  { %v11740_v26 = vpop.f32.mrf.mxu1 }
0x19de   :  { %v6142_v18 = vsel %vm185_vm2, %v6124_v6, -inf }
0x19df   :  { %v6115_v31 = vpop.f32.mrf.mxu1  ;;  %6143 = vmax.xlane.f32.xlu0 %v6142_v18 }
0x19e0   :  { %v6126_v60 = vmul.f32 0.35355338, %v6115_v31 }
0x19e1   :  { %v11750_v7 = vpop.f32.mrf.mxu1 }
0x19e2   :  { %v6148_v5 = vsel %vm185_vm2, %v6126_v60, -inf }
0x19e3   :  { %6149 = vmax.xlane.f32.xlu0 %v6148_v5 }
0x19e6   :  { %v6129_v21 = vpop.xlane.xlu0 %6128 }
0x19e7   :  { %v6151_v57 = vsub.f32 %v6119_v17, %v6129_v21 }
0x19e9   :  { %v6159_v34 = vmul.f32 1.442695, %v6151_v57 }
0x19eb   :  { %12221 = vpow2.f32 %v6159_v34 }
0x19ec   :  { %6215 = vrot.lane.b32.xlu1 %v13407_v27, %s12375_s27 }
0x19f0   :  { %6367 = vrot.lane.b32.xlu1 %v13442_v11, %s12375_s27 }
0x19f4   :  { %6443 = vrot.lane.b32.xlu1 %v13450_v4, %s12375_s27 }
0x19f8   :  { %6595 = vrot.lane.b32.xlu1 %v13435_v25, %s12375_s27  ;;  %v13509_v27 = vpop.eup %12221 }
0x19f9   :  { %6291 = vrot.lane.b32.xlu0 %v13437_v47, %s12375_s27  ;;  %v6175_v11 = vsel %vm185_vm2, %v13509_v27, 0.0 }
0x19fd   :  { %6519 = vrot.lane.b32.xlu0 %v13405_v9, %s12375_s27 }
0x1a1c   :  { %6176 = vadd.xlane.f32.xlu1 %v6175_v11 }
0x1a58   :  { %v6132_v29 = vpop.xlane.xlu1 %6131 }
0x1a59   :  { %v6152_v4 = vsub.f32 %v6120_v61, %v6132_v29 }
0x1a5b   :  { %v6161_v13 = vmul.f32 1.442695, %v6152_v4 }
0x1a5c   :  { %v6135_v25 = vpop.xlane.xlu0 %6134 }
0x1a5d   :  { %12223 = vpow2.f32 %v6161_v13  ;;  %v6153_v0 = vsub.f32 %v6121_v15, %v6135_v25 }
0x1a5f   :  { %v6163_v47 = vmul.f32 1.442695, %v6153_v0 }
0x1a60   :  { %v6141_v14 = vpop.xlane.xlu1 %6140 }
0x1a61   :  { %12225 = vpow2.f32 %v6163_v47  ;;  %v6155_v9 = vsub.f32 %v6123_v45, %v6141_v14 }
0x1a63   :  { %v6167_v30 = vmul.f32 1.442695, %v6155_v9 }
0x1a64   :  { %v6147_v10 = vpop.xlane.xlu1 %6146  ;;  %v6138_v33 = vpop.xlane.xlu0 %6137 }
0x1a65   :  { %12227 = vpow2.f32 %v6167_v30  ;;  %v6157_v17 = vsub.f32 %v6125_v55, %v6147_v10  ;;  %v6154_v23 = vsub.f32 %v6122_v59, %v6138_v33 }
0x1a67   :  { %v6171_v3 = vmul.f32 1.442695, %v6157_v17  ;;  %v6165_v36 = vmul.f32 1.442695, %v6154_v23 }
0x1a68   :  { %v6216_v40 = vpop.permute.xlu1 %6215  ;;  %v6144_v42 = vpop.xlane.xlu0 %6143 }
0x1a69   :  { %12229 = vpow2.f32 %v6171_v3  ;;  %v6156_v61 = vsub.f32 %v6124_v6, %v6144_v42  ;;  %11752 = vmatpush3.msra.mxu0 %v6216_v40 }
0x1a6a   :  { %v12224_v37 = vpop.eup %12223  ;;  %12231 = vpow2.f32 %v6165_v36  ;;  %11761 = vmatprep.subr.mxu0 %v12370_v12 }
0x1a6b   :  { %v6169_v15 = vmul.f32 1.442695, %v6156_v61  ;;  %v6178_v35 = vsel %vm185_vm2, %v12224_v37, 0.0 }
0x1a6c   :  { %6179 = vadd.xlane.f32.xlu0 %v6178_v35  ;;  %v6150_v43 = vpop.xlane.xlu0 %6149  ;;  %v6368_v18 = vpop.permute.xlu1 %6367 }
0x1a6d   :  { %12233 = vpow2.f32 %v6169_v15  ;;  %v6158_v44 = vsub.f32 %v6126_v60, %v6150_v43 }
0x1a6e   :  { %v12226_v45 = vpop.eup %12225 }
0x1a6f   :  { %v6173_v49 = vmul.f32 1.442695, %v6158_v44  ;;  %v6181_v54 = vsel %vm185_vm2, %v12226_v45, 0.0  ;;  %v3740_v44 = vld [vmem:[%s14205_s5 + $0x98] sm:$0xff] }
0x1a70   :  { %6182 = vadd.xlane.f32.xlu1 %v6181_v54  ;;  %v6292_v56 = vpop.permute.xlu0 %6291  ;;  %v6444_v31 = vpop.permute.xlu1 %6443  ;;  %v3738_v54 = vld [vmem:[%s14205_s5 + $0x88] sm:$0xff] }
0x1a71   :  { %12235 = vpow2.f32 %v6173_v49  ;;  %11757 = vmatpush3.msra.mxu1 %v6292_v56  ;;  %v3739_v49 = vld [vmem:[%s14205_s5 + $0x90] sm:$0xff] }
0x1a72   :  { %v12228_v58 = vpop.eup %12227  ;;  %11766 = vmatprep.subr.mxu1 %v12370_v12 }
0x1a73   :  { %v6187_v59 = vsel %vm185_vm2, %v12228_v58, 0.0 }
0x1a74   :  { %6188 = vadd.xlane.f32.xlu1 %v6187_v59  ;;  %v6596_v60 = vpop.permute.xlu1 %6595  ;;  %v3737_v59 = vld [vmem:[%s14205_s5 + $0x80] sm:$0xff] }
0x1a76   :  { %v12230_v55 = vpop.eup %12229 }
0x1a77   :  { %v12232_v38 = vpop.eup %12231  ;;  %v6193_v39 = vsel %vm185_vm2, %v12230_v55, 0.0 }
0x1a78   :  { %6194 = vadd.xlane.f32.xlu1 %v6193_v39  ;;  %v6184_v63 = vsel %vm185_vm2, %v12232_v38, 0.0 }
0x1a79   :  { %6185 = vadd.xlane.f32.xlu0 %v6184_v63 }
0x1a7a   :  { %v12234_v28 = vpop.eup %12233 }
0x1a7b   :  { %v6190_v22 = vsel %vm185_vm2, %v12234_v28, 0.0 }
0x1a7d   :  { %6191 = vadd.xlane.f32.xlu0 %v6190_v22 }
0x1a7e   :  { %v13521_v6 = vpop.eup %12235 }
0x1a7f   :  { %v6196_v26 = vsel %vm185_vm2, %v13521_v6, 0.0 }
0x1a81   :  { %6197 = vadd.xlane.f32.xlu0 %v6196_v26 }
0x1a89   :  { %6747 = vrot.lane.b32.xlu1 %v13478_v16, %s12375_s27  ;;  %v6520_v16 = vpop.permute.xlu0 %6519 }
0x1a97   :  { %6671 = vrot.lane.b32.xlu0 %v13461_v20, %s12375_s27 }
0x1aa5   :  { %v6177_v7 = vpop.xlane.xlu1 %6176 }
0x1aa6   :  { %12237 = vrcp.f32 %v6177_v7 }
0x1ab3   :  { %v12238_v5 = vpop.eup %12237 }
0x1ab4   :  { %v6200_v21 = vmul.f32 %v12238_v5, %v13509_v27 }
0x1ab6   :  { %11754 = vmatmul.mubr.msk.f32.vlgmr.msra.gmra.mxu0 %vm185_vm2, %v6200_v21 }
0x1ab7   :  { %11762 = vmatpush3.msra.mxu0 %v6368_v18  ;;  %11763 = vmatprep.mubr.msk.f32.mxu0 %vm12373_vm1, %v12370_v12 }
0x1ab8   :  { %11771 = vmatprep.subr.mxu0 %v12370_v12 }
0x1af5   :  { %v6180_v57 = vpop.xlane.xlu0 %6179 }
0x1af6   :  { %12239 = vrcp.f32 %v6180_v57 }
0x1af9   :  { %v6183_v34 = vpop.xlane.xlu1 %6182 }
0x1afa   :  { %12241 = vrcp.f32 %v6183_v34 }
0x1afd   :  { %v6189_v20 = vpop.xlane.xlu1 %6188 }
0x1afe   :  { %12243 = vrcp.f32 %v6189_v20 }
0x1b01   :  { %v6195_v11 = vpop.xlane.xlu1 %6194 }
0x1b02   :  { %12245 = vrcp.f32 %v6195_v11  ;;  %v6186_v29 = vpop.xlane.xlu0 %6185 }
0x1b03   :  { %v12240_v4 = vpop.eup %12239  ;;  %12247 = vrcp.f32 %v6186_v29 }
0x1b04   :  { %v6202_v27 = vmul.f32 %v12240_v4, %v12224_v37 }
0x1b05   :  { %v6748_v40 = vpop.permute.xlu1 %6747 }
0x1b06   :  { %v6192_v13 = vpop.xlane.xlu0 %6191  ;;  %11759 = vmatmul.mubr.msk.f32.vlgmr.msra.gmra.mxu1 %vm185_vm2, %v6202_v27  ;;  %v13584_v27 = vld [vmem:[%s14205_s5 + $0x100] sm:$0xff] }
0x1b07   :  { %v12242_v25 = vpop.eup %12241  ;;  %12249 = vrcp.f32 %v6192_v13  ;;  %11767 = vmatpush3.msra.mxu1 %v6444_v31  ;;  %11768 = vmatprep.mubr.msk.f32.mxu1 %vm12373_vm1, %v12370_v12  ;;  %v6856_v13 = vrot.slane %v13584_v27, %v12719_v50 }
0x1b08   :  { %v6204_v0 = vmul.f32 %v12242_v25, %v12226_v45  ;;  %11776 = vmatprep.subr.mxu1 %v12370_v12 }
0x1b0a   :  { %v6198_v47 = vpop.xlane.xlu0 %6197  ;;  %11764 = vmatmul.mubr.msk.f32.vlgmr.msra.gmra.mxu0 %vm185_vm2, %v6204_v0 }
0x1b0b   :  { %v12244_v14 = vpop.eup %12243  ;;  %12251 = vrcp.f32 %v6198_v47  ;;  %11772 = vmatpush3.msra.mxu0 %v6520_v16  ;;  %11773 = vmatprep.mubr.msk.f32.mxu0 %vm12373_vm1, %v12370_v12 }
0x1b0c   :  { %11781 = vmatprep.subr.mxu0 %v12370_v12  ;;  %v6208_v9 = vmul.f32 %v12244_v14, %v12228_v58 }
0x1b0e   :  { %v6672_v30 = vpop.permute.xlu0 %6671  ;;  %11774 = vmatmul.mubr.msk.f32.vlgmr.msra.gmra.mxu0 %vm185_vm2, %v6208_v9 }
0x1b0f   :  { %v12246_v10 = vpop.eup %12245  ;;  %11782 = vmatpush3.msra.mxu0 %v6672_v30  ;;  %11783 = vmatprep.mubr.msk.f32.mxu0 %vm12373_vm1, %v12370_v12 }
0x1b10   :  { %v12248_v33 = vpop.eup %12247  ;;  %v6212_v17 = vmul.f32 %v12246_v10, %v12230_v55  ;;  %11791 = vmatprep.subr.mxu0 %v3740_v44 }
0x1b11   :  { %v6206_v23 = vmul.f32 %v12248_v33, %v12232_v38 }
0x1b12   :  { %11784 = vmatmul.mubr.msk.f32.vlgmr.msra.gmra.mxu0 %vm185_vm2, %v6212_v17 }
0x1b13   :  { %11769 = vmatmul.mubr.msk.f32.vlgmr.msra.gmra.mxu1 %vm185_vm2, %v6206_v23  ;;  %11792 = vmatpush3.msra.mxu0 %v3740_v44  ;;  %v3741_v44 = vld [vmem:[%s14205_s5 + $0xa0] sm:$0xff] }
0x1b14   :  { %v12250_v3 = vpop.eup %12249  ;;  %11777 = vmatpush3.msra.mxu1 %v6596_v60  ;;  %11778 = vmatprep.mubr.msk.f32.mxu1 %vm12373_vm1, %v12370_v12 }
0x1b15   :  { %11786 = vmatprep.subr.mxu1 %v12370_v12  ;;  %v6210_v36 = vmul.f32 %v12250_v3, %v12234_v28  ;;  %11793 = vmatprep.subr.mxu0 %v3739_v49 }
0x1b16   :  { %11794 = vmatpush3.msra.mxu0 %v3739_v49  ;;  %v3751_v49 = vld [vmem:[%s14205_s5 + $0xf0] sm:$0xff] }
0x1b17   :  { %11779 = vmatmul.mubr.msk.f32.vlgmr.msra.gmra.mxu1 %vm185_vm2, %v6210_v36  ;;  %11795 = vmatprep.subr.mxu0 %v3738_v54 }
0x1b18   :  { %v12252_v42 = vpop.eup %12251  ;;  %11787 = vmatpush3.msra.mxu1 %v6748_v40  ;;  %11788 = vmatprep.mubr.msk.f32.mxu1 %vm12373_vm1, %v12370_v12 }
0x1b19   :  { %v6214_v61 = vmul.f32 %v12252_v42, %v13521_v6  ;;  %11796 = vmatpush3.msra.mxu0 %v3738_v54  ;;  %v3750_v54 = vld [vmem:[%s14205_s5 + $0xe8] sm:$0xff] }
0x1b1a   :  { %11797 = vmatprep.subr.mxu0 %v3737_v59 }
0x1b1b   :  { %11789 = vmatmul.mubr.msk.f32.vlgmr.msra.gmra.mxu1 %vm185_vm2, %v6214_v61  ;;  %11798 = vmatpush3.msra.mxu0 %v3737_v59 }
0x1b76   :  { %v6287_v37 = vpop.f32.mrf.mxu0 }
0x1b78   :  { %v11755_v15 = vpop.f32.mrf.mxu0 }
0x1bc6   :  { %v6363_v35 = vpop.f32.mrf.mxu1 }
0x1bc7   :  { %6824 = vrot.lane.b32.xlu0 %v6363_v35, %s12369_s9  ;;  %v3743_v35 = vld [vmem:[%s14205_s5 + $0xb0] sm:$0xff] }
0x1bc8   :  { %v11760_v43 = vpop.f32.mrf.mxu1 }
0x1bc9   :  { %v3742_v43 = vld [vmem:[%s14205_s5 + $0xa8] sm:$0xff] }
0x1bca   :  { %v6439_v45 = vpop.f32.mrf.mxu0 }
0x1bcb   :  { %6828 = vrot.lane.b32.xlu1 %v6439_v45, %s12377_s17  ;;  %v3752_v45 = vld [vmem:[%s14205_s5 + $0xf8] sm:$0xff] }
0x1bcc   :  { %v11765_v56 = vpop.f32.mrf.mxu0  ;;  %11813 = vmatprep.subr.mxu0 %v3752_v45 }
0x1bcd   :  { %v3749_v56 = vld [vmem:[%s14205_s5 + $0xe0] sm:$0xff] }
0x1bce   :  { %v6591_v58 = vpop.f32.mrf.mxu0 }
0x1bd0   :  { %v11775_v55 = vpop.f32.mrf.mxu0 }
0x1bd2   :  { %v6743_v38 = vpop.f32.mrf.mxu0 }
0x1bd3   :  { %v6515_v39 = vpop.f32.mrf.mxu1 }
0x1bd4   :  { %6832 = vrot.lane.b32.xlu1 %v6515_v39, %s12378_s18  ;;  %v11785_v63 = vpop.f32.mrf.mxu0 }
0x1bd5   :  { %v11770_v28 = vpop.f32.mrf.mxu1 }
0x1bd6   :  { %v6969_v28 = vrot.slane %v13374_v51, %v12579_v41 }
0x1bd7   :  { %v6667_v22 = vpop.f32.mrf.mxu1 }
0x1bd8   :  { %6839 = vrot.lane.b32.xlu0 %v6667_v22, %s12369_s9 }
0x1bd9   :  { %v11780_v6 = vpop.f32.mrf.mxu1 }
0x1bdb   :  { %v6819_v26 = vpop.f32.mrf.mxu1 }
0x1bdc   :  { %6847 = vrot.lane.b32.xlu1 %v6819_v26, %s12378_s18  ;;  %6843 = vrot.lane.b32.xlu0 %v6743_v38, %s12377_s17  ;;  %v6975_v26 = vrot.slane %v13374_v51, %v12744_v1 }
0x1bdd   :  { %v11790_v18 = vpop.f32.mrf.mxu1 }
0x1c39   :  { %v6825_v31 = vpop.permute.xlu0 %6824 }
0x1c3a   :  { %v6835_v7 = vsel %vm185_vm2, %v6287_v37, %v6825_v31 }
0x1c3d   :  { %v6829_v60 = vpop.permute.xlu1 %6828 }
0x1c3e   :  { %v6836_v5 = vsel %vm1517_vm3, %v6835_v7, %v6829_v60 }
0x1c46   :  { %v6833_v21 = vpop.permute.xlu1 %6832 }
0x1c47   :  { %v6837_v16 = vsel %vm1519_vm4, %v6836_v5, %v6833_v21 }
0x1c48   :  { %11799 = vmatprep.mubr.msk.f32.mxu0 %vm87_vm0, %v6837_v16  ;;  %v3748_v16 = vld [vmem:[%s14205_s5 + $0xd8] sm:$0xff] }
0x1c4a   :  { %v6840_v57 = vpop.permute.xlu0 %6839 }
0x1c4b   :  { %v6850_v34 = vsel %vm185_vm2, %v6591_v58, %v6840_v57  ;;  %v3747_v57 = vld [vmem:[%s14205_s5 + $0xd0] sm:$0xff] }
0x1c4e   :  { %v6848_v20 = vpop.permute.xlu1 %6847  ;;  %v6844_v11 = vpop.permute.xlu0 %6843 }
0x1c4f   :  { %v6851_v29 = vsel %vm1517_vm3, %v6850_v34, %v6844_v11  ;;  %v3746_v34 = vld [vmem:[%s14205_s5 + $0xc8] sm:$0xff]  ;;  %v6981_v11 = vrot.slane %v13584_v27, %v12722_v46 }
0x1c50   :  { %v6852_v4 = vsel %vm1519_vm4, %v6851_v29, %v6848_v20  ;;  %v3745_v20 = vld [vmem:[%s14205_s5 + $0xc0] sm:$0xff] }
0x1c51   :  { %11800 = vmatmul.mubr.msk.f32.vlgmr.msra.gmra.mxu0 %vm87_vm0, %v6852_v4 }
0x1c52   :  { %11814 = vmatpush3.msra.mxu0 %v3752_v45  ;;  %v7192_v45 = vld [vmem:[%s14206_s6 + $0x10] sm:$0xff] }
0x1c53   :  { %11815 = vmatprep.subr.mxu0 %v3751_v49 }
0x1c54   :  { %11816 = vmatpush3.msra.mxu0 %v3751_v49  ;;  %v7191_v49 = vld [vmem:[%s14206_s6 + $0x8] sm:$0xff] }
0x1c55   :  { %11817 = vmatprep.subr.mxu0 %v3750_v54 }
0x1c56   :  { %11818 = vmatpush3.msra.mxu0 %v3750_v54  ;;  %v7190_v54 = vld [vmem:[%s14206_s6] sm:$0xff] }
0x1c57   :  { %11819 = vmatprep.subr.mxu0 %v3749_v56 }
0x1c58   :  { %11820 = vmatpush3.msra.mxu0 %v3749_v56 }
0x1c59   :  { %11821 = vmatprep.subr.mxu0 %v3748_v16 }
0x1c5a   :  { %11822 = vmatpush3.msra.mxu0 %v3748_v16 }
0x1c5b   :  { %11823 = vmatprep.subr.mxu0 %v3747_v57 }
0x1c5c   :  { %11824 = vmatpush3.msra.mxu0 %v3747_v57 }
0x1c5d   :  { %11825 = vmatprep.subr.mxu0 %v3746_v34 }
0x1c5e   :  { %11826 = vmatpush3.msra.mxu0 %v3746_v34 }
0x1c5f   :  { %11827 = vmatprep.subr.mxu0 %v3745_v20 }
0x1c60   :  { %11828 = vmatpush3.msra.mxu0 %v3745_v20 }
0x1c61   :  { %11853 = vmatprep.subr.mxu0 %v12370_v12 }
0x1d11   :  { %v11801_v25 = vpop.f32.mrf.mxu0 }
0x1d12   :  { %v6935_v0 = vadd.f32 %v11801_v25, %v6856_v13 }
0x1d13   :  { %v6929_v47 = vpop.f32.mrf.mxu0 }
0x1d14   :  { %v6939_v14 = vadd.f32 %v6935_v0, %v13397_v62  ;;  %v6930_v9 = vadd.f32 %v6929_v47, %v6856_v13 }
0x1d16   :  { %v6938_v30 = vadd.f32 %v6930_v9, %v13386_v19  ;;  %v6943_v10 = vsel %vm87_vm0, %v6939_v14, 0.0  ;;  %v3744_v19 = vld [vmem:[%s14205_s5 + $0xb8] sm:$0xff] }
0x1d17   :  { %6944 = vadd.xlane.f32.xlu1 %v6943_v10  ;;  %11802 = vmatprep.subr.mxu1 %v3744_v19 }
0x1d18   :  { %v6940_v33 = vsel %vm87_vm0, %v6938_v30, 0.0  ;;  %11803 = vmatpush3.msra.mxu1 %v3744_v19 }
0x1d19   :  { %6941 = vadd.xlane.f32.xlu0 %v6940_v33  ;;  %11804 = vmatprep.subr.mxu1 %v3743_v35 }
0x1d1a   :  { %11805 = vmatpush3.msra.mxu1 %v3743_v35 }
0x1d1b   :  { %11806 = vmatprep.subr.mxu1 %v3742_v43 }
0x1d1c   :  { %11807 = vmatpush3.msra.mxu1 %v3742_v43 }
0x1d1d   :  { %11808 = vmatprep.subr.mxu1 %v3741_v44 }
0x1d1e   :  { %11809 = vmatpush3.msra.mxu1 %v3741_v44  ;;  %v7193_v44 = vld [vmem:[%s14206_s6 + $0x18] sm:$0xff] }
0x1d1f   :  { %11832 = vmatprep.subr.mxu1 %v7193_v44 }
0x1da0   :  { %v6945_v17 = vpop.xlane.xlu1 %6944 }
0x1da1   :  { %v6947_v23 = vmul.f32 0.03125, %v6945_v17 }
0x1da2   :  { %v6942_v3 = vpop.xlane.xlu0 %6941 }
0x1da3   :  { %v6946_v36 = vmul.f32 0.03125, %v6942_v3  ;;  %v6949_v40 = vsub.f32 %v6939_v14, %v6947_v23  ;;  %v7068_v14 = vrot.slane %v13584_v27, %v12775_v48 }
0x1da5   :  { %v6948_v42 = vsub.f32 %v6938_v30, %v6946_v36  ;;  %v6951_v15 = vmul.f32 %v6949_v40, %v6949_v40 }
0x1da7   :  { %v6950_v61 = vmul.f32 %v6948_v42, %v6948_v42  ;;  %v6955_v62 = vsel %vm87_vm0, %v6951_v15, 0.0 }
0x1da9   :  { %v6952_v37 = vsel %vm87_vm0, %v6950_v61, 0.0 }
0x1daa   :  { %6953 = vadd.xlane.f32.xlu0 %v6952_v37 }
0x1dae   :  { %6956 = vadd.xlane.f32.xlu0 %v6955_v62 }
0x1e33   :  { %v6954_v58 = vpop.xlane.xlu0 %6953 }
0x1e34   :  { %v6958_v59 = vmul.f32 0.03125, %v6954_v58 }
0x1e36   :  { %v6960_v55 = vadd.f32 1e-05, %v6958_v59 }
0x1e37   :  { %v6957_v38 = vpop.xlane.xlu0 %6956 }
0x1e38   :  { %12253 = vrsqrt.f32 %v6960_v55  ;;  %v6959_v39 = vmul.f32 0.03125, %v6957_v38 }
0x1e3a   :  { %v6961_v63 = vadd.f32 1e-05, %v6959_v39 }
0x1e3c   :  { %12255 = vrsqrt.f32 %v6961_v63 }
0x1e45   :  { %v12254_v22 = vpop.eup %12253 }
0x1e46   :  { %v6964_v6 = vmul.f32 %v12254_v22, %v6948_v42 }
0x1e48   :  { %v6970_v18 = vmul.f32 %v6969_v28, %v6964_v6 }
0x1e49   :  { %v12256_v31 = vpop.eup %12255 }
0x1e4a   :  { %v6965_v60 = vmul.f32 %v12256_v31, %v6949_v40  ;;  %v6976_v7 = vadd.f32 %v6975_v26, %v6970_v18  ;;  %v7187_v31 = vrot.slane %v13374_v51, %v12719_v50 }
0x1e4c   :  { %v6971_v5 = vmul.f32 %v6969_v28, %v6965_v60  ;;  %11810 = vmatprep.mubr.msk.f32.mxu1 %vm87_vm0, %v6976_v7  ;;  %v7181_v28 = vrot.slane %v13374_v51, %v12753_v24 }
0x1e4e   :  { %v6977_v21 = vadd.f32 %v6975_v26, %v6971_v5 }
0x1e50   :  { %11811 = vmatmul.mubr.msk.f32.vlgmr.msra.gmra.mxu1 %vm87_vm0, %v6977_v21 }
0x1e51   :  { %11833 = vmatpush3.msra.mxu1 %v7193_v44 }
0x1e52   :  { %11834 = vmatprep.subr.mxu1 %v7192_v45 }
0x1e53   :  { %11835 = vmatpush3.msra.mxu1 %v7192_v45 }
0x1e54   :  { %11836 = vmatprep.subr.mxu1 %v7191_v49 }
0x1e55   :  { %11837 = vmatpush3.msra.mxu1 %v7191_v49 }
0x1e56   :  { %11838 = vmatprep.subr.mxu1 %v7190_v54 }
0x1e57   :  { %11839 = vmatpush3.msra.mxu1 %v7190_v54 }
0x1e58   :  { %11843 = vmatprep.subr.mxu1 %v12370_v12 }
0x1f10   :  { %v11812_v29 = vpop.f32.mrf.mxu1 }
0x1f11   :  { %v7060_v4 = vadd.f32 %v11812_v29, %v6981_v11 }
0x1f12   :  { %v7054_v13 = vpop.f32.mrf.mxu1 }
0x1f13   :  { %v7055_v25 = vadd.f32 %v7054_v13, %v6981_v11  ;;  %v7064_v47 = vmax.f32 %v7060_v4, 0.0 }
0x1f15   :  { %v7063_v0 = vmax.f32 %v7055_v25, 0.0 }
0x1f17   :  { %11829 = vmatprep.mubr.msk.f32.mxu0 %vm1753_vm5, %v7063_v0 }
0x1f18   :  { %11830 = vmatmul.mubr.msk.f32.vlgmr.msra.gmra.mxu0 %vm1753_vm5, %v7064_v47 }
0x1f19   :  { %11855 = vmatprep.mubr.msk.f32.mxu0 %vm12373_vm1, %v12370_v12 }
0x1fd8   :  { %v11831_v9 = vpop.f32.mrf.mxu0 }
0x1fd9   :  { %v7147_v30 = vadd.f32 %v11831_v9, %v7068_v14 }
0x1fda   :  { %v7141_v10 = vpop.f32.mrf.mxu0 }
0x1fdb   :  { %v7151_v33 = vadd.f32 %v7147_v30, %v6977_v21  ;;  %v7142_v17 = vadd.f32 %v7141_v10, %v7068_v14  ;;  %v13679_v21 = vld [vmem:[%s14206_s6 + $0x100] sm:$0xff] }
0x1fdc   :  { %v7227_v16 = vrot.slane %v13679_v21, %v12459_v8 }
0x1fdd   :  { %v7150_v23 = vadd.f32 %v7142_v17, %v6976_v7  ;;  %v7155_v3 = vsel %vm87_vm0, %v7151_v33, 0.0 }
0x1fde   :  { %7156 = vadd.xlane.f32.xlu0 %v7155_v3 }
0x1fdf   :  { %v7152_v36 = vsel %vm87_vm0, %v7150_v23, 0.0 }
0x1fe0   :  { %7153 = vadd.xlane.f32.xlu1 %v7152_v36 }
0x2067   :  { %v7157_v40 = vpop.xlane.xlu0 %7156 }
0x2068   :  { %v7159_v42 = vmul.f32 0.03125, %v7157_v40 }
0x2069   :  { %v7154_v61 = vpop.xlane.xlu1 %7153 }
0x206a   :  { %v7161_v37 = vsub.f32 %v7151_v33, %v7159_v42  ;;  %v7158_v15 = vmul.f32 0.03125, %v7154_v61 }
0x206c   :  { %v7160_v62 = vsub.f32 %v7150_v23, %v7158_v15  ;;  %v7163_v19 = vmul.f32 %v7161_v37, %v7161_v37 }
0x206e   :  { %v7167_v27 = vsel %vm87_vm0, %v7163_v19, 0.0  ;;  %v7162_v35 = vmul.f32 %v7160_v62, %v7160_v62 }
0x206f   :  { %7168 = vadd.xlane.f32.xlu0 %v7167_v27 }
0x2070   :  { %v7164_v43 = vsel %vm87_vm0, %v7162_v35, 0.0 }
0x2071   :  { %7165 = vadd.xlane.f32.xlu1 %v7164_v43 }
0x20f8   :  { %v7169_v56 = vpop.xlane.xlu0 %7168 }
0x20f9   :  { %v7171_v58 = vmul.f32 0.03125, %v7169_v56 }
0x20fa   :  { %v7166_v59 = vpop.xlane.xlu1 %7165 }
0x20fb   :  { %v7173_v55 = vadd.f32 1e-05, %v7171_v58  ;;  %v7170_v38 = vmul.f32 0.03125, %v7166_v59 }
0x20fd   :  { %12257 = vrsqrt.f32 %v7173_v55  ;;  %v7172_v39 = vadd.f32 1e-05, %v7170_v38 }
0x20ff   :  { %12259 = vrsqrt.f32 %v7172_v39 }
0x210a   :  { %v12258_v63 = vpop.eup %12257 }
0x210b   :  { %v7177_v22 = vmul.f32 %v12258_v63, %v7161_v37 }
0x210c   :  { %v12260_v6 = vpop.eup %12259 }
0x210d   :  { %v7176_v26 = vmul.f32 %v12260_v6, %v7160_v62  ;;  %v7183_v18 = vmul.f32 %v7181_v28, %v7177_v22 }
0x210f   :  { %v7182_v60 = vmul.f32 %v7181_v28, %v7176_v26  ;;  %v13668_v5 = vadd.f32 %v7187_v31, %v7183_v18 }
0x2111   :  { %v13666_v7 = vadd.f32 %v7187_v31, %v7182_v60 }
0x2113   :  { %11840 = vmatprep.mubr.msk.f32.mxu1 %vm87_vm0, %v13666_v7 }
0x2114   :  { %11841 = vmatmul.mubr.msk.f32.vlgmr.msra.gmra.mxu1 %vm87_vm0, %v13668_v5 }
0x2115   :  { %11845 = vmatprep.mubr.msk.f32.mxu1 %vm12373_vm1, %v12370_v12 }
0x21d4   :  { %v11842_v51 = vpop.f32.mrf.mxu1 }
0x21d5   :  { %v13689_v20 = vadd.f32 %v11842_v51, %v7227_v16 }
0x21d6   :  { %v7300_v57 = vpop.f32.mrf.mxu1 }
0x21d7   :  { %v13683_v34 = vadd.f32 %v7300_v57, %v7227_v16 }
0x21d9   :  { %7312 = vrot.lane.b32.xlu0 %v13683_v34, %s12374_s26  ;;  %7310 = vrot.lane.b32.xlu1 %v13683_v34, %s12372_s25 }
0x21dd   :  { %7319 = vrot.lane.b32.xlu0 %v13689_v20, %s12374_s26  ;;  %7314 = vrot.lane.b32.xlu1 %v13683_v34, %s12371_s0 }
0x21e1   :  { %7323 = vrot.lane.b32.xlu0 %v13683_v34, %s12375_s27  ;;  %7317 = vrot.lane.b32.xlu1 %v13689_v20, %s12372_s25 }
0x21e5   :  { %7321 = vrot.lane.b32.xlu1 %v13689_v20, %s12371_s0 }
0x224b   :  { %v13701_v11 = vpop.permute.xlu0 %7312  ;;  %v13703_v29 = vpop.permute.xlu1 %7310 }
0x224c   :  { %7475 = vrot.lane.b32.xlu0 %v13701_v11, %s12375_s27  ;;  %7399 = vrot.lane.b32.xlu1 %v13703_v29, %s12375_s27 }
0x224f   :  { %v13709_v4 = vpop.permute.xlu0 %7319  ;;  %v13711_v13 = vpop.permute.xlu1 %7314 }
0x2250   :  { %7627 = vrot.lane.b32.xlu0 %v13689_v20, %s12375_s27  ;;  %7551 = vrot.lane.b32.xlu1 %v13711_v13, %s12375_s27 }
0x2253   :  { %v7324_v25 = vpop.permute.xlu0 %7323  ;;  %v13717_v0 = vpop.permute.xlu1 %7317 }
0x2254   :  { %7779 = vrot.lane.b32.xlu0 %v13709_v4, %s12375_s27  ;;  %11844 = vmatpush3.xpose.msk.msra.mxu1 %vm185_vm2, %v7324_v25 }
0x2255   :  { %7703 = vrot.lane.b32.xlu1 %v13717_v0, %s12375_s27  ;;  %11848 = vmatprep.subr.mxu1 %v12370_v12 }
0x2257   :  { %11846 = vmatmul.mubr.msk.f32.vlgmr.msra.gmra.mxu1 %vm185_vm2, %v13683_v34  ;;  %v13727_v47 = vpop.permute.xlu1 %7321 }
0x2258   :  { %11850 = vmatprep.mubr.msk.f32.mxu1 %vm12373_vm1, %v12370_v12 }
0x2259   :  { %7855 = vrot.lane.b32.xlu1 %v13727_v47, %s12375_s27 }
0x22be   :  { %v7476_v14 = vpop.permute.xlu0 %7475  ;;  %v7400_v9 = vpop.permute.xlu1 %7399 }
0x22bf   :  { %11849 = vmatpush3.xpose.msk.msra.mxu1 %vm185_vm2, %v7400_v9  ;;  %11854 = vmatpush3.xpose.msk.msra.mxu0 %vm185_vm2, %v7476_v14 }
0x22c0   :  { %11863 = vmatprep.subr.mxu0 %v12370_v12  ;;  %11858 = vmatprep.subr.mxu1 %v12370_v12 }
0x22c2   :  { %11856 = vmatmul.mubr.msk.f32.vlgmr.msra.gmra.mxu0 %vm185_vm2, %v13701_v11  ;;  %v7628_v30 = vpop.permute.xlu0 %7627  ;;  %11851 = vmatmul.mubr.msk.f32.vlgmr.msra.gmra.mxu1 %vm185_vm2, %v13703_v29  ;;  %v7552_v10 = vpop.permute.xlu1 %7551 }
0x22c3   :  { %11859 = vmatpush3.xpose.msk.msra.mxu1 %vm185_vm2, %v7552_v10  ;;  %11864 = vmatpush3.xpose.msk.msra.mxu0 %vm185_vm2, %v7628_v30 }
0x22c4   :  { %11860 = vmatprep.mubr.msk.f32.mxu1 %vm12373_vm1, %v12370_v12  ;;  %11865 = vmatprep.mubr.msk.f32.mxu0 %vm12373_vm1, %v12370_v12 }
0x22c5   :  { %11873 = vmatprep.subr.mxu0 %v12370_v12  ;;  %11868 = vmatprep.subr.mxu1 %v12370_v12 }
0x22c6   :  { %11866 = vmatmul.mubr.msk.f32.vlgmr.msra.gmra.mxu0 %vm185_vm2, %v13689_v20  ;;  %v7780_v33 = vpop.permute.xlu0 %7779  ;;  %11861 = vmatmul.mubr.msk.f32.vlgmr.msra.gmra.mxu1 %vm185_vm2, %v13711_v13 }
0x22c7   :  { %v7704_v17 = vpop.permute.xlu1 %7703  ;;  %11874 = vmatpush3.xpose.msk.msra.mxu0 %vm185_vm2, %v7780_v33  ;;  %11870 = vmatprep.mubr.msk.f32.mxu1 %vm12373_vm1, %v12370_v12 }
0x22c8   :  { %11869 = vmatpush3.xpose.msk.msra.mxu1 %vm185_vm2, %v7704_v17  ;;  %11875 = vmatprep.mubr.msk.f32.mxu0 %vm12373_vm1, %v12370_v12 }
0x22c9   :  { %11878 = vmatprep.subr.mxu1 %v12370_v12  ;;  %11883 = vmatprep.subr.mxu0 %v12370_v12 }
0x22ca   :  { %11876 = vmatmul.mubr.msk.f32.vlgmr.msra.gmra.mxu0 %vm185_vm2, %v13709_v4 }
0x22cb   :  { %11871 = vmatmul.mubr.msk.f32.vlgmr.msra.gmra.mxu1 %vm185_vm2, %v13717_v0  ;;  %v7856_v23 = vpop.permute.xlu1 %7855  ;;  %11885 = vmatprep.mubr.msk.f32.mxu0 %vm12373_vm1, %v12370_v12 }
0x22cc   :  { %11879 = vmatpush3.xpose.msk.msra.mxu1 %vm185_vm2, %v7856_v23  ;;  %11880 = vmatprep.mubr.msk.f32.mxu1 %vm12373_vm1, %v12370_v12 }
0x22cd   :  { %11888 = vmatprep.subr.mxu1 %v12370_v12 }
0x22cf   :  { %11881 = vmatmul.mubr.msk.f32.vlgmr.msra.gmra.mxu1 %vm185_vm2, %v13727_v47 }
0x22d0   :  { %11890 = vmatprep.mubr.msk.f32.mxu1 %vm12373_vm1, %v12370_v12 }
0x2317   :  { %v7395_v3 = vpop.f32.mrf.mxu1 }
0x2318   :  { %v7931_v36 = vmul.f32 0.35355338, %v7395_v3 }
0x2319   :  { %v11847_v40 = vpop.f32.mrf.mxu1 }
0x231a   :  { %v7939_v42 = vadd.f32 %v7931_v36, %v13190_v53 }
0x231c   :  { %v7947_v61 = vsel %vm185_vm2, %v7939_v42, -inf }
0x231d   :  { %7948 = vmax.xlane.f32.xlu0 %v7947_v61 }
0x2382   :  { %v7471_v37 = vpop.f32.mrf.mxu1  ;;  %v7547_v15 = vpop.f32.mrf.mxu0 }
0x2383   :  { %v7932_v62 = vmul.f32 0.35355338, %v7471_v37  ;;  %v7933_v19 = vmul.f32 0.35355338, %v7547_v15 }
0x2384   :  { %v11852_v27 = vpop.f32.mrf.mxu1  ;;  %v11857_v35 = vpop.f32.mrf.mxu0 }
0x2385   :  { %v7940_v43 = vadd.f32 %v7932_v62, %v13190_v53  ;;  %v7941_v44 = vadd.f32 %v7933_v19, %v13190_v53 }
0x2386   :  { %v7623_v45 = vpop.f32.mrf.mxu1  ;;  %v7699_v49 = vpop.f32.mrf.mxu0 }
0x2387   :  { %v7934_v54 = vmul.f32 0.35355338, %v7623_v45  ;;  %v7935_v56 = vmul.f32 0.35355338, %v7699_v49  ;;  %v7953_v58 = vsel %vm185_vm2, %v7941_v44, -inf  ;;  %v7950_v59 = vsel %vm185_vm2, %v7940_v43, -inf }
0x2388   :  { %7954 = vmax.xlane.f32.xlu0 %v7953_v58  ;;  %v11867_v55 = vpop.f32.mrf.mxu0  ;;  %7951 = vmax.xlane.f32.xlu1 %v7950_v59  ;;  %v11862_v38 = vpop.f32.mrf.mxu1 }
0x2389   :  { %v7942_v39 = vadd.f32 %v7934_v54, %v13190_v53  ;;  %v7943_v63 = vadd.f32 %v7935_v56, %v13190_v53 }
0x238a   :  { %v7851_v28 = vpop.f32.mrf.mxu0 }
0x238b   :  { %v7775_v22 = vpop.f32.mrf.mxu1  ;;  %v7937_v6 = vmul.f32 0.35355338, %v7851_v28  ;;  %v7959_v26 = vsel %vm185_vm2, %v7943_v63, -inf  ;;  %v7956_v18 = vsel %vm185_vm2, %v7942_v39, -inf }
0x238c   :  { %v7936_v31 = vmul.f32 0.35355338, %v7775_v22  ;;  %v11877_v60 = vpop.f32.mrf.mxu0  ;;  %7960 = vmax.xlane.f32.xlu1 %v7959_v26  ;;  %7957 = vmax.xlane.f32.xlu0 %v7956_v18 }
0x238d   :  { %v7945_v51 = vadd.f32 %v7937_v6, %v13190_v53  ;;  %v11872_v16 = vpop.f32.mrf.mxu1 }
0x238e   :  { %v7944_v57 = vadd.f32 %v7936_v31, %v13190_v53 }
0x238f   :  { %v7927_v25 = vpop.f32.mrf.mxu1  ;;  %v7965_v14 = vsel %vm185_vm2, %v7945_v51, -inf }
0x2390   :  { %v7938_v9 = vmul.f32 0.35355338, %v7927_v25  ;;  %7966 = vmax.xlane.f32.xlu1 %v7965_v14  ;;  %v7962_v30 = vsel %vm185_vm2, %v7944_v57, -inf }
0x2391   :  { %7963 = vmax.xlane.f32.xlu0 %v7962_v30  ;;  %v11882_v10 = vpop.f32.mrf.mxu1 }
0x2392   :  { %v7946_v33 = vadd.f32 %v7938_v9, %v13190_v53 }
0x2394   :  { %v7968_v17 = vsel %vm185_vm2, %v7946_v33, -inf }
0x2395   :  { %7969 = vmax.xlane.f32.xlu0 %v7968_v17 }
0x23a1   :  { %8035 = vrot.lane.b32.xlu1 %v13683_v34, %s12376_s2 }
0x23a5   :  { %8187 = vrot.lane.b32.xlu1 %v13701_v11, %s12376_s2 }
0x23a6   :  { %v7949_v53 = vpop.xlane.xlu0 %7948 }
0x23a7   :  { %v7971_v23 = vsub.f32 %v7939_v42, %v7949_v53 }
0x23a9   :  { %8263 = vrot.lane.b32.xlu1 %v13711_v13, %s12376_s2  ;;  %v7979_v3 = vmul.f32 1.442695, %v7971_v23 }
0x23ab   :  { %8111 = vrot.lane.b32.xlu0 %v13703_v29, %s12376_s2  ;;  %12261 = vpow2.f32 %v7979_v3 }
0x23ad   :  { %8415 = vrot.lane.b32.xlu1 %v13717_v0, %s12376_s2 }
0x23af   :  { %8339 = vrot.lane.b32.xlu0 %v13689_v20, %s12376_s2 }
0x23b8   :  { %v13803_v34 = vpop.eup %12261 }
0x23b9   :  { %v7995_v11 = vsel %vm185_vm2, %v13803_v34, 0.0 }
0x23d1   :  { %7996 = vadd.xlane.f32.xlu1 %v7995_v11 }
0x2411   :  { %v7955_v13 = vpop.xlane.xlu0 %7954  ;;  %v7952_v36 = vpop.xlane.xlu1 %7951 }
0x2412   :  { %v7973_v40 = vsub.f32 %v7941_v44, %v7955_v13  ;;  %v7972_v29 = vsub.f32 %v7940_v43, %v7952_v36 }
0x2414   :  { %v7983_v61 = vmul.f32 1.442695, %v7973_v40  ;;  %v7981_v37 = vmul.f32 1.442695, %v7972_v29 }
0x2415   :  { %v7958_v0 = vpop.xlane.xlu0 %7957  ;;  %v7961_v15 = vpop.xlane.xlu1 %7960 }
0x2416   :  { %12263 = vpow2.f32 %v7983_v61  ;;  %v7974_v20 = vsub.f32 %v7942_v39, %v7958_v0  ;;  %v7975_v62 = vsub.f32 %v7943_v63, %v7961_v15 }
0x2417   :  { %12265 = vpow2.f32 %v7981_v37 }
0x2418   :  { %v7985_v42 = vmul.f32 1.442695, %v7974_v20  ;;  %v7987_v19 = vmul.f32 1.442695, %v7975_v62 }
0x2419   :  { %v7967_v27 = vpop.xlane.xlu1 %7966 }
0x241a   :  { %12267 = vpow2.f32 %v7985_v42  ;;  %v7964_v35 = vpop.xlane.xlu0 %7963  ;;  %v7977_v45 = vsub.f32 %v7945_v51, %v7967_v27 }
0x241b   :  { %12269 = vpow2.f32 %v7987_v19  ;;  %v7976_v49 = vsub.f32 %v7944_v57, %v7964_v35 }
0x241c   :  { %v7991_v54 = vmul.f32 1.442695, %v7977_v45 }
0x241d   :  { %v7989_v56 = vmul.f32 1.442695, %v7976_v49  ;;  %v8036_v44 = vpop.permute.xlu1 %8035 }
0x241e   :  { %12271 = vpow2.f32 %v7991_v54  ;;  %v7970_v43 = vpop.xlane.xlu0 %7969  ;;  %11884 = vmatpush3.msra.mxu0 %v8036_v44 }
0x241f   :  { %12273 = vpow2.f32 %v7989_v56  ;;  %v7978_v58 = vsub.f32 %v7946_v33, %v7970_v43  ;;  %11893 = vmatprep.subr.mxu0 %v12370_v12  ;;  %v7197_v43 = vld [vmem:[%s14206_s6 + $0x38] sm:$0xff] }
0x2421   :  { %v7993_v59 = vmul.f32 1.442695, %v7978_v58  ;;  %v8188_v14 = vpop.permute.xlu1 %8187  ;;  %v7196_v58 = vld [vmem:[%s14206_s6 + $0x30] sm:$0xff] }
0x2422   :  { %v8112_v55 = vpop.permute.xlu0 %8111 }
0x2423   :  { %v12264_v38 = vpop.eup %12263  ;;  %12275 = vpow2.f32 %v7993_v59  ;;  %11889 = vmatpush3.msra.mxu1 %v8112_v55  ;;  %v7195_v59 = vld [vmem:[%s14206_s6 + $0x28] sm:$0xff]  ;;  %v7194_v55 = vld [vmem:[%s14206_s6 + $0x20] sm:$0xff] }
0x2424   :  { %v12266_v39 = vpop.eup %12265  ;;  %v8001_v63 = vsel %vm185_vm2, %v12264_v38, 0.0  ;;  %11898 = vmatprep.subr.mxu1 %v12370_v12 }
0x2425   :  { %8002 = vadd.xlane.f32.xlu1 %v8001_v63  ;;  %v7998_v28 = vsel %vm185_vm2, %v12266_v39, 0.0  ;;  %v8264_v9 = vpop.permute.xlu1 %8263 }
0x2426   :  { %7999 = vadd.xlane.f32.xlu0 %v7998_v28  ;;  %v7205_v28 = vld [vmem:[%s14206_s6 + $0x78] sm:$0xff] }
0x2427   :  { %v12268_v22 = vpop.eup %12267 }
0x2428   :  { %v12270_v6 = vpop.eup %12269  ;;  %v8004_v26 = vsel %vm185_vm2, %v12268_v22, 0.0 }
0x2429   :  { %v8007_v18 = vsel %vm185_vm2, %v12270_v6, 0.0  ;;  %v8416_v30 = vpop.permute.xlu1 %8415 }
0x242a   :  { %8005 = vadd.xlane.f32.xlu0 %v8004_v26  ;;  %8008 = vadd.xlane.f32.xlu1 %v8007_v18 }
0x242b   :  { %v13813_v31 = vpop.eup %12271 }
0x242c   :  { %v12274_v60 = vpop.eup %12273  ;;  %v8013_v51 = vsel %vm185_vm2, %v13813_v31, 0.0 }
0x242d   :  { %v8010_v16 = vsel %vm185_vm2, %v12274_v60, 0.0 }
0x242e   :  { %8011 = vadd.xlane.f32.xlu0 %v8010_v16  ;;  %8014 = vadd.xlane.f32.xlu1 %v8013_v51 }
0x2430   :  { %v13818_v57 = vpop.eup %12275 }
0x2431   :  { %v8016_v25 = vsel %vm185_vm2, %v13818_v57, 0.0 }
0x2432   :  { %8017 = vadd.xlane.f32.xlu0 %v8016_v25 }
0x243f   :  { %8567 = vrot.lane.b32.xlu1 %v13727_v47, %s12376_s2  ;;  %v8340_v47 = vpop.permute.xlu0 %8339 }
0x2448   :  { %8491 = vrot.lane.b32.xlu0 %v13709_v4, %s12376_s2 }
0x245a   :  { %v7997_v10 = vpop.xlane.xlu1 %7996 }
0x245b   :  { %12277 = vrcp.f32 %v7997_v10 }
0x2468   :  { %v12278_v33 = vpop.eup %12277 }
0x2469   :  { %v8020_v17 = vmul.f32 %v12278_v33, %v13803_v34 }
0x246b   :  { %11886 = vmatmul.mubr.msk.f32.vlgmr.msra.gmra.mxu0 %vm185_vm2, %v8020_v17 }
0x246c   :  { %11894 = vmatpush3.msra.mxu0 %v8188_v14  ;;  %11895 = vmatprep.mubr.msk.f32.mxu0 %vm12373_vm1, %v12370_v12 }
0x246d   :  { %11903 = vmatprep.subr.mxu0 %v12370_v12 }
0x24ae   :  { %v8003_v53 = vpop.xlane.xlu1 %8002 }
0x24af   :  { %v8000_v23 = vpop.xlane.xlu0 %7999  ;;  %12279 = vrcp.f32 %v8003_v53 }
0x24b0   :  { %12281 = vrcp.f32 %v8000_v23 }
0x24b3   :  { %v8006_v4 = vpop.xlane.xlu0 %8005  ;;  %v8009_v3 = vpop.xlane.xlu1 %8008 }
0x24b4   :  { %12283 = vrcp.f32 %v8006_v4 }
0x24b5   :  { %12285 = vrcp.f32 %v8009_v3 }
0x24b7   :  { %v8012_v11 = vpop.xlane.xlu0 %8011  ;;  %v8015_v13 = vpop.xlane.xlu1 %8014 }
0x24b8   :  { %12287 = vrcp.f32 %v8012_v11 }
0x24b9   :  { %12289 = vrcp.f32 %v8015_v13 }
0x24bb   :  { %v8018_v34 = vpop.xlane.xlu0 %8017  ;;  %v8568_v45 = vpop.permute.xlu1 %8567 }
0x24bc   :  { %v12280_v36 = vpop.eup %12279  ;;  %12291 = vrcp.f32 %v8018_v34  ;;  %v7204_v34 = vld [vmem:[%s14206_s6 + $0x70] sm:$0xff] }
0x24bd   :  { %v12282_v40 = vpop.eup %12281  ;;  %v8024_v29 = vmul.f32 %v12280_v36, %v12264_v38  ;;  %v7203_v36 = vld [vmem:[%s14206_s6 + $0x68] sm:$0xff] }
0x24be   :  { %v8022_v61 = vmul.f32 %v12282_v40, %v12266_v39  ;;  %v7202_v40 = vld [vmem:[%s14206_s6 + $0x60] sm:$0xff] }
0x24bf   :  { %11896 = vmatmul.mubr.msk.f32.vlgmr.msra.gmra.mxu0 %vm185_vm2, %v8024_v29  ;;  %v8492_v42 = vpop.permute.xlu0 %8491 }
0x24c0   :  { %11891 = vmatmul.mubr.msk.f32.vlgmr.msra.gmra.mxu1 %vm185_vm2, %v8022_v61  ;;  %11904 = vmatpush3.msra.mxu0 %v8340_v47 }
0x24c1   :  { %v12284_v37 = vpop.eup %12283  ;;  %11899 = vmatpush3.msra.mxu1 %v8264_v9  ;;  %11900 = vmatprep.mubr.msk.f32.mxu1 %vm12373_vm1, %v12370_v12 }
0x24c2   :  { %v12286_v0 = vpop.eup %12285  ;;  %11905 = vmatprep.mubr.msk.f32.mxu0 %vm12373_vm1, %v12370_v12  ;;  %11908 = vmatprep.subr.mxu1 %v12370_v12  ;;  %v8026_v15 = vmul.f32 %v12284_v37, %v12268_v22 }
0x24c3   :  { %11913 = vmatprep.subr.mxu0 %v12370_v12  ;;  %v8028_v20 = vmul.f32 %v12286_v0, %v12270_v6 }
0x24c4   :  { %11901 = vmatmul.mubr.msk.f32.vlgmr.msra.gmra.mxu1 %vm185_vm2, %v8026_v15 }
0x24c5   :  { %v12288_v62 = vpop.eup %12287  ;;  %11906 = vmatmul.mubr.msk.f32.vlgmr.msra.gmra.mxu0 %vm185_vm2, %v8028_v20  ;;  %11909 = vmatpush3.msra.mxu1 %v8416_v30 }
0x24c6   :  { %v12290_v19 = vpop.eup %12289  ;;  %11914 = vmatpush3.msra.mxu0 %v8492_v42  ;;  %11910 = vmatprep.mubr.msk.f32.mxu1 %vm12373_vm1, %v12370_v12  ;;  %v8030_v27 = vmul.f32 %v12288_v62, %v12274_v60 }
0x24c7   :  { %11915 = vmatprep.mubr.msk.f32.mxu0 %vm12373_vm1, %v12370_v12  ;;  %11918 = vmatprep.subr.mxu1 %v12370_v12  ;;  %v8032_v35 = vmul.f32 %v12290_v19, %v13813_v31 }
0x24c8   :  { %11911 = vmatmul.mubr.msk.f32.vlgmr.msra.gmra.mxu1 %vm185_vm2, %v8030_v27  ;;  %11923 = vmatprep.subr.mxu0 %v7197_v43 }
0x24c9   :  { %v12292_v49 = vpop.eup %12291  ;;  %11916 = vmatmul.mubr.msk.f32.vlgmr.msra.gmra.mxu0 %vm185_vm2, %v8032_v35  ;;  %11919 = vmatpush3.msra.mxu1 %v8568_v45 }
0x24ca   :  { %11920 = vmatprep.mubr.msk.f32.mxu1 %vm12373_vm1, %v12370_v12  ;;  %v8034_v54 = vmul.f32 %v12292_v49, %v13818_v57  ;;  %11924 = vmatpush3.msra.mxu0 %v7197_v43 }
0x24cb   :  { %11925 = vmatprep.subr.mxu0 %v7196_v58 }
0x24cc   :  { %11921 = vmatmul.mubr.msk.f32.vlgmr.msra.gmra.mxu1 %vm185_vm2, %v8034_v54  ;;  %11926 = vmatpush3.msra.mxu0 %v7196_v58 }
0x24cd   :  { %11927 = vmatprep.subr.mxu0 %v7195_v59 }
0x24ce   :  { %11928 = vmatpush3.msra.mxu0 %v7195_v59 }
0x24cf   :  { %11929 = vmatprep.subr.mxu0 %v7194_v55 }
0x24d0   :  { %11930 = vmatpush3.msra.mxu0 %v7194_v55 }
0x24d1   :  { %11945 = vmatprep.subr.mxu0 %v7205_v28 }
0x252b   :  { %v8107_v56 = vpop.f32.mrf.mxu0 }
0x252d   :  { %v11887_v44 = vpop.f32.mrf.mxu0 }
0x257f   :  { %v8259_v38 = vpop.f32.mrf.mxu0 }
0x2580   :  { %v8183_v39 = vpop.f32.mrf.mxu1  ;;  %8648 = vrot.lane.b32.xlu1 %v8259_v38, %s12377_s17 }
0x2581   :  { %8644 = vrot.lane.b32.xlu0 %v8183_v39, %s12369_s9  ;;  %v11897_v63 = vpop.f32.mrf.mxu0 }
0x2582   :  { %v11892_v22 = vpop.f32.mrf.mxu1  ;;  %v7201_v63 = vld [vmem:[%s14206_s6 + $0x58] sm:$0xff] }
0x2583   :  { %11934 = vmatprep.subr.mxu1 %v7201_v63  ;;  %v7199_v22 = vld [vmem:[%s14206_s6 + $0x48] sm:$0xff] }
0x2584   :  { %v8335_v6 = vpop.f32.mrf.mxu1  ;;  %11935 = vmatpush3.msra.mxu1 %v7201_v63 }
0x2585   :  { %v8411_v26 = vpop.f32.mrf.mxu0  ;;  %8652 = vrot.lane.b32.xlu1 %v8335_v6, %s12378_s18  ;;  %v7198_v6 = vld [vmem:[%s14206_s6 + $0x40] sm:$0xff] }
0x2586   :  { %v11902_v18 = vpop.f32.mrf.mxu1 }
0x2587   :  { %v11907_v31 = vpop.f32.mrf.mxu0 }
0x2588   :  { %v8487_v60 = vpop.f32.mrf.mxu1 }
0x2589   :  { %v8563_v51 = vpop.f32.mrf.mxu0  ;;  %8659 = vrot.lane.b32.xlu0 %v8487_v60, %s12369_s9 }
0x258a   :  { %v11912_v16 = vpop.f32.mrf.mxu1 }
0x258b   :  { %v11917_v57 = vpop.f32.mrf.mxu0 }
0x258c   :  { %v8639_v25 = vpop.f32.mrf.mxu1  ;;  %v13943_v57 = vld [vmem:[%s14206_s6 + $0x108] sm:$0xff] }
0x258d   :  { %8663 = vrot.lane.b32.xlu0 %v8563_v51, %s12377_s17  ;;  %8667 = vrot.lane.b32.xlu1 %v8639_v25, %s12378_s18  ;;  %v8789_v25 = vrot.slane %v13679_v21, %v12780_v52 }
0x258e   :  { %v11922_v14 = vpop.f32.mrf.mxu1 }
0x25f2   :  { %v8649_v9 = vpop.permute.xlu1 %8648 }
0x25f3   :  { %v8645_v30 = vpop.permute.xlu0 %8644 }
0x25f4   :  { %v8655_v10 = vsel %vm185_vm2, %v8107_v56, %v8645_v30  ;;  %v8795_v30 = vrot.slane %v13943_v57, %v12459_v8  ;;  %v8801_v8 = vrot.slane %v13679_v21, %v12744_v1 }
0x25f5   :  { %v8656_v33 = vsel %vm1517_vm3, %v8655_v10, %v8649_v9 }
0x25f7   :  { %v8653_v17 = vpop.permute.xlu1 %8652 }
0x25f8   :  { %v8657_v47 = vsel %vm1519_vm4, %v8656_v33, %v8653_v17 }
0x25f9   :  { %11931 = vmatprep.mubr.msk.f32.mxu0 %vm87_vm0, %v8657_v47 }
0x25fb   :  { %v8660_v53 = vpop.permute.xlu0 %8659 }
0x25fc   :  { %v8670_v23 = vsel %vm185_vm2, %v8411_v26, %v8660_v53 }
0x25ff   :  { %v8664_v4 = vpop.permute.xlu0 %8663  ;;  %v8668_v3 = vpop.permute.xlu1 %8667 }
0x2600   :  { %v8671_v11 = vsel %vm1517_vm3, %v8670_v23, %v8664_v4 }
0x2601   :  { %v8672_v13 = vsel %vm1519_vm4, %v8671_v11, %v8668_v3 }
0x2602   :  { %11932 = vmatmul.mubr.msk.f32.vlgmr.msra.gmra.mxu0 %vm87_vm0, %v8672_v13 }
0x2603   :  { %11946 = vmatpush3.msra.mxu0 %v7205_v28  ;;  %11953 = vmatprep.mubr.msk.f32.mxu0 %vm87_vm0, %v13378_v2  ;;  %v8676_v2 = vrot.slane %v13679_v21, %v12579_v41  ;;  %v7200_v28 = vld [vmem:[%s14206_s6 + $0x50] sm:$0xff] }
0x2604   :  { %11947 = vmatprep.subr.mxu0 %v7204_v34  ;;  %11936 = vmatprep.subr.mxu1 %v7200_v28 }
0x2605   :  { %11948 = vmatpush3.msra.mxu0 %v7204_v34  ;;  %11937 = vmatpush3.msra.mxu1 %v7200_v28 }
0x2606   :  { %11949 = vmatprep.subr.mxu0 %v7203_v36  ;;  %11938 = vmatprep.subr.mxu1 %v7199_v22 }
0x2607   :  { %11950 = vmatpush3.msra.mxu0 %v7203_v36  ;;  %11939 = vmatpush3.msra.mxu1 %v7199_v22 }
0x2608   :  { %11951 = vmatprep.subr.mxu0 %v7202_v40  ;;  %11940 = vmatprep.subr.mxu1 %v7198_v6 }
0x2609   :  { %11952 = vmatpush3.msra.mxu0 %v7202_v40  ;;  %11941 = vmatpush3.msra.mxu1 %v7198_v6 }
0x260a   :  { %11954 = vmatmul.mubr.msk.f32.vlgmr.msra.gmra.mxu0 %vm87_vm0, %v13388_v32  ;;  %11966 = vmatprep.subr.mxu0 %v12370_v12  ;;  %v8886_v32 = vrot.slane %v13679_v21, %v12753_v24 }
0x260b   :  { %11968 = vmatprep.mubr.msk.f32.mxu0 %vm12373_vm1, %v12370_v12  ;;  %11956 = vmatprep.subr.mxu1 %v12370_v12 }
0x26c2   :  { %v11933_v29 = vpop.f32.mrf.mxu0 }
0x26c3   :  { %v8755_v61 = vadd.f32 %v11933_v29, %v8676_v2 }
0x26c4   :  { %v8749_v37 = vpop.f32.mrf.mxu0 }
0x26c5   :  { %v8759_v0 = vadd.f32 %v8755_v61, %v13668_v5  ;;  %v8750_v15 = vadd.f32 %v8749_v37, %v8676_v2 }
0x26c7   :  { %v8758_v20 = vadd.f32 %v8750_v15, %v13666_v7  ;;  %v8763_v62 = vsel %vm87_vm0, %v8759_v0, 0.0 }
0x26c8   :  { %8764 = vadd.xlane.f32.xlu1 %v8763_v62 }
0x26c9   :  { %v8760_v42 = vsel %vm87_vm0, %v8758_v20, 0.0 }
0x26ca   :  { %v11955_v19 = vpop.f32.mrf.mxu0  ;;  %8761 = vadd.xlane.f32.xlu0 %v8760_v42 }
0x26cb   :  { %v13906_v27 = vadd.f32 %v11955_v19, %v8886_v32 }
0x26cc   :  { %v8953_v35 = vpop.f32.mrf.mxu0 }
0x26cd   :  { %v13908_v45 = vadd.f32 %v8953_v35, %v8886_v32 }
0x26d9   :  { %8977 = vrot.lane.b32.xlu1 %v13908_v45, %s12372_s25 }
0x26dd   :  { %8979 = vrot.lane.b32.xlu1 %v13908_v45, %s12374_s26 }
0x26e1   :  { %8981 = vrot.lane.b32.xlu1 %v13908_v45, %s12371_s0 }
0x2751   :  { %v8765_v7 = vpop.xlane.xlu1 %8764 }
0x2752   :  { %v8767_v5 = vmul.f32 0.03125, %v8765_v7 }
0x2753   :  { %v8762_v49 = vpop.xlane.xlu0 %8761 }
0x2754   :  { %v8766_v54 = vmul.f32 0.03125, %v8762_v49  ;;  %v8769_v44 = vsub.f32 %v8759_v0, %v8767_v5 }
0x2755   :  { %v13916_v56 = vpop.permute.xlu1 %8977 }
0x2756   :  { %v8768_v43 = vsub.f32 %v8758_v20, %v8766_v54  ;;  %v8771_v38 = vmul.f32 %v8769_v44, %v8769_v44 }
0x2758   :  { %v8770_v58 = vmul.f32 %v8768_v43, %v8768_v43  ;;  %v8775_v39 = vsel %vm87_vm0, %v8771_v38, 0.0 }
0x2759   :  { %v13918_v59 = vpop.permute.xlu1 %8979 }
0x275a   :  { %11967 = vmatpush3.xpose.msk.msra.mxu0 %vm185_vm2, %v13918_v59  ;;  %v8772_v55 = vsel %vm87_vm0, %v8770_v58, 0.0 }
0x275b   :  { %8773 = vadd.xlane.f32.xlu0 %v8772_v55  ;;  %11976 = vmatprep.subr.mxu0 %v12370_v12 }
0x275d   :  { %v13980_v21 = vpop.permute.xlu1 %8981 }
0x275f   :  { %8776 = vadd.xlane.f32.xlu0 %v8775_v39 }
0x2775   :  { %8984 = vrot.lane.b32.xlu0 %v13906_v27, %s12372_s25 }
0x27e4   :  { %v8774_v26 = vpop.xlane.xlu0 %8773 }
0x27e5   :  { %v8778_v18 = vmul.f32 0.03125, %v8774_v26 }
0x27e7   :  { %v8780_v31 = vadd.f32 1e-05, %v8778_v18 }
0x27e8   :  { %v8777_v60 = vpop.xlane.xlu0 %8776 }
0x27e9   :  { %12293 = vrsqrt.f32 %v8780_v31  ;;  %v8779_v51 = vmul.f32 0.03125, %v8777_v60 }
0x27eb   :  { %v8781_v16 = vadd.f32 1e-05, %v8779_v51 }
0x27ec   :  { %v13982_v13 = vpop.permute.xlu0 %8984 }
0x27ed   :  { %12295 = vrsqrt.f32 %v8781_v16 }
0x27f6   :  { %v12294_v14 = vpop.eup %12293 }
0x27f7   :  { %v8784_v9 = vmul.f32 %v12294_v14, %v8768_v43 }
0x27f9   :  { %v8790_v10 = vmul.f32 %v8789_v25, %v8784_v9 }
0x27fa   :  { %v12296_v33 = vpop.eup %12295 }
0x27fb   :  { %v8785_v17 = vmul.f32 %v12296_v33, %v8769_v44  ;;  %v13949_v47 = vadd.f32 %v8795_v30, %v8790_v10 }
0x27fd   :  { %v8791_v53 = vmul.f32 %v8789_v25, %v8785_v17  ;;  %11942 = vmatprep.mubr.msk.f32.mxu1 %vm87_vm0, %v13949_v47 }
0x27ff   :  { %v13953_v23 = vadd.f32 %v8795_v30, %v8791_v53 }
0x2801   :  { %11943 = vmatmul.mubr.msk.f32.vlgmr.msra.gmra.mxu1 %vm87_vm0, %v13953_v23 }
0x2802   :  { %11957 = vmatpush3.xpose.msk.msra.mxu1 %vm185_vm2, %v13908_v45  ;;  %11958 = vmatprep.mubr.msk.f32.mxu1 %vm12373_vm1, %v12370_v12 }
0x2803   :  { %11961 = vmatprep.subr.mxu1 %v12370_v12 }
0x28c1   :  { %v11944_v52 = vpop.f32.mrf.mxu1 }
0x28c2   :  { %v8880_v4 = vadd.f32 %v11944_v52, %v8801_v8 }
0x28c3   :  { %v8874_v3 = vpop.f32.mrf.mxu1 }
0x28c4   :  { %v8875_v11 = vadd.f32 %v8874_v3, %v8801_v8  ;;  %8970 = vrot.lane.b32.xlu1 %v8880_v4, %s12372_s25 }
0x28c6   :  { %8963 = vrot.lane.b32.xlu0 %v8875_v11, %s12372_s25  ;;  %11959 = vmatmul.mubr.msk.f32.vlgmr.msra.gmra.mxu1 %vm185_vm2, %v8875_v11 }
0x28c7   :  { %11962 = vmatpush3.xpose.msk.msra.mxu1 %vm185_vm2, %v13916_v56  ;;  %11963 = vmatprep.mubr.msk.f32.mxu1 %vm12373_vm1, %v12370_v12 }
0x28c8   :  { %8967 = vrot.lane.b32.xlu1 %v8875_v11, %s12371_s0  ;;  %11971 = vmatprep.subr.mxu1 %v12370_v12 }
0x28ca   :  { %8965 = vrot.lane.b32.xlu0 %v8875_v11, %s12374_s26 }
0x28cc   :  { %8988 = vrot.lane.b32.xlu1 %v13906_v27, %s12371_s0 }
0x28ce   :  { %8986 = vrot.lane.b32.xlu0 %v13906_v27, %s12374_s26 }
0x28d0   :  { %8974 = vrot.lane.b32.xlu1 %v8880_v4, %s12371_s0 }
0x28d2   :  { %8972 = vrot.lane.b32.xlu0 %v8880_v4, %s12374_s26 }
0x2936   :  { %v8971_v34 = vpop.permute.xlu1 %8970 }
0x2938   :  { %v8964_v36 = vpop.permute.xlu0 %8963 }
0x2939   :  { %11964 = vmatmul.mubr.msk.f32.vlgmr.msra.gmra.mxu1 %vm185_vm2, %v8964_v36 }
0x293a   :  { %11972 = vmatpush3.xpose.msk.msra.mxu1 %vm185_vm2, %v13980_v21  ;;  %v8968_v40 = vpop.permute.xlu1 %8967  ;;  %11973 = vmatprep.mubr.msk.f32.mxu1 %vm12373_vm1, %v12370_v12 }
0x293b   :  { %11981 = vmatprep.subr.mxu1 %v12370_v12 }
0x293c   :  { %v8966_v2 = vpop.permute.xlu0 %8965 }
0x293d   :  { %11969 = vmatmul.mubr.msk.f32.vlgmr.msra.gmra.mxu0 %vm185_vm2, %v8966_v2  ;;  %11974 = vmatmul.mubr.msk.f32.vlgmr.msra.gmra.mxu1 %vm185_vm2, %v8968_v40 }
0x293e   :  { %11977 = vmatpush3.xpose.msk.msra.mxu0 %vm185_vm2, %v13906_v27  ;;  %11982 = vmatpush3.xpose.msk.msra.mxu1 %vm185_vm2, %v13982_v13  ;;  %v13996_v29 = vpop.permute.xlu1 %8988 }
0x293f   :  { %11978 = vmatprep.mubr.msk.f32.mxu0 %vm12373_vm1, %v12370_v12  ;;  %11983 = vmatprep.mubr.msk.f32.mxu1 %vm12373_vm1, %v12370_v12 }
0x2940   :  { %11986 = vmatprep.subr.mxu0 %v12370_v12  ;;  %11991 = vmatprep.subr.mxu1 %v12370_v12  ;;  %v14004_v61 = vpop.permute.xlu0 %8986 }
0x2941   :  { %11979 = vmatmul.mubr.msk.f32.vlgmr.msra.gmra.mxu0 %vm185_vm2, %v8880_v4  ;;  %11984 = vmatmul.mubr.msk.f32.vlgmr.msra.gmra.mxu1 %vm185_vm2, %v8971_v34 }
0x2942   :  { %11987 = vmatpush3.xpose.msk.msra.mxu0 %vm185_vm2, %v14004_v61  ;;  %11992 = vmatpush3.xpose.msk.msra.mxu1 %vm185_vm2, %v13996_v29  ;;  %v8975_v37 = vpop.permute.xlu1 %8974 }
0x2943   :  { %11988 = vmatprep.mubr.msk.f32.mxu0 %vm12373_vm1, %v12370_v12  ;;  %11993 = vmatprep.mubr.msk.f32.mxu1 %vm12373_vm1, %v12370_v12 }
0x2944   :  { %v8973_v0 = vpop.permute.xlu0 %8972  ;;  %11996 = vmatprep.subr.mxu0 %v12370_v12  ;;  %12001 = vmatprep.subr.mxu1 %v12370_v12 }
0x2945   :  { %11989 = vmatmul.mubr.msk.f32.vlgmr.msra.gmra.mxu0 %vm185_vm2, %v8973_v0  ;;  %11994 = vmatmul.mubr.msk.f32.vlgmr.msra.gmra.mxu1 %vm185_vm2, %v8975_v37 }
0x2946   :  { %11998 = vmatprep.mubr.msk.f32.mxu0 %vm12373_vm1, %v12370_v12  ;;  %12003 = vmatprep.mubr.msk.f32.mxu1 %vm12373_vm1, %v12370_v12 }
0x2986   :  { %v9060_v15 = vpop.f32.mrf.mxu1 }
0x2987   :  { %v9582_v20 = vmul.f32 0.35355338, %v9060_v15 }
0x2988   :  { %v11960_v62 = vpop.f32.mrf.mxu1 }
0x2989   :  { %v9590_v32 = vsel %vm185_vm2, %v9582_v20, -inf }
0x298a   :  { %9591 = vmax.xlane.f32.xlu0 %v9590_v32 }
0x29f9   :  { %v9134_v42 = vpop.f32.mrf.mxu1 }
0x29fa   :  { %v9583_v19 = vmul.f32 0.35355338, %v9134_v42 }
0x29fb   :  { %v11965_v35 = vpop.f32.mrf.mxu1 }
0x29fc   :  { %v9593_v7 = vsel %vm185_vm2, %v9583_v19, -inf }
0x29fd   :  { %9594 = vmax.xlane.f32.xlu1 %v9593_v7  ;;  %v9208_v5 = vpop.f32.mrf.mxu0  ;;  %v9282_v49 = vpop.f32.mrf.mxu1 }
0x29fe   :  { %v9584_v54 = vmul.f32 0.35355338, %v9208_v5  ;;  %v9585_v58 = vmul.f32 0.35355338, %v9282_v49 }
0x29ff   :  { %v11970_v44 = vpop.f32.mrf.mxu0  ;;  %v11975_v43 = vpop.f32.mrf.mxu1 }
0x2a00   :  { %v9596_v55 = vsel %vm185_vm2, %v9584_v54, -inf  ;;  %v9599_v26 = vsel %vm185_vm2, %v9585_v58, -inf }
0x2a01   :  { %v9430_v38 = vpop.f32.mrf.mxu1  ;;  %9597 = vmax.xlane.f32.xlu0 %v9596_v55  ;;  %v9356_v39 = vpop.f32.mrf.mxu0 }
0x2a02   :  { %v9586_v63 = vmul.f32 0.35355338, %v9356_v39  ;;  %v9587_v6 = vmul.f32 0.35355338, %v9430_v38 }
0x2a03   :  { %v11980_v28 = vpop.f32.mrf.mxu0  ;;  %v11985_v22 = vpop.f32.mrf.mxu1 }
0x2a04   :  { %v9602_v18 = vsel %vm185_vm2, %v9586_v63, -inf  ;;  %v9605_v9 = vsel %vm185_vm2, %v9587_v6, -inf }
0x2a05   :  { %v9578_v31 = vpop.f32.mrf.mxu1  ;;  %9600 = vmax.xlane.f32.xlu0 %v9599_v26  ;;  %9603 = vmax.xlane.f32.xlu1 %v9602_v18  ;;  %v9504_v60 = vpop.f32.mrf.mxu0 }
0x2a06   :  { %v9588_v51 = vmul.f32 0.35355338, %v9504_v60  ;;  %v9589_v14 = vmul.f32 0.35355338, %v9578_v31 }
0x2a07   :  { %v11990_v16 = vpop.f32.mrf.mxu0  ;;  %v11995_v25 = vpop.f32.mrf.mxu1 }
0x2a08   :  { %v9608_v30 = vsel %vm185_vm2, %v9588_v51, -inf  ;;  %v9611_v10 = vsel %vm185_vm2, %v9589_v14, -inf }
0x2a09   :  { %9606 = vmax.xlane.f32.xlu0 %v9605_v9  ;;  %9609 = vmax.xlane.f32.xlu1 %v9608_v30 }
0x2a0d   :  { %9612 = vmax.xlane.f32.xlu0 %v9611_v10 }
0x2a13   :  { %v9592_v33 = vpop.xlane.xlu0 %9591 }
0x2a14   :  { %v9614_v17 = vsub.f32 %v9582_v20, %v9592_v33 }
0x2a16   :  { %v9622_v53 = vmul.f32 1.442695, %v9614_v17 }
0x2a18   :  { %12297 = vpow2.f32 %v9622_v53 }
0x2a1a   :  { %9678 = vrot.lane.b32.xlu1 %v13908_v45, %s12375_s27 }
0x2a1e   :  { %9830 = vrot.lane.b32.xlu1 %v13918_v59, %s12375_s27 }
0x2a22   :  { %9906 = vrot.lane.b32.xlu1 %v13980_v21, %s12375_s27 }
0x2a23   :  { %9754 = vrot.lane.b32.xlu0 %v13916_v56, %s12375_s27 }
0x2a25   :  { %v14044_v45 = vpop.eup %12297 }
0x2a26   :  { %10058 = vrot.lane.b32.xlu1 %v13982_v13, %s12375_s27  ;;  %v9638_v59 = vsel %vm185_vm2, %v14044_v45, 0.0 }
0x2a27   :  { %9982 = vrot.lane.b32.xlu0 %v13906_v27, %s12375_s27 }
0x2a4a   :  { %9639 = vadd.xlane.f32.xlu1 %v9638_v59 }
0x2a86   :  { %v9595_v8 = vpop.xlane.xlu1 %9594 }
0x2a87   :  { %v9615_v52 = vsub.f32 %v9583_v19, %v9595_v8 }
0x2a89   :  { %v9624_v4 = vmul.f32 1.442695, %v9615_v52 }
0x2a8a   :  { %v9598_v56 = vpop.xlane.xlu0 %9597 }
0x2a8b   :  { %12299 = vpow2.f32 %v9624_v4  ;;  %v9616_v3 = vsub.f32 %v9584_v54, %v9598_v56 }
0x2a8d   :  { %v9626_v11 = vmul.f32 1.442695, %v9616_v3 }
0x2a8e   :  { %v9604_v21 = vpop.xlane.xlu1 %9603  ;;  %v9601_v13 = vpop.xlane.xlu0 %9600 }
0x2a8f   :  { %12301 = vpow2.f32 %v9626_v11  ;;  %v9618_v27 = vsub.f32 %v9586_v63, %v9604_v21  ;;  %v9617_v34 = vsub.f32 %v9585_v58, %v9601_v13 }
0x2a91   :  { %v9630_v36 = vmul.f32 1.442695, %v9618_v27  ;;  %v9628_v40 = vmul.f32 1.442695, %v9617_v34 }
0x2a92   :  { %v9610_v2 = vpop.xlane.xlu1 %9609  ;;  %v9607_v37 = vpop.xlane.xlu0 %9606 }
0x2a93   :  { %12303 = vpow2.f32 %v9630_v36  ;;  %v9620_v0 = vsub.f32 %v9588_v51, %v9610_v2  ;;  %v9619_v15 = vsub.f32 %v9587_v6, %v9607_v37 }
0x2a94   :  { %12305 = vpow2.f32 %v9628_v40 }
0x2a95   :  { %v9634_v20 = vmul.f32 1.442695, %v9620_v0  ;;  %v9632_v62 = vmul.f32 1.442695, %v9619_v15  ;;  %v7209_v15 = vld [vmem:[%s14206_s6 + $0x98] sm:$0xff] }
0x2a96   :  { %v9679_v32 = vpop.permute.xlu1 %9678  ;;  %v9613_v42 = vpop.xlane.xlu0 %9612 }
0x2a97   :  { %12307 = vpow2.f32 %v9634_v20  ;;  %v9621_v19 = vsub.f32 %v9589_v14, %v9613_v42  ;;  %11997 = vmatpush3.msra.mxu0 %v9679_v32 }
0x2a98   :  { %v12300_v35 = vpop.eup %12299  ;;  %12309 = vpow2.f32 %v9632_v62  ;;  %12006 = vmatprep.subr.mxu0 %v12370_v12  ;;  %v7208_v62 = vld [vmem:[%s14206_s6 + $0x90] sm:$0xff] }
0x2a99   :  { %v9636_v7 = vmul.f32 1.442695, %v9621_v19  ;;  %v9641_v5 = vsel %vm185_vm2, %v12300_v35, 0.0  ;;  %v7206_v19 = vld [vmem:[%s14206_s6 + $0x80] sm:$0xff] }
0x2a9a   :  { %9642 = vadd.xlane.f32.xlu0 %v9641_v5  ;;  %v9755_v49 = vpop.permute.xlu0 %9754  ;;  %v9831_v18 = vpop.permute.xlu1 %9830 }
0x2a9b   :  { %12311 = vpow2.f32 %v9636_v7  ;;  %12002 = vmatpush3.msra.mxu1 %v9755_v49 }
0x2a9c   :  { %v12302_v54 = vpop.eup %12301  ;;  %12011 = vmatprep.subr.mxu1 %v12370_v12 }
0x2a9d   :  { %v9644_v44 = vsel %vm185_vm2, %v12302_v54, 0.0 }
0x2a9e   :  { %9645 = vadd.xlane.f32.xlu1 %v9644_v44  ;;  %v9907_v31 = vpop.permute.xlu1 %9906 }
0x2aa0   :  { %v12304_v43 = vpop.eup %12303 }
0x2aa1   :  { %v12306_v58 = vpop.eup %12305  ;;  %v9650_v55 = vsel %vm185_vm2, %v12304_v43, 0.0 }
0x2aa2   :  { %9651 = vadd.xlane.f32.xlu1 %v9650_v55  ;;  %v9647_v38 = vsel %vm185_vm2, %v12306_v58, 0.0  ;;  %v10059_v60 = vpop.permute.xlu1 %10058 }
0x2aa3   :  { %9648 = vadd.xlane.f32.xlu0 %v9647_v38 }
0x2aa4   :  { %v12308_v39 = vpop.eup %12307 }
0x2aa5   :  { %v12310_v63 = vpop.eup %12309  ;;  %v9656_v28 = vsel %vm185_vm2, %v12308_v39, 0.0 }
0x2aa6   :  { %9657 = vadd.xlane.f32.xlu1 %v9656_v28  ;;  %v9653_v22 = vsel %vm185_vm2, %v12310_v63, 0.0 }
0x2aa7   :  { %9654 = vadd.xlane.f32.xlu0 %v9653_v22 }
0x2aa8   :  { %v14056_v6 = vpop.eup %12311 }
0x2aa9   :  { %v9659_v26 = vsel %vm185_vm2, %v14056_v6, 0.0 }
0x2aab   :  { %9660 = vadd.xlane.f32.xlu0 %v9659_v26 }
0x2ab7   :  { %10210 = vrot.lane.b32.xlu1 %v13996_v29, %s12375_s27  ;;  %v9983_v29 = vpop.permute.xlu0 %9982 }
0x2ac1   :  { %10134 = vrot.lane.b32.xlu0 %v14004_v61, %s12375_s27 }
0x2ad3   :  { %v9640_v51 = vpop.xlane.xlu1 %9639 }
0x2ad4   :  { %12313 = vrcp.f32 %v9640_v51 }
0x2ae1   :  { %v12314_v16 = vpop.eup %12313 }
0x2ae2   :  { %v9663_v25 = vmul.f32 %v12314_v16, %v14044_v45 }
0x2ae4   :  { %11999 = vmatmul.mubr.msk.f32.vlgmr.msra.gmra.mxu0 %vm185_vm2, %v9663_v25 }
0x2ae5   :  { %12007 = vmatpush3.msra.mxu0 %v9831_v18  ;;  %12008 = vmatprep.mubr.msk.f32.mxu0 %vm12373_vm1, %v12370_v12 }
0x2ae6   :  { %12016 = vmatprep.subr.mxu0 %v12370_v12 }
0x2b23   :  { %v9643_v14 = vpop.xlane.xlu0 %9642 }
0x2b24   :  { %12315 = vrcp.f32 %v9643_v14  ;;  %v14119_v14 = vld [vmem:[%s14206_s6 + $0x100] sm:$0xff] }
0x2b27   :  { %v9646_v61 = vpop.xlane.xlu1 %9645 }
0x2b28   :  { %12317 = vrcp.f32 %v9646_v61  ;;  %v10319_v61 = vrot.slane %v14119_v14, %v12719_v50 }
0x2b2b   :  { %v9652_v9 = vpop.xlane.xlu1 %9651 }
0x2b2c   :  { %12319 = vrcp.f32 %v9652_v9  ;;  %v9649_v30 = vpop.xlane.xlu0 %9648 }
0x2b2d   :  { %12321 = vrcp.f32 %v9649_v30 }
0x2b2f   :  { %v9658_v10 = vpop.xlane.xlu1 %9657 }
0x2b30   :  { %12323 = vrcp.f32 %v9658_v10  ;;  %v9655_v33 = vpop.xlane.xlu0 %9654 }
0x2b31   :  { %v12316_v17 = vpop.eup %12315  ;;  %12325 = vrcp.f32 %v9655_v33 }
0x2b32   :  { %v9665_v53 = vmul.f32 %v12316_v17, %v12300_v35 }
0x2b33   :  { %v10211_v36 = vpop.permute.xlu1 %10210 }
0x2b34   :  { %v9661_v45 = vpop.xlane.xlu0 %9660  ;;  %12004 = vmatmul.mubr.msk.f32.vlgmr.msra.gmra.mxu1 %vm185_vm2, %v9665_v53 }
0x2b35   :  { %v12318_v59 = vpop.eup %12317  ;;  %12327 = vrcp.f32 %v9661_v45  ;;  %12012 = vmatpush3.msra.mxu1 %v9907_v31  ;;  %12013 = vmatprep.mubr.msk.f32.mxu1 %vm12373_vm1, %v12370_v12 }
0x2b36   :  { %v9667_v8 = vmul.f32 %v12318_v59, %v12302_v54  ;;  %12021 = vmatprep.subr.mxu1 %v12370_v12 }
0x2b38   :  { %12009 = vmatmul.mubr.msk.f32.vlgmr.msra.gmra.mxu0 %vm185_vm2, %v9667_v8  ;;  %v10135_v11 = vpop.permute.xlu0 %10134 }
0x2b39   :  { %v12320_v52 = vpop.eup %12319  ;;  %12017 = vmatpush3.msra.mxu0 %v9983_v29  ;;  %12018 = vmatprep.mubr.msk.f32.mxu0 %vm12373_vm1, %v12370_v12 }
0x2b3a   :  { %v12322_v4 = vpop.eup %12321  ;;  %12026 = vmatprep.subr.mxu0 %v12370_v12  ;;  %v9671_v56 = vmul.f32 %v12320_v52, %v12304_v43 }
0x2b3b   :  { %v9669_v3 = vmul.f32 %v12322_v4, %v12306_v58 }
0x2b3c   :  { %12019 = vmatmul.mubr.msk.f32.vlgmr.msra.gmra.mxu0 %vm185_vm2, %v9671_v56 }
0x2b3d   :  { %v12324_v21 = vpop.eup %12323  ;;  %12014 = vmatmul.mubr.msk.f32.vlgmr.msra.gmra.mxu1 %vm185_vm2, %v9669_v3  ;;  %12027 = vmatpush3.msra.mxu0 %v10135_v11 }
0x2b3e   :  { %v12326_v13 = vpop.eup %12325  ;;  %12022 = vmatpush3.msra.mxu1 %v10059_v60  ;;  %12023 = vmatprep.mubr.msk.f32.mxu1 %vm12373_vm1, %v12370_v12  ;;  %v9675_v27 = vmul.f32 %v12324_v21, %v12308_v39 }
0x2b3f   :  { %v9673_v34 = vmul.f32 %v12326_v13, %v12310_v63  ;;  %12028 = vmatprep.mubr.msk.f32.mxu0 %vm12373_vm1, %v12370_v12  ;;  %12031 = vmatprep.subr.mxu1 %v12370_v12 }
0x2b40   :  { %12029 = vmatmul.mubr.msk.f32.vlgmr.msra.gmra.mxu0 %vm185_vm2, %v9675_v27  ;;  %12036 = vmatprep.subr.mxu0 %v7209_v15 }
0x2b41   :  { %12024 = vmatmul.mubr.msk.f32.vlgmr.msra.gmra.mxu1 %vm185_vm2, %v9673_v34  ;;  %12037 = vmatpush3.msra.mxu0 %v7209_v15  ;;  %v7212_v34 = vld [vmem:[%s14206_s6 + $0xb0] sm:$0xff]  ;;  %v7218_v15 = vld [vmem:[%s14206_s6 + $0xe0] sm:$0xff] }
0x2b42   :  { %v12328_v40 = vpop.eup %12327  ;;  %12032 = vmatpush3.msra.mxu1 %v10211_v36  ;;  %12033 = vmatprep.mubr.msk.f32.mxu1 %vm12373_vm1, %v12370_v12  ;;  %v7207_v12 = vld [vmem:[%s14206_s6 + $0x88] sm:$0xff] }
0x2b43   :  { %v9677_v2 = vmul.f32 %v12328_v40, %v14056_v6  ;;  %12038 = vmatprep.subr.mxu0 %v7208_v62  ;;  %v7211_v36 = vld [vmem:[%s14206_s6 + $0xa8] sm:$0xff]  ;;  %v7210_v40 = vld [vmem:[%s14206_s6 + $0xa0] sm:$0xff] }
0x2b44   :  { %12039 = vmatpush3.msra.mxu0 %v7208_v62 }
0x2b45   :  { %12034 = vmatmul.mubr.msk.f32.vlgmr.msra.gmra.mxu1 %vm185_vm2, %v9677_v2  ;;  %12040 = vmatprep.subr.mxu0 %v7207_v12  ;;  %v7221_v2 = vld [vmem:[%s14206_s6 + $0xf8] sm:$0xff] }
0x2b46   :  { %12041 = vmatpush3.msra.mxu0 %v7207_v12 }
0x2b47   :  { %12042 = vmatprep.subr.mxu0 %v7206_v19 }
0x2b48   :  { %12043 = vmatpush3.msra.mxu0 %v7206_v19 }
0x2b49   :  { %12058 = vmatprep.subr.mxu0 %v7221_v2 }
0x2ba4   :  { %v9750_v37 = vpop.f32.mrf.mxu0 }
0x2ba6   :  { %v12000_v0 = vpop.f32.mrf.mxu0 }
0x2ba7   :  { %v7219_v0 = vld [vmem:[%s14206_s6 + $0xe8] sm:$0xff] }
0x2bf4   :  { %v9826_v20 = vpop.f32.mrf.mxu1 }
0x2bf5   :  { %10287 = vrot.lane.b32.xlu0 %v9826_v20, %s12369_s9 }
0x2bf6   :  { %v12005_v32 = vpop.f32.mrf.mxu1 }
0x2bf8   :  { %v9902_v42 = vpop.f32.mrf.mxu0 }
0x2bf9   :  { %10291 = vrot.lane.b32.xlu1 %v9902_v42, %s12377_s17 }
0x2bfa   :  { %v12010_v35 = vpop.f32.mrf.mxu0 }
0x2bfb   :  { %v10432_v35 = vrot.slane %v13943_v57, %v12579_v41  ;;  %v7216_v41 = vld [vmem:[%s14206_s6 + $0xd0] sm:$0xff] }
0x2bfc   :  { %v10054_v7 = vpop.f32.mrf.mxu0 }
0x2bfd   :  { %v9978_v5 = vpop.f32.mrf.mxu1 }
0x2bfe   :  { %10295 = vrot.lane.b32.xlu1 %v9978_v5, %s12378_s18  ;;  %v12020_v49 = vpop.f32.mrf.mxu0 }
0x2bff   :  { %v12015_v54 = vpop.f32.mrf.mxu1  ;;  %v10438_v49 = vrot.slane %v13943_v57, %v12744_v1 }
0x2c00   :  { %v10206_v44 = vpop.f32.mrf.mxu0 }
0x2c01   :  { %v10130_v43 = vpop.f32.mrf.mxu1 }
0x2c02   :  { %10302 = vrot.lane.b32.xlu0 %v10130_v43, %s12369_s9  ;;  %v12030_v58 = vpop.f32.mrf.mxu0 }
0x2c03   :  { %v12025_v55 = vpop.f32.mrf.mxu1 }
0x2c05   :  { %v10282_v38 = vpop.f32.mrf.mxu1 }
0x2c06   :  { %10310 = vrot.lane.b32.xlu1 %v10282_v38, %s12378_s18  ;;  %10306 = vrot.lane.b32.xlu0 %v10206_v44, %s12377_s17 }
0x2c07   :  { %v12035_v39 = vpop.f32.mrf.mxu1 }
0x2c08   :  { %v7217_v39 = vld [vmem:[%s14206_s6 + $0xd8] sm:$0xff] }
0x2c67   :  { %v10288_v28 = vpop.permute.xlu0 %10287 }
0x2c68   :  { %v10298_v22 = vsel %vm185_vm2, %v9750_v37, %v10288_v28  ;;  %v7220_v37 = vld [vmem:[%s14206_s6 + $0xf0] sm:$0xff]  ;;  %v7214_v28 = vld [vmem:[%s14206_s6 + $0xc0] sm:$0xff] }
0x2c6b   :  { %v10292_v63 = vpop.permute.xlu1 %10291 }
0x2c6c   :  { %v10299_v6 = vsel %vm1517_vm3, %v10298_v22, %v10292_v63  ;;  %v7215_v63 = vld [vmem:[%s14206_s6 + $0xc8] sm:$0xff]  ;;  %v10444_v22 = vrot.slane %v14119_v14, %v12722_v46 }
0x2c70   :  { %v10296_v26 = vpop.permute.xlu1 %10295 }
0x2c71   :  { %v10300_v18 = vsel %vm1519_vm4, %v10299_v6, %v10296_v26 }
0x2c72   :  { %12044 = vmatprep.mubr.msk.f32.mxu0 %vm87_vm0, %v10300_v18 }
0x2c74   :  { %v10303_v31 = vpop.permute.xlu0 %10302 }
0x2c75   :  { %v10313_v60 = vsel %vm185_vm2, %v10054_v7, %v10303_v31 }
0x2c78   :  { %v10311_v51 = vpop.permute.xlu1 %10310  ;;  %v10307_v16 = vpop.permute.xlu0 %10306 }
0x2c79   :  { %v10314_v25 = vsel %vm1517_vm3, %v10313_v60, %v10307_v16  ;;  %v10531_v16 = vrot.slane %v14119_v14, %v12775_v48 }
0x2c7a   :  { %v10315_v29 = vsel %vm1519_vm4, %v10314_v25, %v10311_v51 }
0x2c7b   :  { %12045 = vmatmul.mubr.msk.f32.vlgmr.msra.gmra.mxu0 %vm87_vm0, %v10315_v29 }
0x2c7c   :  { %12059 = vmatpush3.msra.mxu0 %v7221_v2 }
0x2c7d   :  { %12060 = vmatprep.subr.mxu0 %v7220_v37 }
0x2c7e   :  { %12061 = vmatpush3.msra.mxu0 %v7220_v37 }
0x2c7f   :  { %12062 = vmatprep.subr.mxu0 %v7219_v0 }
0x2c80   :  { %12063 = vmatpush3.msra.mxu0 %v7219_v0 }
0x2c81   :  { %12064 = vmatprep.subr.mxu0 %v7218_v15 }
0x2c82   :  { %12065 = vmatpush3.msra.mxu0 %v7218_v15 }
0x2c83   :  { %12066 = vmatprep.subr.mxu0 %v7217_v39 }
0x2c84   :  { %12067 = vmatpush3.msra.mxu0 %v7217_v39  ;;  %v10691_v39 = vld [vmem:[#allocation2] sm:$0xff] }
0x2c85   :  { %12068 = vmatprep.subr.mxu0 %v7216_v41 }
0x2c86   :  { %12069 = vmatpush3.msra.mxu0 %v7216_v41 }
0x2c87   :  { %12070 = vmatprep.subr.mxu0 %v7215_v63 }
0x2c88   :  { %12071 = vmatpush3.msra.mxu0 %v7215_v63 }
0x2c89   :  { %12072 = vmatprep.subr.mxu0 %v7214_v28 }
0x2c8a   :  { %12073 = vmatpush3.msra.mxu0 %v7214_v28 }
0x2d3b   :  { %v12046_v9 = vpop.f32.mrf.mxu0 }
0x2d3c   :  { %v10398_v30 = vadd.f32 %v12046_v9, %v10319_v61 }
0x2d3d   :  { %v10392_v10 = vpop.f32.mrf.mxu0 }
0x2d3e   :  { %v10402_v33 = vadd.f32 %v10398_v30, %v13953_v23  ;;  %v10393_v17 = vadd.f32 %v10392_v10, %v10319_v61 }
0x2d40   :  { %v10401_v53 = vadd.f32 %v10393_v17, %v13949_v47  ;;  %v10406_v45 = vsel %vm87_vm0, %v10402_v33, 0.0  ;;  %v7213_v47 = vld [vmem:[%s14206_s6 + $0xb8] sm:$0xff] }
0x2d41   :  { %10407 = vadd.xlane.f32.xlu1 %v10406_v45  ;;  %12047 = vmatprep.subr.mxu1 %v7213_v47 }
0x2d42   :  { %v10403_v59 = vsel %vm87_vm0, %v10401_v53, 0.0  ;;  %12048 = vmatpush3.msra.mxu1 %v7213_v47  ;;  %v10644_v47 = vrot.slane %v13943_v57, %v12753_v24 }
0x2d43   :  { %10404 = vadd.xlane.f32.xlu0 %v10403_v59  ;;  %12049 = vmatprep.subr.mxu1 %v7212_v34 }
0x2d44   :  { %12050 = vmatpush3.msra.mxu1 %v7212_v34 }
0x2d45   :  { %12051 = vmatprep.subr.mxu1 %v7211_v36 }
0x2d46   :  { %12052 = vmatpush3.msra.mxu1 %v7211_v36 }
0x2d47   :  { %12053 = vmatprep.subr.mxu1 %v7210_v40 }
0x2d48   :  { %12054 = vmatpush3.msra.mxu1 %v7210_v40  ;;  %v10650_v40 = vrot.slane %v13943_v57, %v12719_v50 }
0x2dca   :  { %v10408_v8 = vpop.xlane.xlu1 %10407 }
0x2dcb   :  { %v10410_v52 = vmul.f32 0.03125, %v10408_v8 }
0x2dcc   :  { %v10405_v4 = vpop.xlane.xlu0 %10404 }
0x2dcd   :  { %v10409_v56 = vmul.f32 0.03125, %v10405_v4  ;;  %v10412_v3 = vsub.f32 %v10402_v33, %v10410_v52 }
0x2dcf   :  { %v10411_v11 = vsub.f32 %v10401_v53, %v10409_v56  ;;  %v10414_v27 = vmul.f32 %v10412_v3, %v10412_v3 }
0x2dd1   :  { %v10413_v21 = vmul.f32 %v10411_v11, %v10411_v11  ;;  %v10418_v23 = vsel %vm87_vm0, %v10414_v27, 0.0 }
0x2dd3   :  { %v10415_v13 = vsel %vm87_vm0, %v10413_v21, 0.0 }
0x2dd4   :  { %10416 = vadd.xlane.f32.xlu0 %v10415_v13 }
0x2dd8   :  { %10419 = vadd.xlane.f32.xlu0 %v10418_v23 }
0x2e5d   :  { %v10417_v20 = vpop.xlane.xlu0 %10416 }
0x2e5e   :  { %v10421_v62 = vmul.f32 0.03125, %v10417_v20 }
0x2e60   :  { %v10423_v12 = vadd.f32 1e-05, %v10421_v62 }
0x2e61   :  { %v10420_v32 = vpop.xlane.xlu0 %10419 }
0x2e62   :  { %12329 = vrsqrt.f32 %v10423_v12  ;;  %v10422_v42 = vmul.f32 0.03125, %v10420_v32 }
0x2e64   :  { %v10424_v19 = vadd.f32 1e-05, %v10422_v42 }
0x2e66   :  { %12331 = vrsqrt.f32 %v10424_v19 }
0x2e6f   :  { %v12330_v7 = vpop.eup %12329 }
0x2e70   :  { %v10427_v5 = vmul.f32 %v12330_v7, %v10411_v11 }
0x2e72   :  { %v10433_v54 = vmul.f32 %v10432_v35, %v10427_v5 }
0x2e73   :  { %v12332_v44 = vpop.eup %12331 }
0x2e74   :  { %v10428_v43 = vmul.f32 %v12332_v44, %v10412_v3  ;;  %v10439_v58 = vadd.f32 %v10438_v49, %v10433_v54 }
0x2e76   :  { %v10434_v55 = vmul.f32 %v10432_v35, %v10428_v43  ;;  %12055 = vmatprep.mubr.msk.f32.mxu1 %vm87_vm0, %v10439_v58 }
0x2e78   :  { %v10440_v38 = vadd.f32 %v10438_v49, %v10434_v55  ;;  %v10693_v55 = vld [vmem:[#allocation2 + $0x10] sm:$0xff] }
0x2e7a   :  { %12056 = vmatmul.mubr.msk.f32.vlgmr.msra.gmra.mxu1 %vm87_vm0, %v10440_v38 }
0x2f3a   :  { %v12057_v6 = vpop.f32.mrf.mxu1 }
0x2f3b   :  { %v10523_v26 = vadd.f32 %v12057_v6, %v10444_v22 }
0x2f3c   :  { %v10517_v18 = vpop.f32.mrf.mxu1 }
0x2f3d   :  { %v10518_v31 = vadd.f32 %v10517_v18, %v10444_v22  ;;  %v10527_v51 = vmax.f32 %v10523_v26, 0.0 }
0x2f3f   :  { %v10526_v60 = vmax.f32 %v10518_v31, 0.0  ;;  %v12344_v31 = vld [vmem:[#allocation2 + $0x20] sm:$0xff] }
0x2f41   :  { %12074 = vmatprep.mubr.msk.f32.mxu0 %vm1753_vm5, %v10526_v60  ;;  %v10682_v60 = vrot.slane %v12344_v31, %v12744_v1 }
0x2f42   :  { %12075 = vmatmul.mubr.msk.f32.vlgmr.msra.gmra.mxu0 %vm1753_vm5, %v10527_v51 }
0x3002   :  { %v12076_v25 = vpop.f32.mrf.mxu0 }
0x3003   :  { %v10610_v29 = vadd.f32 %v12076_v25, %v10531_v16 }
0x3004   :  { %v10604_v61 = vpop.f32.mrf.mxu0 }
0x3005   :  { %v10614_v9 = vadd.f32 %v10610_v29, %v10440_v38  ;;  %v10605_v30 = vadd.f32 %v10604_v61, %v10531_v16  ;;  %v10692_v38 = vld [vmem:[#allocation2 + $0x8] sm:$0xff]  ;;  %v10688_v61 = vrot.slane %v12344_v31, %v12753_v24 }
0x3007   :  { %v10613_v10 = vadd.f32 %v10605_v30, %v10439_v58  ;;  %v10618_v46 = vsel %vm87_vm0, %v10614_v9, 0.0  ;;  %v10694_v58 = vld [vmem:[#allocation2 + $0x18] sm:$0xff] }
0x3008   :  { %10619 = vadd.xlane.f32.xlu0 %v10618_v46  ;;  %12077 = vmatprep.subr.mxu1 %v10694_v58  ;;  %v10698_v46 = vrot.slane %v12344_v31, %v12719_v50 }
0x3009   :  { %v10615_v33 = vsel %vm87_vm0, %v10613_v10, 0.0  ;;  %12078 = vmatpush3.msra.mxu1 %v10694_v58 }
0x300a   :  { %10616 = vadd.xlane.f32.xlu1 %v10615_v33  ;;  %12079 = vmatprep.subr.mxu1 %v10693_v55 }
0x300b   :  { %12080 = vmatpush3.msra.mxu1 %v10693_v55 }
0x300c   :  { %12081 = vmatprep.subr.mxu1 %v10692_v38 }
0x300d   :  { %12082 = vmatpush3.msra.mxu1 %v10692_v38 }
0x300e   :  { %12083 = vmatprep.subr.mxu1 %v10691_v39 }
0x300f   :  { %12084 = vmatpush3.msra.mxu1 %v10691_v39 }
0x3091   :  { %v10620_v17 = vpop.xlane.xlu0 %10619 }
0x3092   :  { %v10622_v53 = vmul.f32 0.03125, %v10620_v17 }
0x3093   :  { %v10617_v45 = vpop.xlane.xlu1 %10616 }
0x3094   :  { %v10624_v59 = vsub.f32 %v10614_v9, %v10622_v53  ;;  %v10621_v8 = vmul.f32 0.03125, %v10617_v45 }
0x3096   :  { %v10623_v52 = vsub.f32 %v10613_v10, %v10621_v8  ;;  %v10626_v4 = vmul.f32 %v10624_v59, %v10624_v59 }
0x3098   :  { %v10630_v48 = vsel %vm87_vm0, %v10626_v4, 0.0  ;;  %v10625_v14 = vmul.f32 %v10623_v52, %v10623_v52 }
0x3099   :  { %10631 = vadd.xlane.f32.xlu0 %v10630_v48 }
0x309a   :  { %v10627_v56 = vsel %vm87_vm0, %v10625_v14, 0.0 }
0x309b   :  { %10628 = vadd.xlane.f32.xlu1 %v10627_v56 }
0x3122   :  { %v10632_v3 = vpop.xlane.xlu0 %10631 }
0x3123   :  { %v10634_v11 = vmul.f32 0.03125, %v10632_v3 }
0x3124   :  { %v10629_v21 = vpop.xlane.xlu1 %10628 }
0x3125   :  { %v10636_v13 = vadd.f32 1e-05, %v10634_v11  ;;  %v10633_v27 = vmul.f32 0.03125, %v10629_v21 }
0x3127   :  { %12333 = vrsqrt.f32 %v10636_v13  ;;  %v10635_v23 = vadd.f32 1e-05, %v10633_v27 }
0x3129   :  { %12335 = vrsqrt.f32 %v10635_v23 }
0x3134   :  { %v12334_v34 = vpop.eup %12333 }
0x3135   :  { %v10640_v36 = vmul.f32 %v12334_v34, %v10624_v59 }
0x3136   :  { %v12336_v2 = vpop.eup %12335 }
0x3137   :  { %v10646_v37 = vmul.f32 %v10644_v47, %v10640_v36  ;;  %v10639_v0 = vmul.f32 %v12336_v2, %v10623_v52 }
0x3139   :  { %v10652_v15 = vadd.f32 %v10650_v40, %v10646_v37  ;;  %v10645_v20 = vmul.f32 %v10644_v47, %v10639_v0 }
0x313b   :  { %v10656_v62 = vsel %vm87_vm0, %v10652_v15, 0.0  ;;  %v10651_v12 = vadd.f32 %v10650_v40, %v10645_v20 }
0x313c   :  { %10657 = vadd.xlane.f32.xlu0 %v10656_v62 }
0x313d   :  { %v10653_v32 = vsel %vm87_vm0, %v10651_v12, 0.0 }
0x313e   :  { %10654 = vadd.xlane.f32.xlu1 %v10653_v32 }
0x31c5   :  { %v10658_v42 = vpop.xlane.xlu0 %10657 }
0x31c6   :  { %v10660_v19 = vmul.f32 0.03125, %v10658_v42 }
0x31c7   :  { %v10655_v35 = vpop.xlane.xlu1 %10654 }
0x31c8   :  { %v10662_v7 = vsub.f32 %v10652_v15, %v10660_v19  ;;  %v10659_v5 = vmul.f32 0.03125, %v10655_v35 }
0x31ca   :  { %v10661_v49 = vsub.f32 %v10651_v12, %v10659_v5  ;;  %v10664_v54 = vmul.f32 %v10662_v7, %v10662_v7 }
0x31cc   :  { %v10668_v57 = vsel %vm87_vm0, %v10664_v54, 0.0  ;;  %v10663_v44 = vmul.f32 %v10661_v49, %v10661_v49 }
0x31cd   :  { %10669 = vadd.xlane.f32.xlu0 %v10668_v57 }
0x31ce   :  { %v10665_v43 = vsel %vm87_vm0, %v10663_v44, 0.0 }
0x31cf   :  { %10666 = vadd.xlane.f32.xlu1 %v10665_v43 }
0x3256   :  { %v10670_v41 = vpop.xlane.xlu0 %10669 }
0x3257   :  { %v10672_v63 = vmul.f32 0.03125, %v10670_v41 }
0x3258   :  { %v10667_v28 = vpop.xlane.xlu1 %10666 }
0x3259   :  { %v10674_v22 = vadd.f32 1e-05, %v10672_v63  ;;  %v10671_v6 = vmul.f32 0.03125, %v10667_v28 }
0x325b   :  { %12337 = vrsqrt.f32 %v10674_v22  ;;  %v10673_v26 = vadd.f32 1e-05, %v10671_v6 }
0x325d   :  { %12339 = vrsqrt.f32 %v10673_v26 }
0x3268   :  { %v12338_v18 = vpop.eup %12337 }
0x3269   :  { %v10678_v51 = vmul.f32 %v12338_v18, %v10662_v7 }
0x326a   :  { %v12340_v16 = vpop.eup %12339 }
0x326b   :  { %v10677_v25 = vmul.f32 %v12340_v16, %v10661_v49  ;;  %v10684_v29 = vmul.f32 %v10682_v60, %v10678_v51 }
0x326d   :  { %v10683_v9 = vmul.f32 %v10682_v60, %v10677_v25  ;;  %v10690_v10 = vadd.f32 %v10688_v61, %v10684_v29 }
0x326f   :  { %v10689_v30 = vadd.f32 %v10688_v61, %v10683_v9 }
0x3271   :  { %12085 = vmatprep.mubr.msk.f32.mxu1 %vm87_vm0, %v10689_v30 }
0x3272   :  { %12086 = vmatmul.mubr.msk.f32.vlgmr.msra.gmra.mxu1 %vm87_vm0, %v10690_v10 }
0x3332   :  { %v12087_v33 = vpop.f32.mrf.mxu1 }
0x3333   :  { %v10777_v17 = vadd.f32 %v12087_v33, %v10698_v46 }
0x3334   :  { %v10771_v53 = vpop.f32.mrf.mxu1 }
0x3335   :  { %10781 = vst [vmem:[%s14208_s8 + $0x8] sm:$0xff] %v10777_v17  ;;  %v10772_v1 = vadd.f32 %v10771_v53, %v10698_v46 }
0x3337   :  { %10780 = vst [vmem:[%s14208_s8] sm:$0xff] %v10772_v1 }
0x3338   :  { %10786 = vsyncpa [#allocation3], 1 }

</bundles_post_ra>
